<compile_context>
chip_gen: v7x
topology: tpu7x:2x2x1
jax: 0.10.0
libtpu: 0.0.40
codegen_flags: <defaults>
</compile_context>

<pallas_src>
import functools

import jax
import jax.numpy as jnp
from jax.experimental import pallas as pl
from jax.experimental.pallas import tpu as pltpu

LANES = 128          # padded channel width carried through the whole network
NEG_SLOPE = 0.2
BN_EPS = 1e-5


# ----------------------------- Pallas kernels ------------------------------

def _matmul_bias_act_kernel(a_ref, w_ref, b_ref, o_ref, *, act):
    """(tile_m, K) @ (K, 128) + bias, fused activation (leaky / sigmoid)."""
    acc = jnp.dot(a_ref[...], w_ref[...], preferred_element_type=jnp.float32)
    acc = acc + b_ref[...]
    if act == "leaky":
        acc = jnp.where(acc >= 0, acc, NEG_SLOPE * acc)
    elif act == "sigmoid":
        acc = 1.0 / (1.0 + jnp.exp(-acc))
    o_ref[...] = acc.astype(o_ref.dtype)


def _matmul_bn_leaky_kernel(a_ref, w_ref, g_ref, b_ref, o_ref):
    """Conv-as-matmul fused with BatchNorm (batch stats, biased var) + LeakyReLU."""
    acc = jnp.dot(a_ref[...], w_ref[...], preferred_element_type=jnp.float32)
    inv_m = 1.0 / acc.shape[0]
    mean = jnp.sum(acc, axis=0, keepdims=True) * inv_m
    centered = acc - mean
    var = jnp.sum(centered * centered, axis=0, keepdims=True) * inv_m
    y = centered * jax.lax.rsqrt(var + BN_EPS) * g_ref[...] + b_ref[...]
    o_ref[...] = jnp.where(y >= 0, y, NEG_SLOPE * y).astype(o_ref.dtype)


# --------------------------- Pallas call wrappers ---------------------------

def _pick_tile_m(m, cap=512):
    for cand in (512, 256, 128, 64, 32, 16, 8):
        if cand <= cap and m % cand == 0:
            return cand
    return m


def matmul_bias_act(a, w2, bias, act, out_dtype):
    """(M,K)@(K,128)+bias with fused activation. M tiled with a parallel grid."""
    m, k = a.shape
    n = w2.shape[1]
    tile_m = _pick_tile_m(m)
    return pl.pallas_call(
        functools.partial(_matmul_bias_act_kernel, act=act),
        out_shape=jax.ShapeDtypeStruct((m, n), out_dtype),
        grid=(m // tile_m,),
        in_specs=[
            pl.BlockSpec((tile_m, k), lambda i: (i, 0)),
            pl.BlockSpec((k, n), lambda i: (0, 0)),
            pl.BlockSpec((1, n), lambda i: (0, 0)),
        ],
        out_specs=pl.BlockSpec((tile_m, n), lambda i: (i, 0)),
        compiler_params=pltpu.CompilerParams(dimension_semantics=("parallel",)),
    )(a, w2, bias)


def matmul_bn_leaky(a, w2, gamma, beta, out_dtype):
    """Conv matmul fused with BatchNorm+LeakyReLU. Full-M single block (stats)."""
    # TODO(synk): for large batches, switch to a two-pass grid reduction of
    # per-tile sum/sumsq so BN-fused layers can also be M-tiled.
    m, k = a.shape
    n = w2.shape[1]
    return pl.pallas_call(
        _matmul_bn_leaky_kernel,
        out_shape=jax.ShapeDtypeStruct((m, n), out_dtype),
        grid=(1,),
        in_specs=[
            pl.BlockSpec((m, k), lambda i: (0, 0)),
            pl.BlockSpec((k, n), lambda i: (0, 0)),
            pl.BlockSpec((1, n), lambda i: (0, 0)),
            pl.BlockSpec((1, n), lambda i: (0, 0)),
        ],
        out_specs=pl.BlockSpec((m, n), lambda i: (0, 0)),
        compiler_params=pltpu.CompilerParams(dimension_semantics=("arbitrary",)),
    )(a, w2, gamma, beta)


# ------------------------------ Conv plumbing -------------------------------

def extract_patches(x_nhwc, ksize, stride, padding):
    """im2col via one XLA op: (N,H,W,C) -> (N*Ho*Wo, C*k*k), cols ordered (c,ki,kj)."""
    # TODO(synk): patch extraction stays as XLA glue (identity-kernel grouped
    # conv); an in-kernel VMEM gather would remove this HBM materialization.
    n = x_nhwc.shape[0]
    patches = jax.lax.conv_general_dilated_patches(
        x_nhwc,
        filter_shape=(ksize, ksize),
        window_strides=(stride, stride),
        padding=((padding, padding), (padding, padding)),
        dimension_numbers=("NHWC", "HWIO", "NHWC"),
    )
    _, ho, wo, kdim = patches.shape
    return patches.reshape(n * ho * wo, kdim), (n, ho, wo)


# ------------------------------- Parameters ---------------------------------

def init_raw_params(key, input_size, feature_dim):
    """Random parameters in PyTorch layout (Cout, Cin, kh, kw)."""
    fd = feature_dim
    ks = jax.random.split(key, 13)
    p = {}
    p["w1"] = 0.05 * jax.random.normal(ks[0], (fd, input_size, 4, 4), jnp.float32)
    p["b1"] = 0.05 * jax.random.normal(ks[1], (fd,), jnp.float32)
    chans = [(fd, 2 * fd), (2 * fd, 4 * fd), (4 * fd, 8 * fd)]
    for i, (cin, cout) in enumerate(chans):
        p[f"w_b{i}"] = 0.05 * jax.random.normal(ks[2 + 3 * i], (cout, cin, 4, 4),
                                                jnp.float32)
        p[f"gamma_b{i}"] = 1.0 + 0.1 * jax.random.normal(ks[3 + 3 * i], (cout,),
                                                         jnp.float32)
        p[f"beta_b{i}"] = 0.1 * jax.random.normal(ks[4 + 3 * i], (cout,),
                                                  jnp.float32)
    p["w5"] = 0.05 * jax.random.normal(ks[11], (1, 8 * fd, 4, 4), jnp.float32)
    p["b5"] = 0.05 * jax.random.normal(ks[12], (1,), jnp.float32)
    return p


def _pack_weight(w, cin_pad, cout_pad):
    """(Cout,Cin,kh,kw) -> bf16 (cin_pad*kh*kw, cout_pad), rows ordered (c,ki,kj)."""
    cout, cin, kh, kw = w.shape
    wt = jnp.transpose(w, (1, 2, 3, 0))                        # (Cin, kh, kw, Cout)
    wt = jnp.pad(wt, ((0, cin_pad - cin), (0, 0), (0, 0), (0, cout_pad - cout)))
    return wt.reshape(cin_pad * kh * kw, cout_pad).astype(jnp.bfloat16)


def _pack_vec(v, n_pad):
    return jnp.pad(v.astype(jnp.float32), (0, n_pad - v.shape[0])).reshape(1, n_pad)


def prepare_params(raw, input_size):
    """Hoist all weight reshape / pad / cast work out of the forward pass."""
    cin1 = -(-input_size // 8) * 8   # pad first-layer Cin so K = cin1*16 is 128-aligned
    p = {
        "w1": _pack_weight(raw["w1"], cin1, LANES),
        "b1": _pack_vec(raw["b1"], LANES),
        "w5": _pack_weight(raw["w5"], LANES, LANES),
        "b5": _pack_vec(raw["b5"], LANES),
    }
    for i in range(3):
        p[f"w_b{i}"] = _pack_weight(raw[f"w_b{i}"], LANES, LANES)
        p[f"gamma_b{i}"] = _pack_vec(raw[f"gamma_b{i}"], LANES)   # padded lanes = 0
        p[f"beta_b{i}"] = _pack_vec(raw[f"beta_b{i}"], LANES)
    return p


# ----------------------------- Discriminator --------------------------------

def discriminator_forward(x, params, input_size):
    # NCHW -> NHWC once, pad channels to an 8-multiple, cast once to bf16.
    cin1 = -(-input_size // 8) * 8
    xh = jnp.transpose(x, (0, 2, 3, 1)).astype(jnp.bfloat16)
    xh = jnp.pad(xh, ((0, 0), (0, 0), (0, 0), (0, cin1 - x.shape[1])))

    # Conv(3->fd, k4 s2 p1) + bias + LeakyReLU
    patches, (n, h, w) = extract_patches(xh, 4, 2, 1)
    slab = matmul_bias_act(patches, params["w1"], params["b1"],
                           act="leaky", out_dtype=jnp.bfloat16)

    # Three fully-fused Conv -> BatchNorm -> LeakyReLU blocks
    for i in range(3):
        patches, (n, h, w) = extract_patches(slab.reshape(n, h, w, LANES), 4, 2, 1)
        slab = matmul_bn_leaky(patches, params[f"w_b{i}"],
                               params[f"gamma_b{i}"], params[f"beta_b{i}"],
                               out_dtype=jnp.bfloat16)

    # Final Conv(8fd->1, k4 s2 p0) + bias + Sigmoid
    patches, (n, h, w) = extract_patches(slab.reshape(n, h, w, LANES), 4, 2, 0)
    out = matmul_bias_act(patches, params["w5"], params["b5"],
                          act="sigmoid", out_dtype=jnp.float32)
    return out[:, :1].reshape(n, h, w, 1).transpose(0, 3, 1, 2)   # NCHW (N,1,1,1)


if __name__ == "__main__":
    input_size = 3     # image channels
    feature_dim = 8
    key = jax.random.PRNGKey(0)
    k_x, k_p = jax.random.split(key)
    # 64x64 is the smallest spatial size the final k4/s2/p0 conv supports.
    x = jax.random.normal(k_x, (2, input_size, 64, 64), jnp.float32)
    params = prepare_params(init_raw_params(k_p, input_size, feature_dim),
                            input_size)

    fwd = jax.jit(functools.partial(discriminator_forward, input_size=input_size))
    out = fwd(x, params)
    jax.block_until_ready(out)
    assert out.shape == (2, 1, 1, 1)
    assert bool(jnp.all((out >= 0.0) & (out <= 1.0)))
    print("KERNEL_OK")
</pallas_src>

<mosaic_0001>
module attributes {stable_mosaic.version = 11 : i64} {
  func.func @_matmul_bias_act_kernel(%arg0: i32, %arg1: memref<512x128xbf16, #tpu.memory_space<vmem>>, %arg2: memref<128x128xbf16, #tpu.memory_space<vmem>>, %arg3: memref<1x128xf32, #tpu.memory_space<vmem>>, %arg4: memref<512x128xbf16, #tpu.memory_space<vmem>>) attributes {dimension_semantics = [#tpu.dimension_semantics<parallel>], iteration_bounds = array<i64: 4>, scalar_prefetch = 0 : i64, scratch_operands = 0 : i64, tpu.core_type = #tpu.core_type<tc>, window_params = [{transform_indices = @transform_0, window_bounds = array<i64: 512, 128>}, {pipeline_mode = #tpu.pipeline_mode<synchronous>, transform_indices = @transform_1, window_bounds = array<i64: 128, 128>}, {pipeline_mode = #tpu.pipeline_mode<synchronous>, transform_indices = @transform_2, window_bounds = array<i64: 1, 128>}, {transform_indices = @transform_3, window_bounds = array<i64: 512, 128>}]} {
    %c0 = arith.constant 0 : index
    %c0_0 = arith.constant 0 : index
    %0 = vector.load %arg1[%c0, %c0_0] : memref<512x128xbf16, #tpu.memory_space<vmem>>, vector<512x128xbf16>
    %c0_1 = arith.constant 0 : index
    %c0_2 = arith.constant 0 : index
    %1 = vector.load %arg2[%c0_1, %c0_2] : memref<128x128xbf16, #tpu.memory_space<vmem>>, vector<128x128xbf16>
    %cst = arith.constant dense<0.000000e+00> : vector<512x128xf32>
    %2 = tpu.matmul %0, %1, %cst {dimension_numbers = #tpu.dot_dimension_numbers<[1], [0], [0], [1], [0, 0, 1, 1], [], []>} : vector<512x128xbf16>, vector<128x128xbf16>, vector<512x128xf32> -> vector<512x128xf32>
    %c0_3 = arith.constant 0 : index
    %c0_4 = arith.constant 0 : index
    %3 = vector.load %arg3[%c0_3, %c0_4] : memref<1x128xf32, #tpu.memory_space<vmem>>, vector<1x128xf32>
    %4 = vector.broadcast %3 : vector<1x128xf32> to vector<512x128xf32>
    %5 = arith.addf %2, %4 : vector<512x128xf32>
    %cst_5 = arith.constant 0.000000e+00 : f32
    %6 = vector.broadcast %cst_5 : f32 to vector<512x128xf32>
    %7 = arith.cmpf oge, %5, %6 : vector<512x128xf32>
    %cst_6 = arith.constant 2.000000e-01 : f32
    %8 = vector.broadcast %cst_6 : f32 to vector<512x128xf32>
    %9 = arith.mulf %8, %5 : vector<512x128xf32>
    %10 = arith.select %7, %5, %9 : vector<512x128xi1>, vector<512x128xf32>
    %11 = arith.truncf %10 : vector<512x128xf32> to vector<512x128xbf16>
    %c0_7 = arith.constant 0 : index
    %c0_8 = arith.constant 0 : index
    %12 = vector.load %arg4[%c0_7, %c0_8] : memref<512x128xbf16, #tpu.memory_space<vmem>>, vector<512x128xbf16>
    tpu.vector_store %arg4[%c0_7, %c0_8], %11 {strides = array<i32>} : memref<512x128xbf16, #tpu.memory_space<vmem>>, vector<512x128xbf16>,
    return
  }
  func.func @transform_0(%arg0: i32) -> (i32, i32) {
    %c0_i32 = arith.constant 0 : i32
    %c0_i32_0 = arith.constant 0 : i32
    return %arg0, %c0_i32 : i32, i32
  }
  func.func @transform_1(%arg0: i32) -> (i32, i32) {
    %c0_i32 = arith.constant 0 : i32
    %c0_i32_0 = arith.constant 0 : i32
    %c0_i32_1 = arith.constant 0 : i32
    return %c0_i32, %c0_i32_0 : i32, i32
  }
  func.func @transform_2(%arg0: i32) -> (i32, i32) {
    %c0_i32 = arith.constant 0 : i32
    %c0_i32_0 = arith.constant 0 : i32
    %c0_i32_1 = arith.constant 0 : i32
    return %c0_i32, %c0_i32_0 : i32, i32
  }
  func.func @transform_3(%arg0: i32) -> (i32, i32) {
    %c0_i32 = arith.constant 0 : i32
    %c0_i32_0 = arith.constant 0 : i32
    return %arg0, %c0_i32 : i32, i32
  }
}

module attributes {stable_mosaic.version = 11 : i64} {
  func.func @_matmul_bn_leaky_kernel(%arg0: i32, %arg1: memref<512x2048xbf16, #tpu.memory_space<vmem>>, %arg2: memref<2048x128xbf16, #tpu.memory_space<vmem>>, %arg3: memref<1x128xf32, #tpu.memory_space<vmem>>, %arg4: memref<1x128xf32, #tpu.memory_space<vmem>>, %arg5: memref<512x128xbf16, #tpu.memory_space<vmem>>) attributes {dimension_semantics = [#tpu.dimension_semantics<arbitrary>], iteration_bounds = array<i64: 1>, scalar_prefetch = 0 : i64, scratch_operands = 0 : i64, tpu.core_type = #tpu.core_type<tc>, window_params = [{pipeline_mode = #tpu.pipeline_mode<synchronous>, transform_indices = @transform_0, window_bounds = array<i64: 512, 2048>}, {pipeline_mode = #tpu.pipeline_mode<synchronous>, transform_indices = @transform_1, window_bounds = array<i64: 2048, 128>}, {pipeline_mode = #tpu.pipeline_mode<synchronous>, transform_indices = @transform_2, window_bounds = array<i64: 1, 128>}, {pipeline_mode = #tpu.pipeline_mode<synchronous>, transform_indices = @transform_3, window_bounds = array<i64: 1, 128>}, {pipeline_mode = #tpu.pipeline_mode<synchronous>, transform_indices = @transform_4, window_bounds = array<i64: 512, 128>}]} {
    %c0 = arith.constant 0 : index
    %c0_0 = arith.constant 0 : index
    %0 = vector.load %arg1[%c0, %c0_0] : memref<512x2048xbf16, #tpu.memory_space<vmem>>, vector<512x2048xbf16>
    %c0_1 = arith.constant 0 : index
    %c0_2 = arith.constant 0 : index
    %1 = vector.load %arg2[%c0_1, %c0_2] : memref<2048x128xbf16, #tpu.memory_space<vmem>>, vector<2048x128xbf16>
    %cst = arith.constant dense<0.000000e+00> : vector<512x128xf32>
    %2 = tpu.matmul %0, %1, %cst {dimension_numbers = #tpu.dot_dimension_numbers<[1], [0], [0], [1], [0, 0, 1, 1], [], []>} : vector<512x2048xbf16>, vector<2048x128xbf16>, vector<512x128xf32> -> vector<512x128xf32>
    %cst_3 = arith.constant dense<0.000000e+00> : vector<128xf32>
    %3 = vector.multi_reduction <add>, %2, %cst_3 [0] : vector<512x128xf32> to vector<128xf32>
    %4 = vector.shape_cast %3 : vector<128xf32> to vector<1x128xf32>
    %cst_4 = arith.constant 0.001953125 : f32
    %5 = vector.broadcast %cst_4 : f32 to vector<1x128xf32>
    %6 = arith.mulf %4, %5 : vector<1x128xf32>
    %7 = vector.broadcast %6 : vector<1x128xf32> to vector<512x128xf32>
    %8 = arith.subf %2, %7 : vector<512x128xf32>
    %9 = arith.mulf %8, %8 : vector<512x128xf32>
    %cst_5 = arith.constant dense<0.000000e+00> : vector<128xf32>
    %10 = vector.multi_reduction <add>, %9, %cst_5 [0] : vector<512x128xf32> to vector<128xf32>
    %11 = vector.shape_cast %10 : vector<128xf32> to vector<1x128xf32>
    %cst_6 = arith.constant 0.001953125 : f32
    %12 = vector.broadcast %cst_6 : f32 to vector<1x128xf32>
    %13 = arith.mulf %11, %12 : vector<1x128xf32>
    %cst_7 = arith.constant 9.99999974E-6 : f32
    %14 = vector.broadcast %cst_7 : f32 to vector<1x128xf32>
    %15 = arith.addf %13, %14 : vector<1x128xf32>
    %16 = math.rsqrt %15 : vector<1x128xf32>
    %17 = vector.broadcast %16 : vector<1x128xf32> to vector<512x128xf32>
    %18 = arith.mulf %8, %17 : vector<512x128xf32>
    %c0_8 = arith.constant 0 : index
    %c0_9 = arith.constant 0 : index
    %19 = vector.load %arg3[%c0_8, %c0_9] : memref<1x128xf32, #tpu.memory_space<vmem>>, vector<1x128xf32>
    %20 = vector.broadcast %19 : vector<1x128xf32> to vector<512x128xf32>
    %21 = arith.mulf %18, %20 : vector<512x128xf32>
    %c0_10 = arith.constant 0 : index
    %c0_11 = arith.constant 0 : index
    %22 = vector.load %arg4[%c0_10, %c0_11] : memref<1x128xf32, #tpu.memory_space<vmem>>, vector<1x128xf32>
    %23 = vector.broadcast %22 : vector<1x128xf32> to vector<512x128xf32>
    %24 = arith.addf %21, %23 : vector<512x128xf32>
    %cst_12 = arith.constant 0.000000e+00 : f32
    %25 = vector.broadcast %cst_12 : f32 to vector<512x128xf32>
    %26 = arith.cmpf oge, %24, %25 : vector<512x128xf32>
    %cst_13 = arith.constant 2.000000e-01 : f32
    %27 = vector.broadcast %cst_13 : f32 to vector<512x128xf32>
    %28 = arith.mulf %27, %24 : vector<512x128xf32>
    %29 = arith.select %26, %24, %28 : vector<512x128xi1>, vector<512x128xf32>
    %30 = arith.truncf %29 : vector<512x128xf32> to vector<512x128xbf16>
    %c0_14 = arith.constant 0 : index
    %c0_15 = arith.constant 0 : index
    %31 = vector.load %arg5[%c0_14, %c0_15] : memref<512x128xbf16, #tpu.memory_space<vmem>>, vector<512x128xbf16>
    tpu.vector_store %arg5[%c0_14, %c0_15], %30 {strides = array<i32>} : memref<512x128xbf16, #tpu.memory_space<vmem>>, vector<512x128xbf16>,
    return
  }
  func.func @transform_0(%arg0: i32) -> (i32, i32) {
    %c0_i32 = arith.constant 0 : i32
    %c0_i32_0 = arith.constant 0 : i32
    %c0_i32_1 = arith.constant 0 : i32
    return %c0_i32, %c0_i32_0 : i32, i32
  }
  func.func @transform_1(%arg0: i32) -> (i32, i32) {
    %c0_i32 = arith.constant 0 : i32
    %c0_i32_0 = arith.constant 0 : i32
    %c0_i32_1 = arith.constant 0 : i32
    return %c0_i32, %c0_i32_0 : i32, i32
  }
  func.func @transform_2(%arg0: i32) -> (i32, i32) {
    %c0_i32 = arith.constant 0 : i32
    %c0_i32_0 = arith.constant 0 : i32
    %c0_i32_1 = arith.constant 0 : i32
    return %c0_i32, %c0_i32_0 : i32, i32
  }
  func.func @transform_3(%arg0: i32) -> (i32, i32) {
    %c0_i32 = arith.constant 0 : i32
    %c0_i32_0 = arith.constant 0 : i32
    %c0_i32_1 = arith.constant 0 : i32
    return %c0_i32, %c0_i32_0 : i32, i32
  }
  func.func @transform_4(%arg0: i32) -> (i32, i32) {
    %c0_i32 = arith.constant 0 : i32
    %c0_i32_0 = arith.constant 0 : i32
    %c0_i32_1 = arith.constant 0 : i32
    return %c0_i32, %c0_i32_0 : i32, i32
  }
}

module attributes {stable_mosaic.version = 11 : i64} {
  func.func @_matmul_bn_leaky_kernel(%arg0: i32, %arg1: memref<128x2048xbf16, #tpu.memory_space<vmem>>, %arg2: memref<2048x128xbf16, #tpu.memory_space<vmem>>, %arg3: memref<1x128xf32, #tpu.memory_space<vmem>>, %arg4: memref<1x128xf32, #tpu.memory_space<vmem>>, %arg5: memref<128x128xbf16, #tpu.memory_space<vmem>>) attributes {dimension_semantics = [#tpu.dimension_semantics<arbitrary>], iteration_bounds = array<i64: 1>, scalar_prefetch = 0 : i64, scratch_operands = 0 : i64, tpu.core_type = #tpu.core_type<tc>, window_params = [{pipeline_mode = #tpu.pipeline_mode<synchronous>, transform_indices = @transform_0, window_bounds = array<i64: 128, 2048>}, {pipeline_mode = #tpu.pipeline_mode<synchronous>, transform_indices = @transform_1, window_bounds = array<i64: 2048, 128>}, {pipeline_mode = #tpu.pipeline_mode<synchronous>, transform_indices = @transform_2, window_bounds = array<i64: 1, 128>}, {pipeline_mode = #tpu.pipeline_mode<synchronous>, transform_indices = @transform_3, window_bounds = array<i64: 1, 128>}, {pipeline_mode = #tpu.pipeline_mode<synchronous>, transform_indices = @transform_4, window_bounds = array<i64: 128, 128>}]} {
    %c0 = arith.constant 0 : index
    %c0_0 = arith.constant 0 : index
    %0 = vector.load %arg1[%c0, %c0_0] : memref<128x2048xbf16, #tpu.memory_space<vmem>>, vector<128x2048xbf16>
    %c0_1 = arith.constant 0 : index
    %c0_2 = arith.constant 0 : index
    %1 = vector.load %arg2[%c0_1, %c0_2] : memref<2048x128xbf16, #tpu.memory_space<vmem>>, vector<2048x128xbf16>
    %cst = arith.constant dense<0.000000e+00> : vector<128x128xf32>
    %2 = tpu.matmul %0, %1, %cst {dimension_numbers = #tpu.dot_dimension_numbers<[1], [0], [0], [1], [0, 0, 1, 1], [], []>} : vector<128x2048xbf16>, vector<2048x128xbf16>, vector<128x128xf32> -> vector<128x128xf32>
    %cst_3 = arith.constant dense<0.000000e+00> : vector<128xf32>
    %3 = vector.multi_reduction <add>, %2, %cst_3 [0] : vector<128x128xf32> to vector<128xf32>
    %4 = vector.shape_cast %3 : vector<128xf32> to vector<1x128xf32>
    %cst_4 = arith.constant 7.812500e-03 : f32
    %5 = vector.broadcast %cst_4 : f32 to vector<1x128xf32>
    %6 = arith.mulf %4, %5 : vector<1x128xf32>
    %7 = vector.broadcast %6 : vector<1x128xf32> to vector<128x128xf32>
    %8 = arith.subf %2, %7 : vector<128x128xf32>
    %9 = arith.mulf %8, %8 : vector<128x128xf32>
    %cst_5 = arith.constant dense<0.000000e+00> : vector<128xf32>
    %10 = vector.multi_reduction <add>, %9, %cst_5 [0] : vector<128x128xf32> to vector<128xf32>
    %11 = vector.shape_cast %10 : vector<128xf32> to vector<1x128xf32>
    %cst_6 = arith.constant 7.812500e-03 : f32
    %12 = vector.broadcast %cst_6 : f32 to vector<1x128xf32>
    %13 = arith.mulf %11, %12 : vector<1x128xf32>
    %cst_7 = arith.constant 9.99999974E-6 : f32
    %14 = vector.broadcast %cst_7 : f32 to vector<1x128xf32>
    %15 = arith.addf %13, %14 : vector<1x128xf32>
    %16 = math.rsqrt %15 : vector<1x128xf32>
    %17 = vector.broadcast %16 : vector<1x128xf32> to vector<128x128xf32>
    %18 = arith.mulf %8, %17 : vector<128x128xf32>
    %c0_8 = arith.constant 0 : index
    %c0_9 = arith.constant 0 : index
    %19 = vector.load %arg3[%c0_8, %c0_9] : memref<1x128xf32, #tpu.memory_space<vmem>>, vector<1x128xf32>
    %20 = vector.broadcast %19 : vector<1x128xf32> to vector<128x128xf32>
    %21 = arith.mulf %18, %20 : vector<128x128xf32>
    %c0_10 = arith.constant 0 : index
    %c0_11 = arith.constant 0 : index
    %22 = vector.load %arg4[%c0_10, %c0_11] : memref<1x128xf32, #tpu.memory_space<vmem>>, vector<1x128xf32>
    %23 = vector.broadcast %22 : vector<1x128xf32> to vector<128x128xf32>
    %24 = arith.addf %21, %23 : vector<128x128xf32>
    %cst_12 = arith.constant 0.000000e+00 : f32
    %25 = vector.broadcast %cst_12 : f32 to vector<128x128xf32>
    %26 = arith.cmpf oge, %24, %25 : vector<128x128xf32>
    %cst_13 = arith.constant 2.000000e-01 : f32
    %27 = vector.broadcast %cst_13 : f32 to vector<128x128xf32>
    %28 = arith.mulf %27, %24 : vector<128x128xf32>
    %29 = arith.select %26, %24, %28 : vector<128x128xi1>, vector<128x128xf32>
    %30 = arith.truncf %29 : vector<128x128xf32> to vector<128x128xbf16>
    %c0_14 = arith.constant 0 : index
    %c0_15 = arith.constant 0 : index
    %31 = vector.load %arg5[%c0_14, %c0_15] : memref<128x128xbf16, #tpu.memory_space<vmem>>, vector<128x128xbf16>
    tpu.vector_store %arg5[%c0_14, %c0_15], %30 {strides = array<i32>} : memref<128x128xbf16, #tpu.memory_space<vmem>>, vector<128x128xbf16>,
    return
  }
  func.func @transform_0(%arg0: i32) -> (i32, i32) {
    %c0_i32 = arith.constant 0 : i32
    %c0_i32_0 = arith.constant 0 : i32
    %c0_i32_1 = arith.constant 0 : i32
    return %c0_i32, %c0_i32_0 : i32, i32
  }
  func.func @transform_1(%arg0: i32) -> (i32, i32) {
    %c0_i32 = arith.constant 0 : i32
    %c0_i32_0 = arith.constant 0 : i32
    %c0_i32_1 = arith.constant 0 : i32
    return %c0_i32, %c0_i32_0 : i32, i32
  }
  func.func @transform_2(%arg0: i32) -> (i32, i32) {
    %c0_i32 = arith.constant 0 : i32
    %c0_i32_0 = arith.constant 0 : i32
    %c0_i32_1 = arith.constant 0 : i32
    return %c0_i32, %c0_i32_0 : i32, i32
  }
  func.func @transform_3(%arg0: i32) -> (i32, i32) {
    %c0_i32 = arith.constant 0 : i32
    %c0_i32_0 = arith.constant 0 : i32
    %c0_i32_1 = arith.constant 0 : i32
    return %c0_i32, %c0_i32_0 : i32, i32
  }
  func.func @transform_4(%arg0: i32) -> (i32, i32) {
    %c0_i32 = arith.constant 0 : i32
    %c0_i32_0 = arith.constant 0 : i32
    %c0_i32_1 = arith.constant 0 : i32
    return %c0_i32, %c0_i32_0 : i32, i32
  }
}

module attributes {stable_mosaic.version = 11 : i64} {
  func.func @_matmul_bn_leaky_kernel(%arg0: i32, %arg1: memref<32x2048xbf16, #tpu.memory_space<vmem>>, %arg2: memref<2048x128xbf16, #tpu.memory_space<vmem>>, %arg3: memref<1x128xf32, #tpu.memory_space<vmem>>, %arg4: memref<1x128xf32, #tpu.memory_space<vmem>>, %arg5: memref<32x128xbf16, #tpu.memory_space<vmem>>) attributes {dimension_semantics = [#tpu.dimension_semantics<arbitrary>], iteration_bounds = array<i64: 1>, scalar_prefetch = 0 : i64, scratch_operands = 0 : i64, tpu.core_type = #tpu.core_type<tc>, window_params = [{pipeline_mode = #tpu.pipeline_mode<synchronous>, transform_indices = @transform_0, window_bounds = array<i64: 32, 2048>}, {pipeline_mode = #tpu.pipeline_mode<synchronous>, transform_indices = @transform_1, window_bounds = array<i64: 2048, 128>}, {pipeline_mode = #tpu.pipeline_mode<synchronous>, transform_indices = @transform_2, window_bounds = array<i64: 1, 128>}, {pipeline_mode = #tpu.pipeline_mode<synchronous>, transform_indices = @transform_3, window_bounds = array<i64: 1, 128>}, {pipeline_mode = #tpu.pipeline_mode<synchronous>, transform_indices = @transform_4, window_bounds = array<i64: 32, 128>}]} {
    %c0 = arith.constant 0 : index
    %c0_0 = arith.constant 0 : index
    %0 = vector.load %arg1[%c0, %c0_0] : memref<32x2048xbf16, #tpu.memory_space<vmem>>, vector<32x2048xbf16>
    %c0_1 = arith.constant 0 : index
    %c0_2 = arith.constant 0 : index
    %1 = vector.load %arg2[%c0_1, %c0_2] : memref<2048x128xbf16, #tpu.memory_space<vmem>>, vector<2048x128xbf16>
    %cst = arith.constant dense<0.000000e+00> : vector<32x128xf32>
    %2 = tpu.matmul %0, %1, %cst {dimension_numbers = #tpu.dot_dimension_numbers<[1], [0], [0], [1], [0, 0, 1, 1], [], []>} : vector<32x2048xbf16>, vector<2048x128xbf16>, vector<32x128xf32> -> vector<32x128xf32>
    %cst_3 = arith.constant dense<0.000000e+00> : vector<128xf32>
    %3 = vector.multi_reduction <add>, %2, %cst_3 [0] : vector<32x128xf32> to vector<128xf32>
    %4 = vector.shape_cast %3 : vector<128xf32> to vector<1x128xf32>
    %cst_4 = arith.constant 3.125000e-02 : f32
    %5 = vector.broadcast %cst_4 : f32 to vector<1x128xf32>
    %6 = arith.mulf %4, %5 : vector<1x128xf32>
    %7 = vector.broadcast %6 : vector<1x128xf32> to vector<32x128xf32>
    %8 = arith.subf %2, %7 : vector<32x128xf32>
    %9 = arith.mulf %8, %8 : vector<32x128xf32>
    %cst_5 = arith.constant dense<0.000000e+00> : vector<128xf32>
    %10 = vector.multi_reduction <add>, %9, %cst_5 [0] : vector<32x128xf32> to vector<128xf32>
    %11 = vector.shape_cast %10 : vector<128xf32> to vector<1x128xf32>
    %cst_6 = arith.constant 3.125000e-02 : f32
    %12 = vector.broadcast %cst_6 : f32 to vector<1x128xf32>
    %13 = arith.mulf %11, %12 : vector<1x128xf32>
    %cst_7 = arith.constant 9.99999974E-6 : f32
    %14 = vector.broadcast %cst_7 : f32 to vector<1x128xf32>
    %15 = arith.addf %13, %14 : vector<1x128xf32>
    %16 = math.rsqrt %15 : vector<1x128xf32>
    %17 = vector.broadcast %16 : vector<1x128xf32> to vector<32x128xf32>
    %18 = arith.mulf %8, %17 : vector<32x128xf32>
    %c0_8 = arith.constant 0 : index
    %c0_9 = arith.constant 0 : index
    %19 = vector.load %arg3[%c0_8, %c0_9] : memref<1x128xf32, #tpu.memory_space<vmem>>, vector<1x128xf32>
    %20 = vector.broadcast %19 : vector<1x128xf32> to vector<32x128xf32>
    %21 = arith.mulf %18, %20 : vector<32x128xf32>
    %c0_10 = arith.constant 0 : index
    %c0_11 = arith.constant 0 : index
    %22 = vector.load %arg4[%c0_10, %c0_11] : memref<1x128xf32, #tpu.memory_space<vmem>>, vector<1x128xf32>
    %23 = vector.broadcast %22 : vector<1x128xf32> to vector<32x128xf32>
    %24 = arith.addf %21, %23 : vector<32x128xf32>
    %cst_12 = arith.constant 0.000000e+00 : f32
    %25 = vector.broadcast %cst_12 : f32 to vector<32x128xf32>
    %26 = arith.cmpf oge, %24, %25 : vector<32x128xf32>
    %cst_13 = arith.constant 2.000000e-01 : f32
    %27 = vector.broadcast %cst_13 : f32 to vector<32x128xf32>
    %28 = arith.mulf %27, %24 : vector<32x128xf32>
    %29 = arith.select %26, %24, %28 : vector<32x128xi1>, vector<32x128xf32>
    %30 = arith.truncf %29 : vector<32x128xf32> to vector<32x128xbf16>
    %c0_14 = arith.constant 0 : index
    %c0_15 = arith.constant 0 : index
    %31 = vector.load %arg5[%c0_14, %c0_15] : memref<32x128xbf16, #tpu.memory_space<vmem>>, vector<32x128xbf16>
    tpu.vector_store %arg5[%c0_14, %c0_15], %30 {strides = array<i32>} : memref<32x128xbf16, #tpu.memory_space<vmem>>, vector<32x128xbf16>,
    return
  }
  func.func @transform_0(%arg0: i32) -> (i32, i32) {
    %c0_i32 = arith.constant 0 : i32
    %c0_i32_0 = arith.constant 0 : i32
    %c0_i32_1 = arith.constant 0 : i32
    return %c0_i32, %c0_i32_0 : i32, i32
  }
  func.func @transform_1(%arg0: i32) -> (i32, i32) {
    %c0_i32 = arith.constant 0 : i32
    %c0_i32_0 = arith.constant 0 : i32
    %c0_i32_1 = arith.constant 0 : i32
    return %c0_i32, %c0_i32_0 : i32, i32
  }
  func.func @transform_2(%arg0: i32) -> (i32, i32) {
    %c0_i32 = arith.constant 0 : i32
    %c0_i32_0 = arith.constant 0 : i32
    %c0_i32_1 = arith.constant 0 : i32
    return %c0_i32, %c0_i32_0 : i32, i32
  }
  func.func @transform_3(%arg0: i32) -> (i32, i32) {
    %c0_i32 = arith.constant 0 : i32
    %c0_i32_0 = arith.constant 0 : i32
    %c0_i32_1 = arith.constant 0 : i32
    return %c0_i32, %c0_i32_0 : i32, i32
  }
  func.func @transform_4(%arg0: i32) -> (i32, i32) {
    %c0_i32 = arith.constant 0 : i32
    %c0_i32_0 = arith.constant 0 : i32
    %c0_i32_1 = arith.constant 0 : i32
    return %c0_i32, %c0_i32_0 : i32, i32
  }
}

module attributes {stable_mosaic.version = 11 : i64} {
  func.func @_matmul_bias_act_kernel(%arg0: i32, %arg1: memref<2x2048xbf16, #tpu.memory_space<vmem>>, %arg2: memref<2048x128xbf16, #tpu.memory_space<vmem>>, %arg3: memref<1x128xf32, #tpu.memory_space<vmem>>, %arg4: memref<2x128xf32, #tpu.memory_space<vmem>>) attributes {dimension_semantics = [#tpu.dimension_semantics<parallel>], iteration_bounds = array<i64: 1>, scalar_prefetch = 0 : i64, scratch_operands = 0 : i64, tpu.core_type = #tpu.core_type<tc>, window_params = [{transform_indices = @transform_0, window_bounds = array<i64: 2, 2048>}, {pipeline_mode = #tpu.pipeline_mode<synchronous>, transform_indices = @transform_1, window_bounds = array<i64: 2048, 128>}, {pipeline_mode = #tpu.pipeline_mode<synchronous>, transform_indices = @transform_2, window_bounds = array<i64: 1, 128>}, {transform_indices = @transform_3, window_bounds = array<i64: 2, 128>}]} {
    %c0 = arith.constant 0 : index
    %c0_0 = arith.constant 0 : index
    %0 = vector.load %arg1[%c0, %c0_0] : memref<2x2048xbf16, #tpu.memory_space<vmem>>, vector<2x2048xbf16>
    %c0_1 = arith.constant 0 : index
    %c0_2 = arith.constant 0 : index
    %1 = vector.load %arg2[%c0_1, %c0_2] : memref<2048x128xbf16, #tpu.memory_space<vmem>>, vector<2048x128xbf16>
    %cst = arith.constant dense<0.000000e+00> : vector<2x128xf32>
    %2 = tpu.matmul %0, %1, %cst {dimension_numbers = #tpu.dot_dimension_numbers<[1], [0], [0], [1], [0, 0, 1, 1], [], []>} : vector<2x2048xbf16>, vector<2048x128xbf16>, vector<2x128xf32> -> vector<2x128xf32>
    %c0_3 = arith.constant 0 : index
    %c0_4 = arith.constant 0 : index
    %3 = vector.load %arg3[%c0_3, %c0_4] : memref<1x128xf32, #tpu.memory_space<vmem>>, vector<1x128xf32>
    %4 = vector.broadcast %3 : vector<1x128xf32> to vector<2x128xf32>
    %5 = arith.addf %2, %4 : vector<2x128xf32>
    %cst_5 = arith.constant 0.000000e+00 : f32
    %6 = vector.broadcast %cst_5 : f32 to vector<2x128xf32>
    %7 = arith.subf %6, %5 : vector<2x128xf32>
    %8 = math.exp %7 : vector<2x128xf32>
    %cst_6 = arith.constant 1.000000e+00 : f32
    %9 = vector.broadcast %cst_6 : f32 to vector<2x128xf32>
    %10 = arith.addf %9, %8 : vector<2x128xf32>
    %cst_7 = arith.constant 1.000000e+00 : f32
    %11 = vector.broadcast %cst_7 : f32 to vector<2x128xf32>
    %12 = arith.divf %11, %10 : vector<2x128xf32>
    %c0_8 = arith.constant 0 : index
    %c0_9 = arith.constant 0 : index
    %13 = vector.load %arg4[%c0_8, %c0_9] : memref<2x128xf32, #tpu.memory_space<vmem>>, vector<2x128xf32>
    tpu.vector_store %arg4[%c0_8, %c0_9], %12 {strides = array<i32>} : memref<2x128xf32, #tpu.memory_space<vmem>>, vector<2x128xf32>,
    return
  }
  func.func @transform_0(%arg0: i32) -> (i32, i32) {
    %c0_i32 = arith.constant 0 : i32
    %c0_i32_0 = arith.constant 0 : i32
    return %arg0, %c0_i32 : i32, i32
  }
  func.func @transform_1(%arg0: i32) -> (i32, i32) {
    %c0_i32 = arith.constant 0 : i32
    %c0_i32_0 = arith.constant 0 : i32
    %c0_i32_1 = arith.constant 0 : i32
    return %c0_i32, %c0_i32_0 : i32, i32
  }
  func.func @transform_2(%arg0: i32) -> (i32, i32) {
    %c0_i32 = arith.constant 0 : i32
    %c0_i32_0 = arith.constant 0 : i32
    %c0_i32_1 = arith.constant 0 : i32
    return %c0_i32, %c0_i32_0 : i32, i32
  }
  func.func @transform_3(%arg0: i32) -> (i32, i32) {
    %c0_i32 = arith.constant 0 : i32
    %c0_i32_0 = arith.constant 0 : i32
    return %arg0, %c0_i32 : i32, i32
  }
}

</mosaic_0001>

<bundles_post_ra>
// kernel: discriminator_forward.5
= control target key start
LH: loop header
LB: loop body
LE: loop exit
PB: predicated region body
PF: predicated region fallthrough
CT: control target
= control target key end

     0   :  { %s1942_s12 = smov 0   ;;  %s2136_s0 = inlined_call_operand.vmem [shape: bf16[2048,128], index: 0, kind: input, shape index: {}]   ;;  %s2137_s1 = inlined_call_operand.vmem [shape: bf16[128,128], index: 1, kind: input, shape index: {}]   ;;  %s2138_s2 = inlined_call_operand.vmem [shape: f32[1,128], index: 2, kind: input, shape index: {}]   ;;  %s2139_s3 = inlined_call_operand.vmem [shape: bf16[2048,128], index: 3, kind: output, shape index: {}]  }
   0x1 LB: > { %s1359_s13 = sadd.s32 4294967295, %s1920_s12   ;;  %p1363_p0 = scmp.ge.s32.totalorder %s1920_s12, 1  ;;  %s1920_s12 = sphi %s1942_s12, %s13_s12  }
   0x2   : > { %p138_p1 = scmp.lt.s32.totalorder %s1920_s12, 5 }
   0x4   : > { %p139_p2 = pnand %p1363_p0, %p138_p1 }
   0x5   : > { %v1874_v0 = vld [vmem:[%s2137_s1] sm:$0xff] (!%p139_p2)   ;;  %s1364_s16 = sshll.u32 (!%p139_p2), %s1359_s13, 6  ;;  %v1875_v1 = vld [vmem:[%s2137_s1 + $0x8] sm:$0xff] (!%p139_p2)   ;;  %v1876_v2 = vld [vmem:[%s2137_s1 + $0x10] sm:$0xff] (!%p139_p2)  }
   0x6   : > { %142 = sbr.rel (%p139_p2) target bundleno = 327 (0x147), region = 32  ;;  %p163_p3 = scmp.lt.s32.totalorder (!%p139_p2), %s1364_s16, 255  ;;  %1770 = vmatprep.subr.bf16.mxu0 (!%p139_p2), %v1874_v0  ;;  %1850 = vmatprep.subr.bf16.mxu1 (!%p139_p2), %v1874_v0  ;;  %v1877_v3 = vld [vmem:[%s2137_s1 + $0x18] sm:$0xff] (!%p139_p2)   ;;  %v1878_v6 = vld [vmem:[%s2137_s1 + $0x20] sm:$0xff] (!%p139_p2)   ;;  %v1879_v7 = vld [vmem:[%s2137_s1 + $0x28] sm:$0xff] (!%p139_p2)  }
   0x7   : > { %1771 = vmatpush3.bf16.msra.mxu0 (!%p139_p2), %v1874_v0  ;;  %1858 = vmatpush3.bf16.msra.mxu1 (!%p139_p2), %v1874_v0  ;;  %v1880_v8 = vld [vmem:[%s2137_s1 + $0x30] sm:$0xff] (!%p139_p2)   ;;  %v1881_v9 = vld [vmem:[%s2137_s1 + $0x38] sm:$0xff] (!%p139_p2)   ;;  %v2019_v40 = vld [vmem:[%s2138_s2] ss:$0 sm:$0xff] (!%p139_p2) }
   0x8   : > { %1772 = vmatprep.subr.bf16.mxu0 (!%p139_p2), %v1875_v1  ;;  %1851 = vmatprep.subr.bf16.mxu1 (!%p139_p2), %v1875_v1 }
   0xb   : > { %1773 = vmatpush3.bf16.msra.mxu0 (!%p139_p2), %v1875_v1  ;;  %1859 = vmatpush3.bf16.msra.mxu1 (!%p139_p2), %v1875_v1 }
   0xc   : > { %1774 = vmatprep.subr.bf16.mxu0 (!%p139_p2), %v1876_v2  ;;  %1852 = vmatprep.subr.bf16.mxu1 (!%p139_p2), %v1876_v2 }
   0xd   : > { %s2141_s16 = smov (!%p163_p3, %s1364_s16), 255 }
   0xe   : > { %s1365_s21 = sshll.u32 %s2141_s16, 2 }
   0xf   : > { %s1967_s24 = scalar_lea.vmem %s2136_s0, %s1365_s21  ;;  %1775 = vmatpush3.bf16.msra.mxu0 %v1876_v2  ;;  %1860 = vmatpush3.bf16.msra.mxu1 %v1876_v2  ;;  %s2036_s13 = scalar_lea.vmem %s2139_s3, %s1365_s21 }
  0x10   : > { %v1882_v4 = vld [vmem:[%s1967_s24] sm:$0xff]   ;;  %1776 = vmatprep.subr.bf16.mxu0 %v1877_v3  ;;  %1853 = vmatprep.subr.bf16.mxu1 %v1877_v3  ;;  %v1884_v10 = vld [vmem:[%s1967_s24 + $0x8] sm:$0xff]   ;;  %v1886_v12 = vld [vmem:[%s1967_s24 + $0x10] sm:$0xff]  }
  0x11   : > { %v1883_v5 = vld [vmem:[%s1967_s24 + $0x80] sm:$0xff]   ;;  %1786 = vmatprep.mubr.bf16.mxu0 %v1882_v4  ;;  %v1885_v11 = vld [vmem:[%s1967_s24 + $0x88] sm:$0xff]   ;;  %v1887_v13 = vld [vmem:[%s1967_s24 + $0x90] sm:$0xff]  }
  0x12   : > { %1818 = vmatprep.mubr.bf16.mxu1 %v1883_v5  ;;  %v1888_v14 = vld [vmem:[%s1967_s24 + $0x18] sm:$0xff]   ;;  %v1890_v16 = vld [vmem:[%s1967_s24 + $0x20] sm:$0xff]   ;;  %v1892_v18 = vld [vmem:[%s1967_s24 + $0x28] sm:$0xff]  }
  0x13   : > { %1777 = vmatpush3.bf16.msra.mxu0 %v1877_v3  ;;  %1861 = vmatpush3.bf16.msra.mxu1 %v1877_v3  ;;  %v1889_v15 = vld [vmem:[%s1967_s24 + $0x98] sm:$0xff]   ;;  %v1891_v17 = vld [vmem:[%s1967_s24 + $0xa0] sm:$0xff]   ;;  %v1893_v19 = vld [vmem:[%s1967_s24 + $0xa8] sm:$0xff]  }
  0x14   : > { %1778 = vmatprep.subr.bf16.mxu0 %v1878_v6  ;;  %1854 = vmatprep.subr.bf16.mxu1 %v1878_v6  ;;  %v1894_v20 = vld [vmem:[%s1967_s24 + $0x30] sm:$0xff]   ;;  %v1896_v22 = vld [vmem:[%s1967_s24 + $0x38] sm:$0xff]   ;;  %v1898_v24 = vld [vmem:[%s1967_s24 + $0x40] sm:$0xff]  }
  0x15   : > { %v1895_v21 = vld [vmem:[%s1967_s24 + $0xb0] sm:$0xff]   ;;  %v1897_v23 = vld [vmem:[%s1967_s24 + $0xb8] sm:$0xff]   ;;  %v1899_v25 = vld [vmem:[%s1967_s24 + $0xc0] sm:$0xff]  }
  0x16   : > { %v1900_v26 = vld [vmem:[%s1967_s24 + $0x48] sm:$0xff]   ;;  %v1902_v28 = vld [vmem:[%s1967_s24 + $0x50] sm:$0xff]   ;;  %v1904_v30 = vld [vmem:[%s1967_s24 + $0x58] sm:$0xff]  }
  0x17   : > { %1779 = vmatpush3.bf16.msra.mxu0 %v1878_v6  ;;  %1862 = vmatpush3.bf16.msra.mxu1 %v1878_v6  ;;  %v1901_v27 = vld [vmem:[%s1967_s24 + $0xc8] sm:$0xff]   ;;  %v1903_v29 = vld [vmem:[%s1967_s24 + $0xd0] sm:$0xff]   ;;  %v1905_v31 = vld [vmem:[%s1967_s24 + $0xd8] sm:$0xff]  }
  0x18   : > { %1780 = vmatprep.subr.bf16.mxu0 %v1879_v7  ;;  %1855 = vmatprep.subr.bf16.mxu1 %v1879_v7  ;;  %v1906_v32 = vld [vmem:[%s1967_s24 + $0x60] sm:$0xff]   ;;  %v1908_v34 = vld [vmem:[%s1967_s24 + $0x68] sm:$0xff]   ;;  %v1910_v36 = vld [vmem:[%s1967_s24 + $0x70] sm:$0xff]  }
  0x19   : > { %v1907_v33 = vld [vmem:[%s1967_s24 + $0xe0] sm:$0xff]   ;;  %v1909_v35 = vld [vmem:[%s1967_s24 + $0xe8] sm:$0xff]   ;;  %v1911_v37 = vld [vmem:[%s1967_s24 + $0xf0] sm:$0xff]  }
  0x1a   : > { %v1912_v38 = vld [vmem:[%s1967_s24 + $0x78] sm:$0xff]  }
  0x1b   : > { %1781 = vmatpush3.bf16.msra.mxu0 %v1879_v7  ;;  %1863 = vmatpush3.bf16.msra.mxu1 %v1879_v7  ;;  %v1913_v39 = vld [vmem:[%s1967_s24 + $0xf8] sm:$0xff]  }
  0x1c   : > { %1782 = vmatprep.subr.bf16.mxu0 %v1880_v8  ;;  %1856 = vmatprep.subr.bf16.mxu1 %v1880_v8 }
  0x1f   : > { %1783 = vmatpush3.bf16.msra.mxu0 %v1880_v8  ;;  %1864 = vmatpush3.bf16.msra.mxu1 %v1880_v8 }
  0x20   : > { %1784 = vmatprep.subr.bf16.mxu0 %v1881_v9  ;;  %1857 = vmatprep.subr.bf16.mxu1 %v1881_v9 }
  0x23   : > { %1785 = vmatpush3.bf16.msra.mxu0 %v1881_v9  ;;  %1865 = vmatpush3.bf16.msra.mxu1 %v1881_v9 }
  0x26   : > { %1787 = vmatmul.mubr.bf16.vlgmr.msra.gmra.mrb[0].mxu0 %v1884_v10  ;;  %1819 = vmatmul.mubr.bf16.vlgmr.msra.gmra.mrb[0].mxu1 %v1885_v11 }
  0x27   : > { %1790 = vmatprep.mubr.bf16.mxu0 %v1886_v12  ;;  %1822 = vmatprep.mubr.bf16.mxu1 %v1887_v13 }
  0x2e   : > { %1791 = vmatmul.mubr.bf16.gmra.mrb[4].mxu0 %v1888_v14  ;;  %1823 = vmatmul.mubr.bf16.gmra.mrb[4].mxu1 %v1889_v15 }
  0x2f   : > { %1794 = vmatprep.mubr.bf16.mxu0 %v1890_v16  ;;  %1826 = vmatprep.mubr.bf16.mxu1 %v1891_v17 }
  0x36   : > { %1795 = vmatmul.mubr.bf16.gmra.mrb[8].mxu0 %v1892_v18  ;;  %1827 = vmatmul.mubr.bf16.gmra.mrb[8].mxu1 %v1893_v19 }
  0x37   : > { %1798 = vmatprep.mubr.bf16.mxu0 %v1894_v20  ;;  %1830 = vmatprep.mubr.bf16.mxu1 %v1895_v21 }
  0x3e   : > { %1799 = vmatmul.mubr.bf16.gmra.mrb[12].mxu0 %v1896_v22  ;;  %1831 = vmatmul.mubr.bf16.gmra.mrb[12].mxu1 %v1897_v23 }
  0x3f   : > { %1802 = vmatprep.mubr.bf16.mxu0 %v1898_v24  ;;  %1834 = vmatprep.mubr.bf16.mxu1 %v1899_v25 }
  0x46   : > { %1803 = vmatmul.mubr.bf16.gmra.mrb[16].mxu0 %v1900_v26  ;;  %1835 = vmatmul.mubr.bf16.gmra.mrb[16].mxu1 %v1901_v27 }
  0x47   : > { %1806 = vmatprep.mubr.bf16.mxu0 %v1902_v28  ;;  %1838 = vmatprep.mubr.bf16.mxu1 %v1903_v29 }
  0x4e   : > { %1807 = vmatmul.mubr.bf16.gmra.mrb[20].mxu0 %v1904_v30  ;;  %1839 = vmatmul.mubr.bf16.gmra.mrb[20].mxu1 %v1905_v31 }
  0x4f   : > { %1810 = vmatprep.mubr.bf16.mxu0 %v1906_v32  ;;  %1842 = vmatprep.mubr.bf16.mxu1 %v1907_v33 }
  0x56   : > { %1811 = vmatmul.mubr.bf16.gmra.mrb[24].mxu0 %v1908_v34  ;;  %1843 = vmatmul.mubr.bf16.gmra.mrb[24].mxu1 %v1909_v35 }
  0x57   : > { %1814 = vmatprep.mubr.bf16.mxu0 %v1910_v36  ;;  %1846 = vmatprep.mubr.bf16.mxu1 %v1911_v37 }
  0x5e   : > { %1815 = vmatmul.mubr.bf16.gmra.mrb[28].mxu0 %v1912_v38  ;;  %1847 = vmatmul.mubr.bf16.gmra.mrb[28].mxu1 %v1913_v39 }
  0xf9   : > { %v1788_v41 = vpop.f32.mrb[0].mxu0  ;;  %v1820_v42 = vpop.f32.mrb[0].mxu1 }
  0xfa   : > { %v545_v43 = vadd.f32 %v1788_v41, %v2019_v40  ;;  %v673_v44 = vadd.f32 %v1820_v42, %v2019_v40  ;;  %v536_v45 = vpop.f32.mrb[1].mxu0  ;;  %v664_v46 = vpop.f32.mrb[1].mxu1 }
  0xfb   : > { %v537_v47 = vadd.f32 %v2019_v40, %v536_v45  ;;  %v665_v48 = vadd.f32 %v2019_v40, %v664_v46  ;;  %v1789_v49 = vpop.f32.mrb[2].mxu0  ;;  %v1821_v50 = vpop.f32.mrb[2].mxu1 }
  0xfc   : > { %vm793_vm0 = vcmp.ge.f32.partialorder %v545_v43, 0.0  ;;  %v857_v51 = vmul.f32 0.2, %v545_v43  ;;  %vm825_vm1 = vcmp.ge.f32.partialorder %v673_v44, 0.0  ;;  %v889_v52 = vmul.f32 0.2, %v673_v44 }
  0xfd   : > { %vm791_vm2 = vcmp.ge.f32.partialorder %v537_v47, 0.0  ;;  %v855_v53 = vmul.f32 0.2, %v537_v47  ;;  %vm823_vm3 = vcmp.ge.f32.partialorder %v665_v48, 0.0  ;;  %v887_v54 = vmul.f32 0.2, %v665_v48 }
  0xfe   : > { %v548_v55 = vadd.f32 %v1789_v49, %v2019_v40  ;;  %v676_v56 = vadd.f32 %v1821_v50, %v2019_v40  ;;  %v539_v57 = vpop.f32.mrb[3].mxu0  ;;  %v667_v58 = vpop.f32.mrb[3].mxu1  ;;  %v921_v59 = vsel %vm793_vm0, %v545_v43, %v857_v51  ;;  %v953_v60 = vsel %vm825_vm1, %v673_v44, %v889_v52 }
  0xff   : > { %v540_v61 = vadd.f32 %v2019_v40, %v539_v57  ;;  %v668_v62 = vadd.f32 %v2019_v40, %v667_v58  ;;  %v919_v3 = vsel %vm791_vm2, %v537_v47, %v855_v53  ;;  %v951_v4 = vsel %vm823_vm3, %v665_v48, %v887_v54 }
 0x100   : > { %vm794_vm4 = vcmp.ge.f32.partialorder %v548_v55, 0.0  ;;  %v858_v63 = vmul.f32 0.2, %v548_v55  ;;  %vm826_vm5 = vcmp.ge.f32.partialorder %v676_v56, 0.0  ;;  %v890_v0 = vmul.f32 0.2, %v676_v56 }
 0x101   : > { %vm792_vm6 = vcmp.ge.f32.partialorder %v540_v61, 0.0  ;;  %v856_v1 = vmul.f32 0.2, %v540_v61  ;;  %vm824_vm7 = vcmp.ge.f32.partialorder %v668_v62, 0.0  ;;  %v888_v2 = vmul.f32 0.2, %v668_v62 }
 0x102   : > { %v922_v5 = vsel %vm794_vm4, %v548_v55, %v858_v63  ;;  %v954_v6 = vsel %vm826_vm5, %v676_v56, %v890_v0  ;;  %v1792_v7 = vpop.f32.mrb[4].mxu0  ;;  %v1824_v8 = vpop.f32.mrb[4].mxu1 }
 0x103   : > { %v1547_v9 = vpack.c.bf16 %v922_v5, %v921_v59  ;;  %v1627_v10 = vpack.c.bf16 %v954_v6, %v953_v60  ;;  %v920_v11 = vsel %vm792_vm6, %v540_v61, %v856_v1  ;;  %v952_v12 = vsel %vm824_vm7, %v668_v62, %v888_v2  ;;  %v552_v13 = vpop.f32.mrb[5].mxu0  ;;  %v680_v14 = vpop.f32.mrb[5].mxu1 }
 0x104   : > { %v1542_v15 = vpack.c.bf16 %v920_v11, %v919_v3  ;;  %v1622_v16 = vpack.c.bf16 %v952_v12, %v951_v4  ;;  %v561_v17 = vadd.f32 %v1792_v7, %v2019_v40  ;;  %v689_v18 = vadd.f32 %v1824_v8, %v2019_v40  ;;  %v1793_v19 = vpop.f32.mrb[6].mxu0  ;;  %v1825_v20 = vpop.f32.mrb[6].mxu1 }
 0x105   : > { %1699 = vst [vmem:[%s2036_s13 + $0x8] sm:$0xff] %v1547_v9   ;;  %1715 = vst [vmem:[%s2036_s13 + $0x88] sm:$0xff] %v1627_v10   ;;  %v553_v21 = vadd.f32 %v2019_v40, %v552_v13  ;;  %v681_v22 = vadd.f32 %v2019_v40, %v680_v14  ;;  %v564_v23 = vadd.f32 %v1793_v19, %v2019_v40  ;;  %v555_v25 = vpop.f32.mrb[7].mxu0  ;;  %v683_v26 = vpop.f32.mrb[7].mxu1 }
 0x106   : > { %v692_v24 = vadd.f32 %v1825_v20, %v2019_v40  ;;  %1543 = vst [vmem:[%s2036_s13] sm:$0xff] %v1542_v15   ;;  %1714 = vst [vmem:[%s2036_s13 + $0x80] sm:$0xff] %v1622_v16   ;;  %vm797_vm8 = vcmp.ge.f32.partialorder %v561_v17, 0.0  ;;  %v861_v27 = vmul.f32 0.2, %v561_v17  ;;  %vm829_vm9 = vcmp.ge.f32.partialorder %v689_v18, 0.0 }
 0x107   : > { %v893_v28 = vmul.f32 0.2, %v689_v18  ;;  %vm795_vm10 = vcmp.ge.f32.partialorder %v553_v21, 0.0  ;;  %v859_v29 = vmul.f32 0.2, %v553_v21  ;;  %vm827_vm11 = vcmp.ge.f32.partialorder %v681_v22, 0.0 }
 0x108   : > { %v891_v30 = vmul.f32 0.2, %v681_v22  ;;  %v925_v31 = vsel %vm797_vm8, %v561_v17, %v861_v27  ;;  %vm798_vm12 = vcmp.ge.f32.partialorder %v564_v23, 0.0  ;;  %v862_v33 = vmul.f32 0.2, %v564_v23 }
 0x109   : > { %v957_v32 = vsel %vm829_vm9, %v689_v18, %v893_v28  ;;  %v923_v34 = vsel %vm795_vm10, %v553_v21, %v859_v29  ;;  %vm830_vm13 = vcmp.ge.f32.partialorder %v692_v24, 0.0  ;;  %v894_v36 = vmul.f32 0.2, %v692_v24  ;;  %v1796_v37 = vpop.f32.mrb[8].mxu0  ;;  %v1828_v38 = vpop.f32.mrb[8].mxu1 }
 0x10a   : > { %v955_v35 = vsel %vm827_vm11, %v681_v22, %v891_v30  ;;  %v926_v39 = vsel %vm798_vm12, %v564_v23, %v862_v33  ;;  %v556_v41 = vadd.f32 %v2019_v40, %v555_v25  ;;  %v684_v42 = vadd.f32 %v2019_v40, %v683_v26  ;;  %v568_v44 = vpop.f32.mrb[9].mxu0  ;;  %v696_v45 = vpop.f32.mrb[9].mxu1 }
 0x10b   : > { %v577_v43 = vadd.f32 %v1796_v37, %v2019_v40  ;;  %v1557_v46 = vpack.c.bf16 %v926_v39, %v925_v31  ;;  %v958_v47 = vsel %vm830_vm13, %v692_v24, %v894_v36  ;;  %v705_v48 = vadd.f32 %v1828_v38, %v2019_v40  ;;  %v1797_v50 = vpop.f32.mrb[10].mxu0  ;;  %v1829_v51 = vpop.f32.mrb[10].mxu1 }
 0x10c   : > { %v569_v49 = vadd.f32 %v2019_v40, %v568_v44  ;;  %v1637_v52 = vpack.c.bf16 %v958_v47, %v957_v32  ;;  %vm796_vm14 = vcmp.ge.f32.partialorder %v556_v41, 0.0  ;;  %v860_v53 = vmul.f32 0.2, %v556_v41  ;;  %v571_v54 = vpop.f32.mrb[11].mxu0  ;;  %v699_v55 = vpop.f32.mrb[11].mxu1 }
 0x10d   : > { %vm828_vm15 = vcmp.ge.f32.partialorder %v684_v42, 0.0  ;;  %1701 = vst [vmem:[%s2036_s13 + $0x18] sm:$0xff] %v1557_v46   ;;  %v892_v56 = vmul.f32 0.2, %v684_v42  ;;  %vm801_vm0 = vcmp.ge.f32.partialorder %v577_v43, 0.0  ;;  %vm833_vm1 = vcmp.ge.f32.partialorder %v705_v48, 0.0 }
 0x10e   : > { %v865_v57 = vmul.f32 0.2, %v577_v43  ;;  %1717 = vst [vmem:[%s2036_s13 + $0x98] sm:$0xff] %v1637_v52   ;;  %v924_v58 = vsel %vm796_vm14, %v556_v41, %v860_v53  ;;  %v897_v59 = vmul.f32 0.2, %v705_v48  ;;  %vm799_vm2 = vcmp.ge.f32.partialorder %v569_v49, 0.0 }
 0x10f   : > { %v863_v60 = vmul.f32 0.2, %v569_v49  ;;  %v1552_v61 = vpack.c.bf16 %v924_v58, %v923_v34  ;;  %v956_v62 = vsel %vm828_vm15, %v684_v42, %v892_v56  ;;  %v697_v0 = vadd.f32 %v2019_v40, %v696_v45 }
 0x110   : > { %v929_v63 = vsel %vm801_vm0, %v577_v43, %v865_v57  ;;  %v1632_v1 = vpack.c.bf16 %v956_v62, %v955_v35  ;;  %v961_v2 = vsel %vm833_vm1, %v705_v48, %v897_v59  ;;  %v580_v4 = vadd.f32 %v1797_v50, %v2019_v40 }
 0x111   : > { %v927_v3 = vsel %vm799_vm2, %v569_v49, %v863_v60  ;;  %1700 = vst [vmem:[%s2036_s13 + $0x10] sm:$0xff] %v1552_v61   ;;  %vm831_vm3 = vcmp.ge.f32.partialorder %v697_v0, 0.0  ;;  %v895_v5 = vmul.f32 0.2, %v697_v0  ;;  %v708_v6 = vadd.f32 %v1829_v51, %v2019_v40  ;;  %v1800_v8 = vpop.f32.mrb[12].mxu0  ;;  %v1832_v9 = vpop.f32.mrb[12].mxu1 }
 0x112   : > { %v572_v7 = vadd.f32 %v2019_v40, %v571_v54  ;;  %1716 = vst [vmem:[%s2036_s13 + $0x90] sm:$0xff] %v1632_v1   ;;  %vm802_vm4 = vcmp.ge.f32.partialorder %v580_v4, 0.0  ;;  %v866_v10 = vmul.f32 0.2, %v580_v4  ;;  %v700_v11 = vadd.f32 %v2019_v40, %v699_v55  ;;  %v584_v13 = vpop.f32.mrb[13].mxu0  ;;  %v712_v14 = vpop.f32.mrb[13].mxu1 }
 0x113   : > { %v593_v12 = vadd.f32 %v1800_v8, %v2019_v40  ;;  %v959_v15 = vsel %vm831_vm3, %v697_v0, %v895_v5  ;;  %vm834_vm5 = vcmp.ge.f32.partialorder %v708_v6, 0.0  ;;  %v898_v16 = vmul.f32 0.2, %v708_v6  ;;  %v1801_v17 = vpop.f32.mrb[14].mxu0  ;;  %v1833_v18 = vpop.f32.mrb[14].mxu1 }
 0x114   : > { %vm800_vm6 = vcmp.ge.f32.partialorder %v572_v7, 0.0  ;;  %v930_v19 = vsel %vm802_vm4, %v580_v4, %v866_v10  ;;  %v864_v20 = vmul.f32 0.2, %v572_v7  ;;  %vm832_vm7 = vcmp.ge.f32.partialorder %v700_v11, 0.0  ;;  %v587_v22 = vpop.f32.mrb[15].mxu0  ;;  %v715_v26 = vpop.f32.mrb[15].mxu1 }
 0x115   : > { %v896_v21 = vmul.f32 0.2, %v700_v11  ;;  %v1567_v23 = vpack.c.bf16 %v930_v19, %v929_v63  ;;  %v962_v24 = vsel %vm834_vm5, %v708_v6, %v898_v16  ;;  %vm805_vm8 = vcmp.ge.f32.partialorder %v593_v12, 0.0 }
 0x116   : > { %v869_v25 = vmul.f32 0.2, %v593_v12  ;;  %v1647_v27 = vpack.c.bf16 %v962_v24, %v961_v2  ;;  %v928_v28 = vsel %vm800_vm6, %v572_v7, %v864_v20  ;;  %v721_v30 = vadd.f32 %v1832_v9, %v2019_v40 }
 0x117   : > { %v960_v29 = vsel %vm832_vm7, %v700_v11, %v896_v21  ;;  %1703 = vst [vmem:[%s2036_s13 + $0x28] sm:$0xff] %v1567_v23   ;;  %v1562_v31 = vpack.c.bf16 %v928_v28, %v927_v3  ;;  %v585_v34 = vadd.f32 %v2019_v40, %v584_v13  ;;  %v713_v36 = vadd.f32 %v2019_v40, %v712_v14 }
 0x118   : > { %v1642_v32 = vpack.c.bf16 %v960_v29, %v959_v15  ;;  %v933_v33 = vsel %vm805_vm8, %v593_v12, %v869_v25  ;;  %1719 = vst [vmem:[%s2036_s13 + $0xa8] sm:$0xff] %v1647_v27   ;;  %vm837_vm9 = vcmp.ge.f32.partialorder %v721_v30, 0.0  ;;  %v901_v35 = vmul.f32 0.2, %v721_v30 }
 0x119   : > { %v596_v37 = vadd.f32 %v1801_v17, %v2019_v40  ;;  %1702 = vst [vmem:[%s2036_s13 + $0x20] sm:$0xff] %v1562_v31   ;;  %vm803_vm10 = vcmp.ge.f32.partialorder %v585_v34, 0.0  ;;  %v867_v38 = vmul.f32 0.2, %v585_v34  ;;  %v724_v39 = vadd.f32 %v1833_v18, %v2019_v40  ;;  %v1804_v42 = vpop.f32.mrb[16].mxu0  ;;  %v1836_v43 = vpop.f32.mrb[16].mxu1 }
 0x11a   : > { %1718 = vst [vmem:[%s2036_s13 + $0xa0] sm:$0xff] %v1642_v32   ;;  %v588_v41 = vadd.f32 %v2019_v40, %v587_v22  ;;  %v965_v44 = vsel %vm837_vm9, %v721_v30, %v901_v35  ;;  %vm835_vm11 = vcmp.ge.f32.partialorder %v713_v36, 0.0  ;;  %v899_v45 = vmul.f32 0.2, %v713_v36  ;;  %v600_v46 = vpop.f32.mrb[17].mxu0  ;;  %v728_v47 = vpop.f32.mrb[17].mxu1 }
 0x11b   : > { %vm806_vm12 = vcmp.ge.f32.partialorder %v596_v37, 0.0  ;;  %v931_v48 = vsel %vm803_vm10, %v585_v34, %v867_v38  ;;  %v870_v49 = vmul.f32 0.2, %v596_v37  ;;  %vm838_vm13 = vcmp.ge.f32.partialorder %v724_v39, 0.0  ;;  %v1805_v51 = vpop.f32.mrb[18].mxu0  ;;  %v1837_v55 = vpop.f32.mrb[18].mxu1 }
 0x11c   : > { %v902_v50 = vmul.f32 0.2, %v724_v39  ;;  %v963_v52 = vsel %vm835_vm11, %v713_v36, %v899_v45  ;;  %vm804_vm14 = vcmp.ge.f32.partialorder %v588_v41, 0.0  ;;  %v868_v53 = vmul.f32 0.2, %v588_v41  ;;  %v603_v56 = vpop.f32.mrb[19].mxu0 }
 0x11d   : > { %v716_v54 = vadd.f32 %v2019_v40, %v715_v26  ;;  %v934_v57 = vsel %vm806_vm12, %v596_v37, %v870_v49  ;;  %v609_v59 = vadd.f32 %v1804_v42, %v2019_v40  ;;  %v737_v60 = vadd.f32 %v1836_v43, %v2019_v40  ;;  %v731_v61 = vpop.f32.mrb[19].mxu1 }
 0x11e   : > { %v966_v58 = vsel %vm838_vm13, %v724_v39, %v902_v50  ;;  %v1577_v62 = vpack.c.bf16 %v934_v57, %v933_v33  ;;  %v932_v0 = vsel %vm804_vm14, %v588_v41, %v868_v53  ;;  %v601_v5 = vadd.f32 %v2019_v40, %v600_v46 }
 0x11f   : > { %v1657_v63 = vpack.c.bf16 %v966_v58, %v965_v44  ;;  %vm836_vm15 = vcmp.ge.f32.partialorder %v716_v54, 0.0  ;;  %v1572_v1 = vpack.c.bf16 %v932_v0, %v931_v48  ;;  %v900_v2 = vmul.f32 0.2, %v716_v54 }
 0x120   : > { %vm809_vm0 = vcmp.ge.f32.partialorder %v609_v59, 0.0  ;;  %v873_v3 = vmul.f32 0.2, %v609_v59  ;;  %1705 = vst [vmem:[%s2036_s13 + $0x38] sm:$0xff] %v1577_v62   ;;  %vm841_vm1 = vcmp.ge.f32.partialorder %v737_v60, 0.0  ;;  %v729_v6 = vadd.f32 %v2019_v40, %v728_v47 }
 0x121   : > { %1721 = vst [vmem:[%s2036_s13 + $0xb8] sm:$0xff] %v1657_v63   ;;  %v905_v4 = vmul.f32 0.2, %v737_v60  ;;  %1704 = vst [vmem:[%s2036_s13 + $0x30] sm:$0xff] %v1572_v1   ;;  %v964_v7 = vsel %vm836_vm15, %v716_v54, %v900_v2  ;;  %v612_v9 = vadd.f32 %v1805_v51, %v2019_v40  ;;  %v740_v10 = vadd.f32 %v1837_v55, %v2019_v40  ;;  %v1808_v11 = vpop.f32.mrb[20].mxu0  ;;  %v1840_v12 = vpop.f32.mrb[20].mxu1 }
 0x122   : > { %v937_v8 = vsel %vm809_vm0, %v609_v59, %v873_v3  ;;  %v1652_v13 = vpack.c.bf16 %v964_v7, %v963_v52  ;;  %vm807_vm2 = vcmp.ge.f32.partialorder %v601_v5, 0.0  ;;  %v871_v15 = vmul.f32 0.2, %v601_v5  ;;  %v616_v16 = vpop.f32.mrb[21].mxu0  ;;  %v744_v17 = vpop.f32.mrb[21].mxu1 }
 0x123   : > { %v969_v14 = vsel %vm841_vm1, %v737_v60, %v905_v4  ;;  %vm839_vm3 = vcmp.ge.f32.partialorder %v729_v6, 0.0  ;;  %v903_v18 = vmul.f32 0.2, %v729_v6  ;;  %vm810_vm4 = vcmp.ge.f32.partialorder %v612_v9, 0.0  ;;  %v1809_v23 = vpop.f32.mrb[22].mxu0  ;;  %v1841_v24 = vpop.f32.mrb[22].mxu1 }
 0x124   : > { %v874_v19 = vmul.f32 0.2, %v612_v9  ;;  %1720 = vst [vmem:[%s2036_s13 + $0xb0] sm:$0xff] %v1652_v13   ;;  %v935_v20 = vsel %vm807_vm2, %v601_v5, %v871_v15  ;;  %vm842_vm5 = vcmp.ge.f32.partialorder %v740_v10, 0.0  ;;  %v906_v21 = vmul.f32 0.2, %v740_v10 }
 0x125   : > { %v604_v22 = vadd.f32 %v2019_v40, %v603_v56  ;;  %v967_v25 = vsel %vm839_vm3, %v729_v6, %v903_v18  ;;  %v732_v27 = vadd.f32 %v2019_v40, %v731_v61  ;;  %v625_v28 = vadd.f32 %v1808_v11, %v2019_v40  ;;  %v619_v29 = vpop.f32.mrb[23].mxu0  ;;  %v747_v30 = vpop.f32.mrb[23].mxu1 }
 0x126   : > { %v938_v26 = vsel %vm810_vm4, %v612_v9, %v874_v19  ;;  %v970_v32 = vsel %vm842_vm5, %v740_v10, %v906_v21  ;;  %v753_v38 = vadd.f32 %v1840_v12, %v2019_v40  ;;  %v617_v39 = vadd.f32 %v2019_v40, %v616_v16 }
 0x127   : > { %v1587_v31 = vpack.c.bf16 %v938_v26, %v937_v8  ;;  %vm808_vm6 = vcmp.ge.f32.partialorder %v604_v22, 0.0  ;;  %v872_v33 = vmul.f32 0.2, %v604_v22  ;;  %v1667_v34 = vpack.c.bf16 %v970_v32, %v969_v14 }
 0x128   : > { %vm840_vm7 = vcmp.ge.f32.partialorder %v732_v27, 0.0  ;;  %v904_v35 = vmul.f32 0.2, %v732_v27  ;;  %vm813_vm8 = vcmp.ge.f32.partialorder %v625_v28, 0.0  ;;  %v877_v37 = vmul.f32 0.2, %v625_v28 }
 0x129   : > { %1707 = vst [vmem:[%s2036_s13 + $0x48] sm:$0xff] %v1587_v31   ;;  %v936_v36 = vsel %vm808_vm6, %v604_v22, %v872_v33  ;;  %1723 = vst [vmem:[%s2036_s13 + $0xc8] sm:$0xff] %v1667_v34   ;;  %v745_v43 = vadd.f32 %v2019_v40, %v744_v17  ;;  %v628_v44 = vadd.f32 %v1809_v23, %v2019_v40  ;;  %v1812_v45 = vpop.f32.mrb[24].mxu0  ;;  %v1844_v46 = vpop.f32.mrb[24].mxu1  ;;  %vm845_vm9 = vcmp.ge.f32.partialorder %v753_v38, 0.0 }
 0x12a   : > { %v1582_v41 = vpack.c.bf16 %v936_v36, %v935_v20  ;;  %v968_v42 = vsel %vm840_vm7, %v732_v27, %v904_v35  ;;  %v909_v48 = vmul.f32 0.2, %v753_v38  ;;  %v632_v49 = vpop.f32.mrb[25].mxu0  ;;  %v760_v50 = vpop.f32.mrb[25].mxu1  ;;  %v941_v51 = vsel %vm813_vm8, %v625_v28, %v877_v37 }
 0x12b   : > { %v1662_v47 = vpack.c.bf16 %v968_v42, %v967_v25  ;;  %vm811_vm10 = vcmp.ge.f32.partialorder %v617_v39, 0.0  ;;  %v875_v52 = vmul.f32 0.2, %v617_v39  ;;  %v907_v53 = vmul.f32 0.2, %v745_v43  ;;  %v1813_v56 = vpop.f32.mrb[26].mxu0 }
 0x12c   : > { %1706 = vst [vmem:[%s2036_s13 + $0x40] sm:$0xff] %v1582_v41   ;;  %vm843_vm11 = vcmp.ge.f32.partialorder %v745_v43, 0.0  ;;  %vm814_vm12 = vcmp.ge.f32.partialorder %v628_v44, 0.0  ;;  %v878_v54 = vmul.f32 0.2, %v628_v44  ;;  %v756_v55 = vadd.f32 %v1841_v24, %v2019_v40  ;;  %v1845_v57 = vpop.f32.mrb[26].mxu1 }
 0x12d   : > { %1722 = vst [vmem:[%s2036_s13 + $0xc0] sm:$0xff] %v1662_v47   ;;  %v973_v58 = vsel %vm845_vm9, %v753_v38, %v909_v48  ;;  %v939_v59 = vsel %vm811_vm10, %v617_v39, %v875_v52  ;;  %v620_v60 = vadd.f32 %v2019_v40, %v619_v29  ;;  %v748_v61 = vadd.f32 %v2019_v40, %v747_v30  ;;  %v635_v62 = vpop.f32.mrb[27].mxu0  ;;  %v763_v63 = vpop.f32.mrb[27].mxu1 }
 0x12e   : > { %v942_v0 = vsel %vm814_vm12, %v628_v44, %v878_v54  ;;  %vm846_vm13 = vcmp.ge.f32.partialorder %v756_v55, 0.0  ;;  %v910_v1 = vmul.f32 0.2, %v756_v55  ;;  %v641_v2 = vadd.f32 %v1812_v45, %v2019_v40 }
 0x12f   : > { %v1597_v3 = vpack.c.bf16 %v942_v0, %v941_v51  ;;  %vm812_vm14 = vcmp.ge.f32.partialorder %v620_v60, 0.0  ;;  %v876_v4 = vmul.f32 0.2, %v620_v60  ;;  %vm844_vm15 = vcmp.ge.f32.partialorder %v748_v61, 0.0 }
 0x130   : > { %v974_v5 = vsel %vm846_vm13, %v756_v55, %v910_v1  ;;  %v908_v6 = vmul.f32 0.2, %v748_v61  ;;  %vm817_vm0 = vcmp.ge.f32.partialorder %v641_v2, 0.0  ;;  %v881_v7 = vmul.f32 0.2, %v641_v2 }
 0x131   : > { %1709 = vst [vmem:[%s2036_s13 + $0x58] sm:$0xff] %v1597_v3   ;;  %v1677_v8 = vpack.c.bf16 %v974_v5, %v973_v58  ;;  %v940_v9 = vsel %vm812_vm14, %v620_v60, %v876_v4  ;;  %v769_v10 = vadd.f32 %v1844_v46, %v2019_v40  ;;  %v633_v11 = vadd.f32 %v2019_v40, %v632_v49  ;;  %v1816_v12 = vpop.f32.mrb[28].mxu0  ;;  %v1848_v13 = vpop.f32.mrb[28].mxu1 }
 0x132   : > { %v971_v14 = vsel %vm843_vm11, %v745_v43, %v907_v53  ;;  %v1592_v15 = vpack.c.bf16 %v940_v9, %v939_v59  ;;  %v972_v16 = vsel %vm844_vm15, %v748_v61, %v908_v6  ;;  %v761_v17 = vadd.f32 %v2019_v40, %v760_v50  ;;  %v648_v18 = vpop.f32.mrb[29].mxu0  ;;  %v776_v19 = vpop.f32.mrb[29].mxu1 }
 0x133   : > { %1725 = vst [vmem:[%s2036_s13 + $0xd8] sm:$0xff] %v1677_v8   ;;  %v1672_v20 = vpack.c.bf16 %v972_v16, %v971_v14  ;;  %vm849_vm1 = vcmp.ge.f32.partialorder %v769_v10, 0.0  ;;  %v913_v21 = vmul.f32 0.2, %v769_v10  ;;  %vm815_vm2 = vcmp.ge.f32.partialorder %v633_v11, 0.0  ;;  %v1817_v22 = vpop.f32.mrb[30].mxu0 }
 0x134   : > { %v1849_v23 = vpop.f32.mrb[30].mxu1  ;;  %1708 = vst [vmem:[%s2036_s13 + $0x50] sm:$0xff] %v1592_v15   ;;  %v945_v24 = vsel %vm817_vm0, %v641_v2, %v881_v7  ;;  %v879_v25 = vmul.f32 0.2, %v633_v11  ;;  %vm847_vm3 = vcmp.ge.f32.partialorder %v761_v17, 0.0  ;;  %v644_v26 = vadd.f32 %v1813_v56, %v2019_v40  ;;  %v651_v27 = vpop.f32.mrb[31].mxu0 }
 0x135   : > { %1724 = vst [vmem:[%s2036_s13 + $0xd0] sm:$0xff] %v1672_v20   ;;  %v911_v28 = vmul.f32 0.2, %v761_v17  ;;  %v772_v29 = vadd.f32 %v1845_v57, %v2019_v40  ;;  %v636_v30 = vadd.f32 %v2019_v40, %v635_v62  ;;  %v764_v31 = vadd.f32 %v2019_v40, %v763_v63  ;;  %v779_v32 = vpop.f32.mrb[31].mxu1 }
 0x136   : > { %v977_v33 = vsel %vm849_vm1, %v769_v10, %v913_v21  ;;  %v943_v34 = vsel %vm815_vm2, %v633_v11, %v879_v25  ;;  %vm818_vm4 = vcmp.ge.f32.partialorder %v644_v26, 0.0  ;;  %v882_v35 = vmul.f32 0.2, %v644_v26 }
 0x137   : > { %vm850_vm5 = vcmp.ge.f32.partialorder %v772_v29, 0.0  ;;  %v914_v36 = vmul.f32 0.2, %v772_v29  ;;  %vm816_vm6 = vcmp.ge.f32.partialorder %v636_v30, 0.0  ;;  %v880_v37 = vmul.f32 0.2, %v636_v30 }
 0x138   : > { %v946_v38 = vsel %vm818_vm4, %v644_v26, %v882_v35  ;;  %vm848_vm7 = vcmp.ge.f32.partialorder %v764_v31, 0.0  ;;  %v912_v39 = vmul.f32 0.2, %v764_v31  ;;  %v657_v41 = vadd.f32 %v1816_v12, %v2019_v40 }
 0x139   : > { %v1607_v42 = vpack.c.bf16 %v946_v38, %v945_v24  ;;  %v978_v43 = vsel %vm850_vm5, %v772_v29, %v914_v36  ;;  %v944_v44 = vsel %vm816_vm6, %v636_v30, %v880_v37  ;;  %v785_v45 = vadd.f32 %v1848_v13, %v2019_v40 }
 0x13a   : > { %v975_v46 = vsel %vm847_vm3, %v761_v17, %v911_v28  ;;  %v1687_v47 = vpack.c.bf16 %v978_v43, %v977_v33  ;;  %v1602_v48 = vpack.c.bf16 %v944_v44, %v943_v34  ;;  %v976_v49 = vsel %vm848_vm7, %v764_v31, %v912_v39 }
 0x13b   : > { %1711 = vst [vmem:[%s2036_s13 + $0x68] sm:$0xff] %v1607_v42   ;;  %v1682_v50 = vpack.c.bf16 %v976_v49, %v975_v46  ;;  %vm821_vm8 = vcmp.ge.f32.partialorder %v657_v41, 0.0  ;;  %v885_v51 = vmul.f32 0.2, %v657_v41  ;;  %v917_v52 = vmul.f32 0.2, %v785_v45 }
 0x13c   : > { %1727 = vst [vmem:[%s2036_s13 + $0xe8] sm:$0xff] %v1687_v47   ;;  %1710 = vst [vmem:[%s2036_s13 + $0x60] sm:$0xff] %v1602_v48   ;;  %v649_v53 = vadd.f32 %v2019_v40, %v648_v18  ;;  %v777_v54 = vadd.f32 %v2019_v40, %v776_v19  ;;  %v660_v55 = vadd.f32 %v1817_v22, %v2019_v40  ;;  %vm853_vm9 = vcmp.ge.f32.partialorder %v785_v45, 0.0 }
 0x13d   : > { %v788_v56 = vadd.f32 %v1849_v23, %v2019_v40  ;;  %1726 = vst [vmem:[%s2036_s13 + $0xe0] sm:$0xff] %v1682_v50   ;;  %v652_v57 = vadd.f32 %v2019_v40, %v651_v27  ;;  %v780_v58 = vadd.f32 %v2019_v40, %v779_v32  ;;  %v949_v59 = vsel %vm821_vm8, %v657_v41, %v885_v51 }
 0x13e   : > { %vm819_vm10 = vcmp.ge.f32.partialorder %v649_v53, 0.0  ;;  %v883_v60 = vmul.f32 0.2, %v649_v53  ;;  %v915_v61 = vmul.f32 0.2, %v777_v54  ;;  %vm822_vm11 = vcmp.ge.f32.partialorder %v660_v55, 0.0 }
 0x13f   : > { %v886_v62 = vmul.f32 0.2, %v660_v55  ;;  %vm854_vm12 = vcmp.ge.f32.partialorder %v788_v56, 0.0  ;;  %v918_v63 = vmul.f32 0.2, %v788_v56  ;;  %v981_v0 = vsel %vm853_vm9, %v785_v45, %v917_v52 }
 0x140   : > { %vm851_vm13 = vcmp.ge.f32.partialorder %v777_v54, 0.0  ;;  %vm820_vm14 = vcmp.ge.f32.partialorder %v652_v57, 0.0  ;;  %v884_v1 = vmul.f32 0.2, %v652_v57  ;;  %vm852_vm15 = vcmp.ge.f32.partialorder %v780_v58, 0.0 }
 0x141   : > { %v950_v2 = vsel %vm822_vm11, %v660_v55, %v886_v62  ;;  %v982_v3 = vsel %vm854_vm12, %v788_v56, %v918_v63  ;;  %v916_v40 = vmul.f32 0.2, %v780_v58  ;;  %v947_v4 = vsel %vm819_vm10, %v649_v53, %v883_v60 }
 0x142   : > { %v1617_v5 = vpack.c.bf16 %v950_v2, %v949_v59  ;;  %v1697_v6 = vpack.c.bf16 %v982_v3, %v981_v0  ;;  %v948_v7 = vsel %vm820_vm14, %v652_v57, %v884_v1  ;;  %v979_v8 = vsel %vm851_vm13, %v777_v54, %v915_v61 }
 0x143   : > { %v1612_v9 = vpack.c.bf16 %v948_v7, %v947_v4  ;;  %v980_v10 = vsel %vm852_vm15, %v780_v58, %v916_v40 }
 0x144   : > { %1713 = vst [vmem:[%s2036_s13 + $0x78] sm:$0xff] %v1617_v5   ;;  %1729 = vst [vmem:[%s2036_s13 + $0xf8] sm:$0xff] %v1697_v6   ;;  %v1692_v11 = vpack.c.bf16 %v980_v10, %v979_v8 }
 0x145   : > { %1712 = vst [vmem:[%s2036_s13 + $0x70] sm:$0xff] %v1612_v9  }
 0x146   : > { %1728 = vst [vmem:[%s2036_s13 + $0xf0] sm:$0xff] %v1692_v11  }
 0x147 PF: > { %s13_s12 = sadd.s32 1, %s1920_s12  }
 0x148   : > { %p10_p4 = scmp.ge.s32.totalorder %s13_s12, 6  }
 0x14a   :  { %12 = sbr.rel (!%p10_p4) target bundleno = 1 (0x1), region = 62 }

// kernel: discriminator_forward.6
= control target key start
LH: loop header
LB: loop body
LE: loop exit
PB: predicated region body
PF: predicated region fallthrough
CT: control target
= control target key end

     0   :  { %v9342_v0 = vmov 0   ;;  %s13321_s1 = inlined_call_operand.vmem [shape: bf16[2048,128], index: 1, kind: input, shape index: {}]   ;;  %s13322_s0 = inlined_call_operand.vmem [shape: bf16[512,2048], index: 0, kind: input, shape index: {}]   ;;  %s13323_s2 = inlined_call_operand.vmem [shape: f32[1,128], index: 2, kind: input, shape index: {}]   ;;  %s13324_s3 = inlined_call_operand.vmem [shape: f32[1,128], index: 3, kind: input, shape index: {}]   ;;  %s13325_s4 = inlined_call_operand.vmem [shape: bf16[512,128], index: 4, kind: output, shape index: {}]  }
   0x1   :  { %4114 = vmatprep.subr.bf16.mxu1 %v9342_v0  ;;  %5270 = vmatprep.subr.bf16.mxu0 %v9342_v0  ;;  %v9212_v1 = vld [vmem:[%s13321_s1] sm:$0xff]   ;;  %v9214_v3 = vld [vmem:[%s13321_s1 + $0x8] sm:$0xff]   ;;  %v9216_v5 = vld [vmem:[%s13321_s1 + $0x10] sm:$0xff]  }
   0x2   :  { %v9213_v2 = vld [vmem:[%s13321_s1 + $0x200] sm:$0xff]   ;;  %4115 = vmatpush1.bf16.msra.mxu1 %v9212_v1  ;;  %v9215_v4 = vld [vmem:[%s13321_s1 + $0x208] sm:$0xff]   ;;  %v9217_v6 = vld [vmem:[%s13321_s1 + $0x210] sm:$0xff]  }
   0x3   :  { %5271 = vmatpush1.bf16.msra.mxu0 %v9213_v2  ;;  %4116 = vmatprep.subr.bf16.mxu1 %v9342_v0  ;;  %v9218_v7 = vld [vmem:[%s13321_s1 + $0x18] sm:$0xff]   ;;  %v9220_v9 = vld [vmem:[%s13321_s1 + $0x20] sm:$0xff]   ;;  %v9222_v11 = vld [vmem:[%s13321_s1 + $0x28] sm:$0xff]  }
   0x4   :  { %5272 = vmatprep.subr.bf16.mxu0 %v9342_v0  ;;  %v9219_v8 = vld [vmem:[%s13321_s1 + $0x218] sm:$0xff]   ;;  %v9221_v10 = vld [vmem:[%s13321_s1 + $0x220] sm:$0xff]   ;;  %v9223_v12 = vld [vmem:[%s13321_s1 + $0x228] sm:$0xff]  }
   0x5   :  { %v9224_v13 = vld [vmem:[%s13321_s1 + $0x30] sm:$0xff]   ;;  %v9226_v15 = vld [vmem:[%s13321_s1 + $0x38] sm:$0xff]   ;;  %v9228_v17 = vld [vmem:[%s13321_s1 + $0x40] sm:$0xff]  }
   0x6   :  { %4117 = vmatpush1.bf16.msra.mxu1 %v9214_v3  ;;  %v9225_v14 = vld [vmem:[%s13321_s1 + $0x230] sm:$0xff]   ;;  %v9227_v16 = vld [vmem:[%s13321_s1 + $0x238] sm:$0xff]   ;;  %v9229_v18 = vld [vmem:[%s13321_s1 + $0x240] sm:$0xff]  }
   0x7   :  { %5273 = vmatpush1.bf16.msra.mxu0 %v9215_v4  ;;  %4118 = vmatprep.subr.bf16.mxu1 %v9342_v0  ;;  %v9443_v19 = vld [vmem:[%s13322_s0] sm:$0xff]  ;;  %v9230_v24 = vld [vmem:[%s13321_s1 + $0x48] sm:$0xff]   ;;  %v9232_v27 = vld [vmem:[%s13321_s1 + $0x50] sm:$0xff]  }
   0x8   :  { %5274 = vmatprep.subr.bf16.mxu0 %v9342_v0  ;;  %v9448_v20 = vld [vmem:[%s13322_s0 + $0x40] sm:$0xff]  ;;  %v9231_v26 = vld [vmem:[%s13321_s1 + $0x248] sm:$0xff]   ;;  %v9233_v28 = vld [vmem:[%s13321_s1 + $0x250] sm:$0xff]  }
   0x9   :  { %v9453_v21 = vld [vmem:[%s13322_s0 + $0x20] sm:$0xff]  ;;  %v7419_v22 = vcombine.high %v9443_v19, %v9448_v20  ;;  %v9234_v29 = vld [vmem:[%s13321_s1 + $0x58] sm:$0xff]   ;;  %v9238_v33 = vld [vmem:[%s13321_s1 + $0x68] sm:$0xff]   ;;  %v7418_v42 = vcombine.low %v9443_v19, %v9448_v20 }
   0xa   :  { %4119 = vmatpush1.bf16.msra.mxu1 %v9216_v5  ;;  %v9460_v23 = vld [vmem:[%s13322_s0 + $0x60] sm:$0xff]  ;;  %v9235_v30 = vld [vmem:[%s13321_s1 + $0x258] sm:$0xff]   ;;  %v9239_v34 = vld [vmem:[%s13321_s1 + $0x268] sm:$0xff]  }
   0xb   :  { %5275 = vmatpush1.bf16.msra.mxu0 %v9217_v6  ;;  %4120 = vmatprep.subr.bf16.mxu1 %v9342_v0  ;;  %v7427_v25 = vcombine.high %v9453_v21, %v9460_v23  ;;  %v9236_v31 = vld [vmem:[%s13321_s1 + $0x60] sm:$0xff]   ;;  %v9240_v35 = vld [vmem:[%s13321_s1 + $0x70] sm:$0xff]   ;;  %v9242_v37 = vld [vmem:[%s13321_s1 + $0x78] sm:$0xff]   ;;  %v7426_v44 = vcombine.low %v9453_v21, %v9460_v23 }
   0xc   :  { %5276 = vmatprep.subr.bf16.mxu0 %v9342_v0  ;;  %4146 = vmatprep.mubr.bf16.mxu1 %v7419_v22  ;;  %v9237_v32 = vld [vmem:[%s13321_s1 + $0x260] sm:$0xff]   ;;  %v9241_v36 = vld [vmem:[%s13321_s1 + $0x270] sm:$0xff]   ;;  %v9243_v38 = vld [vmem:[%s13321_s1 + $0x278] sm:$0xff]  }
   0xd   :  { %5302 = vmatprep.mubr.bf16.mxu0 %v7427_v25  ;;  %v34_v39 = vld [vmem:[%s13322_s0 + $0x80] sm:$0xff]  ;;  %v9246_v51 = vld [vmem:[%s13321_s1 + $0x88] sm:$0xff]   ;;  %v9248_v59 = vld [vmem:[%s13321_s1 + $0x90] sm:$0xff]  }
   0xe   :  { %4121 = vmatpush1.bf16.msra.mxu1 %v9218_v7  ;;  %v42_v40 = vld [vmem:[%s13322_s0 + $0xc0] sm:$0xff]  ;;  %v9247_v52 = vld [vmem:[%s13321_s1 + $0x288] sm:$0xff]   ;;  %v9249_v60 = vld [vmem:[%s13321_s1 + $0x290] sm:$0xff]  }
   0xf   :  { %5277 = vmatpush1.bf16.msra.mxu0 %v9219_v8  ;;  %4122 = vmatprep.subr.bf16.mxu1 %v9342_v0  ;;  %v38_v41 = vld [vmem:[%s13322_s0 + $0xa0] sm:$0xff]  ;;  %v7435_v47 = vcombine.high %v34_v39, %v42_v40  ;;  %v7434_v55 = vcombine.low %v34_v39, %v42_v40  ;;  %v9250_v2 = vld [vmem:[%s13321_s1 + $0x98] sm:$0xff]   ;;  %v9257_v20 = vld [vmem:[%s13321_s1 + $0x2b0] sm:$0xff]  }
  0x10   :  { %5278 = vmatprep.subr.bf16.mxu0 %v9342_v0  ;;  %v46_v43 = vld [vmem:[%s13322_s0 + $0xe0] sm:$0xff]  ;;  %v9251_v3 = vld [vmem:[%s13321_s1 + $0x298] sm:$0xff]   ;;  %v9263_v39 = vld [vmem:[%s13321_s1 + $0x2c8] sm:$0xff]  }
  0x11   :  { %v9244_v45 = vld [vmem:[%s13321_s1 + $0x80] sm:$0xff]   ;;  %v7443_v48 = vcombine.high %v38_v41, %v46_v43  ;;  %v7442_v56 = vcombine.low %v38_v41, %v46_v43  ;;  %v9264_v41 = vld [vmem:[%s13321_s1 + $0xd0] sm:$0xff]  }
  0x12   :  { %4123 = vmatpush1.bf16.msra.mxu1 %v9220_v9  ;;  %v9245_v46 = vld [vmem:[%s13321_s1 + $0x280] sm:$0xff]  }
  0x13   :  { %5279 = vmatpush1.bf16.msra.mxu0 %v9221_v10  ;;  %4124 = vmatprep.subr.bf16.mxu1 %v9342_v0  ;;  %v50_v49 = vld [vmem:[%s13322_s0 + $0x100] sm:$0xff] }
  0x14   :  { %5280 = vmatprep.subr.bf16.mxu0 %v9342_v0  ;;  %v58_v50 = vld [vmem:[%s13322_s0 + $0x140] sm:$0xff] }
  0x15   :  { %v54_v53 = vld [vmem:[%s13322_s0 + $0x120] sm:$0xff]  ;;  %v7451_v57 = vcombine.high %v50_v49, %v58_v50  ;;  %v7450_v4 = vcombine.low %v50_v49, %v58_v50 }
  0x16   :  { %4125 = vmatpush1.bf16.msra.mxu1 %v9222_v11  ;;  %v62_v54 = vld [vmem:[%s13322_s0 + $0x160] sm:$0xff] }
  0x17   :  { %5281 = vmatpush1.bf16.msra.mxu0 %v9223_v12  ;;  %4126 = vmatprep.subr.bf16.mxu1 %v9342_v0  ;;  %v7459_v58 = vcombine.high %v54_v53, %v62_v54  ;;  %v66_v61 = vld [vmem:[%s13322_s0 + $0x180] sm:$0xff]  ;;  %v7458_v6 = vcombine.low %v54_v53, %v62_v54 }
  0x18   :  { %5282 = vmatprep.subr.bf16.mxu0 %v9342_v0  ;;  %v74_v62 = vld [vmem:[%s13322_s0 + $0x1c0] sm:$0xff] }
  0x19   :  { %v70_v63 = vld [vmem:[%s13322_s0 + $0x1a0] sm:$0xff]  ;;  %v7467_v7 = vcombine.high %v66_v61, %v74_v62 }
  0x1a   :  { %4127 = vmatpush1.bf16.msra.mxu1 %v9224_v13  ;;  %v78_v1 = vld [vmem:[%s13322_s0 + $0x1e0] sm:$0xff] }
  0x1b   :  { %5283 = vmatpush1.bf16.msra.mxu0 %v9225_v14  ;;  %4128 = vmatprep.subr.bf16.mxu1 %v9342_v0  ;;  %v9252_v5 = vld [vmem:[%s13321_s1 + $0xa0] sm:$0xff]   ;;  %v7475_v9 = vcombine.high %v70_v63, %v78_v1  ;;  %v9254_v14 = vld [vmem:[%s13321_s1 + $0xa8] sm:$0xff]  }
  0x1c   :  { %5284 = vmatprep.subr.bf16.mxu0 %v9342_v0  ;;  %v9253_v8 = vld [vmem:[%s13321_s1 + $0x2a0] sm:$0xff]  }
  0x1d   :  { %v82_v10 = vld [vmem:[%s13322_s0 + $0x200] sm:$0xff] }
  0x1e   :  { %4129 = vmatpush1.bf16.msra.mxu1 %v9226_v15  ;;  %v90_v11 = vld [vmem:[%s13322_s0 + $0x240] sm:$0xff]  ;;  %v9255_v15 = vld [vmem:[%s13321_s1 + $0x2a8] sm:$0xff]  }
  0x1f   :  { %5285 = vmatpush1.bf16.msra.mxu0 %v9227_v16  ;;  %4130 = vmatprep.subr.bf16.mxu1 %v9342_v0  ;;  %v86_v12 = vld [vmem:[%s13322_s0 + $0x220] sm:$0xff]  ;;  %v7466_v16 = vcombine.low %v66_v61, %v74_v62  ;;  %v7483_v19 = vcombine.high %v82_v10, %v90_v11 }
  0x20   :  { %5286 = vmatprep.subr.bf16.mxu0 %v9342_v0  ;;  %v94_v13 = vld [vmem:[%s13322_s0 + $0x260] sm:$0xff] }
  0x21   :  { %v7491_v21 = vcombine.high %v86_v12, %v94_v13  ;;  %v98_v22 = vld [vmem:[%s13322_s0 + $0x280] sm:$0xff] }
  0x22   :  { %4131 = vmatpush1.bf16.msra.mxu1 %v9228_v17  ;;  %v9256_v17 = vld [vmem:[%s13321_s1 + $0xb0] sm:$0xff]   ;;  %v106_v23 = vld [vmem:[%s13322_s0 + $0x2c0] sm:$0xff] }
  0x23   :  { %5287 = vmatpush1.bf16.msra.mxu0 %v9229_v18  ;;  %4132 = vmatprep.subr.bf16.mxu1 %v9342_v0  ;;  %v7474_v18 = vcombine.low %v70_v63, %v78_v1  ;;  %v110_v25 = vld [vmem:[%s13322_s0 + $0x2e0] sm:$0xff]  ;;  %v7498_v40 = vcombine.low %v98_v22, %v106_v23 }
  0x24   :  { %5288 = vmatprep.subr.bf16.mxu0 %v9342_v0  ;;  %v142_v49 = vld [vmem:[%s13322_s0 + $0x3e0] sm:$0xff] }
  0x25   :  { %v146_v54 = vld [vmem:[%s13322_s0 + $0x400] sm:$0xff] }
  0x26   :  { %4133 = vmatpush1.bf16.msra.mxu1 %v9230_v24  ;;  %v102_v24 = vld [vmem:[%s13322_s0 + $0x2a0] sm:$0xff] }
  0x27   :  { %5289 = vmatpush1.bf16.msra.mxu0 %v9231_v26  ;;  %4134 = vmatprep.subr.bf16.mxu1 %v9342_v0  ;;  %v9258_v26 = vld [vmem:[%s13321_s1 + $0xb8] sm:$0xff]   ;;  %v162_v1 = vld [vmem:[%s13322_s0 + $0x480] sm:$0xff] }
  0x28   :  { %5290 = vmatprep.subr.bf16.mxu0 %v9342_v0 }
  0x2a   :  { %4135 = vmatpush1.bf16.msra.mxu1 %v9232_v27  ;;  %v9259_v27 = vld [vmem:[%s13321_s1 + $0x2b8] sm:$0xff]  }
  0x2b   :  { %5291 = vmatpush1.bf16.msra.mxu0 %v9233_v28  ;;  %4136 = vmatprep.subr.bf16.mxu1 %v9342_v0  ;;  %v7482_v28 = vcombine.low %v82_v10, %v90_v11  ;;  %v9268_v10 = vld [vmem:[%s13321_s1 + $0xe0] sm:$0xff]  }
  0x2c   :  { %5292 = vmatprep.subr.bf16.mxu0 %v9342_v0  ;;  %v9269_v11 = vld [vmem:[%s13321_s1 + $0x2e0] sm:$0xff]  }
  0x2e   :  { %4137 = vmatpush1.bf16.msra.mxu1 %v9234_v29  ;;  %v9260_v29 = vld [vmem:[%s13321_s1 + $0xc0] sm:$0xff]  }
  0x2f   :  { %5293 = vmatpush1.bf16.msra.mxu0 %v9235_v30  ;;  %4138 = vmatprep.subr.bf16.mxu1 %v9342_v0  ;;  %v7490_v30 = vcombine.low %v86_v12, %v94_v13  ;;  %v186_v12 = vld [vmem:[%s13322_s0 + $0x540] sm:$0xff] }
  0x30   :  { %5294 = vmatprep.subr.bf16.mxu0 %v9342_v0  ;;  %v182_v13 = vld [vmem:[%s13322_s0 + $0x520] sm:$0xff] }
  0x32   :  { %4139 = vmatpush1.bf16.msra.mxu1 %v9236_v31  ;;  %v7499_v31 = vcombine.high %v98_v22, %v106_v23  ;;  %v206_v22 = vld [vmem:[%s13322_s0 + $0x5e0] sm:$0xff] }
  0x33   :  { %5295 = vmatpush1.bf16.msra.mxu0 %v9237_v32  ;;  %4140 = vmatprep.subr.bf16.mxu1 %v9342_v0  ;;  %v9261_v32 = vld [vmem:[%s13321_s1 + $0x2c0] sm:$0xff]  }
  0x34   :  { %5296 = vmatprep.subr.bf16.mxu0 %v9342_v0 }
  0x36   :  { %4141 = vmatpush1.bf16.msra.mxu1 %v9238_v33  ;;  %v7507_v33 = vcombine.high %v102_v24, %v110_v25 }
  0x37   :  { %5297 = vmatpush1.bf16.msra.mxu0 %v9239_v34  ;;  %4142 = vmatprep.subr.bf16.mxu1 %v9342_v0  ;;  %v114_v34 = vld [vmem:[%s13322_s0 + $0x300] sm:$0xff] }
  0x38   :  { %5298 = vmatprep.subr.bf16.mxu0 %v9342_v0 }
  0x3a   :  { %4143 = vmatpush1.bf16.msra.mxu1 %v9240_v35  ;;  %v122_v35 = vld [vmem:[%s13322_s0 + $0x340] sm:$0xff] }
  0x3b   :  { %5299 = vmatpush1.bf16.msra.mxu0 %v9241_v36  ;;  %4144 = vmatprep.subr.bf16.mxu1 %v9342_v0  ;;  %v118_v36 = vld [vmem:[%s13322_s0 + $0x320] sm:$0xff]  ;;  %v7515_v43 = vcombine.high %v114_v34, %v122_v35  ;;  %v7514_v50 = vcombine.low %v114_v34, %v122_v35 }
  0x3c   :  { %5300 = vmatprep.subr.bf16.mxu0 %v9342_v0 }
  0x3e   :  { %4145 = vmatpush1.bf16.msra.mxu1 %v9242_v37  ;;  %v126_v37 = vld [vmem:[%s13322_s0 + $0x360] sm:$0xff] }
  0x3f   :  { %5301 = vmatpush1.bf16.msra.mxu0 %v9243_v38  ;;  %4403 = vmatprep.subr.bf16.mxu1 %v9342_v0  ;;  %v9262_v38 = vld [vmem:[%s13321_s1 + $0xc8] sm:$0xff]  }
  0x40   :  { %5559 = vmatprep.subr.bf16.mxu0 %v9342_v0 }
  0x41   :  { %4147 = vmatmul.mubr.bf16.vlgmr.msra.gmra.mrb[0].mxu1 %v7418_v42  ;;  %v7506_v42 = vcombine.low %v102_v24, %v110_v25 }
  0x42   :  { %5303 = vmatmul.mubr.bf16.vlgmr.msra.gmra.mrb[0].mxu0 %v7426_v44  ;;  %4404 = vmatpush1.bf16.msra.mxu1 %v9244_v45  ;;  %v9265_v44 = vld [vmem:[%s13321_s1 + $0x2d0] sm:$0xff]   ;;  %v7523_v45 = vcombine.high %v118_v36, %v126_v37 }
  0x43   :  { %5560 = vmatpush1.bf16.msra.mxu0 %v9245_v46  ;;  %4154 = vmatprep.mubr.bf16.mxu1 %v7435_v47  ;;  %v130_v46 = vld [vmem:[%s13322_s0 + $0x380] sm:$0xff] }
  0x44   :  { %5310 = vmatprep.mubr.bf16.mxu0 %v7443_v48  ;;  %4405 = vmatprep.subr.bf16.mxu1 %v9342_v0  ;;  %v138_v47 = vld [vmem:[%s13322_s0 + $0x3c0] sm:$0xff] }
  0x45   :  { %5561 = vmatprep.subr.bf16.mxu0 %v9342_v0  ;;  %v134_v48 = vld [vmem:[%s13322_s0 + $0x3a0] sm:$0xff] }
  0x46   :  { %4406 = vmatpush1.bf16.msra.mxu1 %v9246_v51  ;;  %v7522_v51 = vcombine.low %v118_v36, %v126_v37  ;;  %v7539_v53 = vcombine.high %v134_v48, %v142_v49  ;;  %v7538_v61 = vcombine.low %v134_v48, %v142_v49  ;;  %v226_v37 = vld [vmem:[%s13322_s0 + $0x680] sm:$0xff] }
  0x47   :  { %5562 = vmatpush1.bf16.msra.mxu0 %v9247_v52  ;;  %4407 = vmatprep.subr.bf16.mxu1 %v9342_v0  ;;  %v7531_v52 = vcombine.high %v130_v46, %v138_v47  ;;  %v250_v48 = vld [vmem:[%s13322_s0 + $0x740] sm:$0xff] }
  0x48   :  { %5563 = vmatprep.subr.bf16.mxu0 %v9342_v0  ;;  %v246_v49 = vld [vmem:[%s13322_s0 + $0x720] sm:$0xff] }
  0x49   :  { %4155 = vmatmul.mubr.bf16.gmra.mrb[4].mxu1 %v7434_v55  ;;  %v9266_v55 = vld [vmem:[%s13321_s1 + $0xd8] sm:$0xff]  }
  0x4a   :  { %5311 = vmatmul.mubr.bf16.gmra.mrb[4].mxu0 %v7442_v56  ;;  %4162 = vmatprep.mubr.bf16.mxu1 %v7451_v57  ;;  %v9267_v56 = vld [vmem:[%s13321_s1 + $0x2d8] sm:$0xff]   ;;  %v154_v57 = vld [vmem:[%s13322_s0 + $0x440] sm:$0xff] }
  0x4b   :  { %5318 = vmatprep.mubr.bf16.mxu0 %v7459_v58  ;;  %4408 = vmatpush1.bf16.msra.mxu1 %v9248_v59  ;;  %v150_v58 = vld [vmem:[%s13322_s0 + $0x420] sm:$0xff]  ;;  %v7547_v62 = vcombine.high %v146_v54, %v154_v57 }
  0x4c   :  { %5564 = vmatpush1.bf16.msra.mxu0 %v9249_v60  ;;  %4409 = vmatprep.subr.bf16.mxu1 %v9342_v0  ;;  %v158_v59 = vld [vmem:[%s13322_s0 + $0x460] sm:$0xff]  ;;  %v7530_v60 = vcombine.low %v130_v46, %v138_v47  ;;  %v9273_v46 = vld [vmem:[%s13321_s1 + $0x2f0] sm:$0xff]  }
  0x4d   :  { %5565 = vmatprep.subr.bf16.mxu0 %v9342_v0  ;;  %v7555_v63 = vcombine.high %v150_v58, %v158_v59  ;;  %v242_v47 = vld [vmem:[%s13322_s0 + $0x700] sm:$0xff] }
  0x4f   :  { %4410 = vmatpush1.bf16.msra.mxu1 %v9250_v2  ;;  %v170_v2 = vld [vmem:[%s13322_s0 + $0x4c0] sm:$0xff] }
  0x50   :  { %5566 = vmatpush1.bf16.msra.mxu0 %v9251_v3  ;;  %4411 = vmatprep.subr.bf16.mxu1 %v9342_v0  ;;  %v166_v3 = vld [vmem:[%s13322_s0 + $0x4a0] sm:$0xff] }
  0x51   :  { %4163 = vmatmul.mubr.bf16.gmra.mrb[8].mxu1 %v7450_v4  ;;  %5567 = vmatprep.subr.bf16.mxu0 %v9342_v0  ;;  %v174_v4 = vld [vmem:[%s13322_s0 + $0x4e0] sm:$0xff] }
  0x52   :  { %5319 = vmatmul.mubr.bf16.gmra.mrb[8].mxu0 %v7458_v6  ;;  %4170 = vmatprep.mubr.bf16.mxu1 %v7467_v7  ;;  %v7554_v6 = vcombine.low %v150_v58, %v158_v59  ;;  %v7563_v7 = vcombine.high %v162_v1, %v170_v2  ;;  %v270_v58 = vld [vmem:[%s13322_s0 + $0x7e0] sm:$0xff]  ;;  %v7642_v59 = vcombine.low %v242_v47, %v250_v48 }
  0x53   :  { %5326 = vmatprep.mubr.bf16.mxu0 %v7475_v9  ;;  %4412 = vmatpush1.bf16.msra.mxu1 %v9252_v5  ;;  %v7546_v5 = vcombine.low %v146_v54, %v154_v57  ;;  %v178_v9 = vld [vmem:[%s13322_s0 + $0x500] sm:$0xff] }
  0x54   :  { %5568 = vmatpush1.bf16.msra.mxu0 %v9253_v8  ;;  %4413 = vmatprep.subr.bf16.mxu1 %v9342_v0  ;;  %v7571_v8 = vcombine.high %v166_v3, %v174_v4  ;;  %v7578_v23 = vcombine.low %v178_v9, %v186_v12  ;;  %v262_v57 = vld [vmem:[%s13322_s0 + $0x7a0] sm:$0xff] }
  0x55   :  { %5569 = vmatprep.subr.bf16.mxu0 %v9342_v0 }
  0x57   :  { %4414 = vmatpush1.bf16.msra.mxu1 %v9254_v14  ;;  %v190_v14 = vld [vmem:[%s13322_s0 + $0x560] sm:$0xff] }
  0x58   :  { %5570 = vmatpush1.bf16.msra.mxu0 %v9255_v15  ;;  %4415 = vmatprep.subr.bf16.mxu1 %v9342_v0  ;;  %v7562_v15 = vcombine.low %v162_v1, %v170_v2  ;;  %v7586_v24 = vcombine.low %v182_v13, %v190_v14  ;;  %v9275_v1 = vld [vmem:[%s13321_s1 + $0x2f8] sm:$0xff]   ;;  %v274_v2 = vld [vmem:[%s13322_s0 + $0x800] sm:$0xff] }
  0x59   :  { %4171 = vmatmul.mubr.bf16.gmra.mrb[12].mxu1 %v7466_v16  ;;  %5571 = vmatprep.subr.bf16.mxu0 %v9342_v0  ;;  %v7570_v16 = vcombine.low %v166_v3, %v174_v4  ;;  %v282_v3 = vld [vmem:[%s13322_s0 + $0x840] sm:$0xff] }
  0x5a   :  { %5327 = vmatmul.mubr.bf16.gmra.mrb[12].mxu0 %v7474_v18  ;;  %4178 = vmatprep.mubr.bf16.mxu1 %v7483_v19  ;;  %v7587_v18 = vcombine.high %v182_v13, %v190_v14  ;;  %v194_v19 = vld [vmem:[%s13322_s0 + $0x580] sm:$0xff]  ;;  %v7674_v14 = vcombine.low %v274_v2, %v282_v3 }
  0x5b   :  { %5334 = vmatprep.mubr.bf16.mxu0 %v7491_v21  ;;  %4416 = vmatpush1.bf16.msra.mxu1 %v9256_v17  ;;  %v7579_v17 = vcombine.high %v178_v9, %v186_v12  ;;  %v198_v21 = vld [vmem:[%s13322_s0 + $0x5a0] sm:$0xff] }
  0x5c   :  { %5572 = vmatpush1.bf16.msra.mxu0 %v9257_v20  ;;  %4417 = vmatprep.subr.bf16.mxu1 %v9342_v0  ;;  %v202_v20 = vld [vmem:[%s13322_s0 + $0x5c0] sm:$0xff]  ;;  %v7602_v34 = vcombine.low %v198_v21, %v206_v22 }
  0x5d   :  { %5573 = vmatprep.subr.bf16.mxu0 %v9342_v0  ;;  %v7595_v25 = vcombine.high %v194_v19, %v202_v20  ;;  %v278_v4 = vld [vmem:[%s13322_s0 + $0x820] sm:$0xff] }
  0x5e   :  { %v294_v12 = vld [vmem:[%s13322_s0 + $0x8a0] sm:$0xff] }
  0x5f   :  { %4418 = vmatpush1.bf16.msra.mxu1 %v9258_v26  ;;  %v7603_v26 = vcombine.high %v198_v21, %v206_v22  ;;  %v302_v13 = vld [vmem:[%s13322_s0 + $0x8e0] sm:$0xff] }
  0x60   :  { %5574 = vmatpush1.bf16.msra.mxu0 %v9259_v27  ;;  %4419 = vmatprep.subr.bf16.mxu1 %v9342_v0  ;;  %v9270_v27 = vld [vmem:[%s13321_s1 + $0xe8] sm:$0xff]   ;;  %v318_v21 = vld [vmem:[%s13322_s0 + $0x960] sm:$0xff] }
  0x61   :  { %4179 = vmatmul.mubr.bf16.gmra.mrb[16].mxu1 %v7482_v28  ;;  %5575 = vmatprep.subr.bf16.mxu0 %v9342_v0  ;;  %v9271_v28 = vld [vmem:[%s13321_s1 + $0x2e8] sm:$0xff]  }
  0x62   :  { %5335 = vmatmul.mubr.bf16.gmra.mrb[16].mxu0 %v7490_v30  ;;  %4186 = vmatprep.mubr.bf16.mxu1 %v7499_v31  ;;  %v218_v30 = vld [vmem:[%s13322_s0 + $0x640] sm:$0xff] }
  0x63   :  { %5342 = vmatprep.mubr.bf16.mxu0 %v7507_v33  ;;  %4420 = vmatpush1.bf16.msra.mxu1 %v9260_v29  ;;  %v210_v29 = vld [vmem:[%s13322_s0 + $0x600] sm:$0xff]  ;;  %v7594_v33 = vcombine.low %v194_v19, %v202_v20 }
  0x64   :  { %5576 = vmatpush1.bf16.msra.mxu0 %v9261_v32  ;;  %4421 = vmatprep.subr.bf16.mxu1 %v9342_v0  ;;  %v214_v31 = vld [vmem:[%s13322_s0 + $0x620] sm:$0xff]  ;;  %v7611_v35 = vcombine.high %v210_v29, %v218_v30 }
  0x65   :  { %5577 = vmatprep.subr.bf16.mxu0 %v9342_v0  ;;  %v222_v32 = vld [vmem:[%s13322_s0 + $0x660] sm:$0xff] }
  0x66   :  { %v7619_v36 = vcombine.high %v214_v31, %v222_v32  ;;  %v314_v19 = vld [vmem:[%s13322_s0 + $0x940] sm:$0xff] }
  0x67   :  { %4422 = vmatpush1.bf16.msra.mxu1 %v9262_v38  ;;  %v234_v38 = vld [vmem:[%s13322_s0 + $0x6c0] sm:$0xff] }
  0x68   :  { %5578 = vmatpush1.bf16.msra.mxu0 %v9263_v39  ;;  %4423 = vmatprep.subr.bf16.mxu1 %v9342_v0  ;;  %v230_v39 = vld [vmem:[%s13322_s0 + $0x6a0] sm:$0xff] }
  0x69   :  { %4187 = vmatmul.mubr.bf16.gmra.mrb[20].mxu1 %v7498_v40  ;;  %5579 = vmatprep.subr.bf16.mxu0 %v9342_v0  ;;  %v238_v40 = vld [vmem:[%s13322_s0 + $0x6e0] sm:$0xff] }
  0x6a   :  { %5343 = vmatmul.mubr.bf16.gmra.mrb[20].mxu0 %v7506_v42  ;;  %4194 = vmatprep.mubr.bf16.mxu1 %v7515_v43  ;;  %v7618_v42 = vcombine.low %v214_v31, %v222_v32  ;;  %v7627_v43 = vcombine.high %v226_v37, %v234_v38  ;;  %v310_v20 = vld [vmem:[%s13322_s0 + $0x920] sm:$0xff] }
  0x6b   :  { %5350 = vmatprep.mubr.bf16.mxu0 %v7523_v45  ;;  %4424 = vmatpush1.bf16.msra.mxu1 %v9264_v41  ;;  %v7610_v41 = vcombine.low %v210_v29, %v218_v30  ;;  %v9272_v45 = vld [vmem:[%s13321_s1 + $0xf0] sm:$0xff]   ;;  %v334_v29 = vld [vmem:[%s13322_s0 + $0x9e0] sm:$0xff]  ;;  %v7714_v31 = vcombine.low %v310_v20, %v318_v21 }
  0x6c   :  { %5580 = vmatpush1.bf16.msra.mxu0 %v9265_v44  ;;  %4425 = vmatprep.subr.bf16.mxu1 %v9342_v0  ;;  %v7635_v44 = vcombine.high %v230_v39, %v238_v40 }
  0x6d   :  { %5581 = vmatprep.subr.bf16.mxu0 %v9342_v0 }
  0x6f   :  { %4426 = vmatpush1.bf16.msra.mxu1 %v9266_v55  ;;  %v258_v55 = vld [vmem:[%s13322_s0 + $0x780] sm:$0xff] }
  0x70   :  { %5582 = vmatpush1.bf16.msra.mxu0 %v9267_v56  ;;  %4427 = vmatprep.subr.bf16.mxu1 %v9342_v0  ;;  %v266_v56 = vld [vmem:[%s13322_s0 + $0x7c0] sm:$0xff] }
  0x71   :  { %4195 = vmatmul.mubr.bf16.gmra.mrb[24].mxu1 %v7514_v50  ;;  %5583 = vmatprep.subr.bf16.mxu0 %v9342_v0  ;;  %v254_v50 = vld [vmem:[%s13322_s0 + $0x760] sm:$0xff] }
  0x72   :  { %5351 = vmatmul.mubr.bf16.gmra.mrb[24].mxu0 %v7522_v51  ;;  %4202 = vmatprep.mubr.bf16.mxu1 %v7531_v52  ;;  %v7626_v51 = vcombine.low %v226_v37, %v234_v38  ;;  %v7634_v52 = vcombine.low %v230_v39, %v238_v40  ;;  %v7651_v54 = vcombine.high %v246_v49, %v254_v50  ;;  %v350_v37 = vld [vmem:[%s13322_s0 + $0xa60] sm:$0xff] }
  0x73   :  { %5358 = vmatprep.mubr.bf16.mxu0 %v7539_v53  ;;  %4428 = vmatpush1.bf16.msra.mxu1 %v9268_v10  ;;  %v7643_v53 = vcombine.high %v242_v47, %v250_v48  ;;  %v290_v10 = vld [vmem:[%s13322_s0 + $0x880] sm:$0xff] }
  0x74   :  { %5584 = vmatpush1.bf16.msra.mxu0 %v9269_v11  ;;  %4429 = vmatprep.subr.bf16.mxu1 %v9342_v0  ;;  %v298_v11 = vld [vmem:[%s13322_s0 + $0x8c0] sm:$0xff] }
  0x75   :  { %5585 = vmatprep.subr.bf16.mxu0 %v9342_v0  ;;  %v7690_v22 = vcombine.low %v290_v10, %v298_v11 }
  0x77   :  { %4430 = vmatpush1.bf16.msra.mxu1 %v9270_v27  ;;  %v330_v27 = vld [vmem:[%s13322_s0 + $0x9c0] sm:$0xff] }
  0x78   :  { %5586 = vmatpush1.bf16.msra.mxu0 %v9271_v28  ;;  %4431 = vmatprep.subr.bf16.mxu1 %v9342_v0  ;;  %v326_v28 = vld [vmem:[%s13322_s0 + $0x9a0] sm:$0xff] }
  0x79   :  { %4203 = vmatmul.mubr.bf16.gmra.mrb[28].mxu1 %v7530_v60  ;;  %5587 = vmatprep.subr.bf16.mxu0 %v9342_v0  ;;  %v7650_v60 = vcombine.low %v246_v49, %v254_v50  ;;  %v7730_v39 = vcombine.low %v326_v28, %v334_v29  ;;  %v370_v50 = vld [vmem:[%s13322_s0 + $0xb00] sm:$0xff] }
  0x7a   :  { %5359 = vmatmul.mubr.bf16.gmra.mrb[28].mxu0 %v7538_v61  ;;  %4210 = vmatprep.mubr.bf16.mxu1 %v7547_v62  ;;  %v7659_v61 = vcombine.high %v258_v55, %v266_v56  ;;  %v7667_v62 = vcombine.high %v262_v57, %v270_v58 }
  0x7b   :  { %5366 = vmatprep.mubr.bf16.mxu0 %v7555_v63  ;;  %4432 = vmatpush1.bf16.msra.mxu1 %v9272_v45  ;;  %v9274_v63 = vld [vmem:[%s13321_s1 + $0xf8] sm:$0xff]   ;;  %v366_v45 = vld [vmem:[%s13322_s0 + $0xae0] sm:$0xff] }
  0x7c   :  { %5588 = vmatpush1.bf16.msra.mxu0 %v9273_v46  ;;  %4433 = vmatprep.subr.bf16.mxu1 %v9342_v0 }
  0x7d   :  { %5589 = vmatprep.subr.bf16.mxu0 %v9342_v0 }
  0x7f   :  { %4434 = vmatpush1.bf16.msra.mxu1 %v9274_v63 }
  0x80   :  { %5590 = vmatpush1.bf16.msra.mxu0 %v9275_v1  ;;  %4692 = vmatprep.subr.bf16.mxu1 %v9342_v0 }
  0x81   :  { %4211 = vmatmul.mubr.bf16.gmra.mrb[32].mxu1 %v7546_v5  ;;  %v286_v5 = vld [vmem:[%s13322_s0 + $0x860] sm:$0xff]  ;;  %5848 = vmatprep.subr.bf16.mxu0 %v9342_v0 }
  0x82   :  { %5367 = vmatmul.mubr.bf16.gmra.mrb[32].mxu0 %v7554_v6  ;;  %4218 = vmatprep.mubr.bf16.mxu1 %v7563_v7  ;;  %v7658_v6 = vcombine.low %v258_v55, %v266_v56  ;;  %v7666_v7 = vcombine.low %v262_v57, %v270_v58  ;;  %v7683_v9 = vcombine.high %v278_v4, %v286_v5  ;;  %v386_v58 = vld [vmem:[%s13322_s0 + $0xb80] sm:$0xff] }
  0x83   :  { %5374 = vmatprep.mubr.bf16.mxu0 %v7571_v8  ;;  %v7675_v8 = vcombine.high %v274_v2, %v282_v3  ;;  %v402_v3 = vld [vmem:[%s13322_s0 + $0xc00] sm:$0xff] }
  0x89   :  { %4219 = vmatmul.mubr.bf16.gmra.mrb[36].mxu1 %v7562_v15  ;;  %v7682_v15 = vcombine.low %v278_v4, %v286_v5  ;;  %v410_v4 = vld [vmem:[%s13322_s0 + $0xc40] sm:$0xff] }
  0x8a   :  { %5375 = vmatmul.mubr.bf16.gmra.mrb[36].mxu0 %v7570_v16  ;;  %4226 = vmatprep.mubr.bf16.mxu1 %v7579_v17  ;;  %v7691_v16 = vcombine.high %v290_v10, %v298_v11  ;;  %v7699_v17 = vcombine.high %v294_v12, %v302_v13  ;;  %v406_v5 = vld [vmem:[%s13322_s0 + $0xc20] sm:$0xff] }
  0x8b   :  { %5382 = vmatprep.mubr.bf16.mxu0 %v7587_v18  ;;  %v306_v18 = vld [vmem:[%s13322_s0 + $0x900] sm:$0xff] }
  0x8c   :  { %v7706_v30 = vcombine.low %v306_v18, %v314_v19  ;;  %v418_v11 = vld [vmem:[%s13322_s0 + $0xc80] sm:$0xff] }
  0x91   :  { %4227 = vmatmul.mubr.bf16.gmra.mrb[40].mxu1 %v7578_v23  ;;  %v7698_v23 = vcombine.low %v294_v12, %v302_v13  ;;  %v426_v12 = vld [vmem:[%s13322_s0 + $0xcc0] sm:$0xff] }
  0x92   :  { %5383 = vmatmul.mubr.bf16.gmra.mrb[40].mxu0 %v7586_v24  ;;  %4234 = vmatprep.mubr.bf16.mxu1 %v7595_v25  ;;  %v7707_v24 = vcombine.high %v306_v18, %v314_v19  ;;  %v7715_v25 = vcombine.high %v310_v20, %v318_v21  ;;  %v422_v13 = vld [vmem:[%s13322_s0 + $0xca0] sm:$0xff] }
  0x93   :  { %5390 = vmatprep.mubr.bf16.mxu0 %v7603_v26  ;;  %v322_v26 = vld [vmem:[%s13322_s0 + $0x980] sm:$0xff] }
  0x94   :  { %v7723_v32 = vcombine.high %v322_v26, %v330_v27  ;;  %v7722_v38 = vcombine.low %v322_v26, %v330_v27  ;;  %v434_v19 = vld [vmem:[%s13322_s0 + $0xd00] sm:$0xff] }
  0x95   :  { %v442_v20 = vld [vmem:[%s13322_s0 + $0xd40] sm:$0xff] }
  0x96   :  { %v438_v21 = vld [vmem:[%s13322_s0 + $0xd20] sm:$0xff] }
  0x97   :  { %v450_v27 = vld [vmem:[%s13322_s0 + $0xd80] sm:$0xff] }
  0x99   :  { %4235 = vmatmul.mubr.bf16.gmra.mrb[44].mxu1 %v7594_v33  ;;  %v7731_v33 = vcombine.high %v326_v28, %v334_v29  ;;  %v458_v28 = vld [vmem:[%s13322_s0 + $0xdc0] sm:$0xff] }
  0x9a   :  { %5391 = vmatmul.mubr.bf16.gmra.mrb[44].mxu0 %v7602_v34  ;;  %4242 = vmatprep.mubr.bf16.mxu1 %v7611_v35  ;;  %v338_v34 = vld [vmem:[%s13322_s0 + $0xa00] sm:$0xff] }
  0x9b   :  { %5398 = vmatprep.mubr.bf16.mxu0 %v7619_v36  ;;  %v346_v35 = vld [vmem:[%s13322_s0 + $0xa40] sm:$0xff] }
  0x9c   :  { %v342_v36 = vld [vmem:[%s13322_s0 + $0xa20] sm:$0xff]  ;;  %v7739_v40 = vcombine.high %v338_v34, %v346_v35  ;;  %v7738_v46 = vcombine.low %v338_v34, %v346_v35 }
  0x9d   :  { %v7746_v47 = vcombine.low %v342_v36, %v350_v37  ;;  %v454_v29 = vld [vmem:[%s13322_s0 + $0xda0] sm:$0xff] }
  0x9e   :  { %v466_v35 = vld [vmem:[%s13322_s0 + $0xe00] sm:$0xff] }
  0xa1   :  { %4243 = vmatmul.mubr.bf16.gmra.mrb[48].mxu1 %v7610_v41  ;;  %v7747_v41 = vcombine.high %v342_v36, %v350_v37  ;;  %v474_v36 = vld [vmem:[%s13322_s0 + $0xe40] sm:$0xff] }
  0xa2   :  { %5399 = vmatmul.mubr.bf16.gmra.mrb[48].mxu0 %v7618_v42  ;;  %4250 = vmatprep.mubr.bf16.mxu1 %v7627_v43  ;;  %v354_v42 = vld [vmem:[%s13322_s0 + $0xa80] sm:$0xff] }
  0xa3   :  { %5406 = vmatprep.mubr.bf16.mxu0 %v7635_v44  ;;  %v362_v43 = vld [vmem:[%s13322_s0 + $0xac0] sm:$0xff] }
  0xa4   :  { %v358_v44 = vld [vmem:[%s13322_s0 + $0xaa0] sm:$0xff]  ;;  %v7755_v48 = vcombine.high %v354_v42, %v362_v43 }
  0xa5   :  { %v7763_v49 = vcombine.high %v358_v44, %v366_v45  ;;  %v7762_v55 = vcombine.low %v358_v44, %v366_v45  ;;  %v470_v37 = vld [vmem:[%s13322_s0 + $0xe20] sm:$0xff] }
  0xa6   :  { %v490_v44 = vld [vmem:[%s13322_s0 + $0xec0] sm:$0xff] }
  0xa7   :  { %v486_v45 = vld [vmem:[%s13322_s0 + $0xea0] sm:$0xff] }
  0xa9   :  { %4251 = vmatmul.mubr.bf16.gmra.mrb[52].mxu1 %v7626_v51  ;;  %v378_v51 = vld [vmem:[%s13322_s0 + $0xb40] sm:$0xff] }
  0xaa   :  { %5407 = vmatmul.mubr.bf16.gmra.mrb[52].mxu0 %v7634_v52  ;;  %4258 = vmatprep.mubr.bf16.mxu1 %v7643_v53  ;;  %v374_v52 = vld [vmem:[%s13322_s0 + $0xb20] sm:$0xff]  ;;  %v7771_v56 = vcombine.high %v370_v50, %v378_v51 }
  0xab   :  { %5414 = vmatprep.mubr.bf16.mxu0 %v7651_v54  ;;  %v382_v53 = vld [vmem:[%s13322_s0 + $0xb60] sm:$0xff]  ;;  %v7754_v54 = vcombine.low %v354_v42, %v362_v43 }
  0xac   :  { %v7779_v57 = vcombine.high %v374_v52, %v382_v53  ;;  %v7778_v63 = vcombine.low %v374_v52, %v382_v53  ;;  %v482_v43 = vld [vmem:[%s13322_s0 + $0xe80] sm:$0xff] }
  0xad   :  { %v506_v52 = vld [vmem:[%s13322_s0 + $0xf40] sm:$0xff] }
  0xae   :  { %v502_v53 = vld [vmem:[%s13322_s0 + $0xf20] sm:$0xff] }
  0xb1   :  { %4259 = vmatmul.mubr.bf16.gmra.mrb[56].mxu1 %v7642_v59  ;;  %v394_v59 = vld [vmem:[%s13322_s0 + $0xbc0] sm:$0xff] }
  0xb2   :  { %5415 = vmatmul.mubr.bf16.gmra.mrb[56].mxu0 %v7650_v60  ;;  %4266 = vmatprep.mubr.bf16.mxu1 %v7659_v61  ;;  %v390_v60 = vld [vmem:[%s13322_s0 + $0xba0] sm:$0xff]  ;;  %v7787_v1 = vcombine.high %v386_v58, %v394_v59 }
  0xb3   :  { %5422 = vmatprep.mubr.bf16.mxu0 %v7667_v62  ;;  %v398_v61 = vld [vmem:[%s13322_s0 + $0xbe0] sm:$0xff]  ;;  %v7770_v62 = vcombine.low %v370_v50, %v378_v51 }
  0xb4   :  { %v7795_v2 = vcombine.high %v390_v60, %v398_v61  ;;  %v498_v51 = vld [vmem:[%s13322_s0 + $0xf00] sm:$0xff] }
  0xb9   :  { %4267 = vmatmul.mubr.bf16.gmra.mrb[60].mxu1 %v7658_v6  ;;  %v414_v6 = vld [vmem:[%s13322_s0 + $0xc60] sm:$0xff] }
  0xba   :  { %5423 = vmatmul.mubr.bf16.gmra.mrb[60].mxu0 %v7666_v7  ;;  %4274 = vmatprep.mubr.bf16.mxu1 %v7675_v8  ;;  %v7786_v7 = vcombine.low %v386_v58, %v394_v59  ;;  %v7794_v8 = vcombine.low %v390_v60, %v398_v61  ;;  %v7811_v10 = vcombine.high %v406_v5, %v414_v6  ;;  %v514_v59 = vld [vmem:[%s13322_s0 + $0xf80] sm:$0xff] }
  0xbb   :  { %5430 = vmatprep.mubr.bf16.mxu0 %v7683_v9  ;;  %v7803_v9 = vcombine.high %v402_v3, %v410_v4  ;;  %v522_v60 = vld [vmem:[%s13322_s0 + $0xfc0] sm:$0xff] }
  0xbc   :  { %v518_v61 = vld [vmem:[%s13322_s0 + $0xfa0] sm:$0xff] }
  0xc1   :  { %4275 = vmatmul.mubr.bf16.gmra.mrb[64].mxu1 %v7674_v14  ;;  %v430_v14 = vld [vmem:[%s13322_s0 + $0xce0] sm:$0xff] }
  0xc2   :  { %5431 = vmatmul.mubr.bf16.gmra.mrb[64].mxu0 %v7682_v15  ;;  %4282 = vmatprep.mubr.bf16.mxu1 %v7691_v16  ;;  %v7802_v15 = vcombine.low %v402_v3, %v410_v4  ;;  %v7810_v16 = vcombine.low %v406_v5, %v414_v6  ;;  %v7827_v18 = vcombine.high %v422_v13, %v430_v14  ;;  %v19_v4 = vld [vmem:[%s13322_s0 + $0x8] sm:$0xff] }
  0xc3   :  { %5438 = vmatprep.mubr.bf16.mxu0 %v7699_v17  ;;  %v7819_v17 = vcombine.high %v418_v11, %v426_v12  ;;  %v27_v5 = vld [vmem:[%s13322_s0 + $0x48] sm:$0xff] }
  0xc4   :  { %v23_v6 = vld [vmem:[%s13322_s0 + $0x28] sm:$0xff] }
  0xc9   :  { %4283 = vmatmul.mubr.bf16.gmra.mrb[68].mxu1 %v7690_v22  ;;  %v446_v22 = vld [vmem:[%s13322_s0 + $0xd60] sm:$0xff] }
  0xca   :  { %5439 = vmatmul.mubr.bf16.gmra.mrb[68].mxu0 %v7698_v23  ;;  %4290 = vmatprep.mubr.bf16.mxu1 %v7707_v24  ;;  %v7818_v23 = vcombine.low %v418_v11, %v426_v12  ;;  %v7826_v24 = vcombine.low %v422_v13, %v430_v14  ;;  %v7843_v26 = vcombine.high %v438_v21, %v446_v22  ;;  %v35_v12 = vld [vmem:[%s13322_s0 + $0x88] sm:$0xff] }
  0xcb   :  { %5446 = vmatprep.mubr.bf16.mxu0 %v7715_v25  ;;  %v7835_v25 = vcombine.high %v434_v19, %v442_v20  ;;  %v43_v13 = vld [vmem:[%s13322_s0 + $0xc8] sm:$0xff]  ;;  %v7420_v14 = vcombine.low %v19_v4, %v27_v5 }
  0xd1   :  { %4291 = vmatmul.mubr.bf16.gmra.mrb[72].mxu1 %v7706_v30  ;;  %v462_v30 = vld [vmem:[%s13322_s0 + $0xde0] sm:$0xff] }
  0xd2   :  { %5447 = vmatmul.mubr.bf16.gmra.mrb[72].mxu0 %v7714_v31  ;;  %4298 = vmatprep.mubr.bf16.mxu1 %v7723_v32  ;;  %v7834_v31 = vcombine.low %v434_v19, %v442_v20  ;;  %v7842_v32 = vcombine.low %v438_v21, %v446_v22  ;;  %v7859_v34 = vcombine.high %v454_v29, %v462_v30  ;;  %v9277_v19 = vld [vmem:[%s13321_s1 + $0x300] sm:$0xff]   ;;  %v9278_v22 = vld [vmem:[%s13321_s1 + $0x108] sm:$0xff]  }
  0xd3   :  { %5454 = vmatprep.mubr.bf16.mxu0 %v7731_v33  ;;  %v7851_v33 = vcombine.high %v450_v27, %v458_v28  ;;  %v7437_v20 = vcombine.high %v35_v12, %v43_v13 }
  0xd9   :  { %4299 = vmatmul.mubr.bf16.gmra.mrb[76].mxu1 %v7722_v38  ;;  %v478_v38 = vld [vmem:[%s13322_s0 + $0xe60] sm:$0xff] }
  0xda   :  { %5455 = vmatmul.mubr.bf16.gmra.mrb[76].mxu0 %v7730_v39  ;;  %4306 = vmatprep.mubr.bf16.mxu1 %v7739_v40  ;;  %v7850_v39 = vcombine.low %v450_v27, %v458_v28  ;;  %v7858_v40 = vcombine.low %v454_v29, %v462_v30  ;;  %v7875_v42 = vcombine.high %v470_v37, %v478_v38  ;;  %v63_v27 = vld [vmem:[%s13322_s0 + $0x168] sm:$0xff] }
  0xdb   :  { %5462 = vmatprep.mubr.bf16.mxu0 %v7747_v41  ;;  %v7867_v41 = vcombine.high %v466_v35, %v474_v36  ;;  %v7436_v28 = vcombine.low %v35_v12, %v43_v13  ;;  %v9295_v12 = vld [vmem:[%s13321_s1 + $0x348] sm:$0xff]  }
  0xe1   :  { %4307 = vmatmul.mubr.bf16.gmra.mrb[80].mxu1 %v7738_v46  ;;  %v494_v46 = vld [vmem:[%s13322_s0 + $0xee0] sm:$0xff] }
  0xe2   :  { %5463 = vmatmul.mubr.bf16.gmra.mrb[80].mxu0 %v7746_v47  ;;  %4314 = vmatprep.mubr.bf16.mxu1 %v7755_v48  ;;  %v7866_v47 = vcombine.low %v466_v35, %v474_v36  ;;  %v7874_v48 = vcombine.low %v470_v37, %v478_v38  ;;  %v7891_v50 = vcombine.high %v486_v45, %v494_v46  ;;  %v75_v35 = vld [vmem:[%s13322_s0 + $0x1c8] sm:$0xff]  ;;  %v9282_v36 = vld [vmem:[%s13321_s1 + $0x118] sm:$0xff]  }
  0xe3   :  { %5470 = vmatprep.mubr.bf16.mxu0 %v7763_v49  ;;  %v7883_v49 = vcombine.high %v482_v43, %v490_v44  ;;  %v71_v37 = vld [vmem:[%s13322_s0 + $0x1a8] sm:$0xff] }
  0xe4   :  { %v79_v38 = vld [vmem:[%s13322_s0 + $0x1e8] sm:$0xff] }
  0xe9   :  { %4315 = vmatmul.mubr.bf16.gmra.mrb[84].mxu1 %v7754_v54  ;;  %v510_v54 = vld [vmem:[%s13322_s0 + $0xf60] sm:$0xff] }
  0xea   :  { %5471 = vmatmul.mubr.bf16.gmra.mrb[84].mxu0 %v7762_v55  ;;  %4322 = vmatprep.mubr.bf16.mxu1 %v7771_v56  ;;  %v7882_v55 = vcombine.low %v482_v43, %v490_v44  ;;  %v7890_v56 = vcombine.low %v486_v45, %v494_v46  ;;  %v7907_v58 = vcombine.high %v502_v53, %v510_v54  ;;  %v9284_v44 = vld [vmem:[%s13321_s1 + $0x120] sm:$0xff]   ;;  %v83_v46 = vld [vmem:[%s13322_s0 + $0x208] sm:$0xff] }
  0xeb   :  { %5478 = vmatprep.mubr.bf16.mxu0 %v7779_v57  ;;  %v7899_v57 = vcombine.high %v498_v51, %v506_v52  ;;  %v7477_v43 = vcombine.high %v71_v37, %v79_v38  ;;  %v9285_v45 = vld [vmem:[%s13321_s1 + $0x320] sm:$0xff]  }
  0xf1   :  { %4323 = vmatmul.mubr.bf16.gmra.mrb[88].mxu1 %v7770_v62  ;;  %v526_v62 = vld [vmem:[%s13322_s0 + $0xfe0] sm:$0xff] }
  0xf2   :  { %5479 = vmatmul.mubr.bf16.gmra.mrb[88].mxu0 %v7778_v63  ;;  %4330 = vmatprep.mubr.bf16.mxu1 %v7787_v1  ;;  %v7898_v63 = vcombine.low %v498_v51, %v506_v52  ;;  %v7906_v1 = vcombine.low %v502_v53, %v510_v54  ;;  %v7923_v3 = vcombine.high %v518_v61, %v526_v62  ;;  %v9287_v51 = vld [vmem:[%s13321_s1 + $0x328] sm:$0xff]  }
  0xf3   :  { %5486 = vmatprep.mubr.bf16.mxu0 %v7795_v2  ;;  %v7915_v2 = vcombine.high %v514_v59, %v522_v60  ;;  %v7476_v53 = vcombine.low %v71_v37, %v79_v38  ;;  %v163_v37 = vld [vmem:[%s13322_s0 + $0x488] sm:$0xff] }
  0xf4   :  { %v171_v38 = vld [vmem:[%s13322_s0 + $0x4c8] sm:$0xff] }
  0xf9   :  { %4331 = vmatmul.mubr.bf16.gmra.mrb[92].mxu1 %v7786_v7  ;;  %v31_v7 = vld [vmem:[%s13322_s0 + $0x68] sm:$0xff] }
  0xfa   :  { %5487 = vmatmul.mubr.bf16.gmra.mrb[92].mxu0 %v7794_v8  ;;  %4338 = vmatprep.mubr.bf16.mxu1 %v7803_v9  ;;  %v7914_v8 = vcombine.low %v514_v59, %v522_v60  ;;  %v7922_v9 = vcombine.low %v518_v61, %v526_v62  ;;  %v7429_v11 = vcombine.high %v23_v6, %v31_v7  ;;  %v107_v59 = vld [vmem:[%s13322_s0 + $0x2c8] sm:$0xff]  ;;  %v9290_v60 = vld [vmem:[%s13321_s1 + $0x138] sm:$0xff]  }
  0xfb   :  { %5494 = vmatprep.mubr.bf16.mxu0 %v7811_v10  ;;  %v7421_v10 = vcombine.high %v19_v4, %v27_v5  ;;  %v103_v61 = vld [vmem:[%s13322_s0 + $0x2a8] sm:$0xff]  ;;  %v9292_v5 = vld [vmem:[%s13321_s1 + $0x140] sm:$0xff]  }
  0xfc   :  { %v111_v62 = vld [vmem:[%s13322_s0 + $0x2e8] sm:$0xff] }
  0xfd   :  { %v7509_v4 = vcombine.high %v103_v61, %v111_v62 }
 0x101   :  { %4339 = vmatmul.mubr.bf16.gmra.mrb[96].mxu1 %v7802_v15  ;;  %v39_v15 = vld [vmem:[%s13322_s0 + $0xa8] sm:$0xff] }
 0x102   :  { %5495 = vmatmul.mubr.bf16.gmra.mrb[96].mxu0 %v7810_v16  ;;  %4346 = vmatprep.mubr.bf16.mxu1 %v7819_v17  ;;  %v47_v16 = vld [vmem:[%s13322_s0 + $0xe8] sm:$0xff]  ;;  %v7428_v17 = vcombine.low %v23_v6, %v31_v7  ;;  %v9293_v6 = vld [vmem:[%s13321_s1 + $0x340] sm:$0xff]  }
 0x103   :  { %5502 = vmatprep.mubr.bf16.mxu0 %v7827_v18  ;;  %v9276_v18 = vld [vmem:[%s13321_s1 + $0x100] sm:$0xff]   ;;  %v7445_v21 = vcombine.high %v39_v15, %v47_v16  ;;  %v7444_v29 = vcombine.low %v39_v15, %v47_v16  ;;  %v115_v7 = vld [vmem:[%s13322_s0 + $0x308] sm:$0xff] }
 0x109   :  { %4347 = vmatmul.mubr.bf16.gmra.mrb[100].mxu1 %v7818_v23  ;;  %v51_v23 = vld [vmem:[%s13322_s0 + $0x108] sm:$0xff] }
 0x10a   :  { %5503 = vmatmul.mubr.bf16.gmra.mrb[100].mxu0 %v7826_v24  ;;  %4354 = vmatprep.mubr.bf16.mxu1 %v7835_v25  ;;  %v59_v24 = vld [vmem:[%s13322_s0 + $0x148] sm:$0xff] }
 0x10b   :  { %5510 = vmatprep.mubr.bf16.mxu0 %v7843_v26  ;;  %v9279_v25 = vld [vmem:[%s13321_s1 + $0x308] sm:$0xff]   ;;  %v7453_v30 = vcombine.high %v51_v23, %v59_v24 }
 0x10c   :  { %v55_v26 = vld [vmem:[%s13322_s0 + $0x128] sm:$0xff] }
 0x111   :  { %4355 = vmatmul.mubr.bf16.gmra.mrb[104].mxu1 %v7834_v31  ;;  %v7461_v31 = vcombine.high %v55_v26, %v63_v27 }
 0x112   :  { %5511 = vmatmul.mubr.bf16.gmra.mrb[104].mxu0 %v7842_v32  ;;  %4362 = vmatprep.mubr.bf16.mxu1 %v7851_v33  ;;  %v9280_v32 = vld [vmem:[%s13321_s1 + $0x110] sm:$0xff]  }
 0x113   :  { %5518 = vmatprep.mubr.bf16.mxu0 %v7859_v34  ;;  %v9281_v33 = vld [vmem:[%s13321_s1 + $0x310] sm:$0xff]   ;;  %v67_v34 = vld [vmem:[%s13322_s0 + $0x188] sm:$0xff] }
 0x114   :  { %v7468_v52 = vcombine.low %v67_v34, %v75_v35 }
 0x119   :  { %4363 = vmatmul.mubr.bf16.gmra.mrb[108].mxu1 %v7850_v39  ;;  %v9283_v39 = vld [vmem:[%s13321_s1 + $0x318] sm:$0xff]  }
 0x11a   :  { %5519 = vmatmul.mubr.bf16.gmra.mrb[108].mxu0 %v7858_v40  ;;  %4370 = vmatprep.mubr.bf16.mxu1 %v7867_v41  ;;  %v7452_v40 = vcombine.low %v51_v23, %v59_v24  ;;  %v7460_v41 = vcombine.low %v55_v26, %v63_v27  ;;  %v9298_v27 = vld [vmem:[%s13321_s1 + $0x158] sm:$0xff]  }
 0x11b   :  { %5526 = vmatprep.mubr.bf16.mxu0 %v7875_v42  ;;  %v7469_v42 = vcombine.high %v67_v34, %v75_v35 }
 0x121   :  { %4371 = vmatmul.mubr.bf16.gmra.mrb[112].mxu1 %v7866_v47  ;;  %v91_v47 = vld [vmem:[%s13322_s0 + $0x248] sm:$0xff] }
 0x122   :  { %5527 = vmatmul.mubr.bf16.gmra.mrb[112].mxu0 %v7874_v48  ;;  %4378 = vmatprep.mubr.bf16.mxu1 %v7883_v49  ;;  %v9286_v48 = vld [vmem:[%s13321_s1 + $0x128] sm:$0xff]   ;;  %v7485_v54 = vcombine.high %v83_v46, %v91_v47 }
 0x123   :  { %5534 = vmatprep.mubr.bf16.mxu0 %v7891_v50  ;;  %v87_v49 = vld [vmem:[%s13322_s0 + $0x228] sm:$0xff] }
 0x124   :  { %v95_v50 = vld [vmem:[%s13322_s0 + $0x268] sm:$0xff] }
 0x129   :  { %4379 = vmatmul.mubr.bf16.gmra.mrb[116].mxu1 %v7882_v55  ;;  %v7493_v55 = vcombine.high %v87_v49, %v95_v50 }
 0x12a   :  { %5535 = vmatmul.mubr.bf16.gmra.mrb[116].mxu0 %v7890_v56  ;;  %4386 = vmatprep.mubr.bf16.mxu1 %v7899_v57  ;;  %v9288_v56 = vld [vmem:[%s13321_s1 + $0x130] sm:$0xff]  }
 0x12b   :  { %5542 = vmatprep.mubr.bf16.mxu0 %v7907_v58  ;;  %v9289_v57 = vld [vmem:[%s13321_s1 + $0x330] sm:$0xff]   ;;  %v99_v58 = vld [vmem:[%s13322_s0 + $0x288] sm:$0xff] }
 0x12c   :  { %v7500_v13 = vcombine.low %v99_v58, %v107_v59 }
 0x131   :  { %4387 = vmatmul.mubr.bf16.gmra.mrb[120].mxu1 %v7898_v63  ;;  %v9291_v63 = vld [vmem:[%s13321_s1 + $0x338] sm:$0xff]  }
 0x132   :  { %5543 = vmatmul.mubr.bf16.gmra.mrb[120].mxu0 %v7906_v1  ;;  %4394 = vmatprep.mubr.bf16.mxu1 %v7915_v2  ;;  %v7484_v1 = vcombine.low %v83_v46, %v91_v47  ;;  %v7492_v2 = vcombine.low %v87_v49, %v95_v50  ;;  %v9301_v46 = vld [vmem:[%s13321_s1 + $0x360] sm:$0xff]   ;;  %v179_v47 = vld [vmem:[%s13322_s0 + $0x508] sm:$0xff] }
 0x133   :  { %5550 = vmatprep.mubr.bf16.mxu0 %v7923_v3  ;;  %v7501_v3 = vcombine.high %v99_v58, %v107_v59  ;;  %v183_v49 = vld [vmem:[%s13322_s0 + $0x528] sm:$0xff] }
 0x134   :  { %v191_v50 = vld [vmem:[%s13322_s0 + $0x568] sm:$0xff] }
 0x135   :  { %v207_v58 = vld [vmem:[%s13322_s0 + $0x5e8] sm:$0xff] }
 0x139   :  { %4395 = vmatmul.mubr.bf16.gmra.mrb[124].mxu1 %v7914_v8  ;;  %v123_v8 = vld [vmem:[%s13322_s0 + $0x348] sm:$0xff] }
 0x13a   :  { %5551 = vmatmul.mubr.bf16.gmra.mrb[124].mxu0 %v7922_v9  ;;  %4435 = vmatprep.mubr.bf16.mxu1 %v7421_v10  ;;  %v9294_v9 = vld [vmem:[%s13321_s1 + $0x148] sm:$0xff]   ;;  %v7517_v15 = vcombine.high %v115_v7, %v123_v8  ;;  %v7516_v23 = vcombine.low %v115_v7, %v123_v8 }
 0x13b   :  { %5591 = vmatprep.mubr.bf16.mxu0 %v7429_v11  ;;  %v119_v10 = vld [vmem:[%s13322_s0 + $0x328] sm:$0xff] }
 0x13c   :  { %v127_v11 = vld [vmem:[%s13322_s0 + $0x368] sm:$0xff] }
 0x13d   :  { %v7525_v16 = vcombine.high %v119_v10, %v127_v11  ;;  %v7524_v24 = vcombine.low %v119_v10, %v127_v11  ;;  %v227_v10 = vld [vmem:[%s13322_s0 + $0x688] sm:$0xff] }
 0x13e   :  { %v235_v11 = vld [vmem:[%s13322_s0 + $0x6c8] sm:$0xff] }
 0x141   :  { %4436 = vmatmul.mubr.bf16.vlgmr.msra.gmra.mrb[0].mxu1 %v7420_v14  ;;  %v7508_v14 = vcombine.low %v103_v61, %v111_v62 }
 0x142   :  { %5592 = vmatmul.mubr.bf16.vlgmr.msra.gmra.mrb[0].mxu0 %v7428_v17  ;;  %4693 = vmatpush1.bf16.msra.mxu1 %v9276_v18  ;;  %v9296_v17 = vld [vmem:[%s13321_s1 + $0x150] sm:$0xff]  }
 0x143   :  { %5849 = vmatpush1.bf16.msra.mxu0 %v9277_v19  ;;  %4443 = vmatprep.mubr.bf16.mxu1 %v7437_v20  ;;  %v9297_v18 = vld [vmem:[%s13321_s1 + $0x350] sm:$0xff]   ;;  %v131_v19 = vld [vmem:[%s13322_s0 + $0x388] sm:$0xff] }
 0x144   :  { %5599 = vmatprep.mubr.bf16.mxu0 %v7445_v21  ;;  %4694 = vmatprep.subr.bf16.mxu1 %v9342_v0  ;;  %v139_v20 = vld [vmem:[%s13322_s0 + $0x3c8] sm:$0xff] }
 0x145   :  { %5850 = vmatprep.subr.bf16.mxu0 %v9342_v0  ;;  %v135_v21 = vld [vmem:[%s13322_s0 + $0x3a8] sm:$0xff] }
 0x146   :  { %4695 = vmatpush1.bf16.msra.mxu1 %v9278_v22  ;;  %v143_v22 = vld [vmem:[%s13322_s0 + $0x3e8] sm:$0xff] }
 0x147   :  { %5851 = vmatpush1.bf16.msra.mxu0 %v9279_v25  ;;  %4696 = vmatprep.subr.bf16.mxu1 %v9342_v0  ;;  %v7533_v25 = vcombine.high %v131_v19, %v139_v20  ;;  %v7541_v26 = vcombine.high %v135_v21, %v143_v22  ;;  %v7540_v34 = vcombine.low %v135_v21, %v143_v22  ;;  %v251_v21 = vld [vmem:[%s13322_s0 + $0x748] sm:$0xff] }
 0x148   :  { %5852 = vmatprep.subr.bf16.mxu0 %v9342_v0  ;;  %v247_v22 = vld [vmem:[%s13322_s0 + $0x728] sm:$0xff] }
 0x149   :  { %4444 = vmatmul.mubr.bf16.gmra.mrb[4].mxu1 %v7436_v28  ;;  %v9299_v28 = vld [vmem:[%s13321_s1 + $0x358] sm:$0xff]  }
 0x14a   :  { %5600 = vmatmul.mubr.bf16.gmra.mrb[4].mxu0 %v7444_v29  ;;  %4451 = vmatprep.mubr.bf16.mxu1 %v7453_v30  ;;  %v147_v29 = vld [vmem:[%s13322_s0 + $0x408] sm:$0xff] }
 0x14b   :  { %5607 = vmatprep.mubr.bf16.mxu0 %v7461_v31  ;;  %4697 = vmatpush1.bf16.msra.mxu1 %v9280_v32  ;;  %v155_v30 = vld [vmem:[%s13322_s0 + $0x448] sm:$0xff] }
 0x14c   :  { %5853 = vmatpush1.bf16.msra.mxu0 %v9281_v33  ;;  %4698 = vmatprep.subr.bf16.mxu1 %v9342_v0  ;;  %v151_v31 = vld [vmem:[%s13322_s0 + $0x428] sm:$0xff]  ;;  %v7532_v33 = vcombine.low %v131_v19, %v139_v20  ;;  %v7549_v35 = vcombine.high %v147_v29, %v155_v30  ;;  %v9305_v19 = vld [vmem:[%s13321_s1 + $0x370] sm:$0xff]  }
 0x14d   :  { %5854 = vmatprep.subr.bf16.mxu0 %v9342_v0  ;;  %v159_v32 = vld [vmem:[%s13322_s0 + $0x468] sm:$0xff] }
 0x14e   :  { %v243_v20 = vld [vmem:[%s13322_s0 + $0x708] sm:$0xff] }
 0x14f   :  { %4699 = vmatpush1.bf16.msra.mxu1 %v9282_v36  ;;  %v7557_v36 = vcombine.high %v151_v31, %v159_v32 }
 0x150   :  { %5855 = vmatpush1.bf16.msra.mxu0 %v9283_v39  ;;  %4700 = vmatprep.subr.bf16.mxu1 %v9342_v0  ;;  %v167_v39 = vld [vmem:[%s13322_s0 + $0x4a8] sm:$0xff] }
 0x151   :  { %4452 = vmatmul.mubr.bf16.gmra.mrb[8].mxu1 %v7452_v40  ;;  %5856 = vmatprep.subr.bf16.mxu0 %v9342_v0  ;;  %v175_v40 = vld [vmem:[%s13322_s0 + $0x4e8] sm:$0xff] }
 0x152   :  { %5608 = vmatmul.mubr.bf16.gmra.mrb[8].mxu0 %v7460_v41  ;;  %4459 = vmatprep.mubr.bf16.mxu1 %v7469_v42  ;;  %v7548_v41 = vcombine.low %v147_v29, %v155_v30  ;;  %v7556_v42 = vcombine.low %v151_v31, %v159_v32  ;;  %v267_v29 = vld [vmem:[%s13322_s0 + $0x7c8] sm:$0xff]  ;;  %v7644_v32 = vcombine.low %v243_v20, %v251_v21 }
 0x153   :  { %5615 = vmatprep.mubr.bf16.mxu0 %v7477_v43  ;;  %4701 = vmatpush1.bf16.msra.mxu1 %v9284_v44  ;;  %v7565_v43 = vcombine.high %v163_v37, %v171_v38  ;;  %v7573_v44 = vcombine.high %v167_v39, %v175_v40  ;;  %v263_v30 = vld [vmem:[%s13322_s0 + $0x7a8] sm:$0xff] }
 0x154   :  { %5857 = vmatpush1.bf16.msra.mxu0 %v9285_v45  ;;  %4702 = vmatprep.subr.bf16.mxu1 %v9342_v0  ;;  %v9300_v45 = vld [vmem:[%s13321_s1 + $0x160] sm:$0xff]   ;;  %v271_v31 = vld [vmem:[%s13322_s0 + $0x7e8] sm:$0xff] }
 0x155   :  { %5858 = vmatprep.subr.bf16.mxu0 %v9342_v0 }
 0x157   :  { %4703 = vmatpush1.bf16.msra.mxu1 %v9286_v48  ;;  %v187_v48 = vld [vmem:[%s13322_s0 + $0x548] sm:$0xff] }
 0x158   :  { %5859 = vmatpush1.bf16.msra.mxu0 %v9287_v51  ;;  %4704 = vmatprep.subr.bf16.mxu1 %v9342_v0  ;;  %v7564_v51 = vcombine.low %v163_v37, %v171_v38  ;;  %v7580_v59 = vcombine.low %v179_v47, %v187_v48  ;;  %v9307_v37 = vld [vmem:[%s13321_s1 + $0x378] sm:$0xff]   ;;  %v275_v38 = vld [vmem:[%s13322_s0 + $0x808] sm:$0xff] }
 0x159   :  { %4460 = vmatmul.mubr.bf16.gmra.mrb[12].mxu1 %v7468_v52  ;;  %5860 = vmatprep.subr.bf16.mxu0 %v9342_v0  ;;  %v7572_v52 = vcombine.low %v167_v39, %v175_v40  ;;  %v283_v39 = vld [vmem:[%s13322_s0 + $0x848] sm:$0xff] }
 0x15a   :  { %5616 = vmatmul.mubr.bf16.gmra.mrb[12].mxu0 %v7476_v53  ;;  %4467 = vmatprep.mubr.bf16.mxu1 %v7485_v54  ;;  %v7581_v53 = vcombine.high %v179_v47, %v187_v48  ;;  %v7589_v54 = vcombine.high %v183_v49, %v191_v50  ;;  %v279_v40 = vld [vmem:[%s13322_s0 + $0x828] sm:$0xff] }
 0x15b   :  { %5623 = vmatprep.mubr.bf16.mxu0 %v7493_v55  ;;  %4705 = vmatpush1.bf16.msra.mxu1 %v9288_v56  ;;  %v195_v55 = vld [vmem:[%s13322_s0 + $0x588] sm:$0xff] }
 0x15c   :  { %5861 = vmatpush1.bf16.msra.mxu0 %v9289_v57  ;;  %4706 = vmatprep.subr.bf16.mxu1 %v9342_v0  ;;  %v203_v56 = vld [vmem:[%s13322_s0 + $0x5c8] sm:$0xff] }
 0x15d   :  { %5862 = vmatprep.subr.bf16.mxu0 %v9342_v0  ;;  %v199_v57 = vld [vmem:[%s13322_s0 + $0x5a8] sm:$0xff]  ;;  %v7597_v61 = vcombine.high %v195_v55, %v203_v56 }
 0x15e   :  { %v7605_v62 = vcombine.high %v199_v57, %v207_v58  ;;  %v7604_v7 = vcombine.low %v199_v57, %v207_v58  ;;  %v299_v47 = vld [vmem:[%s13322_s0 + $0x8c8] sm:$0xff] }
 0x15f   :  { %4707 = vmatpush1.bf16.msra.mxu1 %v9290_v60  ;;  %v7588_v60 = vcombine.low %v183_v49, %v191_v50  ;;  %v295_v48 = vld [vmem:[%s13322_s0 + $0x8a8] sm:$0xff]  ;;  %v7676_v50 = vcombine.low %v275_v38, %v283_v39 }
 0x160   :  { %5863 = vmatpush1.bf16.msra.mxu0 %v9291_v63  ;;  %4708 = vmatprep.subr.bf16.mxu1 %v9342_v0  ;;  %v9302_v63 = vld [vmem:[%s13321_s1 + $0x168] sm:$0xff]  }
 0x161   :  { %4468 = vmatmul.mubr.bf16.gmra.mrb[16].mxu1 %v7484_v1  ;;  %5864 = vmatprep.subr.bf16.mxu0 %v9342_v0  ;;  %v9303_v1 = vld [vmem:[%s13321_s1 + $0x368] sm:$0xff]  }
 0x162   :  { %5624 = vmatmul.mubr.bf16.gmra.mrb[16].mxu0 %v7492_v2  ;;  %4475 = vmatprep.mubr.bf16.mxu1 %v7501_v3  ;;  %v211_v2 = vld [vmem:[%s13322_s0 + $0x608] sm:$0xff] }
 0x163   :  { %5631 = vmatprep.mubr.bf16.mxu0 %v7509_v4  ;;  %4709 = vmatpush1.bf16.msra.mxu1 %v9292_v5  ;;  %v219_v3 = vld [vmem:[%s13322_s0 + $0x648] sm:$0xff] }
 0x164   :  { %5865 = vmatpush1.bf16.msra.mxu0 %v9293_v6  ;;  %4710 = vmatprep.subr.bf16.mxu1 %v9342_v0  ;;  %v215_v4 = vld [vmem:[%s13322_s0 + $0x628] sm:$0xff]  ;;  %v7596_v6 = vcombine.low %v195_v55, %v203_v56  ;;  %v7613_v8 = vcombine.high %v211_v2, %v219_v3 }
 0x165   :  { %5866 = vmatprep.subr.bf16.mxu0 %v9342_v0  ;;  %v223_v5 = vld [vmem:[%s13322_s0 + $0x668] sm:$0xff] }
 0x166   :  { %v303_v49 = vld [vmem:[%s13322_s0 + $0x8e8] sm:$0xff] }
 0x167   :  { %4711 = vmatpush1.bf16.msra.mxu1 %v9294_v9  ;;  %v7621_v9 = vcombine.high %v215_v4, %v223_v5  ;;  %v315_v55 = vld [vmem:[%s13322_s0 + $0x948] sm:$0xff] }
 0x168   :  { %5867 = vmatpush1.bf16.msra.mxu0 %v9295_v12  ;;  %4712 = vmatprep.subr.bf16.mxu1 %v9342_v0  ;;  %v231_v12 = vld [vmem:[%s13322_s0 + $0x6a8] sm:$0xff] }
 0x169   :  { %4476 = vmatmul.mubr.bf16.gmra.mrb[20].mxu1 %v7500_v13  ;;  %5868 = vmatprep.subr.bf16.mxu0 %v9342_v0  ;;  %v239_v13 = vld [vmem:[%s13322_s0 + $0x6e8] sm:$0xff] }
 0x16a   :  { %5632 = vmatmul.mubr.bf16.gmra.mrb[20].mxu0 %v7508_v14  ;;  %4483 = vmatprep.mubr.bf16.mxu1 %v7517_v15  ;;  %v7612_v14 = vcombine.low %v211_v2, %v219_v3  ;;  %v7620_v15 = vcombine.low %v215_v4, %v223_v5  ;;  %v311_v56 = vld [vmem:[%s13322_s0 + $0x928] sm:$0xff] }
 0x16b   :  { %5639 = vmatprep.mubr.bf16.mxu0 %v7525_v16  ;;  %4713 = vmatpush1.bf16.msra.mxu1 %v9296_v17  ;;  %v7629_v16 = vcombine.high %v227_v10, %v235_v11  ;;  %v7637_v17 = vcombine.high %v231_v12, %v239_v13  ;;  %v319_v57 = vld [vmem:[%s13322_s0 + $0x968] sm:$0xff] }
 0x16c   :  { %5869 = vmatpush1.bf16.msra.mxu0 %v9297_v18  ;;  %4714 = vmatprep.subr.bf16.mxu1 %v9342_v0  ;;  %v9304_v18 = vld [vmem:[%s13321_s1 + $0x170] sm:$0xff]   ;;  %v335_v2 = vld [vmem:[%s13322_s0 + $0x9e8] sm:$0xff]  ;;  %v7716_v4 = vcombine.low %v311_v56, %v319_v57 }
 0x16d   :  { %5870 = vmatprep.subr.bf16.mxu0 %v9342_v0 }
 0x16f   :  { %4715 = vmatpush1.bf16.msra.mxu1 %v9298_v27 }
 0x170   :  { %5871 = vmatpush1.bf16.msra.mxu0 %v9299_v28  ;;  %4716 = vmatprep.subr.bf16.mxu1 %v9342_v0  ;;  %v259_v28 = vld [vmem:[%s13322_s0 + $0x788] sm:$0xff] }
 0x171   :  { %4484 = vmatmul.mubr.bf16.gmra.mrb[24].mxu1 %v7516_v23  ;;  %5872 = vmatprep.subr.bf16.mxu0 %v9342_v0  ;;  %v255_v23 = vld [vmem:[%s13322_s0 + $0x768] sm:$0xff] }
 0x172   :  { %5640 = vmatmul.mubr.bf16.gmra.mrb[24].mxu0 %v7524_v24  ;;  %4491 = vmatprep.mubr.bf16.mxu1 %v7533_v25  ;;  %v7628_v24 = vcombine.low %v227_v10, %v235_v11  ;;  %v7636_v25 = vcombine.low %v231_v12, %v239_v13  ;;  %v7653_v27 = vcombine.high %v247_v22, %v255_v23  ;;  %v351_v10 = vld [vmem:[%s13322_s0 + $0xa68] sm:$0xff] }
 0x173   :  { %5647 = vmatprep.mubr.bf16.mxu0 %v7541_v26  ;;  %4717 = vmatpush1.bf16.msra.mxu1 %v9300_v45  ;;  %v7645_v26 = vcombine.high %v243_v20, %v251_v21 }
 0x174   :  { %5873 = vmatpush1.bf16.msra.mxu0 %v9301_v46  ;;  %4718 = vmatprep.subr.bf16.mxu1 %v9342_v0  ;;  %v291_v46 = vld [vmem:[%s13322_s0 + $0x888] sm:$0xff] }
 0x175   :  { %5874 = vmatprep.subr.bf16.mxu0 %v9342_v0  ;;  %v7692_v58 = vcombine.low %v291_v46, %v299_v47 }
 0x177   :  { %4719 = vmatpush1.bf16.msra.mxu1 %v9302_v63  ;;  %v331_v63 = vld [vmem:[%s13322_s0 + $0x9c8] sm:$0xff] }
 0x178   :  { %5875 = vmatpush1.bf16.msra.mxu0 %v9303_v1  ;;  %4720 = vmatprep.subr.bf16.mxu1 %v9342_v0  ;;  %v327_v1 = vld [vmem:[%s13322_s0 + $0x9a8] sm:$0xff] }
 0x179   :  { %4492 = vmatmul.mubr.bf16.gmra.mrb[28].mxu1 %v7532_v33  ;;  %5876 = vmatprep.subr.bf16.mxu0 %v9342_v0  ;;  %v7652_v33 = vcombine.low %v247_v22, %v255_v23  ;;  %v7732_v12 = vcombine.low %v327_v1, %v335_v2  ;;  %v371_v23 = vld [vmem:[%s13322_s0 + $0xb08] sm:$0xff] }
 0x17a   :  { %5648 = vmatmul.mubr.bf16.gmra.mrb[28].mxu0 %v7540_v34  ;;  %4499 = vmatprep.mubr.bf16.mxu1 %v7549_v35  ;;  %v7661_v34 = vcombine.high %v259_v28, %v267_v29  ;;  %v7669_v35 = vcombine.high %v263_v30, %v271_v31 }
 0x17b   :  { %5655 = vmatprep.mubr.bf16.mxu0 %v7557_v36  ;;  %4721 = vmatpush1.bf16.msra.mxu1 %v9304_v18  ;;  %v9306_v36 = vld [vmem:[%s13321_s1 + $0x178] sm:$0xff]   ;;  %v367_v18 = vld [vmem:[%s13322_s0 + $0xae8] sm:$0xff] }
 0x17c   :  { %5877 = vmatpush1.bf16.msra.mxu0 %v9305_v19  ;;  %4722 = vmatprep.subr.bf16.mxu1 %v9342_v0 }
 0x17d   :  { %5878 = vmatprep.subr.bf16.mxu0 %v9342_v0 }
 0x17f   :  { %4723 = vmatpush1.bf16.msra.mxu1 %v9306_v36 }
 0x180   :  { %5879 = vmatpush1.bf16.msra.mxu0 %v9307_v37  ;;  %4981 = vmatprep.subr.bf16.mxu1 %v9342_v0 }
 0x181   :  { %4500 = vmatmul.mubr.bf16.gmra.mrb[32].mxu1 %v7548_v41  ;;  %v287_v41 = vld [vmem:[%s13322_s0 + $0x868] sm:$0xff]  ;;  %6137 = vmatprep.subr.bf16.mxu0 %v9342_v0 }
 0x182   :  { %5656 = vmatmul.mubr.bf16.gmra.mrb[32].mxu0 %v7556_v42  ;;  %4507 = vmatprep.mubr.bf16.mxu1 %v7565_v43  ;;  %v7660_v42 = vcombine.low %v259_v28, %v267_v29  ;;  %v7668_v43 = vcombine.low %v263_v30, %v271_v31  ;;  %v7685_v45 = vcombine.high %v279_v40, %v287_v41  ;;  %v387_v31 = vld [vmem:[%s13322_s0 + $0xb88] sm:$0xff] }
 0x183   :  { %5663 = vmatprep.mubr.bf16.mxu0 %v7573_v44  ;;  %v7677_v44 = vcombine.high %v275_v38, %v283_v39  ;;  %v403_v39 = vld [vmem:[%s13322_s0 + $0xc08] sm:$0xff] }
 0x189   :  { %4508 = vmatmul.mubr.bf16.gmra.mrb[36].mxu1 %v7564_v51  ;;  %v7684_v51 = vcombine.low %v279_v40, %v287_v41  ;;  %v411_v40 = vld [vmem:[%s13322_s0 + $0xc48] sm:$0xff] }
 0x18a   :  { %5664 = vmatmul.mubr.bf16.gmra.mrb[36].mxu0 %v7572_v52  ;;  %4515 = vmatprep.mubr.bf16.mxu1 %v7581_v53  ;;  %v7693_v52 = vcombine.high %v291_v46, %v299_v47  ;;  %v7701_v53 = vcombine.high %v295_v48, %v303_v49  ;;  %v407_v41 = vld [vmem:[%s13322_s0 + $0xc28] sm:$0xff] }
 0x18b   :  { %5671 = vmatprep.mubr.bf16.mxu0 %v7589_v54  ;;  %v307_v54 = vld [vmem:[%s13322_s0 + $0x908] sm:$0xff] }
 0x18c   :  { %v7708_v3 = vcombine.low %v307_v54, %v315_v55  ;;  %v419_v47 = vld [vmem:[%s13322_s0 + $0xc88] sm:$0xff] }
 0x191   :  { %4516 = vmatmul.mubr.bf16.gmra.mrb[40].mxu1 %v7580_v59  ;;  %v7700_v59 = vcombine.low %v295_v48, %v303_v49  ;;  %v427_v48 = vld [vmem:[%s13322_s0 + $0xcc8] sm:$0xff] }
 0x192   :  { %5672 = vmatmul.mubr.bf16.gmra.mrb[40].mxu0 %v7588_v60  ;;  %4523 = vmatprep.mubr.bf16.mxu1 %v7597_v61  ;;  %v7709_v60 = vcombine.high %v307_v54, %v315_v55  ;;  %v7717_v61 = vcombine.high %v311_v56, %v319_v57  ;;  %v423_v49 = vld [vmem:[%s13322_s0 + $0xca8] sm:$0xff] }
 0x193   :  { %5679 = vmatprep.mubr.bf16.mxu0 %v7605_v62  ;;  %v323_v62 = vld [vmem:[%s13322_s0 + $0x988] sm:$0xff] }
 0x194   :  { %v7725_v5 = vcombine.high %v323_v62, %v331_v63  ;;  %v7724_v11 = vcombine.low %v323_v62, %v331_v63  ;;  %v435_v55 = vld [vmem:[%s13322_s0 + $0xd08] sm:$0xff] }
 0x195   :  { %v443_v56 = vld [vmem:[%s13322_s0 + $0xd48] sm:$0xff] }
 0x196   :  { %v439_v57 = vld [vmem:[%s13322_s0 + $0xd28] sm:$0xff] }
 0x197   :  { %v451_v63 = vld [vmem:[%s13322_s0 + $0xd88] sm:$0xff] }
 0x199   :  { %4524 = vmatmul.mubr.bf16.gmra.mrb[44].mxu1 %v7596_v6  ;;  %v7733_v6 = vcombine.high %v327_v1, %v335_v2  ;;  %v459_v1 = vld [vmem:[%s13322_s0 + $0xdc8] sm:$0xff] }
 0x19a   :  { %5680 = vmatmul.mubr.bf16.gmra.mrb[44].mxu0 %v7604_v7  ;;  %4531 = vmatprep.mubr.bf16.mxu1 %v7613_v8  ;;  %v339_v7 = vld [vmem:[%s13322_s0 + $0xa08] sm:$0xff] }
 0x19b   :  { %5687 = vmatprep.mubr.bf16.mxu0 %v7621_v9  ;;  %v347_v8 = vld [vmem:[%s13322_s0 + $0xa48] sm:$0xff] }
 0x19c   :  { %v343_v9 = vld [vmem:[%s13322_s0 + $0xa28] sm:$0xff]  ;;  %v7741_v13 = vcombine.high %v339_v7, %v347_v8  ;;  %v7740_v19 = vcombine.low %v339_v7, %v347_v8 }
 0x19d   :  { %v7748_v20 = vcombine.low %v343_v9, %v351_v10  ;;  %v455_v2 = vld [vmem:[%s13322_s0 + $0xda8] sm:$0xff] }
 0x19e   :  { %v467_v8 = vld [vmem:[%s13322_s0 + $0xe08] sm:$0xff] }
 0x1a1   :  { %4532 = vmatmul.mubr.bf16.gmra.mrb[48].mxu1 %v7612_v14  ;;  %v7749_v14 = vcombine.high %v343_v9, %v351_v10  ;;  %v475_v9 = vld [vmem:[%s13322_s0 + $0xe48] sm:$0xff] }
 0x1a2   :  { %5688 = vmatmul.mubr.bf16.gmra.mrb[48].mxu0 %v7620_v15  ;;  %4539 = vmatprep.mubr.bf16.mxu1 %v7629_v16  ;;  %v355_v15 = vld [vmem:[%s13322_s0 + $0xa88] sm:$0xff] }
 0x1a3   :  { %5695 = vmatprep.mubr.bf16.mxu0 %v7637_v17  ;;  %v363_v16 = vld [vmem:[%s13322_s0 + $0xac8] sm:$0xff] }
 0x1a4   :  { %v359_v17 = vld [vmem:[%s13322_s0 + $0xaa8] sm:$0xff]  ;;  %v7757_v21 = vcombine.high %v355_v15, %v363_v16 }
 0x1a5   :  { %v7765_v22 = vcombine.high %v359_v17, %v367_v18  ;;  %v7764_v28 = vcombine.low %v359_v17, %v367_v18  ;;  %v471_v10 = vld [vmem:[%s13322_s0 + $0xe28] sm:$0xff] }
 0x1a6   :  { %v491_v17 = vld [vmem:[%s13322_s0 + $0xec8] sm:$0xff] }
 0x1a7   :  { %v487_v18 = vld [vmem:[%s13322_s0 + $0xea8] sm:$0xff] }
 0x1a9   :  { %4540 = vmatmul.mubr.bf16.gmra.mrb[52].mxu1 %v7628_v24  ;;  %v379_v24 = vld [vmem:[%s13322_s0 + $0xb48] sm:$0xff] }
 0x1aa   :  { %5696 = vmatmul.mubr.bf16.gmra.mrb[52].mxu0 %v7636_v25  ;;  %4547 = vmatprep.mubr.bf16.mxu1 %v7645_v26  ;;  %v375_v25 = vld [vmem:[%s13322_s0 + $0xb28] sm:$0xff]  ;;  %v7773_v29 = vcombine.high %v371_v23, %v379_v24 }
 0x1ab   :  { %5703 = vmatprep.mubr.bf16.mxu0 %v7653_v27  ;;  %v383_v26 = vld [vmem:[%s13322_s0 + $0xb68] sm:$0xff]  ;;  %v7756_v27 = vcombine.low %v355_v15, %v363_v16 }
 0x1ac   :  { %v7781_v30 = vcombine.high %v375_v25, %v383_v26  ;;  %v7780_v36 = vcombine.low %v375_v25, %v383_v26  ;;  %v483_v16 = vld [vmem:[%s13322_s0 + $0xe88] sm:$0xff] }
 0x1ad   :  { %v507_v25 = vld [vmem:[%s13322_s0 + $0xf48] sm:$0xff] }
 0x1ae   :  { %v503_v26 = vld [vmem:[%s13322_s0 + $0xf28] sm:$0xff] }
 0x1b1   :  { %4548 = vmatmul.mubr.bf16.gmra.mrb[56].mxu1 %v7644_v32  ;;  %v395_v32 = vld [vmem:[%s13322_s0 + $0xbc8] sm:$0xff] }
 0x1b2   :  { %5704 = vmatmul.mubr.bf16.gmra.mrb[56].mxu0 %v7652_v33  ;;  %4555 = vmatprep.mubr.bf16.mxu1 %v7661_v34  ;;  %v391_v33 = vld [vmem:[%s13322_s0 + $0xba8] sm:$0xff]  ;;  %v7789_v37 = vcombine.high %v387_v31, %v395_v32 }
 0x1b3   :  { %5711 = vmatprep.mubr.bf16.mxu0 %v7669_v35  ;;  %v399_v34 = vld [vmem:[%s13322_s0 + $0xbe8] sm:$0xff]  ;;  %v7772_v35 = vcombine.low %v371_v23, %v379_v24 }
 0x1b4   :  { %v7797_v38 = vcombine.high %v391_v33, %v399_v34  ;;  %v499_v24 = vld [vmem:[%s13322_s0 + $0xf08] sm:$0xff] }
 0x1b9   :  { %4556 = vmatmul.mubr.bf16.gmra.mrb[60].mxu1 %v7660_v42  ;;  %v415_v42 = vld [vmem:[%s13322_s0 + $0xc68] sm:$0xff] }
 0x1ba   :  { %5712 = vmatmul.mubr.bf16.gmra.mrb[60].mxu0 %v7668_v43  ;;  %4563 = vmatprep.mubr.bf16.mxu1 %v7677_v44  ;;  %v7788_v43 = vcombine.low %v387_v31, %v395_v32  ;;  %v7796_v44 = vcombine.low %v391_v33, %v399_v34  ;;  %v7813_v46 = vcombine.high %v407_v41, %v415_v42  ;;  %v515_v32 = vld [vmem:[%s13322_s0 + $0xf88] sm:$0xff] }
 0x1bb   :  { %5719 = vmatprep.mubr.bf16.mxu0 %v7685_v45  ;;  %v7805_v45 = vcombine.high %v403_v39, %v411_v40  ;;  %v523_v33 = vld [vmem:[%s13322_s0 + $0xfc8] sm:$0xff] }
 0x1bc   :  { %v519_v34 = vld [vmem:[%s13322_s0 + $0xfa8] sm:$0xff] }
 0x1c1   :  { %4564 = vmatmul.mubr.bf16.gmra.mrb[64].mxu1 %v7676_v50  ;;  %v431_v50 = vld [vmem:[%s13322_s0 + $0xce8] sm:$0xff] }
 0x1c2   :  { %5720 = vmatmul.mubr.bf16.gmra.mrb[64].mxu0 %v7684_v51  ;;  %4571 = vmatprep.mubr.bf16.mxu1 %v7693_v52  ;;  %v7804_v51 = vcombine.low %v403_v39, %v411_v40  ;;  %v7812_v52 = vcombine.low %v407_v41, %v415_v42  ;;  %v7829_v54 = vcombine.high %v423_v49, %v431_v50  ;;  %v20_v40 = vld [vmem:[%s13322_s0 + $0x10] sm:$0xff] }
 0x1c3   :  { %5727 = vmatprep.mubr.bf16.mxu0 %v7701_v53  ;;  %v7821_v53 = vcombine.high %v419_v47, %v427_v48  ;;  %v28_v41 = vld [vmem:[%s13322_s0 + $0x50] sm:$0xff] }
 0x1c4   :  { %v24_v42 = vld [vmem:[%s13322_s0 + $0x30] sm:$0xff] }
 0x1c9   :  { %4572 = vmatmul.mubr.bf16.gmra.mrb[68].mxu1 %v7692_v58  ;;  %v447_v58 = vld [vmem:[%s13322_s0 + $0xd68] sm:$0xff] }
 0x1ca   :  { %5728 = vmatmul.mubr.bf16.gmra.mrb[68].mxu0 %v7700_v59  ;;  %4579 = vmatprep.mubr.bf16.mxu1 %v7709_v60  ;;  %v7820_v59 = vcombine.low %v419_v47, %v427_v48  ;;  %v7828_v60 = vcombine.low %v423_v49, %v431_v50  ;;  %v7845_v62 = vcombine.high %v439_v57, %v447_v58  ;;  %v36_v48 = vld [vmem:[%s13322_s0 + $0x90] sm:$0xff] }
 0x1cb   :  { %5735 = vmatprep.mubr.bf16.mxu0 %v7717_v61  ;;  %v7837_v61 = vcombine.high %v435_v55, %v443_v56  ;;  %v44_v49 = vld [vmem:[%s13322_s0 + $0xd0] sm:$0xff]  ;;  %v7422_v50 = vcombine.low %v20_v40, %v28_v41 }
 0x1d1   :  { %4580 = vmatmul.mubr.bf16.gmra.mrb[72].mxu1 %v7708_v3  ;;  %v463_v3 = vld [vmem:[%s13322_s0 + $0xde8] sm:$0xff] }
 0x1d2   :  { %5736 = vmatmul.mubr.bf16.gmra.mrb[72].mxu0 %v7716_v4  ;;  %4587 = vmatprep.mubr.bf16.mxu1 %v7725_v5  ;;  %v7836_v4 = vcombine.low %v435_v55, %v443_v56  ;;  %v7844_v5 = vcombine.low %v439_v57, %v447_v58  ;;  %v7861_v7 = vcombine.high %v455_v2, %v463_v3  ;;  %v9309_v55 = vld [vmem:[%s13321_s1 + $0x380] sm:$0xff]   ;;  %v9310_v58 = vld [vmem:[%s13321_s1 + $0x188] sm:$0xff]  }
 0x1d3   :  { %5743 = vmatprep.mubr.bf16.mxu0 %v7733_v6  ;;  %v7853_v6 = vcombine.high %v451_v63, %v459_v1  ;;  %v7439_v56 = vcombine.high %v36_v48, %v44_v49 }
 0x1d9   :  { %4588 = vmatmul.mubr.bf16.gmra.mrb[76].mxu1 %v7724_v11  ;;  %v479_v11 = vld [vmem:[%s13322_s0 + $0xe68] sm:$0xff] }
 0x1da   :  { %5744 = vmatmul.mubr.bf16.gmra.mrb[76].mxu0 %v7732_v12  ;;  %4595 = vmatprep.mubr.bf16.mxu1 %v7741_v13  ;;  %v7852_v12 = vcombine.low %v451_v63, %v459_v1  ;;  %v7860_v13 = vcombine.low %v455_v2, %v463_v3  ;;  %v7877_v15 = vcombine.high %v471_v10, %v479_v11  ;;  %v64_v63 = vld [vmem:[%s13322_s0 + $0x170] sm:$0xff] }
 0x1db   :  { %5751 = vmatprep.mubr.bf16.mxu0 %v7749_v14  ;;  %v7869_v14 = vcombine.high %v467_v8, %v475_v9  ;;  %v7438_v1 = vcombine.low %v36_v48, %v44_v49  ;;  %v9327_v48 = vld [vmem:[%s13321_s1 + $0x3c8] sm:$0xff]  }
 0x1e1   :  { %4596 = vmatmul.mubr.bf16.gmra.mrb[80].mxu1 %v7740_v19  ;;  %v495_v19 = vld [vmem:[%s13322_s0 + $0xee8] sm:$0xff] }
 0x1e2   :  { %5752 = vmatmul.mubr.bf16.gmra.mrb[80].mxu0 %v7748_v20  ;;  %4603 = vmatprep.mubr.bf16.mxu1 %v7757_v21  ;;  %v7868_v20 = vcombine.low %v467_v8, %v475_v9  ;;  %v7876_v21 = vcombine.low %v471_v10, %v479_v11  ;;  %v7893_v23 = vcombine.high %v487_v18, %v495_v19  ;;  %v76_v8 = vld [vmem:[%s13322_s0 + $0x1d0] sm:$0xff]  ;;  %v9314_v9 = vld [vmem:[%s13321_s1 + $0x198] sm:$0xff]  }
 0x1e3   :  { %5759 = vmatprep.mubr.bf16.mxu0 %v7765_v22  ;;  %v7885_v22 = vcombine.high %v483_v16, %v491_v17  ;;  %v72_v10 = vld [vmem:[%s13322_s0 + $0x1b0] sm:$0xff] }
 0x1e4   :  { %v80_v11 = vld [vmem:[%s13322_s0 + $0x1f0] sm:$0xff] }
 0x1e9   :  { %4604 = vmatmul.mubr.bf16.gmra.mrb[84].mxu1 %v7756_v27  ;;  %v511_v27 = vld [vmem:[%s13322_s0 + $0xf68] sm:$0xff] }
 0x1ea   :  { %5760 = vmatmul.mubr.bf16.gmra.mrb[84].mxu0 %v7764_v28  ;;  %4611 = vmatprep.mubr.bf16.mxu1 %v7773_v29  ;;  %v7884_v28 = vcombine.low %v483_v16, %v491_v17  ;;  %v7892_v29 = vcombine.low %v487_v18, %v495_v19  ;;  %v7909_v31 = vcombine.high %v503_v26, %v511_v27  ;;  %v9316_v17 = vld [vmem:[%s13321_s1 + $0x1a0] sm:$0xff]   ;;  %v84_v19 = vld [vmem:[%s13322_s0 + $0x210] sm:$0xff] }
 0x1eb   :  { %5767 = vmatprep.mubr.bf16.mxu0 %v7781_v30  ;;  %v7901_v30 = vcombine.high %v499_v24, %v507_v25  ;;  %v7479_v16 = vcombine.high %v72_v10, %v80_v11  ;;  %v9317_v18 = vld [vmem:[%s13321_s1 + $0x3a0] sm:$0xff]  }
 0x1f1   :  { %4612 = vmatmul.mubr.bf16.gmra.mrb[88].mxu1 %v7772_v35  ;;  %v527_v35 = vld [vmem:[%s13322_s0 + $0xfe8] sm:$0xff] }
 0x1f2   :  { %5768 = vmatmul.mubr.bf16.gmra.mrb[88].mxu0 %v7780_v36  ;;  %4619 = vmatprep.mubr.bf16.mxu1 %v7789_v37  ;;  %v7900_v36 = vcombine.low %v499_v24, %v507_v25  ;;  %v7908_v37 = vcombine.low %v503_v26, %v511_v27  ;;  %v7925_v39 = vcombine.high %v519_v34, %v527_v35  ;;  %v9319_v24 = vld [vmem:[%s13321_s1 + $0x3a8] sm:$0xff]  }
 0x1f3   :  { %5775 = vmatprep.mubr.bf16.mxu0 %v7797_v38  ;;  %v7917_v38 = vcombine.high %v515_v32, %v523_v33  ;;  %v7478_v26 = vcombine.low %v72_v10, %v80_v11  ;;  %v164_v10 = vld [vmem:[%s13322_s0 + $0x490] sm:$0xff] }
 0x1f4   :  { %v172_v11 = vld [vmem:[%s13322_s0 + $0x4d0] sm:$0xff] }
 0x1f9   :  { %4620 = vmatmul.mubr.bf16.gmra.mrb[92].mxu1 %v7788_v43  ;;  %v32_v43 = vld [vmem:[%s13322_s0 + $0x70] sm:$0xff] }
 0x1fa   :  { %5776 = vmatmul.mubr.bf16.gmra.mrb[92].mxu0 %v7796_v44  ;;  %4627 = vmatprep.mubr.bf16.mxu1 %v7805_v45  ;;  %v7916_v44 = vcombine.low %v515_v32, %v523_v33  ;;  %v7924_v45 = vcombine.low %v519_v34, %v527_v35  ;;  %v7431_v47 = vcombine.high %v24_v42, %v32_v43  ;;  %v108_v32 = vld [vmem:[%s13322_s0 + $0x2d0] sm:$0xff]  ;;  %v9322_v33 = vld [vmem:[%s13321_s1 + $0x1b8] sm:$0xff]  }
 0x1fb   :  { %5783 = vmatprep.mubr.bf16.mxu0 %v7813_v46  ;;  %v7423_v46 = vcombine.high %v20_v40, %v28_v41  ;;  %v104_v34 = vld [vmem:[%s13322_s0 + $0x2b0] sm:$0xff]  ;;  %v9324_v41 = vld [vmem:[%s13321_s1 + $0x1c0] sm:$0xff]  }
 0x1fc   :  { %v112_v35 = vld [vmem:[%s13322_s0 + $0x2f0] sm:$0xff] }
 0x1fd   :  { %v7511_v40 = vcombine.high %v104_v34, %v112_v35 }
 0x201   :  { %4628 = vmatmul.mubr.bf16.gmra.mrb[96].mxu1 %v7804_v51  ;;  %v40_v51 = vld [vmem:[%s13322_s0 + $0xb0] sm:$0xff] }
 0x202   :  { %5784 = vmatmul.mubr.bf16.gmra.mrb[96].mxu0 %v7812_v52  ;;  %4635 = vmatprep.mubr.bf16.mxu1 %v7821_v53  ;;  %v48_v52 = vld [vmem:[%s13322_s0 + $0xf0] sm:$0xff]  ;;  %v7430_v53 = vcombine.low %v24_v42, %v32_v43  ;;  %v9325_v42 = vld [vmem:[%s13321_s1 + $0x3c0] sm:$0xff]  }
 0x203   :  { %5791 = vmatprep.mubr.bf16.mxu0 %v7829_v54  ;;  %v9308_v54 = vld [vmem:[%s13321_s1 + $0x180] sm:$0xff]   ;;  %v7447_v57 = vcombine.high %v40_v51, %v48_v52  ;;  %v7446_v2 = vcombine.low %v40_v51, %v48_v52  ;;  %v116_v43 = vld [vmem:[%s13322_s0 + $0x310] sm:$0xff] }
 0x209   :  { %4636 = vmatmul.mubr.bf16.gmra.mrb[100].mxu1 %v7820_v59  ;;  %v52_v59 = vld [vmem:[%s13322_s0 + $0x110] sm:$0xff] }
 0x20a   :  { %5792 = vmatmul.mubr.bf16.gmra.mrb[100].mxu0 %v7828_v60  ;;  %4643 = vmatprep.mubr.bf16.mxu1 %v7837_v61  ;;  %v60_v60 = vld [vmem:[%s13322_s0 + $0x150] sm:$0xff]  ;;  %v9311_v61 = vld [vmem:[%s13321_s1 + $0x388] sm:$0xff]  }
 0x20b   :  { %5799 = vmatprep.mubr.bf16.mxu0 %v7845_v62  ;;  %v56_v62 = vld [vmem:[%s13322_s0 + $0x130] sm:$0xff]  ;;  %v7455_v3 = vcombine.high %v52_v59, %v60_v60 }
 0x211   :  { %4644 = vmatmul.mubr.bf16.gmra.mrb[104].mxu1 %v7836_v4  ;;  %v7463_v4 = vcombine.high %v56_v62, %v64_v63 }
 0x212   :  { %5800 = vmatmul.mubr.bf16.gmra.mrb[104].mxu0 %v7844_v5  ;;  %4651 = vmatprep.mubr.bf16.mxu1 %v7853_v6  ;;  %v9312_v5 = vld [vmem:[%s13321_s1 + $0x190] sm:$0xff]  }
 0x213   :  { %5807 = vmatprep.mubr.bf16.mxu0 %v7861_v7  ;;  %v9313_v6 = vld [vmem:[%s13321_s1 + $0x390] sm:$0xff]  }
 0x214   :  { %v68_v7 = vld [vmem:[%s13322_s0 + $0x190] sm:$0xff] }
 0x215   :  { %v7470_v25 = vcombine.low %v68_v7, %v76_v8 }
 0x219   :  { %4652 = vmatmul.mubr.bf16.gmra.mrb[108].mxu1 %v7852_v12  ;;  %v9315_v12 = vld [vmem:[%s13321_s1 + $0x398] sm:$0xff]  }
 0x21a   :  { %5808 = vmatmul.mubr.bf16.gmra.mrb[108].mxu0 %v7860_v13  ;;  %4659 = vmatprep.mubr.bf16.mxu1 %v7869_v14  ;;  %v7454_v13 = vcombine.low %v52_v59, %v60_v60  ;;  %v7462_v14 = vcombine.low %v56_v62, %v64_v63  ;;  %v9330_v63 = vld [vmem:[%s13321_s1 + $0x1d8] sm:$0xff]  }
 0x21b   :  { %5815 = vmatprep.mubr.bf16.mxu0 %v7877_v15  ;;  %v7471_v15 = vcombine.high %v68_v7, %v76_v8 }
 0x221   :  { %4660 = vmatmul.mubr.bf16.gmra.mrb[112].mxu1 %v7868_v20  ;;  %v92_v20 = vld [vmem:[%s13322_s0 + $0x250] sm:$0xff] }
 0x222   :  { %5816 = vmatmul.mubr.bf16.gmra.mrb[112].mxu0 %v7876_v21  ;;  %4667 = vmatprep.mubr.bf16.mxu1 %v7885_v22  ;;  %v9318_v21 = vld [vmem:[%s13321_s1 + $0x1a8] sm:$0xff]   ;;  %v88_v22 = vld [vmem:[%s13322_s0 + $0x230] sm:$0xff]  ;;  %v7487_v27 = vcombine.high %v84_v19, %v92_v20 }
 0x223   :  { %5823 = vmatprep.mubr.bf16.mxu0 %v7893_v23  ;;  %v96_v23 = vld [vmem:[%s13322_s0 + $0x270] sm:$0xff] }
 0x229   :  { %4668 = vmatmul.mubr.bf16.gmra.mrb[116].mxu1 %v7884_v28  ;;  %v7495_v28 = vcombine.high %v88_v22, %v96_v23 }
 0x22a   :  { %5824 = vmatmul.mubr.bf16.gmra.mrb[116].mxu0 %v7892_v29  ;;  %4675 = vmatprep.mubr.bf16.mxu1 %v7901_v30  ;;  %v9320_v29 = vld [vmem:[%s13321_s1 + $0x1b0] sm:$0xff]  }
 0x22b   :  { %5831 = vmatprep.mubr.bf16.mxu0 %v7909_v31  ;;  %v9321_v30 = vld [vmem:[%s13321_s1 + $0x3b0] sm:$0xff]  }
 0x22c   :  { %v100_v31 = vld [vmem:[%s13322_s0 + $0x290] sm:$0xff] }
 0x22d   :  { %v7502_v49 = vcombine.low %v100_v31, %v108_v32 }
 0x231   :  { %4676 = vmatmul.mubr.bf16.gmra.mrb[120].mxu1 %v7900_v36  ;;  %v9323_v36 = vld [vmem:[%s13321_s1 + $0x3b8] sm:$0xff]  }
 0x232   :  { %5832 = vmatmul.mubr.bf16.gmra.mrb[120].mxu0 %v7908_v37  ;;  %4683 = vmatprep.mubr.bf16.mxu1 %v7917_v38  ;;  %v7486_v37 = vcombine.low %v84_v19, %v92_v20  ;;  %v7494_v38 = vcombine.low %v88_v22, %v96_v23  ;;  %v9333_v19 = vld [vmem:[%s13321_s1 + $0x3e0] sm:$0xff]   ;;  %v180_v20 = vld [vmem:[%s13322_s0 + $0x510] sm:$0xff] }
 0x233   :  { %5839 = vmatprep.mubr.bf16.mxu0 %v7925_v39  ;;  %v7503_v39 = vcombine.high %v100_v31, %v108_v32  ;;  %v184_v22 = vld [vmem:[%s13322_s0 + $0x530] sm:$0xff] }
 0x234   :  { %v192_v23 = vld [vmem:[%s13322_s0 + $0x570] sm:$0xff] }
 0x235   :  { %v208_v31 = vld [vmem:[%s13322_s0 + $0x5f0] sm:$0xff] }
 0x239   :  { %4684 = vmatmul.mubr.bf16.gmra.mrb[124].mxu1 %v7916_v44  ;;  %v124_v44 = vld [vmem:[%s13322_s0 + $0x350] sm:$0xff] }
 0x23a   :  { %5840 = vmatmul.mubr.bf16.gmra.mrb[124].mxu0 %v7924_v45  ;;  %4724 = vmatprep.mubr.bf16.mxu1 %v7423_v46  ;;  %v9326_v45 = vld [vmem:[%s13321_s1 + $0x1c8] sm:$0xff]   ;;  %v120_v46 = vld [vmem:[%s13322_s0 + $0x330] sm:$0xff]  ;;  %v7519_v51 = vcombine.high %v116_v43, %v124_v44  ;;  %v7518_v59 = vcombine.low %v116_v43, %v124_v44 }
 0x23b   :  { %5880 = vmatprep.mubr.bf16.mxu0 %v7431_v47  ;;  %v128_v47 = vld [vmem:[%s13322_s0 + $0x370] sm:$0xff] }
 0x23c   :  { %v7527_v52 = vcombine.high %v120_v46, %v128_v47  ;;  %v7526_v60 = vcombine.low %v120_v46, %v128_v47  ;;  %v228_v46 = vld [vmem:[%s13322_s0 + $0x690] sm:$0xff] }
 0x23d   :  { %v236_v47 = vld [vmem:[%s13322_s0 + $0x6d0] sm:$0xff] }
 0x241   :  { %4725 = vmatmul.mubr.bf16.vlgmr.msra.gmra.mrb[0].mxu1 %v7422_v50  ;;  %v7510_v50 = vcombine.low %v104_v34, %v112_v35 }
 0x242   :  { %5881 = vmatmul.mubr.bf16.vlgmr.msra.gmra.mrb[0].mxu0 %v7430_v53  ;;  %4982 = vmatpush1.bf16.msra.mxu1 %v9308_v54  ;;  %v9328_v53 = vld [vmem:[%s13321_s1 + $0x1d0] sm:$0xff]  }
 0x243   :  { %6138 = vmatpush1.bf16.msra.mxu0 %v9309_v55  ;;  %4732 = vmatprep.mubr.bf16.mxu1 %v7439_v56  ;;  %v9329_v54 = vld [vmem:[%s13321_s1 + $0x3d0] sm:$0xff]  }
 0x244   :  { %5888 = vmatprep.mubr.bf16.mxu0 %v7447_v57  ;;  %4983 = vmatprep.subr.bf16.mxu1 %v9342_v0  ;;  %v132_v55 = vld [vmem:[%s13322_s0 + $0x390] sm:$0xff] }
 0x245   :  { %6139 = vmatprep.subr.bf16.mxu0 %v9342_v0  ;;  %v140_v56 = vld [vmem:[%s13322_s0 + $0x3d0] sm:$0xff] }
 0x246   :  { %4984 = vmatpush1.bf16.msra.mxu1 %v9310_v58  ;;  %v136_v57 = vld [vmem:[%s13322_s0 + $0x3b0] sm:$0xff] }
 0x247   :  { %6140 = vmatpush1.bf16.msra.mxu0 %v9311_v61  ;;  %4985 = vmatprep.subr.bf16.mxu1 %v9342_v0  ;;  %v144_v58 = vld [vmem:[%s13322_s0 + $0x3f0] sm:$0xff]  ;;  %v7535_v61 = vcombine.high %v132_v55, %v140_v56 }
 0x248   :  { %6141 = vmatprep.subr.bf16.mxu0 %v9342_v0  ;;  %v7543_v62 = vcombine.high %v136_v57, %v144_v58  ;;  %v7542_v7 = vcombine.low %v136_v57, %v144_v58  ;;  %v252_v57 = vld [vmem:[%s13322_s0 + $0x750] sm:$0xff] }
 0x249   :  { %4733 = vmatmul.mubr.bf16.gmra.mrb[4].mxu1 %v7438_v1  ;;  %v9331_v1 = vld [vmem:[%s13321_s1 + $0x3d8] sm:$0xff]   ;;  %v248_v58 = vld [vmem:[%s13322_s0 + $0x730] sm:$0xff] }
 0x24a   :  { %5889 = vmatmul.mubr.bf16.gmra.mrb[4].mxu0 %v7446_v2  ;;  %4740 = vmatprep.mubr.bf16.mxu1 %v7455_v3  ;;  %v148_v2 = vld [vmem:[%s13322_s0 + $0x410] sm:$0xff] }
 0x24b   :  { %5896 = vmatprep.mubr.bf16.mxu0 %v7463_v4  ;;  %4986 = vmatpush1.bf16.msra.mxu1 %v9312_v5  ;;  %v156_v3 = vld [vmem:[%s13322_s0 + $0x450] sm:$0xff] }
 0x24c   :  { %6142 = vmatpush1.bf16.msra.mxu0 %v9313_v6  ;;  %4987 = vmatprep.subr.bf16.mxu1 %v9342_v0  ;;  %v152_v4 = vld [vmem:[%s13322_s0 + $0x430] sm:$0xff]  ;;  %v7534_v6 = vcombine.low %v132_v55, %v140_v56  ;;  %v7551_v8 = vcombine.high %v148_v2, %v156_v3 }
 0x24d   :  { %6143 = vmatprep.subr.bf16.mxu0 %v9342_v0  ;;  %v160_v5 = vld [vmem:[%s13322_s0 + $0x470] sm:$0xff] }
 0x24e   :  { %v9337_v55 = vld [vmem:[%s13321_s1 + $0x3f0] sm:$0xff]  }
 0x24f   :  { %4988 = vmatpush1.bf16.msra.mxu1 %v9314_v9  ;;  %v7559_v9 = vcombine.high %v152_v4, %v160_v5  ;;  %v244_v56 = vld [vmem:[%s13322_s0 + $0x710] sm:$0xff] }
 0x250   :  { %6144 = vmatpush1.bf16.msra.mxu0 %v9315_v12  ;;  %4989 = vmatprep.subr.bf16.mxu1 %v9342_v0  ;;  %v168_v12 = vld [vmem:[%s13322_s0 + $0x4b0] sm:$0xff] }
 0x251   :  { %4741 = vmatmul.mubr.bf16.gmra.mrb[8].mxu1 %v7454_v13  ;;  %6145 = vmatprep.subr.bf16.mxu0 %v9342_v0  ;;  %v176_v13 = vld [vmem:[%s13322_s0 + $0x4f0] sm:$0xff] }
 0x252   :  { %5897 = vmatmul.mubr.bf16.gmra.mrb[8].mxu0 %v7462_v14  ;;  %4748 = vmatprep.mubr.bf16.mxu1 %v7471_v15  ;;  %v7550_v14 = vcombine.low %v148_v2, %v156_v3  ;;  %v7558_v15 = vcombine.low %v152_v4, %v160_v5  ;;  %v268_v2 = vld [vmem:[%s13322_s0 + $0x7d0] sm:$0xff]  ;;  %v7646_v4 = vcombine.low %v244_v56, %v252_v57 }
 0x253   :  { %5904 = vmatprep.mubr.bf16.mxu0 %v7479_v16  ;;  %4990 = vmatpush1.bf16.msra.mxu1 %v9316_v17  ;;  %v7567_v16 = vcombine.high %v164_v10, %v172_v11  ;;  %v7575_v17 = vcombine.high %v168_v12, %v176_v13  ;;  %v264_v3 = vld [vmem:[%s13322_s0 + $0x7b0] sm:$0xff] }
 0x254   :  { %6146 = vmatpush1.bf16.msra.mxu0 %v9317_v18  ;;  %4991 = vmatprep.subr.bf16.mxu1 %v9342_v0  ;;  %v9332_v18 = vld [vmem:[%s13321_s1 + $0x1e0] sm:$0xff]  }
 0x255   :  { %6147 = vmatprep.subr.bf16.mxu0 %v9342_v0 }
 0x257   :  { %4992 = vmatpush1.bf16.msra.mxu1 %v9318_v21  ;;  %v188_v21 = vld [vmem:[%s13322_s0 + $0x550] sm:$0xff] }
 0x258   :  { %6148 = vmatpush1.bf16.msra.mxu0 %v9319_v24  ;;  %4993 = vmatprep.subr.bf16.mxu1 %v9342_v0  ;;  %v7566_v24 = vcombine.low %v164_v10, %v172_v11  ;;  %v7582_v32 = vcombine.low %v180_v20, %v188_v21  ;;  %v276_v10 = vld [vmem:[%s13322_s0 + $0x810] sm:$0xff] }
 0x259   :  { %4749 = vmatmul.mubr.bf16.gmra.mrb[12].mxu1 %v7470_v25  ;;  %6149 = vmatprep.subr.bf16.mxu0 %v9342_v0  ;;  %v7574_v25 = vcombine.low %v168_v12, %v176_v13  ;;  %v284_v11 = vld [vmem:[%s13322_s0 + $0x850] sm:$0xff] }
 0x25a   :  { %5905 = vmatmul.mubr.bf16.gmra.mrb[12].mxu0 %v7478_v26  ;;  %4756 = vmatprep.mubr.bf16.mxu1 %v7487_v27  ;;  %v7583_v26 = vcombine.high %v180_v20, %v188_v21  ;;  %v7591_v27 = vcombine.high %v184_v22, %v192_v23  ;;  %v280_v12 = vld [vmem:[%s13322_s0 + $0x830] sm:$0xff] }
 0x25b   :  { %5912 = vmatprep.mubr.bf16.mxu0 %v7495_v28  ;;  %4994 = vmatpush1.bf16.msra.mxu1 %v9320_v29  ;;  %v196_v28 = vld [vmem:[%s13322_s0 + $0x590] sm:$0xff] }
 0x25c   :  { %6150 = vmatpush1.bf16.msra.mxu0 %v9321_v30  ;;  %4995 = vmatprep.subr.bf16.mxu1 %v9342_v0  ;;  %v204_v29 = vld [vmem:[%s13322_s0 + $0x5d0] sm:$0xff] }
 0x25d   :  { %6151 = vmatprep.subr.bf16.mxu0 %v9342_v0  ;;  %v200_v30 = vld [vmem:[%s13322_s0 + $0x5b0] sm:$0xff]  ;;  %v7599_v34 = vcombine.high %v196_v28, %v204_v29 }
 0x25e   :  { %v7607_v35 = vcombine.high %v200_v30, %v208_v31  ;;  %v7606_v43 = vcombine.low %v200_v30, %v208_v31  ;;  %v288_v13 = vld [vmem:[%s13322_s0 + $0x870] sm:$0xff] }
 0x25f   :  { %4996 = vmatpush1.bf16.msra.mxu1 %v9322_v33  ;;  %v7590_v33 = vcombine.low %v184_v22, %v192_v23  ;;  %v296_v20 = vld [vmem:[%s13322_s0 + $0x8b0] sm:$0xff]  ;;  %v7678_v22 = vcombine.low %v276_v10, %v284_v11  ;;  %v7686_v23 = vcombine.low %v280_v12, %v288_v13 }
 0x260   :  { %6152 = vmatpush1.bf16.msra.mxu0 %v9323_v36  ;;  %4997 = vmatprep.subr.bf16.mxu1 %v9342_v0  ;;  %v9334_v36 = vld [vmem:[%s13321_s1 + $0x1e8] sm:$0xff]   ;;  %v304_v21 = vld [vmem:[%s13322_s0 + $0x8f0] sm:$0xff] }
 0x261   :  { %4757 = vmatmul.mubr.bf16.gmra.mrb[16].mxu1 %v7486_v37  ;;  %6153 = vmatprep.subr.bf16.mxu0 %v9342_v0  ;;  %v9335_v37 = vld [vmem:[%s13321_s1 + $0x3e8] sm:$0xff]   ;;  %v7702_v31 = vcombine.low %v296_v20, %v304_v21 }
 0x262   :  { %5913 = vmatmul.mubr.bf16.gmra.mrb[16].mxu0 %v7494_v38  ;;  %4764 = vmatprep.mubr.bf16.mxu1 %v7503_v39  ;;  %v212_v38 = vld [vmem:[%s13322_s0 + $0x610] sm:$0xff] }
 0x263   :  { %5920 = vmatprep.mubr.bf16.mxu0 %v7511_v40  ;;  %4998 = vmatpush1.bf16.msra.mxu1 %v9324_v41  ;;  %v220_v39 = vld [vmem:[%s13322_s0 + $0x650] sm:$0xff] }
 0x264   :  { %6154 = vmatpush1.bf16.msra.mxu0 %v9325_v42  ;;  %4999 = vmatprep.subr.bf16.mxu1 %v9342_v0  ;;  %v216_v40 = vld [vmem:[%s13322_s0 + $0x630] sm:$0xff]  ;;  %v7598_v42 = vcombine.low %v196_v28, %v204_v29  ;;  %v7615_v44 = vcombine.high %v212_v38, %v220_v39 }
 0x265   :  { %6155 = vmatprep.subr.bf16.mxu0 %v9342_v0  ;;  %v224_v41 = vld [vmem:[%s13322_s0 + $0x670] sm:$0xff] }
 0x266   :  { %v312_v28 = vld [vmem:[%s13322_s0 + $0x930] sm:$0xff] }
 0x267   :  { %5000 = vmatpush1.bf16.msra.mxu1 %v9326_v45  ;;  %v7623_v45 = vcombine.high %v216_v40, %v224_v41  ;;  %v320_v29 = vld [vmem:[%s13322_s0 + $0x970] sm:$0xff] }
 0x268   :  { %6156 = vmatpush1.bf16.msra.mxu0 %v9327_v48  ;;  %5001 = vmatprep.subr.bf16.mxu1 %v9342_v0  ;;  %v232_v48 = vld [vmem:[%s13322_s0 + $0x6b0] sm:$0xff] }
 0x269   :  { %4765 = vmatmul.mubr.bf16.gmra.mrb[20].mxu1 %v7502_v49  ;;  %6157 = vmatprep.subr.bf16.mxu0 %v9342_v0  ;;  %v240_v49 = vld [vmem:[%s13322_s0 + $0x6f0] sm:$0xff] }
 0x26a   :  { %5921 = vmatmul.mubr.bf16.gmra.mrb[20].mxu0 %v7510_v50  ;;  %4772 = vmatprep.mubr.bf16.mxu1 %v7519_v51  ;;  %v7614_v50 = vcombine.low %v212_v38, %v220_v39  ;;  %v7622_v51 = vcombine.low %v216_v40, %v224_v41  ;;  %v7718_v39 = vcombine.low %v312_v28, %v320_v29 }
 0x26b   :  { %5928 = vmatprep.mubr.bf16.mxu0 %v7527_v52  ;;  %5002 = vmatpush1.bf16.msra.mxu1 %v9328_v53  ;;  %v7631_v52 = vcombine.high %v228_v46, %v236_v47  ;;  %v7639_v53 = vcombine.high %v232_v48, %v240_v49 }
 0x26c   :  { %6158 = vmatpush1.bf16.msra.mxu0 %v9329_v54  ;;  %5003 = vmatprep.subr.bf16.mxu1 %v9342_v0  ;;  %v9336_v54 = vld [vmem:[%s13321_s1 + $0x1f0] sm:$0xff]  }
 0x26d   :  { %6159 = vmatprep.subr.bf16.mxu0 %v9342_v0 }
 0x26f   :  { %5004 = vmatpush1.bf16.msra.mxu1 %v9330_v63 }
 0x270   :  { %6160 = vmatpush1.bf16.msra.mxu0 %v9331_v1  ;;  %5005 = vmatprep.subr.bf16.mxu1 %v9342_v0  ;;  %v260_v1 = vld [vmem:[%s13322_s0 + $0x790] sm:$0xff] }
 0x271   :  { %4773 = vmatmul.mubr.bf16.gmra.mrb[24].mxu1 %v7518_v59  ;;  %6161 = vmatprep.subr.bf16.mxu0 %v9342_v0  ;;  %v256_v59 = vld [vmem:[%s13322_s0 + $0x770] sm:$0xff] }
 0x272   :  { %5929 = vmatmul.mubr.bf16.gmra.mrb[24].mxu0 %v7526_v60  ;;  %4780 = vmatprep.mubr.bf16.mxu1 %v7535_v61  ;;  %v7630_v60 = vcombine.low %v228_v46, %v236_v47  ;;  %v7638_v61 = vcombine.low %v232_v48, %v240_v49  ;;  %v7655_v63 = vcombine.high %v248_v58, %v256_v59 }
 0x273   :  { %5936 = vmatprep.mubr.bf16.mxu0 %v7543_v62  ;;  %5006 = vmatpush1.bf16.msra.mxu1 %v9332_v18  ;;  %v7647_v62 = vcombine.high %v244_v56, %v252_v57  ;;  %v7654_v5 = vcombine.low %v248_v58, %v256_v59  ;;  %v292_v18 = vld [vmem:[%s13322_s0 + $0x890] sm:$0xff] }
 0x274   :  { %6162 = vmatpush1.bf16.msra.mxu0 %v9333_v19  ;;  %5007 = vmatprep.subr.bf16.mxu1 %v9342_v0  ;;  %v300_v19 = vld [vmem:[%s13322_s0 + $0x8d0] sm:$0xff] }
 0x275   :  { %6163 = vmatprep.subr.bf16.mxu0 %v9342_v0  ;;  %v7694_v30 = vcombine.low %v292_v18, %v300_v19  ;;  %v372_v58 = vld [vmem:[%s13322_s0 + $0xb10] sm:$0xff] }
 0x276   :  { %v380_v59 = vld [vmem:[%s13322_s0 + $0xb50] sm:$0xff] }
 0x277   :  { %5008 = vmatpush1.bf16.msra.mxu1 %v9334_v36  ;;  %v328_v36 = vld [vmem:[%s13322_s0 + $0x9b0] sm:$0xff] }
 0x278   :  { %6164 = vmatpush1.bf16.msra.mxu0 %v9335_v37  ;;  %5009 = vmatprep.subr.bf16.mxu1 %v9342_v0  ;;  %v336_v37 = vld [vmem:[%s13322_s0 + $0x9f0] sm:$0xff] }
 0x279   :  { %4781 = vmatmul.mubr.bf16.gmra.mrb[28].mxu1 %v7534_v6  ;;  %6165 = vmatprep.subr.bf16.mxu0 %v9342_v0  ;;  %v7663_v6 = vcombine.high %v260_v1, %v268_v2  ;;  %v7735_v41 = vcombine.high %v328_v36, %v336_v37  ;;  %v7734_v47 = vcombine.low %v328_v36, %v336_v37  ;;  %v456_v36 = vld [vmem:[%s13322_s0 + $0xdb0] sm:$0xff] }
 0x27a   :  { %5937 = vmatmul.mubr.bf16.gmra.mrb[28].mxu0 %v7542_v7  ;;  %4788 = vmatprep.mubr.bf16.mxu1 %v7551_v8  ;;  %v9338_v8 = vld [vmem:[%s13321_s1 + $0x1f8] sm:$0xff]   ;;  %v464_v37 = vld [vmem:[%s13322_s0 + $0xdf0] sm:$0xff] }
 0x27b   :  { %5944 = vmatprep.mubr.bf16.mxu0 %v7559_v9  ;;  %5010 = vmatpush1.bf16.msra.mxu1 %v9336_v54  ;;  %v9339_v9 = vld [vmem:[%s13321_s1 + $0x3f8] sm:$0xff]  }
 0x27c   :  { %6166 = vmatpush1.bf16.msra.mxu0 %v9337_v55  ;;  %5011 = vmatprep.subr.bf16.mxu1 %v9342_v0 }
 0x27d   :  { %6167 = vmatprep.subr.bf16.mxu0 %v9342_v0  ;;  %v272_v0 = vld [vmem:[%s13322_s0 + $0x7f0] sm:$0xff] }
 0x27e   :  { %v7671_v7 = vcombine.high %v264_v3, %v272_v0 }
 0x27f   :  { %5012 = vmatpush1.bf16.msra.mxu1 %v9338_v8 }
 0x280   :  { %6168 = vmatpush1.bf16.msra.mxu0 %v9339_v9 }
 0x281   :  { %4789 = vmatmul.mubr.bf16.gmra.mrb[32].mxu1 %v7550_v14  ;;  %v7662_v14 = vcombine.low %v260_v1, %v268_v2  ;;  %v7775_v1 = vcombine.high %v372_v58, %v380_v59 }
 0x282   :  { %5945 = vmatmul.mubr.bf16.gmra.mrb[32].mxu0 %v7558_v15  ;;  %4796 = vmatprep.mubr.bf16.mxu1 %v7567_v16  ;;  %v7670_v15 = vcombine.low %v264_v3, %v272_v0  ;;  %v7679_v16 = vcombine.high %v276_v10, %v284_v11  ;;  %v388_v3 = vld [vmem:[%s13322_s0 + $0xb90] sm:$0xff] }
 0x283   :  { %5952 = vmatprep.mubr.bf16.mxu0 %v7575_v17  ;;  %v7687_v17 = vcombine.high %v280_v12, %v288_v13  ;;  %v396_v0 = vld [vmem:[%s13322_s0 + $0xbd0] sm:$0xff] }
 0x284   :  { %v7791_v8 = vcombine.high %v388_v3, %v396_v0  ;;  %v404_v10 = vld [vmem:[%s13322_s0 + $0xc10] sm:$0xff] }
 0x285   :  { %v412_v11 = vld [vmem:[%s13322_s0 + $0xc50] sm:$0xff] }
 0x286   :  { %v408_v12 = vld [vmem:[%s13322_s0 + $0xc30] sm:$0xff] }
 0x287   :  { %v416_v13 = vld [vmem:[%s13322_s0 + $0xc70] sm:$0xff] }
 0x289   :  { %4797 = vmatmul.mubr.bf16.gmra.mrb[36].mxu1 %v7566_v24  ;;  %v7695_v24 = vcombine.high %v292_v18, %v300_v19  ;;  %v420_v18 = vld [vmem:[%s13322_s0 + $0xc90] sm:$0xff] }
 0x28a   :  { %5953 = vmatmul.mubr.bf16.gmra.mrb[36].mxu0 %v7574_v25  ;;  %4804 = vmatprep.mubr.bf16.mxu1 %v7583_v26  ;;  %v7703_v25 = vcombine.high %v296_v20, %v304_v21  ;;  %v308_v26 = vld [vmem:[%s13322_s0 + $0x910] sm:$0xff] }
 0x28b   :  { %5960 = vmatprep.mubr.bf16.mxu0 %v7591_v27  ;;  %v316_v27 = vld [vmem:[%s13322_s0 + $0x950] sm:$0xff] }
 0x28c   :  { %v7710_v38 = vcombine.low %v308_v26, %v316_v27  ;;  %v428_v19 = vld [vmem:[%s13322_s0 + $0xcd0] sm:$0xff] }
 0x28d   :  { %v424_v20 = vld [vmem:[%s13322_s0 + $0xcb0] sm:$0xff] }
 0x28e   :  { %v432_v21 = vld [vmem:[%s13322_s0 + $0xcf0] sm:$0xff] }
 0x291   :  { %4805 = vmatmul.mubr.bf16.gmra.mrb[40].mxu1 %v7582_v32  ;;  %v7711_v32 = vcombine.high %v308_v26, %v316_v27  ;;  %v436_v26 = vld [vmem:[%s13322_s0 + $0xd10] sm:$0xff] }
 0x292   :  { %5961 = vmatmul.mubr.bf16.gmra.mrb[40].mxu0 %v7590_v33  ;;  %4812 = vmatprep.mubr.bf16.mxu1 %v7599_v34  ;;  %v7719_v33 = vcombine.high %v312_v28, %v320_v29  ;;  %v324_v34 = vld [vmem:[%s13322_s0 + $0x990] sm:$0xff] }
 0x293   :  { %5968 = vmatprep.mubr.bf16.mxu0 %v7607_v35  ;;  %v332_v35 = vld [vmem:[%s13322_s0 + $0x9d0] sm:$0xff] }
 0x294   :  { %v7727_v40 = vcombine.high %v324_v34, %v332_v35  ;;  %v7726_v46 = vcombine.low %v324_v34, %v332_v35  ;;  %v444_v27 = vld [vmem:[%s13322_s0 + $0xd50] sm:$0xff] }
 0x295   :  { %v440_v28 = vld [vmem:[%s13322_s0 + $0xd30] sm:$0xff] }
 0x296   :  { %v448_v29 = vld [vmem:[%s13322_s0 + $0xd70] sm:$0xff] }
 0x297   :  { %v452_v34 = vld [vmem:[%s13322_s0 + $0xd90] sm:$0xff] }
 0x298   :  { %v460_v35 = vld [vmem:[%s13322_s0 + $0xdd0] sm:$0xff] }
 0x299   :  { %4813 = vmatmul.mubr.bf16.gmra.mrb[44].mxu1 %v7598_v42  ;;  %v340_v42 = vld [vmem:[%s13322_s0 + $0xa10] sm:$0xff] }
 0x29a   :  { %5969 = vmatmul.mubr.bf16.gmra.mrb[44].mxu0 %v7606_v43  ;;  %4820 = vmatprep.mubr.bf16.mxu1 %v7615_v44  ;;  %v348_v43 = vld [vmem:[%s13322_s0 + $0xa50] sm:$0xff] }
 0x29b   :  { %5976 = vmatprep.mubr.bf16.mxu0 %v7623_v45  ;;  %v344_v44 = vld [vmem:[%s13322_s0 + $0xa30] sm:$0xff]  ;;  %v7743_v48 = vcombine.high %v340_v42, %v348_v43  ;;  %v7742_v54 = vcombine.low %v340_v42, %v348_v43 }
 0x29c   :  { %v352_v45 = vld [vmem:[%s13322_s0 + $0xa70] sm:$0xff] }
 0x29d   :  { %v7751_v49 = vcombine.high %v344_v44, %v352_v45  ;;  %v7750_v55 = vcombine.low %v344_v44, %v352_v45  ;;  %v468_v42 = vld [vmem:[%s13322_s0 + $0xe10] sm:$0xff] }
 0x29e   :  { %v476_v43 = vld [vmem:[%s13322_s0 + $0xe50] sm:$0xff] }
 0x29f   :  { %v472_v44 = vld [vmem:[%s13322_s0 + $0xe30] sm:$0xff] }
 0x2a0   :  { %v480_v45 = vld [vmem:[%s13322_s0 + $0xe70] sm:$0xff] }
 0x2a1   :  { %4821 = vmatmul.mubr.bf16.gmra.mrb[48].mxu1 %v7614_v50  ;;  %v356_v50 = vld [vmem:[%s13322_s0 + $0xa90] sm:$0xff] }
 0x2a2   :  { %5977 = vmatmul.mubr.bf16.gmra.mrb[48].mxu0 %v7622_v51  ;;  %4828 = vmatprep.mubr.bf16.mxu1 %v7631_v52  ;;  %v364_v51 = vld [vmem:[%s13322_s0 + $0xad0] sm:$0xff] }
 0x2a3   :  { %5984 = vmatprep.mubr.bf16.mxu0 %v7639_v53  ;;  %v360_v52 = vld [vmem:[%s13322_s0 + $0xab0] sm:$0xff]  ;;  %v7759_v56 = vcombine.high %v356_v50, %v364_v51 }
 0x2a4   :  { %v368_v53 = vld [vmem:[%s13322_s0 + $0xaf0] sm:$0xff] }
 0x2a5   :  { %v7767_v57 = vcombine.high %v360_v52, %v368_v53 }
 0x2a9   :  { %4829 = vmatmul.mubr.bf16.gmra.mrb[52].mxu1 %v7630_v60  ;;  %v376_v60 = vld [vmem:[%s13322_s0 + $0xb30] sm:$0xff] }
 0x2aa   :  { %5985 = vmatmul.mubr.bf16.gmra.mrb[52].mxu0 %v7638_v61  ;;  %4836 = vmatprep.mubr.bf16.mxu1 %v7647_v62  ;;  %v384_v61 = vld [vmem:[%s13322_s0 + $0xb70] sm:$0xff]  ;;  %v7758_v62 = vcombine.low %v356_v50, %v364_v51 }
 0x2ab   :  { %5992 = vmatprep.mubr.bf16.mxu0 %v7655_v63  ;;  %v7766_v63 = vcombine.low %v360_v52, %v368_v53  ;;  %v7783_v2 = vcombine.high %v376_v60, %v384_v61  ;;  %v484_v50 = vld [vmem:[%s13322_s0 + $0xe90] sm:$0xff] }
 0x2ac   :  { %v492_v51 = vld [vmem:[%s13322_s0 + $0xed0] sm:$0xff] }
 0x2ad   :  { %v488_v52 = vld [vmem:[%s13322_s0 + $0xeb0] sm:$0xff] }
 0x2ae   :  { %v496_v53 = vld [vmem:[%s13322_s0 + $0xef0] sm:$0xff] }
 0x2b1   :  { %4837 = vmatmul.mubr.bf16.gmra.mrb[56].mxu1 %v7646_v4  ;;  %v392_v4 = vld [vmem:[%s13322_s0 + $0xbb0] sm:$0xff] }
 0x2b2   :  { %5993 = vmatmul.mubr.bf16.gmra.mrb[56].mxu0 %v7654_v5  ;;  %4844 = vmatprep.mubr.bf16.mxu1 %v7663_v6  ;;  %v400_v5 = vld [vmem:[%s13322_s0 + $0xbf0] sm:$0xff]  ;;  %v7774_v6 = vcombine.low %v372_v58, %v380_v59 }
 0x2b3   :  { %6000 = vmatprep.mubr.bf16.mxu0 %v7671_v7  ;;  %v7782_v7 = vcombine.low %v376_v60, %v384_v61  ;;  %v7799_v9 = vcombine.high %v392_v4, %v400_v5  ;;  %v500_v58 = vld [vmem:[%s13322_s0 + $0xf10] sm:$0xff] }
 0x2b4   :  { %v508_v59 = vld [vmem:[%s13322_s0 + $0xf50] sm:$0xff] }
 0x2b5   :  { %v504_v60 = vld [vmem:[%s13322_s0 + $0xf30] sm:$0xff] }
 0x2b6   :  { %v512_v61 = vld [vmem:[%s13322_s0 + $0xf70] sm:$0xff] }
 0x2b9   :  { %4845 = vmatmul.mubr.bf16.gmra.mrb[60].mxu1 %v7662_v14  ;;  %v7790_v14 = vcombine.low %v388_v3, %v396_v0  ;;  %v516_v3 = vld [vmem:[%s13322_s0 + $0xf90] sm:$0xff] }
 0x2ba   :  { %6001 = vmatmul.mubr.bf16.gmra.mrb[60].mxu0 %v7670_v15  ;;  %4852 = vmatprep.mubr.bf16.mxu1 %v7679_v16  ;;  %v7798_v15 = vcombine.low %v392_v4, %v400_v5  ;;  %v7807_v16 = vcombine.high %v404_v10, %v412_v11  ;;  %v524_v0 = vld [vmem:[%s13322_s0 + $0xfd0] sm:$0xff] }
 0x2bb   :  { %6008 = vmatprep.mubr.bf16.mxu0 %v7687_v17  ;;  %v7815_v17 = vcombine.high %v408_v12, %v416_v13  ;;  %v520_v4 = vld [vmem:[%s13322_s0 + $0xfb0] sm:$0xff] }
 0x2bc   :  { %v528_v5 = vld [vmem:[%s13322_s0 + $0xff0] sm:$0xff] }
 0x2c1   :  { %4853 = vmatmul.mubr.bf16.gmra.mrb[64].mxu1 %v7678_v22  ;;  %v7806_v22 = vcombine.low %v404_v10, %v412_v11  ;;  %v21_v10 = vld [vmem:[%s13322_s0 + $0x18] sm:$0xff] }
 0x2c2   :  { %6009 = vmatmul.mubr.bf16.gmra.mrb[64].mxu0 %v7686_v23  ;;  %4860 = vmatprep.mubr.bf16.mxu1 %v7695_v24  ;;  %v7814_v23 = vcombine.low %v408_v12, %v416_v13  ;;  %v7823_v24 = vcombine.high %v420_v18, %v428_v19  ;;  %v29_v11 = vld [vmem:[%s13322_s0 + $0x58] sm:$0xff] }
 0x2c3   :  { %6016 = vmatprep.mubr.bf16.mxu0 %v7703_v25  ;;  %v7831_v25 = vcombine.high %v424_v20, %v432_v21  ;;  %v25_v12 = vld [vmem:[%s13322_s0 + $0x38] sm:$0xff] }
 0x2c4   :  { %v33_v13 = vld [vmem:[%s13322_s0 + $0x78] sm:$0xff] }
 0x2c9   :  { %4861 = vmatmul.mubr.bf16.gmra.mrb[68].mxu1 %v7694_v30  ;;  %v7822_v30 = vcombine.low %v420_v18, %v428_v19  ;;  %v37_v18 = vld [vmem:[%s13322_s0 + $0x98] sm:$0xff] }
 0x2ca   :  { %6017 = vmatmul.mubr.bf16.gmra.mrb[68].mxu0 %v7702_v31  ;;  %4868 = vmatprep.mubr.bf16.mxu1 %v7711_v32  ;;  %v7830_v31 = vcombine.low %v424_v20, %v432_v21  ;;  %v7839_v32 = vcombine.high %v436_v26, %v444_v27  ;;  %v45_v19 = vld [vmem:[%s13322_s0 + $0xd8] sm:$0xff] }
 0x2cb   :  { %6024 = vmatprep.mubr.bf16.mxu0 %v7719_v33  ;;  %v7847_v33 = vcombine.high %v440_v28, %v448_v29  ;;  %v41_v20 = vld [vmem:[%s13322_s0 + $0xb8] sm:$0xff] }
 0x2cc   :  { %v49_v21 = vld [vmem:[%s13322_s0 + $0xf8] sm:$0xff] }
 0x2d1   :  { %4869 = vmatmul.mubr.bf16.gmra.mrb[72].mxu1 %v7710_v38  ;;  %v7838_v38 = vcombine.low %v436_v26, %v444_v27  ;;  %v53_v26 = vld [vmem:[%s13322_s0 + $0x118] sm:$0xff] }
 0x2d2   :  { %6025 = vmatmul.mubr.bf16.gmra.mrb[72].mxu0 %v7718_v39  ;;  %4876 = vmatprep.mubr.bf16.mxu1 %v7727_v40  ;;  %v7846_v39 = vcombine.low %v440_v28, %v448_v29  ;;  %v7855_v40 = vcombine.high %v452_v34, %v460_v35  ;;  %v61_v27 = vld [vmem:[%s13322_s0 + $0x158] sm:$0xff] }
 0x2d3   :  { %6032 = vmatprep.mubr.bf16.mxu0 %v7735_v41  ;;  %v7863_v41 = vcombine.high %v456_v36, %v464_v37  ;;  %v57_v28 = vld [vmem:[%s13322_s0 + $0x138] sm:$0xff] }
 0x2d4   :  { %v65_v29 = vld [vmem:[%s13322_s0 + $0x178] sm:$0xff] }
 0x2d9   :  { %4877 = vmatmul.mubr.bf16.gmra.mrb[76].mxu1 %v7726_v46  ;;  %v7854_v46 = vcombine.low %v452_v34, %v460_v35  ;;  %v69_v34 = vld [vmem:[%s13322_s0 + $0x198] sm:$0xff] }
 0x2da   :  { %6033 = vmatmul.mubr.bf16.gmra.mrb[76].mxu0 %v7734_v47  ;;  %4884 = vmatprep.mubr.bf16.mxu1 %v7743_v48  ;;  %v7862_v47 = vcombine.low %v456_v36, %v464_v37  ;;  %v7871_v48 = vcombine.high %v468_v42, %v476_v43  ;;  %v77_v35 = vld [vmem:[%s13322_s0 + $0x1d8] sm:$0xff] }
 0x2db   :  { %6040 = vmatprep.mubr.bf16.mxu0 %v7751_v49  ;;  %v7879_v49 = vcombine.high %v472_v44, %v480_v45  ;;  %v73_v36 = vld [vmem:[%s13322_s0 + $0x1b8] sm:$0xff] }
 0x2dc   :  { %v81_v37 = vld [vmem:[%s13322_s0 + $0x1f8] sm:$0xff] }
 0x2e1   :  { %4885 = vmatmul.mubr.bf16.gmra.mrb[80].mxu1 %v7742_v54  ;;  %v7870_v54 = vcombine.low %v468_v42, %v476_v43  ;;  %v85_v42 = vld [vmem:[%s13322_s0 + $0x218] sm:$0xff] }
 0x2e2   :  { %6041 = vmatmul.mubr.bf16.gmra.mrb[80].mxu0 %v7750_v55  ;;  %4892 = vmatprep.mubr.bf16.mxu1 %v7759_v56  ;;  %v7878_v55 = vcombine.low %v472_v44, %v480_v45  ;;  %v7887_v56 = vcombine.high %v484_v50, %v492_v51  ;;  %v93_v43 = vld [vmem:[%s13322_s0 + $0x258] sm:$0xff] }
 0x2e3   :  { %6048 = vmatprep.mubr.bf16.mxu0 %v7767_v57  ;;  %v7895_v57 = vcombine.high %v488_v52, %v496_v53  ;;  %v89_v44 = vld [vmem:[%s13322_s0 + $0x238] sm:$0xff] }
 0x2e4   :  { %v97_v45 = vld [vmem:[%s13322_s0 + $0x278] sm:$0xff] }
 0x2e9   :  { %4893 = vmatmul.mubr.bf16.gmra.mrb[84].mxu1 %v7758_v62  ;;  %v7886_v62 = vcombine.low %v484_v50, %v492_v51  ;;  %v101_v50 = vld [vmem:[%s13322_s0 + $0x298] sm:$0xff] }
 0x2ea   :  { %6049 = vmatmul.mubr.bf16.gmra.mrb[84].mxu0 %v7766_v63  ;;  %4900 = vmatprep.mubr.bf16.mxu1 %v7775_v1  ;;  %v7894_v63 = vcombine.low %v488_v52, %v496_v53  ;;  %v7903_v1 = vcombine.high %v500_v58, %v508_v59  ;;  %v109_v51 = vld [vmem:[%s13322_s0 + $0x2d8] sm:$0xff] }
 0x2eb   :  { %6056 = vmatprep.mubr.bf16.mxu0 %v7783_v2  ;;  %v7911_v2 = vcombine.high %v504_v60, %v512_v61  ;;  %v105_v52 = vld [vmem:[%s13322_s0 + $0x2b8] sm:$0xff] }
 0x2ec   :  { %v113_v53 = vld [vmem:[%s13322_s0 + $0x2f8] sm:$0xff] }
 0x2f1   :  { %4901 = vmatmul.mubr.bf16.gmra.mrb[88].mxu1 %v7774_v6  ;;  %v7902_v6 = vcombine.low %v500_v58, %v508_v59  ;;  %v117_v58 = vld [vmem:[%s13322_s0 + $0x318] sm:$0xff] }
 0x2f2   :  { %6057 = vmatmul.mubr.bf16.gmra.mrb[88].mxu0 %v7782_v7  ;;  %4908 = vmatprep.mubr.bf16.mxu1 %v7791_v8  ;;  %v7910_v7 = vcombine.low %v504_v60, %v512_v61  ;;  %v7919_v8 = vcombine.high %v516_v3, %v524_v0  ;;  %v125_v59 = vld [vmem:[%s13322_s0 + $0x358] sm:$0xff] }
 0x2f3   :  { %6064 = vmatprep.mubr.bf16.mxu0 %v7799_v9  ;;  %v7927_v9 = vcombine.high %v520_v4, %v528_v5  ;;  %v121_v60 = vld [vmem:[%s13322_s0 + $0x338] sm:$0xff] }
 0x2f4   :  { %v129_v61 = vld [vmem:[%s13322_s0 + $0x378] sm:$0xff] }
 0x2f9   :  { %4909 = vmatmul.mubr.bf16.gmra.mrb[92].mxu1 %v7790_v14  ;;  %v7918_v14 = vcombine.low %v516_v3, %v524_v0  ;;  %v133_v3 = vld [vmem:[%s13322_s0 + $0x398] sm:$0xff] }
 0x2fa   :  { %6065 = vmatmul.mubr.bf16.gmra.mrb[92].mxu0 %v7798_v15  ;;  %4916 = vmatprep.mubr.bf16.mxu1 %v7807_v16  ;;  %v7926_v15 = vcombine.low %v520_v4, %v528_v5  ;;  %v7425_v16 = vcombine.high %v21_v10, %v29_v11  ;;  %v141_v0 = vld [vmem:[%s13322_s0 + $0x3d8] sm:$0xff] }
 0x2fb   :  { %6072 = vmatprep.mubr.bf16.mxu0 %v7815_v17  ;;  %v7433_v17 = vcombine.high %v25_v12, %v33_v13  ;;  %v137_v4 = vld [vmem:[%s13322_s0 + $0x3b8] sm:$0xff] }
 0x2fc   :  { %v145_v5 = vld [vmem:[%s13322_s0 + $0x3f8] sm:$0xff] }
 0x301   :  { %4917 = vmatmul.mubr.bf16.gmra.mrb[96].mxu1 %v7806_v22  ;;  %v7424_v22 = vcombine.low %v21_v10, %v29_v11  ;;  %v149_v10 = vld [vmem:[%s13322_s0 + $0x418] sm:$0xff] }
 0x302   :  { %6073 = vmatmul.mubr.bf16.gmra.mrb[96].mxu0 %v7814_v23  ;;  %4924 = vmatprep.mubr.bf16.mxu1 %v7823_v24  ;;  %v7432_v23 = vcombine.low %v25_v12, %v33_v13  ;;  %v7441_v24 = vcombine.high %v37_v18, %v45_v19  ;;  %v157_v11 = vld [vmem:[%s13322_s0 + $0x458] sm:$0xff] }
 0x303   :  { %6080 = vmatprep.mubr.bf16.mxu0 %v7831_v25  ;;  %v7449_v25 = vcombine.high %v41_v20, %v49_v21  ;;  %v153_v12 = vld [vmem:[%s13322_s0 + $0x438] sm:$0xff] }
 0x304   :  { %v161_v13 = vld [vmem:[%s13322_s0 + $0x478] sm:$0xff] }
 0x309   :  { %4925 = vmatmul.mubr.bf16.gmra.mrb[100].mxu1 %v7822_v30  ;;  %v7440_v30 = vcombine.low %v37_v18, %v45_v19  ;;  %v165_v18 = vld [vmem:[%s13322_s0 + $0x498] sm:$0xff] }
 0x30a   :  { %6081 = vmatmul.mubr.bf16.gmra.mrb[100].mxu0 %v7830_v31  ;;  %4932 = vmatprep.mubr.bf16.mxu1 %v7839_v32  ;;  %v7448_v31 = vcombine.low %v41_v20, %v49_v21  ;;  %v7457_v32 = vcombine.high %v53_v26, %v61_v27  ;;  %v173_v19 = vld [vmem:[%s13322_s0 + $0x4d8] sm:$0xff] }
 0x30b   :  { %6088 = vmatprep.mubr.bf16.mxu0 %v7847_v33  ;;  %v7465_v33 = vcombine.high %v57_v28, %v65_v29  ;;  %v169_v20 = vld [vmem:[%s13322_s0 + $0x4b8] sm:$0xff] }
 0x30c   :  { %v177_v21 = vld [vmem:[%s13322_s0 + $0x4f8] sm:$0xff] }
 0x311   :  { %4933 = vmatmul.mubr.bf16.gmra.mrb[104].mxu1 %v7838_v38  ;;  %v7456_v38 = vcombine.low %v53_v26, %v61_v27  ;;  %v181_v26 = vld [vmem:[%s13322_s0 + $0x518] sm:$0xff] }
 0x312   :  { %6089 = vmatmul.mubr.bf16.gmra.mrb[104].mxu0 %v7846_v39  ;;  %4940 = vmatprep.mubr.bf16.mxu1 %v7855_v40  ;;  %v7464_v39 = vcombine.low %v57_v28, %v65_v29  ;;  %v7473_v40 = vcombine.high %v69_v34, %v77_v35  ;;  %v189_v27 = vld [vmem:[%s13322_s0 + $0x558] sm:$0xff] }
 0x313   :  { %6096 = vmatprep.mubr.bf16.mxu0 %v7863_v41  ;;  %v7481_v41 = vcombine.high %v73_v36, %v81_v37  ;;  %v185_v28 = vld [vmem:[%s13322_s0 + $0x538] sm:$0xff] }
 0x314   :  { %v193_v29 = vld [vmem:[%s13322_s0 + $0x578] sm:$0xff] }
 0x319   :  { %4941 = vmatmul.mubr.bf16.gmra.mrb[108].mxu1 %v7854_v46  ;;  %v7472_v46 = vcombine.low %v69_v34, %v77_v35  ;;  %v197_v34 = vld [vmem:[%s13322_s0 + $0x598] sm:$0xff] }
 0x31a   :  { %6097 = vmatmul.mubr.bf16.gmra.mrb[108].mxu0 %v7862_v47  ;;  %4948 = vmatprep.mubr.bf16.mxu1 %v7871_v48  ;;  %v7480_v47 = vcombine.low %v73_v36, %v81_v37  ;;  %v7489_v48 = vcombine.high %v85_v42, %v93_v43  ;;  %v205_v35 = vld [vmem:[%s13322_s0 + $0x5d8] sm:$0xff] }
 0x31b   :  { %6104 = vmatprep.mubr.bf16.mxu0 %v7879_v49  ;;  %v7497_v49 = vcombine.high %v89_v44, %v97_v45  ;;  %v201_v36 = vld [vmem:[%s13322_s0 + $0x5b8] sm:$0xff] }
 0x31c   :  { %v209_v37 = vld [vmem:[%s13322_s0 + $0x5f8] sm:$0xff] }
 0x321   :  { %4949 = vmatmul.mubr.bf16.gmra.mrb[112].mxu1 %v7870_v54  ;;  %v7488_v54 = vcombine.low %v85_v42, %v93_v43  ;;  %v213_v42 = vld [vmem:[%s13322_s0 + $0x618] sm:$0xff] }
 0x322   :  { %6105 = vmatmul.mubr.bf16.gmra.mrb[112].mxu0 %v7878_v55  ;;  %4956 = vmatprep.mubr.bf16.mxu1 %v7887_v56  ;;  %v7496_v55 = vcombine.low %v89_v44, %v97_v45  ;;  %v7505_v56 = vcombine.high %v101_v50, %v109_v51  ;;  %v221_v43 = vld [vmem:[%s13322_s0 + $0x658] sm:$0xff] }
 0x323   :  { %6112 = vmatprep.mubr.bf16.mxu0 %v7895_v57  ;;  %v7513_v57 = vcombine.high %v105_v52, %v113_v53  ;;  %v217_v44 = vld [vmem:[%s13322_s0 + $0x638] sm:$0xff] }
 0x324   :  { %v225_v45 = vld [vmem:[%s13322_s0 + $0x678] sm:$0xff] }
 0x329   :  { %4957 = vmatmul.mubr.bf16.gmra.mrb[116].mxu1 %v7886_v62  ;;  %v7504_v62 = vcombine.low %v101_v50, %v109_v51  ;;  %v229_v50 = vld [vmem:[%s13322_s0 + $0x698] sm:$0xff] }
 0x32a   :  { %6113 = vmatmul.mubr.bf16.gmra.mrb[116].mxu0 %v7894_v63  ;;  %4964 = vmatprep.mubr.bf16.mxu1 %v7903_v1  ;;  %v7512_v63 = vcombine.low %v105_v52, %v113_v53  ;;  %v7521_v1 = vcombine.high %v117_v58, %v125_v59  ;;  %v237_v51 = vld [vmem:[%s13322_s0 + $0x6d8] sm:$0xff] }
 0x32b   :  { %6120 = vmatprep.mubr.bf16.mxu0 %v7911_v2  ;;  %v7529_v2 = vcombine.high %v121_v60, %v129_v61  ;;  %v233_v52 = vld [vmem:[%s13322_s0 + $0x6b8] sm:$0xff] }
 0x32c   :  { %v241_v53 = vld [vmem:[%s13322_s0 + $0x6f8] sm:$0xff] }
 0x331   :  { %4965 = vmatmul.mubr.bf16.gmra.mrb[120].mxu1 %v7902_v6  ;;  %v7520_v6 = vcombine.low %v117_v58, %v125_v59  ;;  %v245_v58 = vld [vmem:[%s13322_s0 + $0x718] sm:$0xff] }
 0x332   :  { %6121 = vmatmul.mubr.bf16.gmra.mrb[120].mxu0 %v7910_v7  ;;  %4972 = vmatprep.mubr.bf16.mxu1 %v7919_v8  ;;  %v7528_v7 = vcombine.low %v121_v60, %v129_v61  ;;  %v7537_v8 = vcombine.high %v133_v3, %v141_v0  ;;  %v253_v59 = vld [vmem:[%s13322_s0 + $0x758] sm:$0xff] }
 0x333   :  { %6128 = vmatprep.mubr.bf16.mxu0 %v7927_v9  ;;  %v7545_v9 = vcombine.high %v137_v4, %v145_v5  ;;  %v249_v60 = vld [vmem:[%s13322_s0 + $0x738] sm:$0xff] }
 0x334   :  { %v257_v61 = vld [vmem:[%s13322_s0 + $0x778] sm:$0xff] }
 0x339   :  { %4973 = vmatmul.mubr.bf16.gmra.mrb[124].mxu1 %v7918_v14  ;;  %v7536_v14 = vcombine.low %v133_v3, %v141_v0  ;;  %v261_v3 = vld [vmem:[%s13322_s0 + $0x798] sm:$0xff] }
 0x33a   :  { %6129 = vmatmul.mubr.bf16.gmra.mrb[124].mxu0 %v7926_v15  ;;  %5013 = vmatprep.mubr.bf16.mxu1 %v7425_v16  ;;  %v7544_v15 = vcombine.low %v137_v4, %v145_v5  ;;  %v7553_v16 = vcombine.high %v149_v10, %v157_v11  ;;  %v269_v0 = vld [vmem:[%s13322_s0 + $0x7d8] sm:$0xff] }
 0x33b   :  { %6169 = vmatprep.mubr.bf16.mxu0 %v7433_v17  ;;  %v7561_v17 = vcombine.high %v153_v12, %v161_v13  ;;  %v265_v4 = vld [vmem:[%s13322_s0 + $0x7b8] sm:$0xff] }
 0x33c   :  { %v273_v5 = vld [vmem:[%s13322_s0 + $0x7f8] sm:$0xff] }
 0x341   :  { %5014 = vmatmul.mubr.bf16.vlgmr.msra.gmra.mrb[0].mxu1 %v7424_v22  ;;  %v7552_v22 = vcombine.low %v149_v10, %v157_v11  ;;  %v277_v10 = vld [vmem:[%s13322_s0 + $0x818] sm:$0xff] }
 0x342   :  { %6170 = vmatmul.mubr.bf16.vlgmr.msra.gmra.mrb[0].mxu0 %v7432_v23  ;;  %5021 = vmatprep.mubr.bf16.mxu1 %v7441_v24  ;;  %v7560_v23 = vcombine.low %v153_v12, %v161_v13  ;;  %v7569_v24 = vcombine.high %v165_v18, %v173_v19  ;;  %v285_v11 = vld [vmem:[%s13322_s0 + $0x858] sm:$0xff] }
 0x343   :  { %6177 = vmatprep.mubr.bf16.mxu0 %v7449_v25  ;;  %v7577_v25 = vcombine.high %v169_v20, %v177_v21  ;;  %v281_v12 = vld [vmem:[%s13322_s0 + $0x838] sm:$0xff] }
 0x344   :  { %v289_v13 = vld [vmem:[%s13322_s0 + $0x878] sm:$0xff] }
 0x349   :  { %5022 = vmatmul.mubr.bf16.gmra.mrb[4].mxu1 %v7440_v30  ;;  %v7568_v30 = vcombine.low %v165_v18, %v173_v19  ;;  %v293_v18 = vld [vmem:[%s13322_s0 + $0x898] sm:$0xff] }
 0x34a   :  { %6178 = vmatmul.mubr.bf16.gmra.mrb[4].mxu0 %v7448_v31  ;;  %5029 = vmatprep.mubr.bf16.mxu1 %v7457_v32  ;;  %v7576_v31 = vcombine.low %v169_v20, %v177_v21  ;;  %v7585_v32 = vcombine.high %v181_v26, %v189_v27  ;;  %v301_v19 = vld [vmem:[%s13322_s0 + $0x8d8] sm:$0xff] }
 0x34b   :  { %6185 = vmatprep.mubr.bf16.mxu0 %v7465_v33  ;;  %v7593_v33 = vcombine.high %v185_v28, %v193_v29  ;;  %v297_v20 = vld [vmem:[%s13322_s0 + $0x8b8] sm:$0xff] }
 0x34c   :  { %v305_v21 = vld [vmem:[%s13322_s0 + $0x8f8] sm:$0xff] }
 0x351   :  { %5030 = vmatmul.mubr.bf16.gmra.mrb[8].mxu1 %v7456_v38  ;;  %v7584_v38 = vcombine.low %v181_v26, %v189_v27  ;;  %v309_v26 = vld [vmem:[%s13322_s0 + $0x918] sm:$0xff] }
 0x352   :  { %6186 = vmatmul.mubr.bf16.gmra.mrb[8].mxu0 %v7464_v39  ;;  %5037 = vmatprep.mubr.bf16.mxu1 %v7473_v40  ;;  %v7592_v39 = vcombine.low %v185_v28, %v193_v29  ;;  %v7601_v40 = vcombine.high %v197_v34, %v205_v35  ;;  %v317_v27 = vld [vmem:[%s13322_s0 + $0x958] sm:$0xff] }
 0x353   :  { %6193 = vmatprep.mubr.bf16.mxu0 %v7481_v41  ;;  %v7609_v41 = vcombine.high %v201_v36, %v209_v37  ;;  %v313_v28 = vld [vmem:[%s13322_s0 + $0x938] sm:$0xff] }
 0x354   :  { %v321_v29 = vld [vmem:[%s13322_s0 + $0x978] sm:$0xff] }
 0x359   :  { %5038 = vmatmul.mubr.bf16.gmra.mrb[12].mxu1 %v7472_v46  ;;  %v7600_v46 = vcombine.low %v197_v34, %v205_v35  ;;  %v325_v34 = vld [vmem:[%s13322_s0 + $0x998] sm:$0xff] }
 0x35a   :  { %6194 = vmatmul.mubr.bf16.gmra.mrb[12].mxu0 %v7480_v47  ;;  %5045 = vmatprep.mubr.bf16.mxu1 %v7489_v48  ;;  %v7608_v47 = vcombine.low %v201_v36, %v209_v37  ;;  %v7617_v48 = vcombine.high %v213_v42, %v221_v43  ;;  %v333_v35 = vld [vmem:[%s13322_s0 + $0x9d8] sm:$0xff] }
 0x35b   :  { %6201 = vmatprep.mubr.bf16.mxu0 %v7497_v49  ;;  %v7625_v49 = vcombine.high %v217_v44, %v225_v45  ;;  %v329_v36 = vld [vmem:[%s13322_s0 + $0x9b8] sm:$0xff] }
 0x35c   :  { %v337_v37 = vld [vmem:[%s13322_s0 + $0x9f8] sm:$0xff] }
 0x361   :  { %5046 = vmatmul.mubr.bf16.gmra.mrb[16].mxu1 %v7488_v54  ;;  %v7616_v54 = vcombine.low %v213_v42, %v221_v43  ;;  %v341_v42 = vld [vmem:[%s13322_s0 + $0xa18] sm:$0xff] }
 0x362   :  { %6202 = vmatmul.mubr.bf16.gmra.mrb[16].mxu0 %v7496_v55  ;;  %5053 = vmatprep.mubr.bf16.mxu1 %v7505_v56  ;;  %v7624_v55 = vcombine.low %v217_v44, %v225_v45  ;;  %v7633_v56 = vcombine.high %v229_v50, %v237_v51  ;;  %v349_v43 = vld [vmem:[%s13322_s0 + $0xa58] sm:$0xff] }
 0x363   :  { %6209 = vmatprep.mubr.bf16.mxu0 %v7513_v57  ;;  %v7641_v57 = vcombine.high %v233_v52, %v241_v53  ;;  %v345_v44 = vld [vmem:[%s13322_s0 + $0xa38] sm:$0xff] }
 0x364   :  { %v353_v45 = vld [vmem:[%s13322_s0 + $0xa78] sm:$0xff] }
 0x369   :  { %5054 = vmatmul.mubr.bf16.gmra.mrb[20].mxu1 %v7504_v62  ;;  %v7632_v62 = vcombine.low %v229_v50, %v237_v51  ;;  %v357_v50 = vld [vmem:[%s13322_s0 + $0xa98] sm:$0xff] }
 0x36a   :  { %6210 = vmatmul.mubr.bf16.gmra.mrb[20].mxu0 %v7512_v63  ;;  %5061 = vmatprep.mubr.bf16.mxu1 %v7521_v1  ;;  %v7640_v63 = vcombine.low %v233_v52, %v241_v53  ;;  %v7649_v1 = vcombine.high %v245_v58, %v253_v59  ;;  %v365_v51 = vld [vmem:[%s13322_s0 + $0xad8] sm:$0xff] }
 0x36b   :  { %6217 = vmatprep.mubr.bf16.mxu0 %v7529_v2  ;;  %v7657_v2 = vcombine.high %v249_v60, %v257_v61  ;;  %v361_v52 = vld [vmem:[%s13322_s0 + $0xab8] sm:$0xff] }
 0x36c   :  { %v369_v53 = vld [vmem:[%s13322_s0 + $0xaf8] sm:$0xff] }
 0x371   :  { %5062 = vmatmul.mubr.bf16.gmra.mrb[24].mxu1 %v7520_v6  ;;  %v7648_v6 = vcombine.low %v245_v58, %v253_v59  ;;  %v373_v58 = vld [vmem:[%s13322_s0 + $0xb18] sm:$0xff] }
 0x372   :  { %6218 = vmatmul.mubr.bf16.gmra.mrb[24].mxu0 %v7528_v7  ;;  %5069 = vmatprep.mubr.bf16.mxu1 %v7537_v8  ;;  %v7656_v7 = vcombine.low %v249_v60, %v257_v61  ;;  %v7665_v8 = vcombine.high %v261_v3, %v269_v0  ;;  %v381_v59 = vld [vmem:[%s13322_s0 + $0xb58] sm:$0xff] }
 0x373   :  { %6225 = vmatprep.mubr.bf16.mxu0 %v7545_v9  ;;  %v7673_v9 = vcombine.high %v265_v4, %v273_v5  ;;  %v377_v60 = vld [vmem:[%s13322_s0 + $0xb38] sm:$0xff] }
 0x374   :  { %v385_v61 = vld [vmem:[%s13322_s0 + $0xb78] sm:$0xff] }
 0x379   :  { %5070 = vmatmul.mubr.bf16.gmra.mrb[28].mxu1 %v7536_v14  ;;  %v7664_v14 = vcombine.low %v261_v3, %v269_v0  ;;  %v389_v3 = vld [vmem:[%s13322_s0 + $0xb98] sm:$0xff] }
 0x37a   :  { %6226 = vmatmul.mubr.bf16.gmra.mrb[28].mxu0 %v7544_v15  ;;  %5077 = vmatprep.mubr.bf16.mxu1 %v7553_v16  ;;  %v7672_v15 = vcombine.low %v265_v4, %v273_v5  ;;  %v7681_v16 = vcombine.high %v277_v10, %v285_v11  ;;  %v397_v0 = vld [vmem:[%s13322_s0 + $0xbd8] sm:$0xff] }
 0x37b   :  { %6233 = vmatprep.mubr.bf16.mxu0 %v7561_v17  ;;  %v7689_v17 = vcombine.high %v281_v12, %v289_v13  ;;  %v393_v4 = vld [vmem:[%s13322_s0 + $0xbb8] sm:$0xff] }
 0x37c   :  { %v401_v5 = vld [vmem:[%s13322_s0 + $0xbf8] sm:$0xff] }
 0x381   :  { %5078 = vmatmul.mubr.bf16.gmra.mrb[32].mxu1 %v7552_v22  ;;  %v7680_v22 = vcombine.low %v277_v10, %v285_v11  ;;  %v405_v10 = vld [vmem:[%s13322_s0 + $0xc18] sm:$0xff] }
 0x382   :  { %6234 = vmatmul.mubr.bf16.gmra.mrb[32].mxu0 %v7560_v23  ;;  %5085 = vmatprep.mubr.bf16.mxu1 %v7569_v24  ;;  %v7688_v23 = vcombine.low %v281_v12, %v289_v13  ;;  %v7697_v24 = vcombine.high %v293_v18, %v301_v19  ;;  %v413_v11 = vld [vmem:[%s13322_s0 + $0xc58] sm:$0xff] }
 0x383   :  { %6241 = vmatprep.mubr.bf16.mxu0 %v7577_v25  ;;  %v7705_v25 = vcombine.high %v297_v20, %v305_v21  ;;  %v409_v12 = vld [vmem:[%s13322_s0 + $0xc38] sm:$0xff] }
 0x384   :  { %v417_v13 = vld [vmem:[%s13322_s0 + $0xc78] sm:$0xff] }
 0x389   :  { %5086 = vmatmul.mubr.bf16.gmra.mrb[36].mxu1 %v7568_v30  ;;  %v7696_v30 = vcombine.low %v293_v18, %v301_v19  ;;  %v421_v18 = vld [vmem:[%s13322_s0 + $0xc98] sm:$0xff] }
 0x38a   :  { %6242 = vmatmul.mubr.bf16.gmra.mrb[36].mxu0 %v7576_v31  ;;  %5093 = vmatprep.mubr.bf16.mxu1 %v7585_v32  ;;  %v7704_v31 = vcombine.low %v297_v20, %v305_v21  ;;  %v7713_v32 = vcombine.high %v309_v26, %v317_v27  ;;  %v429_v19 = vld [vmem:[%s13322_s0 + $0xcd8] sm:$0xff] }
 0x38b   :  { %6249 = vmatprep.mubr.bf16.mxu0 %v7593_v33  ;;  %v7721_v33 = vcombine.high %v313_v28, %v321_v29  ;;  %v425_v20 = vld [vmem:[%s13322_s0 + $0xcb8] sm:$0xff] }
 0x38c   :  { %v433_v21 = vld [vmem:[%s13322_s0 + $0xcf8] sm:$0xff] }
 0x391   :  { %5094 = vmatmul.mubr.bf16.gmra.mrb[40].mxu1 %v7584_v38  ;;  %v7712_v38 = vcombine.low %v309_v26, %v317_v27  ;;  %v437_v26 = vld [vmem:[%s13322_s0 + $0xd18] sm:$0xff] }
 0x392   :  { %6250 = vmatmul.mubr.bf16.gmra.mrb[40].mxu0 %v7592_v39  ;;  %5101 = vmatprep.mubr.bf16.mxu1 %v7601_v40  ;;  %v7720_v39 = vcombine.low %v313_v28, %v321_v29  ;;  %v7729_v40 = vcombine.high %v325_v34, %v333_v35  ;;  %v445_v27 = vld [vmem:[%s13322_s0 + $0xd58] sm:$0xff] }
 0x393   :  { %6257 = vmatprep.mubr.bf16.mxu0 %v7609_v41  ;;  %v7737_v41 = vcombine.high %v329_v36, %v337_v37  ;;  %v441_v28 = vld [vmem:[%s13322_s0 + $0xd38] sm:$0xff] }
 0x394   :  { %v449_v29 = vld [vmem:[%s13322_s0 + $0xd78] sm:$0xff] }
 0x399   :  { %5102 = vmatmul.mubr.bf16.gmra.mrb[44].mxu1 %v7600_v46  ;;  %v7728_v46 = vcombine.low %v325_v34, %v333_v35  ;;  %v453_v34 = vld [vmem:[%s13322_s0 + $0xd98] sm:$0xff] }
 0x39a   :  { %6258 = vmatmul.mubr.bf16.gmra.mrb[44].mxu0 %v7608_v47  ;;  %5109 = vmatprep.mubr.bf16.mxu1 %v7617_v48  ;;  %v7736_v47 = vcombine.low %v329_v36, %v337_v37  ;;  %v7745_v48 = vcombine.high %v341_v42, %v349_v43  ;;  %v461_v35 = vld [vmem:[%s13322_s0 + $0xdd8] sm:$0xff] }
 0x39b   :  { %6265 = vmatprep.mubr.bf16.mxu0 %v7625_v49  ;;  %v7753_v49 = vcombine.high %v345_v44, %v353_v45  ;;  %v457_v36 = vld [vmem:[%s13322_s0 + $0xdb8] sm:$0xff] }
 0x39c   :  { %v465_v37 = vld [vmem:[%s13322_s0 + $0xdf8] sm:$0xff] }
 0x3a1   :  { %5110 = vmatmul.mubr.bf16.gmra.mrb[48].mxu1 %v7616_v54  ;;  %v7744_v54 = vcombine.low %v341_v42, %v349_v43  ;;  %v469_v42 = vld [vmem:[%s13322_s0 + $0xe18] sm:$0xff] }
 0x3a2   :  { %6266 = vmatmul.mubr.bf16.gmra.mrb[48].mxu0 %v7624_v55  ;;  %5117 = vmatprep.mubr.bf16.mxu1 %v7633_v56  ;;  %v7752_v55 = vcombine.low %v345_v44, %v353_v45  ;;  %v7761_v56 = vcombine.high %v357_v50, %v365_v51  ;;  %v477_v43 = vld [vmem:[%s13322_s0 + $0xe58] sm:$0xff] }
 0x3a3   :  { %6273 = vmatprep.mubr.bf16.mxu0 %v7641_v57  ;;  %v7769_v57 = vcombine.high %v361_v52, %v369_v53  ;;  %v473_v45 = vld [vmem:[%s13322_s0 + $0xe38] sm:$0xff] }
 0x3a9   :  { %5118 = vmatmul.mubr.bf16.gmra.mrb[52].mxu1 %v7632_v62  ;;  %v7760_v62 = vcombine.low %v357_v50, %v365_v51 }
 0x3aa   :  { %6274 = vmatmul.mubr.bf16.gmra.mrb[52].mxu0 %v7640_v63  ;;  %5125 = vmatprep.mubr.bf16.mxu1 %v7649_v1  ;;  %v7768_v63 = vcombine.low %v361_v52, %v369_v53  ;;  %v7777_v1 = vcombine.high %v373_v58, %v381_v59  ;;  %v7864_v53 = vcombine.low %v457_v36, %v465_v37 }
 0x3ab   :  { %6281 = vmatprep.mubr.bf16.mxu0 %v7657_v2  ;;  %v7785_v2 = vcombine.high %v377_v60, %v385_v61 }
 0x3b1   :  { %5126 = vmatmul.mubr.bf16.gmra.mrb[56].mxu1 %v7648_v6  ;;  %v7776_v6 = vcombine.low %v373_v58, %v381_v59 }
 0x3b2   :  { %6282 = vmatmul.mubr.bf16.gmra.mrb[56].mxu0 %v7656_v7  ;;  %5133 = vmatprep.mubr.bf16.mxu1 %v7665_v8  ;;  %v7784_v7 = vcombine.low %v377_v60, %v385_v61  ;;  %v7793_v8 = vcombine.high %v389_v3, %v397_v0  ;;  %v485_v60 = vld [vmem:[%s13322_s0 + $0xe98] sm:$0xff] }
 0x3b3   :  { %6289 = vmatprep.mubr.bf16.mxu0 %v7673_v9  ;;  %v7801_v9 = vcombine.high %v393_v4, %v401_v5  ;;  %v493_v61 = vld [vmem:[%s13322_s0 + $0xed8] sm:$0xff] }
 0x3b9   :  { %5134 = vmatmul.mubr.bf16.gmra.mrb[60].mxu1 %v7664_v14  ;;  %v7792_v14 = vcombine.low %v389_v3, %v397_v0  ;;  %v7872_v0 = vcombine.low %v469_v42, %v477_v43 }
 0x3ba   :  { %6290 = vmatmul.mubr.bf16.gmra.mrb[60].mxu0 %v7672_v15  ;;  %5141 = vmatprep.mubr.bf16.mxu1 %v7681_v16  ;;  %v7800_v15 = vcombine.low %v393_v4, %v401_v5  ;;  %v7809_v16 = vcombine.high %v405_v10, %v413_v11 }
 0x3bb   :  { %6297 = vmatprep.mubr.bf16.mxu0 %v7689_v17  ;;  %v7817_v17 = vcombine.high %v409_v12, %v417_v13 }
 0x3c1   :  { %5142 = vmatmul.mubr.bf16.gmra.mrb[64].mxu1 %v7680_v22  ;;  %v7808_v22 = vcombine.low %v405_v10, %v413_v11 }
 0x3c2   :  { %6298 = vmatmul.mubr.bf16.gmra.mrb[64].mxu0 %v7688_v23  ;;  %5149 = vmatprep.mubr.bf16.mxu1 %v7697_v24  ;;  %v7816_v23 = vcombine.low %v409_v12, %v417_v13  ;;  %v7825_v24 = vcombine.high %v421_v18, %v429_v19 }
 0x3c3   :  { %6305 = vmatprep.mubr.bf16.mxu0 %v7705_v25  ;;  %v7833_v25 = vcombine.high %v425_v20, %v433_v21 }
 0x3c9   :  { %5150 = vmatmul.mubr.bf16.gmra.mrb[68].mxu1 %v7696_v30  ;;  %v7824_v30 = vcombine.low %v421_v18, %v429_v19  ;;  %v513_v18 = vld [vmem:[%s13322_s0 + $0xf78] sm:$0xff] }
 0x3ca   :  { %6306 = vmatmul.mubr.bf16.gmra.mrb[68].mxu0 %v7704_v31  ;;  %5157 = vmatprep.mubr.bf16.mxu1 %v7713_v32  ;;  %v7832_v31 = vcombine.low %v425_v20, %v433_v21  ;;  %v7841_v32 = vcombine.high %v437_v26, %v445_v27  ;;  %v7888_v21 = vcombine.low %v485_v60, %v493_v61 }
 0x3cb   :  { %6313 = vmatprep.mubr.bf16.mxu0 %v7721_v33  ;;  %v7849_v33 = vcombine.high %v441_v28, %v449_v29 }
 0x3d1   :  { %5158 = vmatmul.mubr.bf16.gmra.mrb[72].mxu1 %v7712_v38  ;;  %v7840_v38 = vcombine.low %v437_v26, %v445_v27 }
 0x3d2   :  { %6314 = vmatmul.mubr.bf16.gmra.mrb[72].mxu0 %v7720_v39  ;;  %5165 = vmatprep.mubr.bf16.mxu1 %v7729_v40  ;;  %v7848_v39 = vcombine.low %v441_v28, %v449_v29  ;;  %v7857_v40 = vcombine.high %v453_v34, %v461_v35 }
 0x3d3   :  { %6321 = vmatprep.mubr.bf16.mxu0 %v7737_v41  ;;  %v7865_v41 = vcombine.high %v457_v36, %v465_v37  ;;  %v529_v36 = vld [vmem:[%s13322_s0 + $0xff8] sm:$0xff] }
 0x3d9   :  { %5166 = vmatmul.mubr.bf16.gmra.mrb[76].mxu1 %v7728_v46  ;;  %v481_v46 = vld [vmem:[%s13322_s0 + $0xe78] sm:$0xff] }
 0x3da   :  { %6322 = vmatmul.mubr.bf16.gmra.mrb[76].mxu0 %v7736_v47  ;;  %5173 = vmatprep.mubr.bf16.mxu1 %v7745_v48 }
 0x3db   :  { %6329 = vmatprep.mubr.bf16.mxu0 %v7753_v49  ;;  %v7856_v49 = vcombine.low %v453_v34, %v461_v35  ;;  %v521_v35 = vld [vmem:[%s13322_s0 + $0xfb8] sm:$0xff] }
 0x3e1   :  { %5174 = vmatmul.mubr.bf16.gmra.mrb[80].mxu1 %v7744_v54  ;;  %v7873_v54 = vcombine.high %v469_v42, %v477_v43 }
 0x3e2   :  { %6330 = vmatmul.mubr.bf16.gmra.mrb[80].mxu0 %v7752_v55  ;;  %5181 = vmatprep.mubr.bf16.mxu1 %v7761_v56 }
 0x3e3   :  { %6337 = vmatprep.mubr.bf16.mxu0 %v7769_v57  ;;  %v7881_v57 = vcombine.high %v473_v45, %v481_v46 }
 0x3e9   :  { %5182 = vmatmul.mubr.bf16.gmra.mrb[84].mxu1 %v7760_v62 }
 0x3ea   :  { %6338 = vmatmul.mubr.bf16.gmra.mrb[84].mxu0 %v7768_v63  ;;  %5189 = vmatprep.mubr.bf16.mxu1 %v7777_v1  ;;  %v489_v63 = vld [vmem:[%s13322_s0 + $0xeb8] sm:$0xff] }
 0x3eb   :  { %6345 = vmatprep.mubr.bf16.mxu0 %v7785_v2  ;;  %v497_v1 = vld [vmem:[%s13322_s0 + $0xef8] sm:$0xff] }
 0x3ec   :  { %v7897_v11 = vcombine.high %v489_v63, %v497_v1 }
 0x3f1   :  { %5190 = vmatmul.mubr.bf16.gmra.mrb[88].mxu1 %v7776_v6 }
 0x3f2   :  { %6346 = vmatmul.mubr.bf16.gmra.mrb[88].mxu0 %v7784_v7  ;;  %5197 = vmatprep.mubr.bf16.mxu1 %v7793_v8  ;;  %v7880_v7 = vcombine.low %v473_v45, %v481_v46  ;;  %v7889_v8 = vcombine.high %v485_v60, %v493_v61 }
 0x3f3   :  { %6353 = vmatprep.mubr.bf16.mxu0 %v7801_v9 }
 0x3f9   :  { %5198 = vmatmul.mubr.bf16.gmra.mrb[92].mxu1 %v7792_v14  ;;  %v501_v14 = vld [vmem:[%s13322_s0 + $0xf18] sm:$0xff] }
 0x3fa   :  { %6354 = vmatmul.mubr.bf16.gmra.mrb[92].mxu0 %v7800_v15  ;;  %5205 = vmatprep.mubr.bf16.mxu1 %v7809_v16  ;;  %v509_v15 = vld [vmem:[%s13322_s0 + $0xf58] sm:$0xff] }
 0x3fb   :  { %6361 = vmatprep.mubr.bf16.mxu0 %v7817_v17  ;;  %v505_v17 = vld [vmem:[%s13322_s0 + $0xf38] sm:$0xff]  ;;  %v7905_v26 = vcombine.high %v501_v14, %v509_v15 }
 0x3fc   :  { %v7913_v29 = vcombine.high %v505_v17, %v513_v18  ;;  %v7912_v43 = vcombine.low %v505_v17, %v513_v18 }
 0x401   :  { %5206 = vmatmul.mubr.bf16.gmra.mrb[96].mxu1 %v7808_v22 }
 0x402   :  { %6362 = vmatmul.mubr.bf16.gmra.mrb[96].mxu0 %v7816_v23  ;;  %5213 = vmatprep.mubr.bf16.mxu1 %v7825_v24 }
 0x403   :  { %6369 = vmatprep.mubr.bf16.mxu0 %v7833_v25  ;;  %v7896_v25 = vcombine.low %v489_v63, %v497_v1 }
 0x409   :  { %5214 = vmatmul.mubr.bf16.gmra.mrb[100].mxu1 %v7824_v30 }
 0x40a   :  { %6370 = vmatmul.mubr.bf16.gmra.mrb[100].mxu0 %v7832_v31  ;;  %5221 = vmatprep.mubr.bf16.mxu1 %v7841_v32  ;;  %v517_v32 = vld [vmem:[%s13322_s0 + $0xf98] sm:$0xff] }
 0x40b   :  { %6377 = vmatprep.mubr.bf16.mxu0 %v7849_v33  ;;  %v525_v33 = vld [vmem:[%s13322_s0 + $0xfd8] sm:$0xff] }
 0x411   :  { %5222 = vmatmul.mubr.bf16.gmra.mrb[104].mxu1 %v7840_v38 }
 0x412   :  { %6378 = vmatmul.mubr.bf16.gmra.mrb[104].mxu0 %v7848_v39  ;;  %5229 = vmatprep.mubr.bf16.mxu1 %v7857_v40  ;;  %v7904_v39 = vcombine.low %v501_v14, %v509_v15 }
 0x413   :  { %6385 = vmatprep.mubr.bf16.mxu0 %v7865_v41 }
 0x414   :  { %v5015_v44 = vpop.f32.mrb[0].mxu1 }
 0x415   :  { %v6171_v47 = vpop.f32.mrb[0].mxu0  ;;  %v5017_v48 = vpop.f32.mrb[1].mxu1 }
 0x416   :  { %v11396_v50 = vadd.f32 %v6171_v47, %v5015_v44  ;;  %v6173_v51 = vpop.f32.mrb[1].mxu0  ;;  %v5018_v52 = vpop.f32.mrb[2].mxu1  ;;  %v7921_v44 = vcombine.high %v517_v32, %v525_v33  ;;  %v7929_v47 = vcombine.high %v521_v35, %v529_v36 }
 0x417   :  { %v6174_v55 = vpop.f32.mrb[2].mxu0  ;;  %v5020_v56 = vpop.f32.mrb[3].mxu1 }
 0x418   :  { %v11398_v58 = vadd.f32 %v6174_v55, %v5018_v52  ;;  %v6176_v59 = vpop.f32.mrb[3].mxu0 }
 0x419   :  { %5230 = vmatmul.mubr.bf16.gmra.mrb[108].mxu1 %v7856_v49  ;;  %v7928_v59 = vcombine.low %v521_v35, %v529_v36 }
 0x41a   :  { %6386 = vmatmul.mubr.bf16.gmra.mrb[108].mxu0 %v7864_v53  ;;  %5237 = vmatprep.mubr.bf16.mxu1 %v7873_v54  ;;  %v7920_v54 = vcombine.low %v517_v32, %v525_v33 }
 0x41b   :  { %6393 = vmatprep.mubr.bf16.mxu0 %v7881_v57 }
 0x41c   :  { %v5023_v62 = vpop.f32.mrb[4].mxu1 }
 0x41d   :  { %v6179_v2 = vpop.f32.mrb[4].mxu0  ;;  %v5025_v3 = vpop.f32.mrb[5].mxu1 }
 0x41e   :  { %v11412_v4 = vadd.f32 %v6179_v2, %v5023_v62  ;;  %v6181_v5 = vpop.f32.mrb[5].mxu0  ;;  %v5026_v6 = vpop.f32.mrb[6].mxu1 }
 0x41f   :  { %v6182_v9 = vpop.f32.mrb[6].mxu0  ;;  %v5028_v10 = vpop.f32.mrb[7].mxu1 }
 0x420   :  { %v11414_v12 = vadd.f32 %v6182_v9, %v5026_v6  ;;  %v6184_v13 = vpop.f32.mrb[7].mxu0 }
 0x421   :  { %5238 = vmatmul.mubr.bf16.gmra.mrb[112].mxu1 %v7872_v0 }
 0x422   :  { %6394 = vmatmul.mubr.bf16.gmra.mrb[112].mxu0 %v7880_v7  ;;  %5245 = vmatprep.mubr.bf16.mxu1 %v7889_v8 }
 0x423   :  { %6401 = vmatprep.mubr.bf16.mxu0 %v7897_v11 }
 0x424   :  { %v5031_v16 = vpop.f32.mrb[8].mxu1 }
 0x425   :  { %v6187_v19 = vpop.f32.mrb[8].mxu0  ;;  %v5033_v20 = vpop.f32.mrb[9].mxu1 }
 0x426   :  { %v11428_v22 = vadd.f32 %v6187_v19, %v5031_v16  ;;  %v6189_v23 = vpop.f32.mrb[9].mxu0  ;;  %v5034_v24 = vpop.f32.mrb[10].mxu1 }
 0x427   :  { %v6190_v27 = vpop.f32.mrb[10].mxu0  ;;  %v5036_v28 = vpop.f32.mrb[11].mxu1 }
 0x428   :  { %v11430_v30 = vadd.f32 %v6190_v27, %v5034_v24  ;;  %v6192_v31 = vpop.f32.mrb[11].mxu0 }
 0x429   :  { %5246 = vmatmul.mubr.bf16.gmra.mrb[116].mxu1 %v7888_v21 }
 0x42a   :  { %6402 = vmatmul.mubr.bf16.gmra.mrb[116].mxu0 %v7896_v25  ;;  %5253 = vmatprep.mubr.bf16.mxu1 %v7905_v26 }
 0x42b   :  { %6409 = vmatprep.mubr.bf16.mxu0 %v7913_v29 }
 0x42c   :  { %v5039_v34 = vpop.f32.mrb[12].mxu1 }
 0x42d   :  { %v6195_v37 = vpop.f32.mrb[12].mxu0  ;;  %v5041_v38 = vpop.f32.mrb[13].mxu1 }
 0x42e   :  { %v11444_v40 = vadd.f32 %v6195_v37, %v5039_v34  ;;  %v6197_v41 = vpop.f32.mrb[13].mxu0  ;;  %v5042_v42 = vpop.f32.mrb[14].mxu1  ;;  %v6426_v34 = vadd.f32 %v11398_v58, %v11396_v50 }
 0x42f   :  { %v6198_v45 = vpop.f32.mrb[14].mxu0  ;;  %v5044_v46 = vpop.f32.mrb[15].mxu1 }
 0x430   :  { %v11446_v48 = vadd.f32 %v6198_v45, %v5042_v42  ;;  %v6200_v49 = vpop.f32.mrb[15].mxu0  ;;  %v6427_v35 = vadd.f32 %v11412_v4, %v6426_v34 }
 0x431   :  { %5254 = vmatmul.mubr.bf16.gmra.mrb[120].mxu1 %v7904_v39 }
 0x432   :  { %6410 = vmatmul.mubr.bf16.gmra.mrb[120].mxu0 %v7912_v43  ;;  %5261 = vmatprep.mubr.bf16.mxu1 %v7921_v44  ;;  %v6428_v45 = vadd.f32 %v11414_v12, %v6427_v35 }
 0x433   :  { %6417 = vmatprep.mubr.bf16.mxu0 %v7929_v47 }
 0x434   :  { %v5047_v51 = vpop.f32.mrb[16].mxu1  ;;  %v6429_v49 = vadd.f32 %v11428_v22, %v6428_v45 }
 0x435   :  { %v6203_v52 = vpop.f32.mrb[16].mxu0  ;;  %v5049_v53 = vpop.f32.mrb[17].mxu1 }
 0x436   :  { %v11448_v55 = vadd.f32 %v6203_v52, %v5047_v51  ;;  %v6205_v56 = vpop.f32.mrb[17].mxu0  ;;  %v5050_v57 = vpop.f32.mrb[18].mxu1 }
 0x437   :  { %v6206_v60 = vpop.f32.mrb[18].mxu0  ;;  %v5052_v61 = vpop.f32.mrb[19].mxu1 }
 0x438   :  { %v11450_v62 = vadd.f32 %v6206_v60, %v5050_v57  ;;  %v6208_v63 = vpop.f32.mrb[19].mxu0 }
 0x439   :  { %5262 = vmatmul.mubr.bf16.gmra.mrb[124].mxu1 %v7920_v54  ;;  %v6430_v54 = vadd.f32 %v11430_v30, %v6429_v49 }
 0x43a   :  { %6418 = vmatmul.mubr.bf16.gmra.mrb[124].mxu0 %v7928_v59 }
 0x43b   :  { %v6431_v63 = vadd.f32 %v11444_v40, %v6430_v54 }
 0x43c   :  { %v5055_v1 = vpop.f32.mrb[20].mxu1 }
 0x43d   :  { %v6211_v2 = vpop.f32.mrb[20].mxu0  ;;  %v5057_v3 = vpop.f32.mrb[21].mxu1 }
 0x43e   :  { %v11452_v0 = vadd.f32 %v6211_v2, %v5055_v1  ;;  %v6213_v5 = vpop.f32.mrb[21].mxu0  ;;  %v5058_v6 = vpop.f32.mrb[22].mxu1  ;;  %v6432_v3 = vadd.f32 %v11446_v48, %v6431_v63 }
 0x43f   :  { %v6214_v7 = vpop.f32.mrb[22].mxu0  ;;  %v5060_v8 = vpop.f32.mrb[23].mxu1 }
 0x440   :  { %v11454_v9 = vadd.f32 %v6214_v7, %v5058_v6  ;;  %v6216_v10 = vpop.f32.mrb[23].mxu0  ;;  %v6433_v8 = vadd.f32 %v11448_v55, %v6432_v3 }
 0x444   :  { %v5063_v11 = vpop.f32.mrb[24].mxu1 }
 0x445   :  { %v6219_v13 = vpop.f32.mrb[24].mxu0  ;;  %v5065_v14 = vpop.f32.mrb[25].mxu1 }
 0x446   :  { %v11456_v15 = vadd.f32 %v6219_v13, %v5063_v11  ;;  %v6221_v16 = vpop.f32.mrb[25].mxu0  ;;  %v5066_v17 = vpop.f32.mrb[26].mxu1 }
 0x447   :  { %v6222_v18 = vpop.f32.mrb[26].mxu0  ;;  %v5068_v19 = vpop.f32.mrb[27].mxu1 }
 0x448   :  { %v11458_v20 = vadd.f32 %v6222_v18, %v5066_v17  ;;  %v6224_v21 = vpop.f32.mrb[27].mxu0  ;;  %v6434_v19 = vadd.f32 %v11450_v62, %v6433_v8 }
 0x44a   :  { %v6435_v21 = vadd.f32 %v11452_v0, %v6434_v19 }
 0x44c   :  { %v5071_v23 = vpop.f32.mrb[28].mxu1  ;;  %v6436_v34 = vadd.f32 %v11454_v9, %v6435_v21 }
 0x44d   :  { %v6227_v24 = vpop.f32.mrb[28].mxu0  ;;  %v5073_v25 = vpop.f32.mrb[29].mxu1 }
 0x44e   :  { %v11460_v26 = vadd.f32 %v6227_v24, %v5071_v23  ;;  %v6229_v27 = vpop.f32.mrb[29].mxu0  ;;  %v5074_v28 = vpop.f32.mrb[30].mxu1 }
 0x44f   :  { %v6230_v29 = vpop.f32.mrb[30].mxu0  ;;  %v5076_v31 = vpop.f32.mrb[31].mxu1 }
 0x450   :  { %v11462_v32 = vadd.f32 %v6230_v29, %v5074_v28  ;;  %v6232_v33 = vpop.f32.mrb[31].mxu0 }
 0x454   :  { %v5079_v36 = vpop.f32.mrb[32].mxu1 }
 0x455   :  { %v6235_v37 = vpop.f32.mrb[32].mxu0  ;;  %v5081_v38 = vpop.f32.mrb[33].mxu1 }
 0x456   :  { %v11467_v39 = vadd.f32 %v6235_v37, %v5079_v36  ;;  %v6237_v41 = vpop.f32.mrb[33].mxu0  ;;  %v5082_v42 = vpop.f32.mrb[34].mxu1  ;;  %v6437_v37 = vadd.f32 %v11456_v15, %v6436_v34 }
 0x457   :  { %v6238_v43 = vpop.f32.mrb[34].mxu0  ;;  %v5084_v44 = vpop.f32.mrb[35].mxu1 }
 0x458   :  { %v11470_v46 = vadd.f32 %v6238_v43, %v5082_v42  ;;  %v6240_v47 = vpop.f32.mrb[35].mxu0  ;;  %v6438_v43 = vadd.f32 %v11458_v20, %v6437_v37 }
 0x45c   :  { %v5087_v51 = vpop.f32.mrb[36].mxu1 }
 0x45d   :  { %v6243_v52 = vpop.f32.mrb[36].mxu0  ;;  %v5089_v53 = vpop.f32.mrb[37].mxu1 }
 0x45e   :  { %v11474_v56 = vadd.f32 %v6243_v52, %v5087_v51  ;;  %v6245_v57 = vpop.f32.mrb[37].mxu0  ;;  %v5090_v59 = vpop.f32.mrb[38].mxu1  ;;  %v6439_v52 = vadd.f32 %v11460_v26, %v6438_v43 }
 0x45f   :  { %v6246_v60 = vpop.f32.mrb[38].mxu0  ;;  %v5092_v61 = vpop.f32.mrb[39].mxu1 }
 0x460   :  { %v11477_v1 = vadd.f32 %v6246_v60, %v5090_v59  ;;  %v6248_v2 = vpop.f32.mrb[39].mxu0  ;;  %v6440_v57 = vadd.f32 %v11462_v32, %v6439_v52 }
 0x462   :  { %v6441_v63 = vadd.f32 %v11467_v39, %v6440_v57 }
 0x464   :  { %v5095_v5 = vpop.f32.mrb[40].mxu1 }
 0x465   :  { %v6251_v6 = vpop.f32.mrb[40].mxu0  ;;  %v5097_v7 = vpop.f32.mrb[41].mxu1 }
 0x466   :  { %v11481_v10 = vadd.f32 %v6251_v6, %v5095_v5  ;;  %v6253_v11 = vpop.f32.mrb[41].mxu0  ;;  %v5098_v13 = vpop.f32.mrb[42].mxu1 }
 0x467   :  { %v6254_v14 = vpop.f32.mrb[42].mxu0  ;;  %v5100_v16 = vpop.f32.mrb[43].mxu1 }
 0x468   :  { %v11483_v17 = vadd.f32 %v6254_v14, %v5098_v13  ;;  %v6256_v18 = vpop.f32.mrb[43].mxu0  ;;  %v6442_v13 = vadd.f32 %v11470_v46, %v6441_v63 }
 0x46a   :  { %v6443_v14 = vadd.f32 %v11474_v56, %v6442_v13 }
 0x46c   :  { %v5103_v23 = vpop.f32.mrb[44].mxu1 }
 0x46d   :  { %v6259_v24 = vpop.f32.mrb[44].mxu0  ;;  %v5105_v25 = vpop.f32.mrb[45].mxu1 }
 0x46e   :  { %v11487_v27 = vadd.f32 %v6259_v24, %v5103_v23  ;;  %v6261_v28 = vpop.f32.mrb[45].mxu0  ;;  %v5106_v29 = vpop.f32.mrb[46].mxu1 }
 0x46f   :  { %v6262_v31 = vpop.f32.mrb[46].mxu0  ;;  %v5108_v33 = vpop.f32.mrb[47].mxu1 }
 0x470   :  { %v11490_v35 = vadd.f32 %v6262_v31, %v5106_v29  ;;  %v6264_v36 = vpop.f32.mrb[47].mxu0  ;;  %v6444_v29 = vadd.f32 %v11477_v1, %v6443_v14 }
 0x472   :  { %v6445_v34 = vadd.f32 %v11481_v10, %v6444_v29 }
 0x474   :  { %v5111_v38 = vpop.f32.mrb[48].mxu1 }
 0x475   :  { %v6267_v41 = vpop.f32.mrb[48].mxu0  ;;  %v5113_v42 = vpop.f32.mrb[49].mxu1 }
 0x476   :  { %v11494_v44 = vadd.f32 %v6267_v41, %v5111_v38  ;;  %v6269_v45 = vpop.f32.mrb[49].mxu0  ;;  %v5114_v47 = vpop.f32.mrb[50].mxu1  ;;  %v6446_v41 = vadd.f32 %v11483_v17, %v6445_v34 }
 0x477   :  { %v6270_v49 = vpop.f32.mrb[50].mxu0  ;;  %v5116_v51 = vpop.f32.mrb[51].mxu1 }
 0x478   :  { %v11497_v53 = vadd.f32 %v6270_v49, %v5114_v47  ;;  %v6272_v54 = vpop.f32.mrb[51].mxu0  ;;  %v6447_v51 = vadd.f32 %v11487_v27, %v6446_v41 }
 0x47a   :  { %v6448_v57 = vadd.f32 %v11490_v35, %v6447_v51 }
 0x47c   :  { %v5119_v59 = vpop.f32.mrb[52].mxu1  ;;  %v6449_v63 = vadd.f32 %v11494_v44, %v6448_v57 }
 0x47d   :  { %v6275_v60 = vpop.f32.mrb[52].mxu0  ;;  %v5121_v61 = vpop.f32.mrb[53].mxu1 }
 0x47e   :  { %v11501_v2 = vadd.f32 %v6275_v60, %v5119_v59  ;;  %v6277_v3 = vpop.f32.mrb[53].mxu0  ;;  %v5122_v5 = vpop.f32.mrb[54].mxu1 }
 0x47f   :  { %v6278_v6 = vpop.f32.mrb[54].mxu0  ;;  %v5124_v7 = vpop.f32.mrb[55].mxu1 }
 0x480   :  { %v11503_v8 = vadd.f32 %v6278_v6, %v5122_v5  ;;  %v6280_v11 = vpop.f32.mrb[55].mxu0 }
 0x484   :  { %v5127_v16 = vpop.f32.mrb[56].mxu1 }
 0x485   :  { %v6283_v18 = vpop.f32.mrb[56].mxu0  ;;  %v5129_v19 = vpop.f32.mrb[57].mxu1 }
 0x486   :  { %v11507_v21 = vadd.f32 %v6283_v18, %v5127_v16  ;;  %v6285_v23 = vpop.f32.mrb[57].mxu0  ;;  %v5130_v24 = vpop.f32.mrb[58].mxu1  ;;  %v6450_v16 = vadd.f32 %v11497_v53, %v6449_v63 }
 0x487   :  { %v6286_v25 = vpop.f32.mrb[58].mxu0  ;;  %v5132_v28 = vpop.f32.mrb[59].mxu1 }
 0x488   :  { %v11510_v31 = vadd.f32 %v6286_v25, %v5130_v24  ;;  %v6288_v33 = vpop.f32.mrb[59].mxu0  ;;  %v6451_v18 = vadd.f32 %v11501_v2, %v6450_v16 }
 0x48c   :  { %v5135_v36 = vpop.f32.mrb[60].mxu1 }
 0x48d   :  { %v6291_v37 = vpop.f32.mrb[60].mxu0  ;;  %v5137_v38 = vpop.f32.mrb[61].mxu1 }
 0x48e   :  { %v11514_v42 = vadd.f32 %v6291_v37, %v5135_v36  ;;  %v6293_v43 = vpop.f32.mrb[61].mxu0  ;;  %v5138_v45 = vpop.f32.mrb[62].mxu1  ;;  %v6452_v36 = vadd.f32 %v11503_v8, %v6451_v18 }
 0x48f   :  { %v6294_v47 = vpop.f32.mrb[62].mxu0  ;;  %v5140_v49 = vpop.f32.mrb[63].mxu1 }
 0x490   :  { %v11517_v52 = vadd.f32 %v6294_v47, %v5138_v45  ;;  %v6296_v54 = vpop.f32.mrb[63].mxu0  ;;  %v6453_v41 = vadd.f32 %v11507_v21, %v6452_v36 }
 0x492   :  { %v6454_v49 = vadd.f32 %v11510_v31, %v6453_v41 }
 0x494   :  { %v5143_v59 = vpop.f32.mrb[64].mxu1 }
 0x495   :  { %v6299_v60 = vpop.f32.mrb[64].mxu0  ;;  %v5145_v61 = vpop.f32.mrb[65].mxu1 }
 0x496   :  { %v11521_v3 = vadd.f32 %v6299_v60, %v5143_v59  ;;  %v6301_v5 = vpop.f32.mrb[65].mxu0  ;;  %v5146_v6 = vpop.f32.mrb[66].mxu1  ;;  %v6455_v61 = vadd.f32 %v11514_v42, %v6454_v49 }
 0x497   :  { %v6302_v7 = vpop.f32.mrb[66].mxu0  ;;  %v5148_v11 = vpop.f32.mrb[67].mxu1 }
 0x498   :  { %v11523_v13 = vadd.f32 %v6302_v7, %v5146_v6  ;;  %v6304_v14 = vpop.f32.mrb[67].mxu0  ;;  %v6456_v6 = vadd.f32 %v11517_v52, %v6455_v61 }
 0x49a   :  { %v6457_v16 = vadd.f32 %v11521_v3, %v6456_v6 }
 0x49c   :  { %v5151_v19 = vpop.f32.mrb[68].mxu1 }
 0x49d   :  { %v6307_v23 = vpop.f32.mrb[68].mxu0  ;;  %v5153_v24 = vpop.f32.mrb[69].mxu1 }
 0x49e   :  { %v11527_v25 = vadd.f32 %v6307_v23, %v5151_v19  ;;  %v6309_v28 = vpop.f32.mrb[69].mxu0  ;;  %v5154_v29 = vpop.f32.mrb[70].mxu1 }
 0x49f   :  { %v6310_v33 = vpop.f32.mrb[70].mxu0  ;;  %v5156_v34 = vpop.f32.mrb[71].mxu1 }
 0x4a0   :  { %13397 = vst [vmem:[#allocation2_spill] sm:$0xff] %v11527_v25  ;;  %v11530_v37 = vadd.f32 %v6310_v33, %v5154_v29  ;;  %v6312_v38 = vpop.f32.mrb[71].mxu0  ;;  %v6458_v34 = vadd.f32 %v11523_v13, %v6457_v16 }
 0x4a2   :  { %13398 = vst [vmem:[#allocation3_spill] sm:$0xff] %v11530_v37  ;;  %v6459_v36 = vadd.f32 %v11527_v25, %v6458_v34 }
 0x4a4   :  { %v5159_v43 = vpop.f32.mrb[72].mxu1 }
 0x4a5   :  { %v6315_v45 = vpop.f32.mrb[72].mxu0  ;;  %v5161_v47 = vpop.f32.mrb[73].mxu1 }
 0x4a6   :  { %v11534_v51 = vadd.f32 %v6315_v45, %v5159_v43  ;;  %v6317_v54 = vpop.f32.mrb[73].mxu0  ;;  %v5162_v57 = vpop.f32.mrb[74].mxu1 }
 0x4a7   :  { %v6318_v59 = vpop.f32.mrb[74].mxu0  ;;  %v5164_v60 = vpop.f32.mrb[75].mxu1 }
 0x4a8   :  { %13399 = vst [vmem:[#allocation4_spill] sm:$0xff] %v11534_v51  ;;  %v11537_v63 = vadd.f32 %v6318_v59, %v5162_v57  ;;  %v6320_v5 = vpop.f32.mrb[75].mxu0  ;;  %v6460_v59 = vadd.f32 %v11530_v37, %v6459_v36 }
 0x4aa   :  { %13400 = vst [vmem:[#allocation5_spill] sm:$0xff] %v11537_v63  ;;  %v6461_v5 = vadd.f32 %v11534_v51, %v6460_v59 }
 0x4ac   :  { %v5167_v7 = vpop.f32.mrb[76].mxu1 }
 0x4ad   :  { %v6323_v11 = vpop.f32.mrb[76].mxu0  ;;  %v5169_v14 = vpop.f32.mrb[77].mxu1 }
 0x4ae   :  { %v11541_v18 = vadd.f32 %v6323_v11, %v5167_v7  ;;  %v6325_v19 = vpop.f32.mrb[77].mxu0  ;;  %v5170_v23 = vpop.f32.mrb[78].mxu1  ;;  %v6462_v14 = vadd.f32 %v11537_v63, %v6461_v5 }
 0x4af   :  { %v6326_v24 = vpop.f32.mrb[78].mxu0  ;;  %v5172_v28 = vpop.f32.mrb[79].mxu1 }
 0x4b0   :  { %13401 = vst [vmem:[#allocation6_spill] sm:$0xff] %v11541_v18  ;;  %v11543_v29 = vadd.f32 %v6326_v24, %v5170_v23  ;;  %v6328_v33 = vpop.f32.mrb[79].mxu0 }
 0x4b1   :  { %v6463_v33 = vadd.f32 %v11541_v18, %v6462_v14 }
 0x4b2   :  { %13402 = vst [vmem:[#allocation7_spill] sm:$0xff] %v11543_v29 }
 0x4b4   :  { %v5175_v38 = vpop.f32.mrb[80].mxu1 }
 0x4b5   :  { %v6331_v41 = vpop.f32.mrb[80].mxu0  ;;  %v5177_v43 = vpop.f32.mrb[81].mxu1 }
 0x4b6   :  { %v11547_v45 = vadd.f32 %v6331_v41, %v5175_v38  ;;  %v6333_v47 = vpop.f32.mrb[81].mxu0  ;;  %v5178_v49 = vpop.f32.mrb[82].mxu1  ;;  %v6464_v38 = vadd.f32 %v11543_v29, %v6463_v33 }
 0x4b7   :  { %v6334_v54 = vpop.f32.mrb[82].mxu0  ;;  %v5180_v57 = vpop.f32.mrb[83].mxu1 }
 0x4b8   :  { %13403 = vst [vmem:[#allocation8_spill] sm:$0xff] %v11547_v45  ;;  %v11550_v60 = vadd.f32 %v6334_v54, %v5178_v49  ;;  %v6336_v61 = vpop.f32.mrb[83].mxu0  ;;  %v6465_v49 = vadd.f32 %v11547_v45, %v6464_v38 }
 0x4ba   :  { %13404 = vst [vmem:[#allocation9_spill] sm:$0xff] %v11550_v60 }
 0x4bc   :  { %v5183_v6 = vpop.f32.mrb[84].mxu1 }
 0x4bd   :  { %v6339_v7 = vpop.f32.mrb[84].mxu0  ;;  %v5185_v11 = vpop.f32.mrb[85].mxu1 }
 0x4be   :  { %v11554_v16 = vadd.f32 %v6339_v7, %v5183_v6  ;;  %v6341_v19 = vpop.f32.mrb[85].mxu0  ;;  %v5186_v23 = vpop.f32.mrb[86].mxu1  ;;  %v6466_v11 = vadd.f32 %v11550_v60, %v6465_v49 }
 0x4bf   :  { %v6342_v24 = vpop.f32.mrb[86].mxu0  ;;  %v5188_v28 = vpop.f32.mrb[87].mxu1 }
 0x4c0   :  { %13405 = vst [vmem:[#allocation10_spill] sm:$0xff] %v11554_v16  ;;  %v11557_v34 = vadd.f32 %v6342_v24, %v5186_v23  ;;  %v6344_v36 = vpop.f32.mrb[87].mxu0  ;;  %v6467_v14 = vadd.f32 %v11554_v16, %v6466_v11 }
 0x4c2   :  { %13406 = vst [vmem:[#allocation11_spill] sm:$0xff] %v11557_v34 }
 0x4c4   :  { %v5191_v41 = vpop.f32.mrb[88].mxu1 }
 0x4c5   :  { %v6347_v43 = vpop.f32.mrb[88].mxu0  ;;  %v5193_v47 = vpop.f32.mrb[89].mxu1 }
 0x4c6   :  { %v11561_v54 = vadd.f32 %v6347_v43, %v5191_v41  ;;  %v6349_v57 = vpop.f32.mrb[89].mxu0  ;;  %v5194_v59 = vpop.f32.mrb[90].mxu1  ;;  %v6468_v43 = vadd.f32 %v11557_v34, %v6467_v14 }
 0x4c7   :  { %v6350_v61 = vpop.f32.mrb[90].mxu0  ;;  %v5196_v5 = vpop.f32.mrb[91].mxu1 }
 0x4c8   :  { %13407 = vst [vmem:[#allocation12_spill] sm:$0xff] %v11561_v54  ;;  %v11563_v6 = vadd.f32 %v6350_v61, %v5194_v59  ;;  %v6352_v7 = vpop.f32.mrb[91].mxu0  ;;  %v6469_v59 = vadd.f32 %v11561_v54, %v6468_v43 }
 0x4ca   :  { %13408 = vst [vmem:[#allocation13_spill] sm:$0xff] %v11563_v6  ;;  %v6470_v7 = vadd.f32 %v11563_v6, %v6469_v59 }
 0x4cc   :  { %v5199_v19 = vpop.f32.mrb[92].mxu1 }
 0x4cd   :  { %v6355_v23 = vpop.f32.mrb[92].mxu0  ;;  %v5201_v24 = vpop.f32.mrb[93].mxu1 }
 0x4ce   :  { %v11567_v28 = vadd.f32 %v6355_v23, %v5199_v19  ;;  %v6357_v33 = vpop.f32.mrb[93].mxu0  ;;  %v5202_v36 = vpop.f32.mrb[94].mxu1 }
 0x4cf   :  { %v6358_v38 = vpop.f32.mrb[94].mxu0  ;;  %v5204_v41 = vpop.f32.mrb[95].mxu1 }
 0x4d0   :  { %13409 = vst [vmem:[#allocation14_spill] sm:$0xff] %v11567_v28  ;;  %v11570_v47 = vadd.f32 %v6358_v38, %v5202_v36  ;;  %v6360_v57 = vpop.f32.mrb[95].mxu0  ;;  %v6471_v41 = vadd.f32 %v11567_v28, %v6470_v7 }
 0x4d2   :  { %13410 = vst [vmem:[#allocation15_spill] sm:$0xff] %v11570_v47  ;;  %v6472_v36 = vadd.f32 %v11570_v47, %v6471_v41 }
 0x4d4   :  { %v5207_v61 = vpop.f32.mrb[96].mxu1 }
 0x4d5   :  { %v6363_v49 = vpop.f32.mrb[96].mxu0  ;;  %v5209_v5 = vpop.f32.mrb[97].mxu1 }
 0x4d6   :  { %v11574_v11 = vadd.f32 %v6363_v49, %v5207_v61  ;;  %v6365_v19 = vpop.f32.mrb[97].mxu0  ;;  %v5210_v23 = vpop.f32.mrb[98].mxu1 }
 0x4d7   :  { %v6366_v24 = vpop.f32.mrb[98].mxu0  ;;  %v5212_v33 = vpop.f32.mrb[99].mxu1 }
 0x4d8   :  { %13411 = vst [vmem:[#allocation16_spill] sm:$0xff] %v11574_v11  ;;  %v11577_v16 = vadd.f32 %v6366_v24, %v5210_v23  ;;  %v6368_v14 = vpop.f32.mrb[99].mxu0  ;;  %v6473_v5 = vadd.f32 %v11574_v11, %v6472_v36 }
 0x4da   :  { %13412 = vst [vmem:[#allocation17_spill] sm:$0xff] %v11577_v16  ;;  %v6474_v7 = vadd.f32 %v11577_v16, %v6473_v5 }
 0x4dc   :  { %v5215_v38 = vpop.f32.mrb[100].mxu1 }
 0x4dd   :  { %v6371_v43 = vpop.f32.mrb[100].mxu0  ;;  %v5217_v57 = vpop.f32.mrb[101].mxu1 }
 0x4de   :  { %v11581_v54 = vadd.f32 %v6371_v43, %v5215_v38  ;;  %v6373_v59 = vpop.f32.mrb[101].mxu0  ;;  %v5218_v61 = vpop.f32.mrb[102].mxu1 }
 0x4df   :  { %v6374_v49 = vpop.f32.mrb[102].mxu0  ;;  %v5220_v19 = vpop.f32.mrb[103].mxu1 }
 0x4e0   :  { %13413 = vst [vmem:[#allocation18_spill] sm:$0xff] %v11581_v54  ;;  %v11583_v6 = vadd.f32 %v6374_v49, %v5218_v61  ;;  %v6376_v33 = vpop.f32.mrb[103].mxu0  ;;  %v6475_v23 = vadd.f32 %v11581_v54, %v6474_v7 }
 0x4e2   :  { %13414 = vst [vmem:[#allocation19_spill] sm:$0xff] %v11583_v6  ;;  %v6476_v59 = vadd.f32 %v11583_v6, %v6475_v23 }
 0x4e4   :  { %v5223_v24 = vpop.f32.mrb[104].mxu1 }
 0x4e5   :  { %v6379_v41 = vpop.f32.mrb[104].mxu0  ;;  %v5225_v14 = vpop.f32.mrb[105].mxu1 }
 0x4e6   :  { %v11587_v47 = vadd.f32 %v6379_v41, %v5223_v24  ;;  %v6381_v57 = vpop.f32.mrb[105].mxu0  ;;  %v5226_v36 = vpop.f32.mrb[106].mxu1 }
 0x4e7   :  { %v6382_v38 = vpop.f32.mrb[106].mxu0  ;;  %v5228_v43 = vpop.f32.mrb[107].mxu1 }
 0x4e8   :  { %13415 = vst [vmem:[#allocation20_spill] sm:$0xff] %v11587_v47  ;;  %v11590_v11 = vadd.f32 %v6382_v38, %v5226_v36  ;;  %v6384_v61 = vpop.f32.mrb[107].mxu0  ;;  %v6477_v49 = vadd.f32 %v11587_v47, %v6476_v59 }
 0x4ea   :  { %13416 = vst [vmem:[#allocation21_spill] sm:$0xff] %v11590_v11  ;;  %v6478_v7 = vadd.f32 %v11590_v11, %v6477_v49 }
 0x4ec   :  { %v5231_v19 = vpop.f32.mrb[108].mxu1 }
 0x4ed   :  { %v6387_v5 = vpop.f32.mrb[108].mxu0  ;;  %v5233_v33 = vpop.f32.mrb[109].mxu1 }
 0x4ee   :  { %v11594_v54 = vadd.f32 %v6387_v5, %v5231_v19  ;;  %v6389_v24 = vpop.f32.mrb[109].mxu0  ;;  %v5234_v41 = vpop.f32.mrb[110].mxu1 }
 0x4ef   :  { %v6390_v14 = vpop.f32.mrb[110].mxu0  ;;  %v5236_v57 = vpop.f32.mrb[111].mxu1 }
 0x4f0   :  { %v6479_v43 = vadd.f32 %v11594_v54, %v6478_v7  ;;  %v8434_v16 = vadd.f32 %v6390_v14, %v5234_v41  ;;  %v6392_v23 = vpop.f32.mrb[111].mxu0 }
 0x4f2   :  { %v6480_v36 = vadd.f32 %v8434_v16, %v6479_v43 }
 0x4f4   :  { %v5239_v38 = vpop.f32.mrb[112].mxu1 }
 0x4f5   :  { %v6395_v61 = vpop.f32.mrb[112].mxu0  ;;  %v5241_v6 = vpop.f32.mrb[113].mxu1 }
 0x4f6   :  { %v8435_v59 = vadd.f32 %v6395_v61, %v5239_v38  ;;  %v6397_v47 = vpop.f32.mrb[113].mxu0  ;;  %v5242_v28 = vpop.f32.mrb[114].mxu1 }
 0x4f7   :  { %v6398_v33 = vpop.f32.mrb[114].mxu0  ;;  %v5244_v34 = vpop.f32.mrb[115].mxu1 }
 0x4f8   :  { %v6481_v49 = vadd.f32 %v8435_v59, %v6480_v36  ;;  %v8436_v19 = vadd.f32 %v6398_v33, %v5242_v28  ;;  %v6400_v5 = vpop.f32.mrb[115].mxu0 }
 0x4fa   :  { %v6482_v24 = vadd.f32 %v8436_v19, %v6481_v49 }
 0x4fc   :  { %v5247_v11 = vpop.f32.mrb[116].mxu1 }
 0x4fd   :  { %v6403_v60 = vpop.f32.mrb[116].mxu0  ;;  %v5249_v57 = vpop.f32.mrb[117].mxu1 }
 0x4fe   :  { %v8437_v45 = vadd.f32 %v6403_v60, %v5247_v11  ;;  %v6405_v7 = vpop.f32.mrb[117].mxu0  ;;  %v5250_v41 = vpop.f32.mrb[118].mxu1 }
 0x4ff   :  { %v6406_v14 = vpop.f32.mrb[118].mxu0  ;;  %v5252_v43 = vpop.f32.mrb[119].mxu1 }
 0x500   :  { %v6483_v23 = vadd.f32 %v8437_v45, %v6482_v24  ;;  %v8438_v29 = vadd.f32 %v6406_v14, %v5250_v41  ;;  %v6408_v6 = vpop.f32.mrb[119].mxu0 }
 0x502   :  { %v6484_v38 = vadd.f32 %v8438_v29, %v6483_v23 }
 0x504   :  { %v5255_v47 = vpop.f32.mrb[120].mxu1 }
 0x505   :  { %v6411_v61 = vpop.f32.mrb[120].mxu0  ;;  %v5257_v18 = vpop.f32.mrb[121].mxu1 }
 0x506   :  { %v8439_v34 = vadd.f32 %v6411_v61, %v5255_v47  ;;  %v6413_v36 = vpop.f32.mrb[121].mxu0  ;;  %v5258_v28 = vpop.f32.mrb[122].mxu1 }
 0x507   :  { %v6414_v33 = vpop.f32.mrb[122].mxu0  ;;  %v5260_v49 = vpop.f32.mrb[123].mxu1 }
 0x508   :  { %v6485_v5 = vadd.f32 %v8439_v34, %v6484_v38  ;;  %v8440_v63 = vadd.f32 %v6414_v33, %v5258_v28  ;;  %v6416_v57 = vpop.f32.mrb[123].mxu0 }
 0x50a   :  { %v6486_v60 = vadd.f32 %v8440_v63, %v6485_v5 }
 0x50c   :  { %v5263_v11 = vpop.f32.mrb[124].mxu1 }
 0x50d   :  { %v6419_v7 = vpop.f32.mrb[124].mxu0  ;;  %v5265_v51 = vpop.f32.mrb[125].mxu1 }
 0x50e   :  { %v8441_v43 = vadd.f32 %v6419_v7, %v5263_v11  ;;  %v6421_v24 = vpop.f32.mrb[125].mxu0  ;;  %v5266_v41 = vpop.f32.mrb[126].mxu1 }
 0x50f   :  { %v6422_v14 = vpop.f32.mrb[126].mxu0  ;;  %v5268_v23 = vpop.f32.mrb[127].mxu1 }
 0x510   :  { %v6487_v6 = vadd.f32 %v8441_v43, %v6486_v60  ;;  %v8442_v37 = vadd.f32 %v6422_v14, %v5266_v41  ;;  %v6424_v18 = vpop.f32.mrb[127].mxu0 }
 0x512   :  { %v6488_v47 = vadd.f32 %v8442_v37, %v6487_v6 }
 0x514   :  { %v6489_v61 = vrot.slane %v6488_v47, 4 }
 0x516   :  { %v6490_v36 = vadd.f32 %v6489_v61, %v6488_v47 }
 0x518   :  { %v6491_v25 = vrot.slane %v6490_v36, 2 }
 0x51a   :  { %v6492_v49 = vadd.f32 %v6491_v25, %v6490_v36 }
 0x51c   :  { %v6493_v38 = vrot.slane %v6492_v49, 1 }
 0x51e   :  { %v6494_v28 = vadd.f32 %v6493_v38, %v6492_v49 }
 0x520   :  { %v11597_v33 = vmul.f32 0.001953125, %v6494_v28 }
 0x522   :  { %v11601_v51 = vsub.f32 %v11594_v54, %v11597_v33  ;;  %v11604_v5 = vsub.f32 %v8434_v16, %v11597_v33  ;;  %v11607_v57 = vsub.f32 %v8435_v59, %v11597_v33  ;;  %v11610_v60 = vsub.f32 %v8436_v19, %v11597_v33 }
 0x523   :  { %v11613_v11 = vsub.f32 %v8437_v45, %v11597_v33  ;;  %v11616_v25 = vsub.f32 %v8438_v29, %v11597_v33  ;;  %v11619_v7 = vsub.f32 %v8439_v34, %v11597_v33  ;;  %v11622_v54 = vsub.f32 %v8440_v63, %v11597_v33 }
 0x524   :  { %v11625_v16 = vsub.f32 %v8441_v43, %v11597_v33  ;;  %v11628_v59 = vsub.f32 %v8442_v37, %v11597_v33  ;;  %v11632_v19 = vsub.f32 %v11396_v50, %v11597_v33  ;;  %v11636_v29 = vsub.f32 %v11398_v58, %v11597_v33 }
 0x525   :  { %v11640_v45 = vsub.f32 %v11412_v4, %v11597_v33  ;;  %v11648_v37 = vsub.f32 %v11414_v12, %v11597_v33  ;;  %v11652_v50 = vsub.f32 %v11428_v22, %v11597_v33  ;;  %v11658_v4 = vsub.f32 %v11430_v30, %v11597_v33 }
 0x526   :  { %v6560_v63 = vmul.f32 %v11632_v19, %v11632_v19  ;;  %v6561_v34 = vmul.f32 %v11636_v29, %v11636_v29  ;;  %v11664_v12 = vsub.f32 %v11444_v40, %v11597_v33  ;;  %v11670_v23 = vsub.f32 %v11446_v48, %v11597_v33 }
 0x527   :  { %v6562_v58 = vmul.f32 %v11640_v45, %v11640_v45  ;;  %v6563_v24 = vmul.f32 %v11648_v37, %v11648_v37  ;;  %v6564_v22 = vmul.f32 %v11652_v50, %v11652_v50  ;;  %v6565_v30 = vmul.f32 %v11658_v4, %v11658_v4 }
 0x528   :  { %v6624_v43 = vadd.f32 %v6561_v34, %v6560_v63  ;;  %v11676_v18 = vsub.f32 %v11448_v55, %v11597_v33  ;;  %v6566_v40 = vmul.f32 %v11664_v12, %v11664_v12  ;;  %v11682_v61 = vsub.f32 %v11450_v62, %v11597_v33 }
 0x529   :  { %v6567_v48 = vmul.f32 %v11670_v23, %v11670_v23  ;;  %v11688_v49 = vsub.f32 %v11452_v0, %v11597_v33  ;;  %v11694_v28 = vsub.f32 %v11454_v9, %v11597_v33  ;;  %v11700_v34 = vsub.f32 %v11456_v15, %v11597_v33 }
 0x52a   :  { %v6625_v41 = vadd.f32 %v6624_v43, %v6562_v58  ;;  %v6568_v55 = vmul.f32 %v11676_v18, %v11676_v18  ;;  %v6569_v62 = vmul.f32 %v11682_v61, %v11682_v61  ;;  %v11706_v43 = vsub.f32 %v11458_v20, %v11597_v33 }
 0x52b   :  { %v6570_v0 = vmul.f32 %v11688_v49, %v11688_v49  ;;  %v6571_v9 = vmul.f32 %v11694_v28, %v11694_v28  ;;  %v6572_v15 = vmul.f32 %v11700_v34, %v11700_v34 }
 0x52c   :  { %v6626_v14 = vadd.f32 %v6625_v41, %v6563_v24  ;;  %v11712_v41 = vsub.f32 %v11460_v26, %v11597_v33  ;;  %v6573_v20 = vmul.f32 %v11706_v43, %v11706_v43 }
 0x52e   :  { %v6627_v6 = vadd.f32 %v6626_v14, %v6564_v22  ;;  %v11718_v14 = vsub.f32 %v11462_v32, %v11597_v33  ;;  %v6574_v26 = vmul.f32 %v11712_v41, %v11712_v41 }
 0x530   :  { %v6628_v47 = vadd.f32 %v6627_v6, %v6565_v30  ;;  %v11724_v6 = vsub.f32 %v11467_v39, %v11597_v33  ;;  %v6575_v32 = vmul.f32 %v11718_v14, %v11718_v14 }
 0x532   :  { %v6629_v36 = vadd.f32 %v6628_v47, %v6566_v40  ;;  %v11730_v47 = vsub.f32 %v11470_v46, %v11597_v33  ;;  %v6576_v39 = vmul.f32 %v11724_v6, %v11724_v6 }
 0x534   :  { %v6630_v38 = vadd.f32 %v6629_v36, %v6567_v48  ;;  %v11736_v36 = vsub.f32 %v11474_v56, %v11597_v33  ;;  %v6577_v46 = vmul.f32 %v11730_v47, %v11730_v47 }
 0x536   :  { %v6631_v63 = vadd.f32 %v6630_v38, %v6568_v55  ;;  %v11742_v38 = vsub.f32 %v11477_v1, %v11597_v33  ;;  %v6578_v56 = vmul.f32 %v11736_v36, %v11736_v36 }
 0x538   :  { %v6632_v58 = vadd.f32 %v6631_v63, %v6569_v62  ;;  %v11748_v63 = vsub.f32 %v11481_v10, %v11597_v33  ;;  %v6579_v1 = vmul.f32 %v11742_v38, %v11742_v38 }
 0x53a   :  { %v6633_v24 = vadd.f32 %v6632_v58, %v6570_v0  ;;  %v11754_v58 = vsub.f32 %v11483_v17, %v11597_v33  ;;  %v6580_v10 = vmul.f32 %v11748_v63, %v11748_v63 }
 0x53c   :  { %v6634_v22 = vadd.f32 %v6633_v24, %v6571_v9  ;;  %v11760_v24 = vsub.f32 %v11487_v27, %v11597_v33  ;;  %v6581_v17 = vmul.f32 %v11754_v58, %v11754_v58 }
 0x53e   :  { %v6635_v30 = vadd.f32 %v6634_v22, %v6572_v15  ;;  %v11766_v22 = vsub.f32 %v11490_v35, %v11597_v33  ;;  %v6582_v27 = vmul.f32 %v11760_v24, %v11760_v24 }
 0x540   :  { %v6636_v40 = vadd.f32 %v6635_v30, %v6573_v20  ;;  %v11772_v30 = vsub.f32 %v11494_v44, %v11597_v33  ;;  %v6583_v35 = vmul.f32 %v11766_v22, %v11766_v22 }
 0x542   :  { %v6637_v48 = vadd.f32 %v6636_v40, %v6574_v26  ;;  %v11778_v40 = vsub.f32 %v11497_v53, %v11597_v33  ;;  %v6584_v44 = vmul.f32 %v11772_v30, %v11772_v30 }
 0x544   :  { %v6638_v55 = vadd.f32 %v6637_v48, %v6575_v32  ;;  %v11784_v48 = vsub.f32 %v11501_v2, %v11597_v33  ;;  %v6585_v53 = vmul.f32 %v11778_v40, %v11778_v40 }
 0x546   :  { %v6639_v62 = vadd.f32 %v6638_v55, %v6576_v39  ;;  %v11790_v55 = vsub.f32 %v11503_v8, %v11597_v33  ;;  %v6586_v2 = vmul.f32 %v11784_v48, %v11784_v48 }
 0x548   :  { %v6640_v0 = vadd.f32 %v6639_v62, %v6577_v46  ;;  %v11796_v62 = vsub.f32 %v11507_v21, %v11597_v33  ;;  %v6587_v8 = vmul.f32 %v11790_v55, %v11790_v55 }
 0x54a   :  { %v6641_v9 = vadd.f32 %v6640_v0, %v6578_v56  ;;  %v11802_v0 = vsub.f32 %v11510_v31, %v11597_v33  ;;  %v6588_v21 = vmul.f32 %v11796_v62, %v11796_v62 }
 0x54c   :  { %v6642_v15 = vadd.f32 %v6641_v9, %v6579_v1  ;;  %v11808_v9 = vsub.f32 %v11514_v42, %v11597_v33  ;;  %v6589_v31 = vmul.f32 %v11802_v0, %v11802_v0 }
 0x54e   :  { %v6643_v20 = vadd.f32 %v6642_v15, %v6580_v10  ;;  %v11814_v15 = vsub.f32 %v11517_v52, %v11597_v33  ;;  %v6590_v42 = vmul.f32 %v11808_v9, %v11808_v9 }
 0x550   :  { %v6644_v26 = vadd.f32 %v6643_v20, %v6581_v17  ;;  %v11820_v20 = vsub.f32 %v11521_v3, %v11597_v33  ;;  %v6591_v52 = vmul.f32 %v11814_v15, %v11814_v15 }
 0x552   :  { %v6645_v32 = vadd.f32 %v6644_v26, %v6582_v27  ;;  %13417 = vst [vmem:[#allocation22_spill] sm:$0xff] %v11820_v20  ;;  %v11826_v26 = vsub.f32 %v11523_v13, %v11597_v33  ;;  %v6592_v3 = vmul.f32 %v11820_v20, %v11820_v20 }
 0x554   :  { %v6646_v39 = vadd.f32 %v6645_v32, %v6583_v35  ;;  %13418 = vst [vmem:[#allocation23_spill] sm:$0xff] %v11826_v26  ;;  %v13419_v32 = vld [vmem:[#allocation2_spill] sm:$0xff]  ;;  %v6593_v13 = vmul.f32 %v11826_v26, %v11826_v26 }
 0x556   :  { %v6647_v46 = vadd.f32 %v6646_v39, %v6584_v44  ;;  %v11832_v44 = vsub.f32 %v13419_v32, %v11597_v33 }
 0x558   :  { %v6648_v56 = vadd.f32 %v6647_v46, %v6585_v53  ;;  %13420 = vst [vmem:[#allocation2_spill] sm:$0xff] %v11832_v44  ;;  %v13421_v53 = vld [vmem:[#allocation3_spill] sm:$0xff] }
 0x559   :  { %v11838_v46 = vsub.f32 %v13421_v53, %v11597_v33 }
 0x55a   :  { %v6649_v1 = vadd.f32 %v6648_v56, %v6586_v2  ;;  %v13423_v56 = vld [vmem:[#allocation4_spill] sm:$0xff] }
 0x55b   :  { %13422 = vst [vmem:[#allocation3_spill] sm:$0xff] %v11838_v46 }
 0x55c   :  { %v6650_v10 = vadd.f32 %v6649_v1, %v6587_v8  ;;  %v11844_v8 = vsub.f32 %v13423_v56, %v11597_v33  ;;  %v6594_v1 = vmul.f32 %v11832_v44, %v11832_v44 }
 0x55e   :  { %v6651_v17 = vadd.f32 %v6650_v10, %v6588_v21  ;;  %13424 = vst [vmem:[#allocation4_spill] sm:$0xff] %v11844_v8  ;;  %v13425_v10 = vld [vmem:[#allocation5_spill] sm:$0xff] }
 0x560   :  { %v6652_v27 = vadd.f32 %v6651_v17, %v6589_v31  ;;  %v11850_v31 = vsub.f32 %v13425_v10, %v11597_v33  ;;  %v6595_v17 = vmul.f32 %v11838_v46, %v11838_v46  ;;  %v13433_v10 = vld [vmem:[#allocation9_spill] sm:$0xff] }
 0x562   :  { %v6653_v35 = vadd.f32 %v6652_v27, %v6590_v42  ;;  %13426 = vst [vmem:[#allocation5_spill] sm:$0xff] %v11850_v31  ;;  %v13427_v27 = vld [vmem:[#allocation6_spill] sm:$0xff]  ;;  %v6597_v53 = vmul.f32 %v11850_v31, %v11850_v31 }
 0x564   :  { %v6654_v39 = vadd.f32 %v6653_v35, %v6591_v52  ;;  %v11856_v52 = vsub.f32 %v13427_v27, %v11597_v33  ;;  %v6596_v35 = vmul.f32 %v11844_v8, %v11844_v8  ;;  %v11874_v27 = vsub.f32 %v13433_v10, %v11597_v33  ;;  %v13439_v10 = vld [vmem:[#allocation12_spill] sm:$0xff] }
 0x566   :  { %v6655_v2 = vadd.f32 %v6654_v39, %v6592_v3  ;;  %13428 = vst [vmem:[#allocation6_spill] sm:$0xff] %v11856_v52  ;;  %v13429_v3 = vld [vmem:[#allocation7_spill] sm:$0xff]  ;;  %13434 = vst [vmem:[#allocation9_spill] sm:$0xff] %v11874_v27 }
 0x567   :  { %v11862_v39 = vsub.f32 %v13429_v3, %v11597_v33  ;;  %v13435_v3 = vld [vmem:[#allocation10_spill] sm:$0xff] }
 0x568   :  { %v6656_v21 = vadd.f32 %v6655_v2, %v6593_v13  ;;  %v13431_v2 = vld [vmem:[#allocation8_spill] sm:$0xff]  ;;  %v11880_v31 = vsub.f32 %v13435_v3, %v11597_v33  ;;  %v13441_v3 = vld [vmem:[#allocation13_spill] sm:$0xff] }
 0x569   :  { %13430 = vst [vmem:[#allocation7_spill] sm:$0xff] %v11862_v39  ;;  %v11868_v56 = vsub.f32 %v13431_v2, %v11597_v33  ;;  %v13437_v2 = vld [vmem:[#allocation11_spill] sm:$0xff] }
 0x56a   :  { %v6657_v42 = vadd.f32 %v6656_v21, %v6594_v1  ;;  %v6598_v1 = vmul.f32 %v11856_v52, %v11856_v52  ;;  %13436 = vst [vmem:[#allocation10_spill] sm:$0xff] %v11880_v31  ;;  %v11886_v52 = vsub.f32 %v13437_v2, %v11597_v33  ;;  %v13443_v2 = vld [vmem:[#allocation14_spill] sm:$0xff] }
 0x56b   :  { %13432 = vst [vmem:[#allocation8_spill] sm:$0xff] %v11868_v56 }
 0x56c   :  { %v6658_v32 = vadd.f32 %v6657_v42, %v6595_v17  ;;  %v6599_v17 = vmul.f32 %v11862_v39, %v11862_v39  ;;  %13438 = vst [vmem:[#allocation11_spill] sm:$0xff] %v11886_v52  ;;  %v11892_v39 = vsub.f32 %v13439_v10, %v11597_v33  ;;  %v13445_v10 = vld [vmem:[#allocation15_spill] sm:$0xff] }
 0x56e   :  { %v6659_v13 = vadd.f32 %v6658_v32, %v6596_v35  ;;  %v6600_v35 = vmul.f32 %v11868_v56, %v11868_v56  ;;  %13440 = vst [vmem:[#allocation12_spill] sm:$0xff] %v11892_v39  ;;  %v11898_v56 = vsub.f32 %v13441_v3, %v11597_v33  ;;  %v13447_v3 = vld [vmem:[#allocation16_spill] sm:$0xff] }
 0x570   :  { %v6660_v21 = vadd.f32 %v6659_v13, %v6597_v53  ;;  %v6601_v53 = vmul.f32 %v11874_v27, %v11874_v27  ;;  %13442 = vst [vmem:[#allocation13_spill] sm:$0xff] %v11898_v56  ;;  %v11904_v27 = vsub.f32 %v13443_v2, %v11597_v33  ;;  %v13449_v2 = vld [vmem:[#allocation17_spill] sm:$0xff] }
 0x572   :  { %v6661_v42 = vadd.f32 %v6660_v21, %v6598_v1  ;;  %v6602_v1 = vmul.f32 %v11880_v31, %v11880_v31  ;;  %13444 = vst [vmem:[#allocation14_spill] sm:$0xff] %v11904_v27  ;;  %v11910_v31 = vsub.f32 %v13445_v10, %v11597_v33  ;;  %v13451_v10 = vld [vmem:[#allocation18_spill] sm:$0xff] }
 0x574   :  { %v6662_v32 = vadd.f32 %v6661_v42, %v6599_v17  ;;  %v6603_v17 = vmul.f32 %v11886_v52, %v11886_v52  ;;  %13446 = vst [vmem:[#allocation15_spill] sm:$0xff] %v11910_v31  ;;  %v11916_v52 = vsub.f32 %v13447_v3, %v11597_v33  ;;  %v13452_v3 = vld [vmem:[#allocation19_spill] sm:$0xff] }
 0x575   :  { %v6547_v8 = vsub.f32 %v13452_v3, %v11597_v33  ;;  %v6614_v3 = vmul.f32 %v11601_v51, %v11601_v51 }
 0x576   :  { %v6663_v13 = vadd.f32 %v6662_v32, %v6600_v35  ;;  %v6604_v35 = vmul.f32 %v11892_v39, %v11892_v39  ;;  %13448 = vst [vmem:[#allocation16_spill] sm:$0xff] %v11916_v52  ;;  %v11922_v39 = vsub.f32 %v13449_v2, %v11597_v33  ;;  %v13453_v2 = vld [vmem:[#allocation20_spill] sm:$0xff] }
 0x578   :  { %v6664_v21 = vadd.f32 %v6663_v13, %v6601_v53  ;;  %v6605_v53 = vmul.f32 %v11898_v56, %v11898_v56  ;;  %13450 = vst [vmem:[#allocation17_spill] sm:$0xff] %v11922_v39  ;;  %v6546_v56 = vsub.f32 %v13451_v10, %v11597_v33  ;;  %v6611_v10 = vmul.f32 %v6547_v8, %v6547_v8 }
 0x57a   :  { %v6665_v42 = vadd.f32 %v6664_v21, %v6602_v1  ;;  %v6606_v1 = vmul.f32 %v11904_v27, %v11904_v27  ;;  %v6548_v27 = vsub.f32 %v13453_v2, %v11597_v33  ;;  %v6610_v46 = vmul.f32 %v6546_v56, %v6546_v56 }
 0x57b   :  { %v6620_v2 = vmul.f32 %v11619_v7, %v11619_v7 }
 0x57c   :  { %v6666_v32 = vadd.f32 %v6665_v42, %v6603_v17  ;;  %v6607_v17 = vmul.f32 %v11910_v31, %v11910_v31  ;;  %v6612_v26 = vmul.f32 %v6548_v27, %v6548_v27 }
 0x57e   :  { %v6667_v13 = vadd.f32 %v6666_v32, %v6604_v35  ;;  %v6608_v35 = vmul.f32 %v11916_v52, %v11916_v52 }
 0x580   :  { %v6668_v21 = vadd.f32 %v6667_v13, %v6605_v53  ;;  %v6609_v53 = vmul.f32 %v11922_v39, %v11922_v39 }
 0x582   :  { %v6669_v42 = vadd.f32 %v6668_v21, %v6606_v1  ;;  %v13454_v1 = vld [vmem:[#allocation21_spill] sm:$0xff] }
 0x583   :  { %v6549_v21 = vsub.f32 %v13454_v1, %v11597_v33  ;;  %v6617_v33 = vmul.f32 %v11610_v60, %v11610_v60  ;;  %v6621_v1 = vmul.f32 %v11622_v54, %v11622_v54 }
 0x584   :  { %v6670_v32 = vadd.f32 %v6669_v42, %v6607_v17 }
 0x585   :  { %v6613_v17 = vmul.f32 %v6549_v21, %v6549_v21 }
 0x586   :  { %v6671_v13 = vadd.f32 %v6670_v32, %v6608_v35  ;;  %v6615_v35 = vmul.f32 %v11604_v5, %v11604_v5 }
 0x588   :  { %v6672_v31 = vadd.f32 %v6671_v13, %v6609_v53  ;;  %v6616_v53 = vmul.f32 %v11607_v57, %v11607_v57 }
 0x58a   :  { %v6673_v44 = vadd.f32 %v6672_v31, %v6610_v46  ;;  %v6619_v31 = vmul.f32 %v11616_v25, %v11616_v25 }
 0x58c   :  { %v6674_v52 = vadd.f32 %v6673_v44, %v6611_v10  ;;  %v6618_v44 = vmul.f32 %v11613_v11, %v11613_v11 }
 0x58e   :  { %v6675_v42 = vadd.f32 %v6674_v52, %v6612_v26 }
 0x590   :  { %v6676_v20 = vadd.f32 %v6675_v42, %v6613_v17  ;;  %v6622_v17 = vmul.f32 %v11625_v16, %v11625_v16 }
 0x592   :  { %v6677_v32 = vadd.f32 %v6676_v20, %v6614_v3  ;;  %v6623_v3 = vmul.f32 %v11628_v59, %v11628_v59 }
 0x594   :  { %v6678_v13 = vadd.f32 %v6677_v32, %v6615_v35 }
 0x596   :  { %v6679_v46 = vadd.f32 %v6678_v13, %v6616_v53 }
 0x598   :  { %v6680_v26 = vadd.f32 %v6679_v46, %v6617_v33 }
 0x59a   :  { %v6681_v52 = vadd.f32 %v6680_v26, %v6618_v44 }
 0x59c   :  { %v6682_v20 = vadd.f32 %v6681_v52, %v6619_v31 }
 0x59e   :  { %v6683_v10 = vadd.f32 %v6682_v20, %v6620_v2 }
 0x5a0   :  { %v6684_v42 = vadd.f32 %v6683_v10, %v6621_v1 }
 0x5a2   :  { %v6685_v35 = vadd.f32 %v6684_v42, %v6622_v17 }
 0x5a4   :  { %v6686_v32 = vadd.f32 %v6685_v35, %v6623_v3  ;;  %v13464_v35 = vld [vmem:[#allocation22_spill] sm:$0xff] }
 0x5a6   :  { %v6687_v53 = vrot.slane %v6686_v32, 4 }
 0x5a8   :  { %v6688_v13 = vadd.f32 %v6687_v53, %v6686_v32  ;;  %v13465_v32 = vld [vmem:[#allocation23_spill] sm:$0xff]  ;;  %v13466_v53 = vld [vmem:[#allocation2_spill] sm:$0xff] }
 0x5aa   :  { %v6689_v33 = vrot.slane %v6688_v13, 2 }
 0x5ac   :  { %v6690_v46 = vadd.f32 %v6689_v33, %v6688_v13  ;;  %v13467_v13 = vld [vmem:[#allocation3_spill] sm:$0xff]  ;;  %v13468_v33 = vld [vmem:[#allocation4_spill] sm:$0xff] }
 0x5ae   :  { %v6691_v44 = vrot.slane %v6690_v46, 1 }
 0x5b0   :  { %v6692_v26 = vadd.f32 %v6691_v44, %v6690_v46  ;;  %v13469_v46 = vld [vmem:[#allocation5_spill] sm:$0xff]  ;;  %v13470_v44 = vld [vmem:[#allocation6_spill] sm:$0xff] }
 0x5b2   :  { %v6693_v31 = vmul.f32 0.001953125, %v6692_v26  ;;  %v13471_v26 = vld [vmem:[#allocation7_spill] sm:$0xff] }
 0x5b4   :  { %v6694_v52 = vadd.f32 1e-05, %v6693_v31 }
 0x5b6   :  { %9340 = vrsqrt.f32 %v6694_v52  ;;  %v13472_v52 = vld [vmem:[#allocation8_spill] sm:$0xff] }
 0x5c0   :  { %v11958_v39 = vpop.eup %9340 }
 0x5c1   :  { %v11961_v2 = vmul.f32 %v11958_v39, %v6546_v56  ;;  %v11964_v20 = vmul.f32 %v11958_v39, %v6547_v8  ;;  %v11967_v1 = vmul.f32 %v11958_v39, %v6548_v27  ;;  %v11970_v10 = vmul.f32 %v11958_v39, %v6549_v21 }
 0x5c2   :  { %v11974_v17 = vmul.f32 %v11958_v39, %v11601_v51  ;;  %v11978_v42 = vmul.f32 %v11958_v39, %v11604_v5  ;;  %v11982_v56 = vmul.f32 %v11958_v39, %v11607_v57  ;;  %v11986_v8 = vmul.f32 %v11958_v39, %v11610_v60 }
 0x5c3   :  { %v11990_v27 = vmul.f32 %v11958_v39, %v11613_v11  ;;  %v11994_v51 = vmul.f32 %v11958_v39, %v11616_v25  ;;  %v11998_v5 = vmul.f32 %v11958_v39, %v11619_v7  ;;  %v12002_v57 = vmul.f32 %v11958_v39, %v11622_v54 }
 0x5c4   :  { %13455 = vst [vmem:[#allocation18_spill] sm:$0xff] %v11978_v42  ;;  %13456 = vst [vmem:[#allocation19_spill] sm:$0xff] %v11982_v56  ;;  %v12006_v60 = vmul.f32 %v11958_v39, %v11625_v16  ;;  %v12010_v11 = vmul.f32 %v11958_v39, %v11628_v59  ;;  %v6696_v25 = vmul.f32 %v11958_v39, %v11632_v19  ;;  %v13480_v56 = vld [vmem:[#allocation16_spill] sm:$0xff]  ;;  %v13481_v42 = vld [vmem:[#allocation17_spill] sm:$0xff] }
 0x5c5   :  { %13457 = vst [vmem:[#allocation20_spill] sm:$0xff] %v11986_v8  ;;  %13458 = vst [vmem:[#allocation21_spill] sm:$0xff] %v11990_v27  ;;  %v6697_v21 = vmul.f32 %v11958_v39, %v11636_v29  ;;  %v6698_v7 = vmul.f32 %v11958_v39, %v11640_v45  ;;  %v6699_v54 = vmul.f32 %v11958_v39, %v11648_v37  ;;  %v13479_v27 = vld [vmem:[#allocation15_spill] sm:$0xff] }
 0x5c6   :  { %13459 = vst [vmem:[#allocation24_spill] sm:$0xff] %v11994_v51  ;;  %13460 = vst [vmem:[#allocation25_spill] sm:$0xff] %v11998_v5  ;;  %v6700_v16 = vmul.f32 %v11958_v39, %v11652_v50  ;;  %v6701_v3 = vmul.f32 %v11958_v39, %v11658_v4  ;;  %v6702_v59 = vmul.f32 %v11958_v39, %v11664_v12  ;;  %v13478_v5 = vld [vmem:[#allocation14_spill] sm:$0xff] }
 0x5c7   :  { %13461 = vst [vmem:[#allocation26_spill] sm:$0xff] %v12002_v57  ;;  %13462 = vst [vmem:[#allocation27_spill] sm:$0xff] %v12006_v60  ;;  %v6703_v19 = vmul.f32 %v11958_v39, %v11670_v23  ;;  %v6704_v29 = vmul.f32 %v11958_v39, %v11676_v18  ;;  %v6705_v45 = vmul.f32 %v11958_v39, %v11682_v61  ;;  %v13476_v60 = vld [vmem:[#allocation12_spill] sm:$0xff]  ;;  %v13477_v57 = vld [vmem:[#allocation13_spill] sm:$0xff] }
 0x5c8   :  { %13463 = vst [vmem:[#allocation28_spill] sm:$0xff] %v12010_v11  ;;  %v6706_v37 = vmul.f32 %v11958_v39, %v11688_v49  ;;  %v6707_v50 = vmul.f32 %v11958_v39, %v11694_v28  ;;  %v6708_v4 = vmul.f32 %v11958_v39, %v11700_v34  ;;  %v6709_v12 = vmul.f32 %v11958_v39, %v11706_v43  ;;  %v13475_v11 = vld [vmem:[#allocation11_spill] sm:$0xff] }
 0x5c9   :  { %v6710_v23 = vmul.f32 %v11958_v39, %v11712_v41  ;;  %v6711_v18 = vmul.f32 %v11958_v39, %v11718_v14  ;;  %v6712_v61 = vmul.f32 %v11958_v39, %v11724_v6  ;;  %v6713_v49 = vmul.f32 %v11958_v39, %v11730_v47 }
 0x5ca   :  { %v6714_v28 = vmul.f32 %v11958_v39, %v11736_v36  ;;  %v6715_v34 = vmul.f32 %v11958_v39, %v11742_v38  ;;  %v6716_v43 = vmul.f32 %v11958_v39, %v11748_v63  ;;  %v6717_v41 = vmul.f32 %v11958_v39, %v11754_v58 }
 0x5cb   :  { %v6718_v14 = vmul.f32 %v11958_v39, %v11760_v24  ;;  %v6719_v6 = vmul.f32 %v11958_v39, %v11766_v22  ;;  %v6720_v47 = vmul.f32 %v11958_v39, %v11772_v30  ;;  %v6721_v36 = vmul.f32 %v11958_v39, %v11778_v40 }
 0x5cc   :  { %v6722_v38 = vmul.f32 %v11958_v39, %v11784_v48  ;;  %v6723_v63 = vmul.f32 %v11958_v39, %v11790_v55  ;;  %v6724_v58 = vmul.f32 %v11958_v39, %v11796_v62  ;;  %v6725_v24 = vmul.f32 %v11958_v39, %v11802_v0 }
 0x5cd   :  { %v6726_v22 = vmul.f32 %v11958_v39, %v11808_v9  ;;  %v6727_v30 = vmul.f32 %v11958_v39, %v11814_v15  ;;  %v6728_v40 = vmul.f32 %v11958_v39, %v13464_v35  ;;  %v6729_v48 = vmul.f32 %v11958_v39, %v13465_v32  ;;  %v12097_v32 = vld [vmem:[%s13323_s2] ss:$0 sm:$0xff] }
 0x5ce   :  { %v6730_v55 = vmul.f32 %v11958_v39, %v13466_v53  ;;  %v6731_v62 = vmul.f32 %v11958_v39, %v13467_v13  ;;  %v6732_v0 = vmul.f32 %v11958_v39, %v13468_v33  ;;  %v6733_v9 = vmul.f32 %v11958_v39, %v13469_v46  ;;  %v13473_v53 = vld [vmem:[#allocation9_spill] sm:$0xff]  ;;  %v13474_v33 = vld [vmem:[#allocation10_spill] sm:$0xff] }
 0x5cf   :  { %v6734_v15 = vmul.f32 %v11958_v39, %v13470_v44  ;;  %v6735_v31 = vmul.f32 %v11958_v39, %v13471_v26  ;;  %v6736_v35 = vmul.f32 %v11958_v39, %v13472_v52  ;;  %v6737_v13 = vmul.f32 %v11958_v39, %v13473_v53 }
 0x5d0   :  { %v6738_v46 = vmul.f32 %v11958_v39, %v13474_v33  ;;  %v6739_v44 = vmul.f32 %v11958_v39, %v13475_v11  ;;  %v6740_v26 = vmul.f32 %v11958_v39, %v13476_v60  ;;  %v6741_v52 = vmul.f32 %v11958_v39, %v13477_v57 }
 0x5d1   :  { %v6742_v51 = vmul.f32 %v11958_v39, %v13478_v5  ;;  %v6743_v8 = vmul.f32 %v11958_v39, %v13479_v27  ;;  %v6744_v53 = vmul.f32 %v11958_v39, %v13480_v56  ;;  %v6745_v33 = vmul.f32 %v11958_v39, %v13481_v42 }
 0x5d2   :  { %v12118_v11 = vmul.f32 %v12097_v32, %v6696_v25  ;;  %v12121_v60 = vmul.f32 %v12097_v32, %v6697_v21  ;;  %v12124_v57 = vmul.f32 %v12097_v32, %v6698_v7  ;;  %v12127_v5 = vmul.f32 %v12097_v32, %v6699_v54 }
 0x5d3   :  { %v12130_v27 = vmul.f32 %v12097_v32, %v6700_v16  ;;  %v12133_v56 = vmul.f32 %v12097_v32, %v6701_v3  ;;  %v12136_v39 = vmul.f32 %v12097_v32, %v6702_v59  ;;  %v12139_v42 = vmul.f32 %v12097_v32, %v6703_v19 }
 0x5d4   :  { %v12142_v25 = vmul.f32 %v12097_v32, %v6704_v29  ;;  %v12145_v21 = vmul.f32 %v12097_v32, %v6705_v45  ;;  %v12148_v7 = vmul.f32 %v12097_v32, %v6706_v37  ;;  %v12151_v54 = vmul.f32 %v12097_v32, %v6707_v50 }
 0x5d5   :  { %v12154_v16 = vmul.f32 %v12097_v32, %v6708_v4  ;;  %v12157_v3 = vmul.f32 %v12097_v32, %v6709_v12  ;;  %v12160_v59 = vmul.f32 %v12097_v32, %v6710_v23  ;;  %v12163_v19 = vmul.f32 %v12097_v32, %v6711_v18 }
 0x5d6   :  { %v12166_v29 = vmul.f32 %v12097_v32, %v6712_v61  ;;  %v12169_v45 = vmul.f32 %v12097_v32, %v6713_v49  ;;  %v12172_v37 = vmul.f32 %v12097_v32, %v6714_v28  ;;  %v12175_v50 = vmul.f32 %v12097_v32, %v6715_v34 }
 0x5d7   :  { %v12178_v4 = vmul.f32 %v12097_v32, %v6716_v43  ;;  %v12181_v12 = vmul.f32 %v12097_v32, %v6717_v41  ;;  %v12184_v23 = vmul.f32 %v12097_v32, %v6718_v14  ;;  %v12187_v18 = vmul.f32 %v12097_v32, %v6719_v6 }
 0x5d8   :  { %v12190_v61 = vmul.f32 %v12097_v32, %v6720_v47  ;;  %v12193_v49 = vmul.f32 %v12097_v32, %v6721_v36  ;;  %v12196_v28 = vmul.f32 %v12097_v32, %v6722_v38  ;;  %v12199_v34 = vmul.f32 %v12097_v32, %v6723_v63 }
 0x5d9   :  { %v12202_v43 = vmul.f32 %v12097_v32, %v6724_v58  ;;  %v12205_v41 = vmul.f32 %v12097_v32, %v6725_v24  ;;  %v12208_v14 = vmul.f32 %v12097_v32, %v6726_v22  ;;  %v12211_v6 = vmul.f32 %v12097_v32, %v6727_v30 }
 0x5da   :  { %v12214_v47 = vmul.f32 %v12097_v32, %v6728_v40  ;;  %v12217_v36 = vmul.f32 %v12097_v32, %v6729_v48  ;;  %v12220_v38 = vmul.f32 %v12097_v32, %v6730_v55  ;;  %v12223_v63 = vmul.f32 %v12097_v32, %v6731_v62 }
 0x5db   :  { %v12226_v58 = vmul.f32 %v12097_v32, %v6732_v0  ;;  %v12229_v24 = vmul.f32 %v12097_v32, %v6733_v9  ;;  %v12232_v22 = vmul.f32 %v12097_v32, %v6734_v15  ;;  %v12235_v30 = vmul.f32 %v12097_v32, %v6735_v31 }
 0x5dc   :  { %v12238_v40 = vmul.f32 %v12097_v32, %v6736_v35  ;;  %v12241_v48 = vmul.f32 %v12097_v32, %v6737_v13  ;;  %v12244_v55 = vmul.f32 %v12097_v32, %v6738_v46  ;;  %v12247_v62 = vmul.f32 %v12097_v32, %v6739_v44 }
 0x5dd   :  { %v12250_v0 = vmul.f32 %v12097_v32, %v6740_v26  ;;  %v12253_v9 = vmul.f32 %v12097_v32, %v6741_v52  ;;  %v12256_v15 = vmul.f32 %v12097_v32, %v6742_v51  ;;  %v12259_v31 = vmul.f32 %v12097_v32, %v6743_v8  ;;  %v13486_v52 = vld [vmem:[#allocation18_spill] sm:$0xff] }
 0x5de   :  { %v12262_v35 = vmul.f32 %v12097_v32, %v6744_v53  ;;  %v12265_v13 = vmul.f32 %v12097_v32, %v6745_v33  ;;  %v12269_v46 = vmul.f32 %v12097_v32, %v11961_v2  ;;  %v12273_v44 = vmul.f32 %v12097_v32, %v11964_v20  ;;  %v12290_v2 = vld [vmem:[%s13324_s3] ss:$0 sm:$0xff]  ;;  %v13488_v53 = vld [vmem:[#allocation19_spill] sm:$0xff]  ;;  %v13490_v33 = vld [vmem:[#allocation20_spill] sm:$0xff] }
 0x5df   :  { %v12277_v51 = vmul.f32 %v12097_v32, %v11967_v1  ;;  %v12281_v8 = vmul.f32 %v12097_v32, %v11970_v10  ;;  %v12285_v26 = vmul.f32 %v12097_v32, %v11974_v17  ;;  %v12294_v20 = vmul.f32 %v12097_v32, %v13486_v52 }
 0x5e0   :  { %13482 = vst [vmem:[#allocation22_spill] sm:$0xff] %v12273_v44  ;;  %v12298_v1 = vmul.f32 %v12097_v32, %v13488_v53  ;;  %v12302_v10 = vmul.f32 %v12097_v32, %v13490_v33  ;;  %v13494_v44 = vld [vmem:[#allocation25_spill] sm:$0xff] }
 0x5e1   :  { %13483 = vst [vmem:[#allocation23_spill] sm:$0xff] %v12277_v51  ;;  %13484 = vst [vmem:[#allocation2_spill] sm:$0xff] %v12281_v8  ;;  %v13492_v8 = vld [vmem:[#allocation21_spill] sm:$0xff]  ;;  %v12314_v52 = vmul.f32 %v12097_v32, %v13494_v44  ;;  %v12334_v44 = vadd.f32 %v12290_v2, %v12121_v60  ;;  %v12354_v60 = vadd.f32 %v12290_v2, %v12136_v39 }
 0x5e2   :  { %13485 = vst [vmem:[#allocation3_spill] sm:$0xff] %v12285_v26  ;;  %13487 = vst [vmem:[#allocation4_spill] sm:$0xff] %v12294_v20  ;;  %v12306_v17 = vmul.f32 %v12097_v32, %v13492_v8  ;;  %v13493_v26 = vld [vmem:[#allocation24_spill] sm:$0xff]  ;;  %v13495_v20 = vld [vmem:[#allocation26_spill] sm:$0xff]  ;;  %v12374_v39 = vadd.f32 %v12290_v2, %v12151_v54  ;;  %v12394_v54 = vadd.f32 %v12290_v2, %v12166_v29 }
 0x5e3   :  { %13489 = vst [vmem:[#allocation5_spill] sm:$0xff] %v12298_v1  ;;  %13491 = vst [vmem:[#allocation6_spill] sm:$0xff] %v12302_v10  ;;  %v12310_v51 = vmul.f32 %v12097_v32, %v13493_v26  ;;  %v12318_v53 = vmul.f32 %v12097_v32, %v13495_v20  ;;  %v13496_v1 = vld [vmem:[#allocation27_spill] sm:$0xff]  ;;  %v13497_v10 = vld [vmem:[#allocation28_spill] sm:$0xff]  ;;  %v12330_v26 = vadd.f32 %v12290_v2, %v12118_v11  ;;  %vm6903_vm1 = vcmp.ge.f32.partialorder %v12334_v44, 0.0 }
 0x5e4   :  { %v12322_v33 = vmul.f32 %v12097_v32, %v13496_v1  ;;  %v12326_v8 = vmul.f32 %v12097_v32, %v13497_v10  ;;  %v12338_v20 = vadd.f32 %v12290_v2, %v12124_v57  ;;  %v12342_v1 = vadd.f32 %v12290_v2, %v12127_v5 }
 0x5e5   :  { %v12346_v32 = vadd.f32 %v12290_v2, %v12130_v27  ;;  %v12350_v11 = vadd.f32 %v12290_v2, %v12133_v56  ;;  %v12358_v57 = vadd.f32 %v12290_v2, %v12139_v42  ;;  %v12362_v5 = vadd.f32 %v12290_v2, %v12142_v25 }
 0x5e6   :  { %v12366_v27 = vadd.f32 %v12290_v2, %v12145_v21  ;;  %v12370_v56 = vadd.f32 %v12290_v2, %v12148_v7  ;;  %v12378_v42 = vadd.f32 %v12290_v2, %v12154_v16  ;;  %v12382_v25 = vadd.f32 %v12290_v2, %v12157_v3 }
 0x5e7   :  { %v12386_v21 = vadd.f32 %v12290_v2, %v12160_v59  ;;  %v12390_v7 = vadd.f32 %v12290_v2, %v12163_v19  ;;  %v12398_v16 = vadd.f32 %v12290_v2, %v12169_v45  ;;  %v12402_v3 = vadd.f32 %v12290_v2, %v12172_v37  ;;  %v13504_v10 = vld [vmem:[#allocation22_spill] sm:$0xff] }
 0x5e8   :  { %v12406_v59 = vadd.f32 %v12290_v2, %v12175_v50  ;;  %v12410_v19 = vadd.f32 %v12290_v2, %v12178_v4  ;;  %v12414_v29 = vadd.f32 %v12290_v2, %v12181_v12  ;;  %v12418_v45 = vadd.f32 %v12290_v2, %v12184_v23 }
 0x5e9   :  { %v12422_v37 = vadd.f32 %v12290_v2, %v12187_v18  ;;  %v12426_v50 = vadd.f32 %v12290_v2, %v12190_v61  ;;  %v12430_v4 = vadd.f32 %v12290_v2, %v12193_v49  ;;  %v12434_v12 = vadd.f32 %v12290_v2, %v12196_v28 }
 0x5ea   :  { %v12438_v23 = vadd.f32 %v12290_v2, %v12199_v34  ;;  %v12442_v18 = vadd.f32 %v12290_v2, %v12202_v43  ;;  %v12446_v61 = vadd.f32 %v12290_v2, %v12205_v41  ;;  %v12450_v49 = vadd.f32 %v12290_v2, %v12208_v14 }
 0x5eb   :  { %v12454_v28 = vadd.f32 %v12290_v2, %v12211_v6  ;;  %v12458_v34 = vadd.f32 %v12290_v2, %v12214_v47  ;;  %v12462_v43 = vadd.f32 %v12290_v2, %v12217_v36  ;;  %v12466_v41 = vadd.f32 %v12290_v2, %v12220_v38 }
 0x5ec   :  { %v12470_v14 = vadd.f32 %v12290_v2, %v12223_v63  ;;  %v12474_v6 = vadd.f32 %v12290_v2, %v12226_v58  ;;  %v12478_v47 = vadd.f32 %v12290_v2, %v12229_v24  ;;  %v12482_v36 = vadd.f32 %v12290_v2, %v12232_v22 }
 0x5ed   :  { %v12486_v38 = vadd.f32 %v12290_v2, %v12235_v30  ;;  %v12490_v63 = vadd.f32 %v12290_v2, %v12238_v40  ;;  %v12494_v58 = vadd.f32 %v12290_v2, %v12241_v48  ;;  %v12498_v24 = vadd.f32 %v12290_v2, %v12244_v55 }
 0x5ee   :  { %v12502_v22 = vadd.f32 %v12290_v2, %v12247_v62  ;;  %v12506_v30 = vadd.f32 %v12290_v2, %v12250_v0  ;;  %v12510_v40 = vadd.f32 %v12290_v2, %v12253_v9  ;;  %v12514_v48 = vadd.f32 %v12290_v2, %v12256_v15 }
 0x5ef   :  { %13498 = vst [vmem:[#allocation7_spill] sm:$0xff] %v12494_v58  ;;  %v12518_v55 = vadd.f32 %v12290_v2, %v12259_v31  ;;  %v12522_v62 = vadd.f32 %v12290_v2, %v12262_v35  ;;  %v12526_v0 = vadd.f32 %v12290_v2, %v12265_v13  ;;  %v12530_v9 = vadd.f32 %v12290_v2, %v12269_v46 }
 0x5f0   :  { %13499 = vst [vmem:[#allocation8_spill] sm:$0xff] %v12514_v48  ;;  %v12534_v15 = vadd.f32 %v12290_v2, %v13504_v10  ;;  %v13506_v48 = vld [vmem:[#allocation23_spill] sm:$0xff]  ;;  %vm6902_vm0 = vcmp.ge.f32.partialorder %v12330_v26, 0.0  ;;  %vm6904_vm2 = vcmp.ge.f32.partialorder %v12338_v20, 0.0  ;;  %vm6905_vm3 = vcmp.ge.f32.partialorder %v12342_v1, 0.0 }
 0x5f1   :  { %13500 = vst [vmem:[#allocation9_spill] sm:$0xff] %v12518_v55  ;;  %13501 = vst [vmem:[#allocation10_spill] sm:$0xff] %v12522_v62  ;;  %v12538_v31 = vadd.f32 %v12290_v2, %v13506_v48  ;;  %v13508_v55 = vld [vmem:[#allocation2_spill] sm:$0xff]  ;;  %v13510_v62 = vld [vmem:[#allocation3_spill] sm:$0xff]  ;;  %vm6906_vm4 = vcmp.ge.f32.partialorder %v12346_v32, 0.0  ;;  %vm6907_vm5 = vcmp.ge.f32.partialorder %v12350_v11, 0.0 }
 0x5f2   :  { %13502 = vst [vmem:[#allocation11_spill] sm:$0xff] %v12526_v0  ;;  %13503 = vst [vmem:[#allocation12_spill] sm:$0xff] %v12530_v9  ;;  %v12542_v35 = vadd.f32 %v12290_v2, %v13508_v55  ;;  %v12546_v13 = vadd.f32 %v12290_v2, %v13510_v62  ;;  %v13512_v0 = vld [vmem:[#allocation4_spill] sm:$0xff]  ;;  %v13514_v9 = vld [vmem:[#allocation5_spill] sm:$0xff]  ;;  %v12562_v55 = vadd.f32 %v12290_v2, %v12306_v17  ;;  %vm6908_vm6 = vcmp.ge.f32.partialorder %v12354_v60, 0.0 }
 0x5f3   :  { %13505 = vst [vmem:[#allocation13_spill] sm:$0xff] %v12534_v15  ;;  %13507 = vst [vmem:[#allocation14_spill] sm:$0xff] %v12538_v31  ;;  %v12550_v46 = vadd.f32 %v12290_v2, %v13512_v0  ;;  %v12554_v10 = vadd.f32 %v12290_v2, %v13514_v9  ;;  %v13516_v15 = vld [vmem:[#allocation6_spill] sm:$0xff]  ;;  %v12566_v62 = vadd.f32 %v12290_v2, %v12310_v51  ;;  %vm6909_vm7 = vcmp.ge.f32.partialorder %v12358_v57, 0.0 }
 0x5f4   :  { %13509 = vst [vmem:[#allocation15_spill] sm:$0xff] %v12542_v35  ;;  %13511 = vst [vmem:[#allocation16_spill] sm:$0xff] %v12546_v13  ;;  %v12558_v48 = vadd.f32 %v12290_v2, %v13516_v15  ;;  %v12570_v0 = vadd.f32 %v12290_v2, %v12314_v52  ;;  %v12574_v9 = vadd.f32 %v12290_v2, %v12318_v53  ;;  %vm6910_vm8 = vcmp.ge.f32.partialorder %v12362_v5, 0.0 }
 0x5f5   :  { %13513 = vst [vmem:[#allocation17_spill] sm:$0xff] %v12550_v46  ;;  %13515 = vst [vmem:[#allocation18_spill] sm:$0xff] %v12554_v10  ;;  %v12587_v51 = vadd.f32 %v12290_v2, %v12322_v33  ;;  %vm6911_vm9 = vcmp.ge.f32.partialorder %v12366_v27, 0.0  ;;  %v6966_v17 = vmul.f32 0.2, %v12330_v26  ;;  %v12595_v15 = vadd.f32 %v12290_v2, %v12326_v8 }
 0x5f6   :  { %13517 = vst [vmem:[#allocation19_spill] sm:$0xff] %v12558_v48  ;;  %13518 = vst [vmem:[#allocation20_spill] sm:$0xff] %v12562_v55  ;;  %v6967_v52 = vmul.f32 0.2, %v12334_v44  ;;  %v6968_v53 = vmul.f32 0.2, %v12338_v20 }
 0x5f7   :  { %13519 = vst [vmem:[#allocation21_spill] sm:$0xff] %v12566_v62  ;;  %13520 = vst [vmem:[#allocation24_spill] sm:$0xff] %v12570_v0  ;;  %vm6912_vm10 = vcmp.ge.f32.partialorder %v12370_v56, 0.0  ;;  %v6970_v0 = vmul.f32 0.2, %v12346_v32  ;;  %vm6913_vm11 = vcmp.ge.f32.partialorder %v12374_v39, 0.0  ;;  %v12608_v2 = vsel %vm6902_vm0, %v12330_v26, %v6966_v17 }
 0x5f8   :  { %13521 = vst [vmem:[#allocation25_spill] sm:$0xff] %v12574_v9  ;;  %13522 = vst [vmem:[#allocation26_spill] sm:$0xff] %v12587_v51  ;;  %v6969_v9 = vmul.f32 0.2, %v12342_v1  ;;  %v6971_v33 = vmul.f32 0.2, %v12350_v11  ;;  %v12619_v10 = vsel %vm6903_vm1, %v12334_v44, %v6967_v52 }
 0x5f9   :  { %13523 = vst [vmem:[#allocation27_spill] sm:$0xff] %v12595_v15  ;;  %v6972_v51 = vmul.f32 0.2, %v12354_v60  ;;  %v6973_v62 = vmul.f32 0.2, %v12358_v57  ;;  %13524 = vst [vmem:[#allocation28_spill] sm:$0xff] %v12608_v2  ;;  %v12634_v2 = vsel %vm6904_vm2, %v12338_v20, %v6968_v53 }
 0x5fa   :  { %v6974_v55 = vmul.f32 0.2, %v12362_v5  ;;  %vm6914_vm12 = vcmp.ge.f32.partialorder %v12378_v42, 0.0  ;;  %v6975_v8 = vmul.f32 0.2, %v12366_v27  ;;  %13525 = vst [vmem:[#allocation22_spill] sm:$0xff] %v12619_v10  ;;  %v12649_v13 = vsel %vm6905_vm3, %v12342_v1, %v6969_v9 }
 0x5fb   :  { %v6976_v15 = vmul.f32 0.2, %v12370_v56  ;;  %v12614_v48 = vmul.f32 0.2, %v12374_v39  ;;  %vm6915_vm13 = vcmp.ge.f32.partialorder %v12382_v25, 0.0  ;;  %13526 = vst [vmem:[#allocation23_spill] sm:$0xff] %v12634_v2 }
 0x5fc   :  { %v12623_v46 = vmul.f32 0.2, %v12378_v42  ;;  %v12626_v26 = vmul.f32 0.2, %v12382_v25  ;;  %v12629_v17 = vmul.f32 0.2, %v12386_v21 }
 0x5fd   :  { %vm6916_vm14 = vcmp.ge.f32.partialorder %v12386_v21, 0.0  ;;  %v12638_v44 = vmul.f32 0.2, %v12390_v7  ;;  %v12641_v52 = vmul.f32 0.2, %v12394_v54  ;;  %13528 = vst [vmem:[#allocation3_spill] sm:$0xff] %v12649_v13 }
 0x5fe   :  { %v12644_v10 = vmul.f32 0.2, %v12398_v16  ;;  %vm6917_vm15 = vcmp.ge.f32.partialorder %v12390_v7, 0.0  ;;  %v12653_v20 = vmul.f32 0.2, %v12402_v3  ;;  %vm6918_vm0 = vcmp.ge.f32.partialorder %v12394_v54, 0.0 }
 0x5ff   :  { %v12656_v53 = vmul.f32 0.2, %v12406_v59  ;;  %v12659_v2 = vmul.f32 0.2, %v12410_v19  ;;  %v12668_v1 = vmul.f32 0.2, %v12414_v29 }
 0x600   :  { %13527 = vst [vmem:[#allocation2_spill] sm:$0xff] %v12644_v10  ;;  %v12664_v10 = vsel %vm6906_vm4, %v12346_v32, %v6970_v0  ;;  %v12671_v9 = vmul.f32 0.2, %v12418_v45  ;;  %v12674_v13 = vmul.f32 0.2, %v12422_v37  ;;  %vm6919_vm1 = vcmp.ge.f32.partialorder %v12398_v16, 0.0 }
 0x601   :  { %13529 = vst [vmem:[#allocation4_spill] sm:$0xff] %v12659_v2  ;;  %13530 = vst [vmem:[#allocation5_spill] sm:$0xff] %v12664_v10  ;;  %v12679_v2 = vsel %vm6907_vm5, %v12350_v11, %v6971_v33  ;;  %v12683_v32 = vmul.f32 0.2, %v12426_v50  ;;  %v12686_v0 = vmul.f32 0.2, %v12430_v4 }
 0x602   :  { %13531 = vst [vmem:[#allocation6_spill] sm:$0xff] %v12674_v13  ;;  %13532 = vst [vmem:[#allocation29_spill] sm:$0xff] %v12679_v2  ;;  %v12689_v10 = vmul.f32 0.2, %v12434_v12  ;;  %v12694_v13 = vsel %vm6908_vm6, %v12354_v60, %v6972_v51  ;;  %vm6920_vm2 = vcmp.ge.f32.partialorder %v12402_v3, 0.0  ;;  %vm6921_vm3 = vcmp.ge.f32.partialorder %v12406_v59, 0.0 }
 0x603   :  { %13534 = vst [vmem:[#allocation31_spill] sm:$0xff] %v12694_v13  ;;  %v12698_v11 = vmul.f32 0.2, %v12438_v23  ;;  %v12701_v33 = vmul.f32 0.2, %v12442_v18  ;;  %vm6924_vm6 = vcmp.ge.f32.partialorder %v12418_v45, 0.0 }
 0x604   :  { %13533 = vst [vmem:[#allocation30_spill] sm:$0xff] %v12689_v10  ;;  %v12704_v2 = vmul.f32 0.2, %v12446_v61  ;;  %v12709_v10 = vsel %vm6909_vm7, %v12358_v57, %v6973_v62  ;;  %v12715_v60 = vmul.f32 0.2, %v12450_v49  ;;  %v12726_v57 = vsel %vm6910_vm8, %v12362_v5, %v6974_v55 }
 0x605   :  { %13535 = vst [vmem:[#allocation32_spill] sm:$0xff] %v12709_v10  ;;  %v12718_v51 = vmul.f32 0.2, %v12454_v28  ;;  %v12721_v13 = vmul.f32 0.2, %v12458_v34  ;;  %13537 = vst [vmem:[#allocation34_spill] sm:$0xff] %v12726_v57  ;;  %v12744_v5 = vsel %vm6911_vm9, %v12366_v27, %v6975_v8  ;;  %v12762_v27 = vsel %vm6912_vm10, %v12370_v56, %v6976_v15 }
 0x606   :  { %v12733_v62 = vmul.f32 0.2, %v12462_v43  ;;  %v12736_v10 = vmul.f32 0.2, %v12466_v41  ;;  %13539 = vst [vmem:[#allocation36_spill] sm:$0xff] %v12744_v5  ;;  %vm6928_vm8 = vcmp.ge.f32.partialorder %v12434_v12, 0.0  ;;  %v12781_v56 = vsel %vm6913_vm11, %v12374_v39, %v12614_v48 }
 0x607   :  { %13536 = vst [vmem:[#allocation33_spill] sm:$0xff] %v12721_v13  ;;  %v12739_v13 = vmul.f32 0.2, %v12470_v14  ;;  %v12751_v55 = vmul.f32 0.2, %v12474_v6  ;;  %13541 = vst [vmem:[#allocation38_spill] sm:$0xff] %v12762_v27  ;;  %v12800_v39 = vsel %vm6914_vm12, %v12378_v42, %v12623_v46  ;;  %v12819_v42 = vsel %vm6915_vm13, %v12382_v25, %v12626_v26 }
 0x608   :  { %v12754_v57 = vmul.f32 0.2, %v12478_v47  ;;  %vm6932_vm9 = vcmp.ge.f32.partialorder %v12450_v49, 0.0  ;;  %v12769_v8 = vmul.f32 0.2, %v12486_v38  ;;  %13543 = vst [vmem:[#allocation40_spill] sm:$0xff] %v12781_v56  ;;  %v12838_v25 = vsel %vm6916_vm14, %v12386_v21, %v12629_v17 }
 0x609   :  { %13538 = vst [vmem:[#allocation35_spill] sm:$0xff] %v12739_v13  ;;  %v12757_v13 = vmul.f32 0.2, %v12482_v36  ;;  %v12772_v5 = vmul.f32 0.2, %v12490_v63  ;;  %vm6936_vm10 = vcmp.ge.f32.partialorder %v12466_v41, 0.0  ;;  %v12857_v21 = vsel %vm6917_vm15, %v12390_v7, %v12638_v44 }
 0x60a   :  { %v12788_v15 = vmul.f32 0.2, %v12498_v24  ;;  %v12791_v27 = vmul.f32 0.2, %v12502_v22  ;;  %13547 = vst [vmem:[#allocation44_spill] sm:$0xff] %v12800_v39  ;;  %vm6940_vm11 = vcmp.ge.f32.partialorder %v12482_v36, 0.0  ;;  %v12870_v7 = vsel %vm6918_vm0, %v12394_v54, %v12641_v52 }
 0x60b   :  { %13540 = vst [vmem:[#allocation37_spill] sm:$0xff] %v12757_v13  ;;  %v12775_v13 = vmul.f32 0.2, %v12494_v58  ;;  %v12807_v48 = vmul.f32 0.2, %v12510_v40  ;;  %v13549_v56 = vld [vmem:[#allocation8_spill] sm:$0xff] }
 0x60c   :  { %13544 = vst [vmem:[#allocation41_spill] sm:$0xff] %v12788_v15  ;;  %13545 = vst [vmem:[#allocation42_spill] sm:$0xff] %v12791_v27  ;;  %v12810_v27 = vmul.f32 0.2, %v13549_v56  ;;  %vm6944_vm12 = vcmp.ge.f32.partialorder %v12498_v24, 0.0  ;;  %v13554_v46 = vld [vmem:[#allocation10_spill] sm:$0xff] }
 0x60d   :  { %13542 = vst [vmem:[#allocation39_spill] sm:$0xff] %v12775_v13  ;;  %v12794_v13 = vmul.f32 0.2, %v12506_v30  ;;  %13548 = vst [vmem:[#allocation45_spill] sm:$0xff] %v12807_v48  ;;  %v12826_v39 = vmul.f32 0.2, %v13554_v46 }
 0x60e   :  { %13550 = vst [vmem:[#allocation8_spill] sm:$0xff] %v12810_v27  ;;  %13553 = vst [vmem:[#allocation46_spill] sm:$0xff] %v12819_v42  ;;  %v13555_v27 = vld [vmem:[#allocation11_spill] sm:$0xff]  ;;  %vm6948_vm13 = vcmp.ge.f32.partialorder %v13549_v56, 0.0  ;;  %v13560_v26 = vld [vmem:[#allocation13_spill] sm:$0xff]  ;;  %vm13579_vm7 = vcmp.ge.f32.partialorder %v12410_v19, 0.0 }
 0x60f   :  { %13546 = vst [vmem:[#allocation43_spill] sm:$0xff] %v12794_v13  ;;  %v13551_v13 = vld [vmem:[#allocation9_spill] sm:$0xff]  ;;  %v12829_v48 = vmul.f32 0.2, %v13555_v27  ;;  %13559 = vst [vmem:[#allocation49_spill] sm:$0xff] %v12838_v25  ;;  %v13565_v17 = vld [vmem:[#allocation16_spill] sm:$0xff] }
 0x610   :  { %v12813_v15 = vmul.f32 0.2, %v13551_v13  ;;  %v12845_v42 = vmul.f32 0.2, %v13560_v26  ;;  %13564 = vst [vmem:[#allocation53_spill] sm:$0xff] %v12857_v21  ;;  %v13567_v27 = vld [vmem:[#allocation18_spill] sm:$0xff] }
 0x611   :  { %13556 = vst [vmem:[#allocation47_spill] sm:$0xff] %v12829_v48  ;;  %v12848_v48 = vmul.f32 0.2, %v12538_v31  ;;  %v7020_v25 = vmul.f32 0.2, %v13565_v17  ;;  %13568 = vst [vmem:[#allocation54_spill] sm:$0xff] %v12870_v7 }
 0x612   :  { %13552 = vst [vmem:[#allocation9_spill] sm:$0xff] %v12813_v15  ;;  %v13557_v15 = vld [vmem:[#allocation12_spill] sm:$0xff]  ;;  %13561 = vst [vmem:[#allocation50_spill] sm:$0xff] %v12845_v42  ;;  %vm6956_vm15 = vcmp.ge.f32.partialorder %v13565_v17, 0.0  ;;  %v13569_v44 = vld [vmem:[#allocation19_spill] sm:$0xff] }
 0x613   :  { %v12832_v58 = vmul.f32 0.2, %v13557_v15  ;;  %13562 = vst [vmem:[#allocation51_spill] sm:$0xff] %v12848_v48  ;;  %vm6952_vm14 = vcmp.ge.f32.partialorder %v13557_v15, 0.0  ;;  %v13566_v48 = vld [vmem:[#allocation17_spill] sm:$0xff]  ;;  %v13572_v46 = vld [vmem:[#allocation2_spill] sm:$0xff] }
 0x614   :  { %v7021_v42 = vmul.f32 0.2, %v13566_v48  ;;  %v7023_v21 = vmul.f32 0.2, %v13569_v44  ;;  %v13571_v26 = vld [vmem:[#allocation21_spill] sm:$0xff]  ;;  %v12883_v54 = vsel %vm6919_vm1, %v12398_v16, %v13572_v46  ;;  %v13574_v52 = vld [vmem:[#allocation24_spill] sm:$0xff]  ;;  %v12896_v16 = vsel %vm6920_vm2, %v12402_v3, %v12653_v20 }
 0x615   :  { %13558 = vst [vmem:[#allocation48_spill] sm:$0xff] %v12832_v58  ;;  %v12851_v58 = vmul.f32 0.2, %v12542_v35  ;;  %v13570_v35 = vld [vmem:[#allocation20_spill] sm:$0xff]  ;;  %v7025_v15 = vmul.f32 0.2, %v13571_v26  ;;  %v12923_v20 = vsel %vm6924_vm6, %v12418_v45, %v12671_v9 }
 0x616   :  { %v7024_v31 = vmul.f32 0.2, %v13570_v35  ;;  %13573 = vst [vmem:[#allocation20_spill] sm:$0xff] %v12883_v54  ;;  %vm6960_vm0 = vcmp.ge.f32.partialorder %v13570_v35, 0.0  ;;  %vm6962_vm4 = vcmp.ge.f32.partialorder %v13574_v52, 0.0  ;;  %v13575_v7 = vld [vmem:[#allocation25_spill] sm:$0xff] }
 0x617   :  { %13563 = vst [vmem:[#allocation52_spill] sm:$0xff] %v12851_v58  ;;  %v7022_v58 = vmul.f32 0.2, %v13567_v27  ;;  %v7026_v44 = vmul.f32 0.2, %v13574_v52  ;;  %v13576_v48 = vld [vmem:[#allocation26_spill] sm:$0xff]  ;;  %v12905_v52 = vsel %vm6921_vm3, %v12406_v59, %v12656_v53 }
 0x618   :  { %v7027_v27 = vmul.f32 0.2, %v13575_v7  ;;  %v7028_v17 = vmul.f32 0.2, %v13576_v48  ;;  %vm6964_vm1 = vcmp.ge.f32.partialorder %v13576_v48, 0.0  ;;  %v13577_v46 = vld [vmem:[#allocation27_spill] sm:$0xff] }
 0x619   :  { %vm6965_vm5 = vcmp.ge.f32.partialorder %v13577_v46, 0.0  ;;  %v7029_v54 = vmul.f32 0.2, %v13577_v46  ;;  %v13578_v7 = vld [vmem:[#allocation4_spill] sm:$0xff]  ;;  %vm13580_vm2 = vcmp.ge.f32.partialorder %v12414_v29, 0.0  ;;  %v13581_v59 = vld [vmem:[#allocation6_spill] sm:$0xff] }
 0x61a   :  { %v12911_v26 = vsel %vm13579_vm7, %v12410_v19, %v13578_v7  ;;  %v12917_v3 = vsel %vm13580_vm2, %v12414_v29, %v12668_v1  ;;  %vm13582_vm3 = vcmp.ge.f32.partialorder %v12422_v37, 0.0  ;;  %vm13583_vm7 = vcmp.ge.f32.partialorder %v12426_v50, 0.0  ;;  %v13585_v45 = vld [vmem:[#allocation30_spill] sm:$0xff] }
 0x61b   :  { %v12929_v53 = vsel %vm13582_vm3, %v12422_v37, %v13581_v59  ;;  %v12935_v19 = vsel %vm13583_vm7, %v12426_v50, %v12683_v32  ;;  %vm13584_vm2 = vcmp.ge.f32.partialorder %v12430_v4, 0.0  ;;  %v12947_v1 = vsel %vm6928_vm8, %v12434_v12, %v13585_v45  ;;  %v13601_v32 = vld [vmem:[#allocation7_spill] sm:$0xff]  ;;  %v13619_v59 = vld [vmem:[#allocation12_spill] sm:$0xff] }
 0x61c   :  { %v12941_v29 = vsel %vm13584_vm2, %v12430_v4, %v12686_v0  ;;  %vm13586_vm6 = vcmp.ge.f32.partialorder %v12438_v23, 0.0  ;;  %vm13587_vm3 = vcmp.ge.f32.partialorder %v12442_v18, 0.0  ;;  %vm13588_vm7 = vcmp.ge.f32.partialorder %v12446_v61, 0.0 }
 0x61d   :  { %v12953_v37 = vsel %vm13586_vm6, %v12438_v23, %v12698_v11  ;;  %v12959_v50 = vsel %vm13587_vm3, %v12442_v18, %v12701_v33  ;;  %v12965_v4 = vsel %vm13588_vm7, %v12446_v61, %v12704_v2  ;;  %v12971_v12 = vsel %vm6932_vm9, %v12450_v49, %v12715_v60  ;;  %v13590_v18 = vld [vmem:[#allocation33_spill] sm:$0xff] }
 0x61e   :  { %vm13589_vm8 = vcmp.ge.f32.partialorder %v12454_v28, 0.0  ;;  %vm13591_vm2 = vcmp.ge.f32.partialorder %v12458_v34, 0.0  ;;  %vm13592_vm6 = vcmp.ge.f32.partialorder %v12462_v43, 0.0  ;;  %v12995_v49 = vsel %vm6936_vm10, %v12466_v41, %v12736_v10  ;;  %v13597_v41 = vld [vmem:[#allocation37_spill] sm:$0xff] }
 0x61f   :  { %v12977_v23 = vsel %vm13589_vm8, %v12454_v28, %v12718_v51  ;;  %v12983_v9 = vsel %vm13591_vm2, %v12458_v34, %v13590_v18  ;;  %v12989_v61 = vsel %vm13592_vm6, %v12462_v43, %v12733_v62  ;;  %v13593_v28 = vld [vmem:[#allocation35_spill] sm:$0xff]  ;;  %vm13594_vm9 = vcmp.ge.f32.partialorder %v12470_v14, 0.0  ;;  %v13608_v51 = vld [vmem:[#allocation45_spill] sm:$0xff] }
 0x620   :  { %v13001_v2 = vsel %vm13594_vm9, %v12470_v14, %v13593_v28  ;;  %vm13595_vm3 = vcmp.ge.f32.partialorder %v12474_v6, 0.0  ;;  %vm13596_vm7 = vcmp.ge.f32.partialorder %v12478_v47, 0.0  ;;  %v13019_v10 = vsel %vm6940_vm11, %v12482_v36, %v13597_v41  ;;  %v13603_v36 = vld [vmem:[#allocation41_spill] sm:$0xff]  ;;  %v13624_v41 = vld [vmem:[#allocation14_spill] sm:$0xff] }
 0x621   :  { %v13007_v34 = vsel %vm13595_vm3, %v12474_v6, %v12751_v55  ;;  %v13013_v43 = vsel %vm13596_vm7, %v12478_v47, %v12754_v57  ;;  %vm13598_vm10 = vcmp.ge.f32.partialorder %v12486_v38, 0.0  ;;  %vm13599_vm8 = vcmp.ge.f32.partialorder %v12490_v63, 0.0  ;;  %v13600_v47 = vld [vmem:[#allocation39_spill] sm:$0xff]  ;;  %v13621_v18 = vld [vmem:[#allocation13_spill] sm:$0xff] }
 0x622   :  { %v13025_v14 = vsel %vm13598_vm10, %v12486_v38, %v12769_v8  ;;  %v13031_v6 = vsel %vm13599_vm8, %v12490_v63, %v12772_v5  ;;  %vm13602_vm2 = vcmp.ge.f32.partialorder %v13601_v32, 0.0  ;;  %v13043_v11 = vsel %vm6944_vm12, %v12498_v24, %v13603_v36  ;;  %v13604_v38 = vld [vmem:[#allocation42_spill] sm:$0xff]  ;;  %v13606_v63 = vld [vmem:[#allocation43_spill] sm:$0xff]  ;;  %v13610_v24 = vld [vmem:[#allocation8_spill] sm:$0xff] }
 0x623   :  { %v13037_v0 = vsel %vm13602_vm2, %v13601_v32, %v13600_v47  ;;  %vm13605_vm11 = vcmp.ge.f32.partialorder %v12502_v22, 0.0  ;;  %vm13607_vm6 = vcmp.ge.f32.partialorder %v12506_v30, 0.0  ;;  %vm13609_vm9 = vcmp.ge.f32.partialorder %v12510_v40, 0.0  ;;  %v13616_v8 = vld [vmem:[#allocation11_spill] sm:$0xff]  ;;  %v13626_v32 = vld [vmem:[#allocation52_spill] sm:$0xff] }
 0x624   :  { %v13049_v33 = vsel %vm13605_vm11, %v12502_v22, %v13604_v38  ;;  %v13055_v60 = vsel %vm13607_vm6, %v12506_v30, %v13606_v63  ;;  %v13061_v57 = vsel %vm13609_vm9, %v12510_v40, %v13608_v51  ;;  %v13067_v62 = vsel %vm6948_vm13, %v13549_v56, %v13610_v24  ;;  %v13611_v22 = vld [vmem:[#allocation9_spill] sm:$0xff]  ;;  %v13613_v30 = vld [vmem:[#allocation10_spill] sm:$0xff]  ;;  %v13615_v40 = vld [vmem:[#allocation47_spill] sm:$0xff] }
 0x625   :  { %vm13612_vm12 = vcmp.ge.f32.partialorder %v13551_v13, 0.0  ;;  %vm13614_vm3 = vcmp.ge.f32.partialorder %v13613_v30, 0.0  ;;  %vm13617_vm7 = vcmp.ge.f32.partialorder %v13616_v8, 0.0  ;;  %v13618_v56 = vld [vmem:[#allocation48_spill] sm:$0xff]  ;;  %vm13622_vm13 = vcmp.ge.f32.partialorder %v13621_v18, 0.0  ;;  %v13627_v36 = vld [vmem:[#allocation15_spill] sm:$0xff] }
 0x626   :  { %v13073_v5 = vsel %vm13612_vm12, %v13551_v13, %v13611_v22  ;;  %v13079_v55 = vsel %vm13614_vm3, %v13613_v30, %v12826_v39  ;;  %v13085_v7 = vsel %vm13617_vm7, %v13616_v8, %v13615_v40  ;;  %v13091_v45 = vsel %vm6952_vm14, %v13619_v59, %v13618_v56  ;;  %v13620_v13 = vld [vmem:[#allocation50_spill] sm:$0xff]  ;;  %v13623_v39 = vld [vmem:[#allocation51_spill] sm:$0xff]  ;;  %v13629_v63 = vld [vmem:[#allocation16_spill] sm:$0xff] }
 0x627   :  { %v13097_v28 = vsel %vm13622_vm13, %v13621_v18, %v13620_v13  ;;  %vm13625_vm10 = vcmp.ge.f32.partialorder %v13624_v41, 0.0  ;;  %vm13628_vm8 = vcmp.ge.f32.partialorder %v13627_v36, 0.0  ;;  %v13114_v51 = vsel %vm6956_vm15, %v13629_v63, %v7020_v25  ;;  %v13630_v24 = vld [vmem:[#allocation17_spill] sm:$0xff]  ;;  %v13632_v30 = vld [vmem:[#allocation18_spill] sm:$0xff]  ;;  %v13634_v8 = vld [vmem:[#allocation19_spill] sm:$0xff] }
 0x628   :  { %v13103_v47 = vsel %vm13625_vm10, %v13624_v41, %v13623_v39  ;;  %v13109_v38 = vsel %vm13628_vm8, %v13627_v36, %v13626_v32  ;;  %vm13631_vm14 = vcmp.ge.f32.partialorder %v13630_v24, 0.0  ;;  %vm13633_vm2 = vcmp.ge.f32.partialorder %v13632_v30, 0.0  ;;  %v13636_v59 = vld [vmem:[#allocation21_spill] sm:$0xff]  ;;  %v13638_v13 = vld [vmem:[#allocation24_spill] sm:$0xff]  ;;  %v13644_v39 = vld [vmem:[#allocation22_spill] sm:$0xff] }
 0x629   :  { %v13119_v22 = vsel %vm13631_vm14, %v13630_v24, %v7021_v42  ;;  %v13124_v40 = vsel %vm13633_vm2, %v13632_v30, %v7022_v58  ;;  %vm13635_vm11 = vcmp.ge.f32.partialorder %v13634_v8, 0.0  ;;  %v13134_v25 = vsel %vm6960_vm0, %v13570_v35, %v7024_v31  ;;  %v13639_v18 = vld [vmem:[#allocation25_spill] sm:$0xff]  ;;  %v13646_v32 = vld [vmem:[#allocation3_spill] sm:$0xff] }
 0x62a   :  { %v13129_v56 = vsel %vm13635_vm11, %v13634_v8, %v7023_v21  ;;  %vm13637_vm15 = vcmp.ge.f32.partialorder %v13636_v59, 0.0  ;;  %v13144_v58 = vsel %vm6962_vm4, %v13638_v13, %v7026_v44  ;;  %vm13640_vm6 = vcmp.ge.f32.partialorder %v13639_v18, 0.0  ;;  %v13645_v44 = vld [vmem:[#allocation23_spill] sm:$0xff]  ;;  %v13647_v63 = vld [vmem:[#allocation5_spill] sm:$0xff]  ;;  %v13650_v8 = vld [vmem:[#allocation32_spill] sm:$0xff] }
 0x62b   :  { %v13139_v42 = vsel %vm13637_vm15, %v13636_v59, %v7025_v15  ;;  %v13149_v21 = vsel %vm13640_vm6, %v13639_v18, %v7027_v27  ;;  %v13154_v31 = vsel %vm6964_vm1, %v13576_v48, %v7028_v17  ;;  %v13159_v35 = vsel %vm6965_vm5, %v13577_v46, %v7029_v54  ;;  %v13643_v15 = vld [vmem:[#allocation28_spill] sm:$0xff]  ;;  %v13648_v24 = vld [vmem:[#allocation29_spill] sm:$0xff]  ;;  %v13649_v30 = vld [vmem:[#allocation31_spill] sm:$0xff] }
 0x62c   :  { %13641 = vst [vmem:[#allocation2_spill] sm:$0xff] %v13149_v21  ;;  %13642 = vst [vmem:[#allocation26_spill] sm:$0xff] %v13154_v31  ;;  %v8191_v41 = vpack.c.bf16 %v13644_v39, %v13643_v15  ;;  %v8196_v36 = vpack.c.bf16 %v13646_v32, %v13645_v44  ;;  %v8201_v27 = vpack.c.bf16 %v13648_v24, %v13647_v63  ;;  %v13651_v13 = vld [vmem:[#allocation34_spill] sm:$0xff]  ;;  %v13652_v48 = vld [vmem:[#allocation36_spill] sm:$0xff] }
 0x62d   :  { %v8206_v59 = vpack.c.bf16 %v13650_v8, %v13649_v30  ;;  %v8211_v17 = vpack.c.bf16 %v13652_v48, %v13651_v13  ;;  %v13653_v18 = vld [vmem:[#allocation38_spill] sm:$0xff]  ;;  %v13654_v31 = vld [vmem:[#allocation40_spill] sm:$0xff]  ;;  %v13657_v39 = vld [vmem:[#allocation49_spill] sm:$0xff] }
 0x62e   :  { %v8216_v21 = vpack.c.bf16 %v13654_v31, %v13653_v18  ;;  %8192 = vst [vmem:[%s13325_s4] sm:$0xff] %v8191_v41   ;;  %8348 = vst [vmem:[%s13325_s4 + $0x8] sm:$0xff] %v8196_v36   ;;  %v13655_v54 = vld [vmem:[#allocation44_spill] sm:$0xff]  ;;  %v13656_v46 = vld [vmem:[#allocation46_spill] sm:$0xff]  ;;  %v8236_v31 = vpack.c.bf16 %v12905_v52, %v12896_v16  ;;  %v8241_v41 = vpack.c.bf16 %v12917_v3, %v12911_v26 }
 0x62f   :  { %v8221_v15 = vpack.c.bf16 %v13656_v46, %v13655_v54  ;;  %v13658_v44 = vld [vmem:[#allocation53_spill] sm:$0xff]  ;;  %v13659_v63 = vld [vmem:[#allocation54_spill] sm:$0xff]  ;;  %v13660_v24 = vld [vmem:[#allocation20_spill] sm:$0xff]  ;;  %8349 = vst [vmem:[%s13325_s4 + $0x10] sm:$0xff] %v8201_v27   ;;  %v8246_v52 = vpack.c.bf16 %v12929_v53, %v12923_v20  ;;  %v8251_v16 = vpack.c.bf16 %v12941_v29, %v12935_v19  ;;  %v8256_v36 = vpack.c.bf16 %v12953_v37, %v12947_v1 }
 0x630   :  { %v8226_v32 = vpack.c.bf16 %v13658_v44, %v13657_v39  ;;  %v8231_v30 = vpack.c.bf16 %v13660_v24, %v13659_v63  ;;  %8350 = vst [vmem:[%s13325_s4 + $0x18] sm:$0xff] %v8206_v59   ;;  %8351 = vst [vmem:[%s13325_s4 + $0x20] sm:$0xff] %v8211_v17   ;;  %v8261_v26 = vpack.c.bf16 %v12965_v4, %v12959_v50 }
 0x631   :  { %8352 = vst [vmem:[%s13325_s4 + $0x28] sm:$0xff] %v8216_v21   ;;  %8353 = vst [vmem:[%s13325_s4 + $0x30] sm:$0xff] %v8221_v15   ;;  %v8266_v3 = vpack.c.bf16 %v12977_v23, %v12971_v12  ;;  %v8271_v20 = vpack.c.bf16 %v12989_v61, %v12983_v9  ;;  %v8276_v53 = vpack.c.bf16 %v13001_v2, %v12995_v49 }
 0x632   :  { %8354 = vst [vmem:[%s13325_s4 + $0x38] sm:$0xff] %v8226_v32   ;;  %8355 = vst [vmem:[%s13325_s4 + $0x40] sm:$0xff] %v8231_v30   ;;  %v8281_v19 = vpack.c.bf16 %v13013_v43, %v13007_v34  ;;  %v8286_v29 = vpack.c.bf16 %v13025_v14, %v13019_v10  ;;  %v8291_v1 = vpack.c.bf16 %v13037_v0, %v13031_v6 }
 0x633   :  { %8356 = vst [vmem:[%s13325_s4 + $0x48] sm:$0xff] %v8236_v31   ;;  %8357 = vst [vmem:[%s13325_s4 + $0x50] sm:$0xff] %v8241_v41   ;;  %v8296_v37 = vpack.c.bf16 %v13049_v33, %v13043_v11  ;;  %v8301_v50 = vpack.c.bf16 %v13061_v57, %v13055_v60  ;;  %v8306_v4 = vpack.c.bf16 %v13073_v5, %v13067_v62  ;;  %v13661_v34 = vld [vmem:[#allocation2_spill] sm:$0xff] }
 0x634   :  { %8358 = vst [vmem:[%s13325_s4 + $0x58] sm:$0xff] %v8246_v52   ;;  %8359 = vst [vmem:[%s13325_s4 + $0x60] sm:$0xff] %v8251_v16   ;;  %v8311_v12 = vpack.c.bf16 %v13085_v7, %v13079_v55  ;;  %v8316_v23 = vpack.c.bf16 %v13097_v28, %v13091_v45  ;;  %v8321_v9 = vpack.c.bf16 %v13109_v38, %v13103_v47  ;;  %v13662_v10 = vld [vmem:[#allocation26_spill] sm:$0xff] }
 0x635   :  { %8360 = vst [vmem:[%s13325_s4 + $0x68] sm:$0xff] %v8256_v36   ;;  %8361 = vst [vmem:[%s13325_s4 + $0x70] sm:$0xff] %v8261_v26   ;;  %v8326_v61 = vpack.c.bf16 %v13119_v22, %v13114_v51  ;;  %v8331_v49 = vpack.c.bf16 %v13129_v56, %v13124_v40  ;;  %v8336_v2 = vpack.c.bf16 %v13139_v42, %v13134_v25 }
 0x636   :  { %8362 = vst [vmem:[%s13325_s4 + $0x78] sm:$0xff] %v8266_v3   ;;  %8363 = vst [vmem:[%s13325_s4 + $0x80] sm:$0xff] %v8271_v20   ;;  %v8341_v43 = vpack.c.bf16 %v13661_v34, %v13144_v58  ;;  %v8346_v14 = vpack.c.bf16 %v13159_v35, %v13662_v10 }
 0x637   :  { %8364 = vst [vmem:[%s13325_s4 + $0x88] sm:$0xff] %v8276_v53   ;;  %8365 = vst [vmem:[%s13325_s4 + $0x90] sm:$0xff] %v8281_v19  }
 0x638   :  { %8366 = vst [vmem:[%s13325_s4 + $0x98] sm:$0xff] %v8286_v29   ;;  %8367 = vst [vmem:[%s13325_s4 + $0xa0] sm:$0xff] %v8291_v1  }
 0x639   :  { %8368 = vst [vmem:[%s13325_s4 + $0xa8] sm:$0xff] %v8296_v37   ;;  %8369 = vst [vmem:[%s13325_s4 + $0xb0] sm:$0xff] %v8301_v50  }
 0x63a   :  { %8370 = vst [vmem:[%s13325_s4 + $0xb8] sm:$0xff] %v8306_v4   ;;  %8371 = vst [vmem:[%s13325_s4 + $0xc0] sm:$0xff] %v8311_v12  }
 0x63b   :  { %8372 = vst [vmem:[%s13325_s4 + $0xc8] sm:$0xff] %v8316_v23   ;;  %8373 = vst [vmem:[%s13325_s4 + $0xd0] sm:$0xff] %v8321_v9  }
 0x63c   :  { %8374 = vst [vmem:[%s13325_s4 + $0xd8] sm:$0xff] %v8326_v61   ;;  %8375 = vst [vmem:[%s13325_s4 + $0xe0] sm:$0xff] %v8331_v49  }
 0x63d   :  { %8376 = vst [vmem:[%s13325_s4 + $0xe8] sm:$0xff] %v8336_v2   ;;  %8377 = vst [vmem:[%s13325_s4 + $0xf0] sm:$0xff] %v8341_v43  }
 0x63e   :  { %8378 = vst [vmem:[%s13325_s4 + $0xf8] sm:$0xff] %v8346_v14  }

// kernel: discriminator_forward.7
= control target key start
LH: loop header
LB: loop body
LE: loop exit
PB: predicated region body
PF: predicated region fallthrough
CT: control target
= control target key end

     0   :  { %s4860_s1 = inlined_call_operand.vmem [shape: bf16[2048,128], index: 1, kind: input, shape index: {}]   ;;  %s4861_s0 = inlined_call_operand.vmem [shape: bf16[128,2048], index: 0, kind: input, shape index: {}]   ;;  %s4862_s2 = inlined_call_operand.vmem [shape: f32[1,128], index: 2, kind: input, shape index: {}]   ;;  %s4863_s3 = inlined_call_operand.vmem [shape: f32[1,128], index: 3, kind: input, shape index: {}]   ;;  %s4864_s4 = inlined_call_operand.vmem [shape: bf16[128,128], index: 4, kind: output, shape index: {}]  }
   0x1   :  { %v3707_v0 = vld [vmem:[%s4860_s1 + $0x40] sm:$0xff]   ;;  %v3711_v4 = vld [vmem:[%s4860_s1 + $0x48] sm:$0xff]   ;;  %v3715_v8 = vld [vmem:[%s4860_s1 + $0x50] sm:$0xff]  }
   0x2   :  { %v3708_v1 = vld [vmem:[%s4860_s1 + $0xc0] sm:$0xff]   ;;  %3195 = vmatprep.subr.bf16.mxu0 %v3707_v0  ;;  %v3712_v5 = vld [vmem:[%s4860_s1 + $0xc8] sm:$0xff]   ;;  %v3716_v9 = vld [vmem:[%s4860_s1 + $0xd0] sm:$0xff]  }
   0x3   :  { %v3709_v2 = vld [vmem:[%s4860_s1] sm:$0xff]   ;;  %3259 = vmatprep.subr.bf16.mxu1 %v3708_v1  ;;  %v3713_v6 = vld [vmem:[%s4860_s1 + $0x8] sm:$0xff]   ;;  %v3717_v10 = vld [vmem:[%s4860_s1 + $0x10] sm:$0xff]  }
   0x4   :  { %v3710_v3 = vld [vmem:[%s4860_s1 + $0x80] sm:$0xff]   ;;  %3196 = vmatpush3.bf16.msra.mxu0 %v3709_v2  ;;  %v3714_v7 = vld [vmem:[%s4860_s1 + $0x88] sm:$0xff]   ;;  %v3718_v11 = vld [vmem:[%s4860_s1 + $0x90] sm:$0xff]  }
   0x5   :  { %3260 = vmatpush3.bf16.msra.mxu1 %v3710_v3  ;;  %3197 = vmatprep.subr.bf16.mxu0 %v3711_v4  ;;  %v3719_v12 = vld [vmem:[%s4860_s1 + $0x58] sm:$0xff]   ;;  %v3723_v16 = vld [vmem:[%s4860_s1 + $0x60] sm:$0xff]   ;;  %v3727_v20 = vld [vmem:[%s4860_s1 + $0x68] sm:$0xff]  }
   0x6   :  { %3261 = vmatprep.subr.bf16.mxu1 %v3712_v5  ;;  %v3720_v13 = vld [vmem:[%s4860_s1 + $0xd8] sm:$0xff]   ;;  %v3724_v17 = vld [vmem:[%s4860_s1 + $0xe0] sm:$0xff]   ;;  %v3728_v21 = vld [vmem:[%s4860_s1 + $0xe8] sm:$0xff]  }
   0x7   :  { %v3721_v14 = vld [vmem:[%s4860_s1 + $0x18] sm:$0xff]   ;;  %v3725_v18 = vld [vmem:[%s4860_s1 + $0x20] sm:$0xff]   ;;  %v3729_v22 = vld [vmem:[%s4860_s1 + $0x28] sm:$0xff]  }
   0x8   :  { %3198 = vmatpush3.bf16.msra.mxu0 %v3713_v6  ;;  %v3722_v15 = vld [vmem:[%s4860_s1 + $0x98] sm:$0xff]   ;;  %v3726_v19 = vld [vmem:[%s4860_s1 + $0xa0] sm:$0xff]   ;;  %v3730_v23 = vld [vmem:[%s4860_s1 + $0xa8] sm:$0xff]  }
   0x9   :  { %3262 = vmatpush3.bf16.msra.mxu1 %v3714_v7  ;;  %3199 = vmatprep.subr.bf16.mxu0 %v3715_v8  ;;  %v3731_v24 = vld [vmem:[%s4860_s1 + $0x70] sm:$0xff]   ;;  %v3735_v28 = vld [vmem:[%s4860_s1 + $0x78] sm:$0xff]   ;;  %v18_v32 = vld [vmem:[%s4861_s0] sm:$0xff] }
   0xa   :  { %3263 = vmatprep.subr.bf16.mxu1 %v3716_v9  ;;  %v3732_v25 = vld [vmem:[%s4860_s1 + $0xf0] sm:$0xff]   ;;  %v3736_v29 = vld [vmem:[%s4860_s1 + $0xf8] sm:$0xff]   ;;  %v26_v33 = vld [vmem:[%s4861_s0 + $0x40] sm:$0xff] }
   0xb   :  { %v3733_v26 = vld [vmem:[%s4860_s1 + $0x30] sm:$0xff]   ;;  %v3737_v30 = vld [vmem:[%s4860_s1 + $0x38] sm:$0xff]   ;;  %v19_v34 = vld [vmem:[%s4861_s0 + $0x8] sm:$0xff]  ;;  %v2858_v35 = vcombine.low %v18_v32, %v26_v33  ;;  %v2859_v36 = vcombine.high %v18_v32, %v26_v33 }
   0xc   :  { %3200 = vmatpush3.bf16.msra.mxu0 %v3717_v10  ;;  %v3734_v27 = vld [vmem:[%s4860_s1 + $0xb0] sm:$0xff]   ;;  %v3738_v31 = vld [vmem:[%s4860_s1 + $0xb8] sm:$0xff]   ;;  %v27_v37 = vld [vmem:[%s4861_s0 + $0x48] sm:$0xff] }
   0xd   :  { %3264 = vmatpush3.bf16.msra.mxu1 %v3718_v11  ;;  %3201 = vmatprep.subr.bf16.mxu0 %v3719_v12  ;;  %v2860_v38 = vcombine.low %v19_v34, %v27_v37  ;;  %v2861_v39 = vcombine.high %v19_v34, %v27_v37  ;;  %v3739_v40 = vld [vmem:[%s4860_s1 + $0x140] sm:$0xff]   ;;  %v35_v47 = vld [vmem:[%s4861_s0 + $0x88] sm:$0xff]  ;;  %v3747_v62 = vld [vmem:[%s4860_s1 + $0x150] sm:$0xff]  }
   0xe   :  { %3265 = vmatprep.subr.bf16.mxu1 %v3720_v13  ;;  %1842 = vmatprep.mubr.bf16.mxu0 %v2859_v36  ;;  %v3740_v41 = vld [vmem:[%s4860_s1 + $0x100] sm:$0xff]   ;;  %v43_v48 = vld [vmem:[%s4861_s0 + $0xc8] sm:$0xff]  ;;  %v3748_v63 = vld [vmem:[%s4860_s1 + $0x110] sm:$0xff]  }
   0xf   :  { %1939 = vmatprep.mubr.bf16.mxu1 %v2861_v39  ;;  %v3741_v42 = vld [vmem:[%s4860_s1 + $0x1c0] sm:$0xff]   ;;  %v2877_v49 = vcombine.high %v35_v47, %v43_v48  ;;  %v3743_v50 = vld [vmem:[%s4860_s1 + $0x148] sm:$0xff]   ;;  %v2876_v53 = vcombine.low %v35_v47, %v43_v48  ;;  %v3749_v0 = vld [vmem:[%s4860_s1 + $0x1d0] sm:$0xff]  }
  0x10   :  { %3202 = vmatpush3.bf16.msra.mxu0 %v3721_v14  ;;  %v3742_v43 = vld [vmem:[%s4860_s1 + $0x180] sm:$0xff]   ;;  %v3744_v52 = vld [vmem:[%s4860_s1 + $0x108] sm:$0xff]   ;;  %v3750_v1 = vld [vmem:[%s4860_s1 + $0x190] sm:$0xff]  }
  0x11   :  { %3266 = vmatpush3.bf16.msra.mxu1 %v3722_v15  ;;  %3203 = vmatprep.subr.bf16.mxu0 %v3723_v16  ;;  %v34_v44 = vld [vmem:[%s4861_s0 + $0x80] sm:$0xff]  ;;  %v3745_v54 = vld [vmem:[%s4860_s1 + $0x1c8] sm:$0xff]   ;;  %v3751_v10 = vld [vmem:[%s4860_s1 + $0x158] sm:$0xff]  }
  0x12   :  { %3267 = vmatprep.subr.bf16.mxu1 %v3724_v17  ;;  %v42_v45 = vld [vmem:[%s4861_s0 + $0xc0] sm:$0xff]  ;;  %v3746_v55 = vld [vmem:[%s4860_s1 + $0x188] sm:$0xff]   ;;  %v3752_v11 = vld [vmem:[%s4860_s1 + $0x118] sm:$0xff]  }
  0x13   :  { %v2875_v46 = vcombine.high %v34_v44, %v42_v45  ;;  %v2874_v51 = vcombine.low %v34_v44, %v42_v45  ;;  %v50_v56 = vld [vmem:[%s4861_s0 + $0x100] sm:$0xff]  ;;  %v51_v58 = vld [vmem:[%s4861_s0 + $0x108] sm:$0xff]  ;;  %v3753_v12 = vld [vmem:[%s4860_s1 + $0x1d8] sm:$0xff]  }
  0x14   :  { %3204 = vmatpush3.bf16.msra.mxu0 %v3725_v18  ;;  %v58_v57 = vld [vmem:[%s4861_s0 + $0x140] sm:$0xff]  ;;  %v59_v59 = vld [vmem:[%s4861_s0 + $0x148] sm:$0xff]  ;;  %v3754_v13 = vld [vmem:[%s4860_s1 + $0x198] sm:$0xff]  }
  0x15   :  { %3268 = vmatpush3.bf16.msra.mxu1 %v3726_v19  ;;  %3205 = vmatprep.subr.bf16.mxu0 %v3727_v20  ;;  %v2891_v60 = vcombine.high %v50_v56, %v58_v57  ;;  %v2893_v61 = vcombine.high %v51_v58, %v59_v59  ;;  %v2890_v2 = vcombine.low %v50_v56, %v58_v57  ;;  %v66_v3 = vld [vmem:[%s4861_s0 + $0x180] sm:$0xff]  ;;  %v67_v5 = vld [vmem:[%s4861_s0 + $0x188] sm:$0xff]  ;;  %v3764_v39 = vld [vmem:[%s4860_s1 + $0x130] sm:$0xff]  }
  0x16   :  { %3269 = vmatprep.subr.bf16.mxu1 %v3728_v21  ;;  %v74_v4 = vld [vmem:[%s4861_s0 + $0x1c0] sm:$0xff]  ;;  %v2892_v6 = vcombine.low %v51_v58, %v59_v59  ;;  %v75_v8 = vld [vmem:[%s4861_s0 + $0x1c8] sm:$0xff]  ;;  %v3768_v48 = vld [vmem:[%s4860_s1 + $0x138] sm:$0xff]  }
  0x17   :  { %v2907_v7 = vcombine.high %v66_v3, %v74_v4  ;;  %v2909_v9 = vcombine.high %v67_v5, %v75_v8  ;;  %v82_v14 = vld [vmem:[%s4861_s0 + $0x200] sm:$0xff]  ;;  %v83_v16 = vld [vmem:[%s4861_s0 + $0x208] sm:$0xff]  ;;  %v2906_v19 = vcombine.low %v66_v3, %v74_v4  ;;  %v2908_v21 = vcombine.low %v67_v5, %v75_v8  ;;  %v29_v3 = vld [vmem:[%s4861_s0 + $0x58] sm:$0xff] }
  0x18   :  { %3206 = vmatpush3.bf16.msra.mxu0 %v3729_v22  ;;  %v90_v15 = vld [vmem:[%s4861_s0 + $0x240] sm:$0xff]  ;;  %v91_v17 = vld [vmem:[%s4861_s0 + $0x248] sm:$0xff]  ;;  %v36_v8 = vld [vmem:[%s4861_s0 + $0x90] sm:$0xff] }
  0x19   :  { %3270 = vmatpush3.bf16.msra.mxu1 %v3730_v23  ;;  %3207 = vmatprep.subr.bf16.mxu0 %v3731_v24  ;;  %v3755_v18 = vld [vmem:[%s4860_s1 + $0x160] sm:$0xff]   ;;  %v2923_v22 = vcombine.high %v82_v14, %v90_v15  ;;  %v2925_v24 = vcombine.high %v83_v16, %v91_v17  ;;  %v3761_v32 = vld [vmem:[%s4860_s1 + $0x1e8] sm:$0xff]   ;;  %v2922_v34 = vcombine.low %v82_v14, %v90_v15 }
  0x1a   :  { %3271 = vmatprep.subr.bf16.mxu1 %v3732_v25  ;;  %v3756_v20 = vld [vmem:[%s4860_s1 + $0x120] sm:$0xff]   ;;  %v3762_v33 = vld [vmem:[%s4860_s1 + $0x1a8] sm:$0xff]  }
  0x1b   :  { %v3757_v23 = vld [vmem:[%s4860_s1 + $0x1e0] sm:$0xff]   ;;  %v115_v44 = vld [vmem:[%s4861_s0 + $0x308] sm:$0xff] }
  0x1c   :  { %3208 = vmatpush3.bf16.msra.mxu0 %v3733_v26  ;;  %v3758_v25 = vld [vmem:[%s4860_s1 + $0x1a0] sm:$0xff]   ;;  %v123_v45 = vld [vmem:[%s4861_s0 + $0x348] sm:$0xff] }
  0x1d   :  { %3272 = vmatpush3.bf16.msra.mxu1 %v3734_v27  ;;  %3209 = vmatprep.subr.bf16.mxu0 %v3735_v28  ;;  %v98_v26 = vld [vmem:[%s4861_s0 + $0x280] sm:$0xff]  ;;  %v3759_v28 = vld [vmem:[%s4860_s1 + $0x168] sm:$0xff]  }
  0x1e   :  { %3273 = vmatprep.subr.bf16.mxu1 %v3736_v29  ;;  %v106_v27 = vld [vmem:[%s4861_s0 + $0x2c0] sm:$0xff]  ;;  %v99_v29 = vld [vmem:[%s4861_s0 + $0x288] sm:$0xff] }
  0x1f   :  { %v2939_v36 = vcombine.high %v98_v26, %v106_v27  ;;  %v2938_v47 = vcombine.low %v98_v26, %v106_v27  ;;  %v3771_v56 = vld [vmem:[%s4860_s1 + $0x240] sm:$0xff]   ;;  %v131_v57 = vld [vmem:[%s4861_s0 + $0x388] sm:$0xff]  ;;  %v3779_v26 = vld [vmem:[%s4860_s1 + $0x250] sm:$0xff]  }
  0x20   :  { %3210 = vmatpush3.bf16.msra.mxu0 %v3737_v30  ;;  %v107_v30 = vld [vmem:[%s4861_s0 + $0x2c8] sm:$0xff]  ;;  %v3773_v58 = vld [vmem:[%s4860_s1 + $0x2c0] sm:$0xff]   ;;  %v3781_v27 = vld [vmem:[%s4860_s1 + $0x2d0] sm:$0xff]  }
  0x21   :  { %3274 = vmatpush3.bf16.msra.mxu1 %v3738_v31  ;;  %3323 = vmatprep.subr.bf16.mxu0 %v3739_v40  ;;  %v3760_v31 = vld [vmem:[%s4860_s1 + $0x128] sm:$0xff]   ;;  %v2941_v37 = vcombine.high %v99_v29, %v107_v30  ;;  %v3765_v40 = vld [vmem:[%s4860_s1 + $0x1f0] sm:$0xff]   ;;  %v3774_v15 = vld [vmem:[%s4860_s1 + $0x280] sm:$0xff]  }
  0x22   :  { %3387 = vmatprep.subr.bf16.mxu1 %v3741_v42  ;;  %v122_v42 = vld [vmem:[%s4861_s0 + $0x340] sm:$0xff]  ;;  %v139_v59 = vld [vmem:[%s4861_s0 + $0x3c8] sm:$0xff] }
  0x23   :  { %1843 = vmatmul.mubr.bf16.vlgmr.msra.gmra.mrb[0].mxu0 %v2858_v35  ;;  %v2924_v35 = vcombine.low %v83_v16, %v91_v17  ;;  %v2972_v5 = vcombine.low %v131_v57, %v139_v59  ;;  %v3775_v17 = vld [vmem:[%s4860_s1 + $0x248] sm:$0xff]  }
  0x24   :  { %1940 = vmatmul.mubr.bf16.vlgmr.msra.gmra.mrb[0].mxu1 %v2860_v38  ;;  %3324 = vmatpush3.bf16.msra.mxu0 %v3740_v41  ;;  %v3763_v38 = vld [vmem:[%s4860_s1 + $0x170] sm:$0xff]   ;;  %v114_v41 = vld [vmem:[%s4861_s0 + $0x300] sm:$0xff] }
  0x25   :  { %3388 = vmatpush3.bf16.msra.mxu1 %v3742_v43  ;;  %1850 = vmatprep.mubr.bf16.mxu0 %v2875_v46  ;;  %v3766_v43 = vld [vmem:[%s4860_s1 + $0x1b0] sm:$0xff]   ;;  %v3767_v46 = vld [vmem:[%s4860_s1 + $0x178] sm:$0xff]  }
  0x26   :  { %1947 = vmatprep.mubr.bf16.mxu1 %v2877_v49  ;;  %3325 = vmatprep.subr.bf16.mxu0 %v3743_v50  ;;  %v2940_v49 = vcombine.low %v99_v29, %v107_v30  ;;  %v2955_v50 = vcombine.high %v114_v41, %v122_v42 }
  0x27   :  { %3389 = vmatprep.subr.bf16.mxu1 %v3745_v54  ;;  %v130_v54 = vld [vmem:[%s4861_s0 + $0x380] sm:$0xff] }
  0x28   :  { %3326 = vmatpush3.bf16.msra.mxu0 %v3744_v52  ;;  %v2957_v52 = vcombine.high %v115_v44, %v123_v45 }
  0x29   :  { %3390 = vmatpush3.bf16.msra.mxu1 %v3746_v55  ;;  %3327 = vmatprep.subr.bf16.mxu0 %v3747_v62  ;;  %v138_v55 = vld [vmem:[%s4861_s0 + $0x3c0] sm:$0xff] }
  0x2a   :  { %3391 = vmatprep.subr.bf16.mxu1 %v3749_v0  ;;  %v2971_v62 = vcombine.high %v130_v54, %v138_v55  ;;  %v20_v0 = vld [vmem:[%s4861_s0 + $0x10] sm:$0xff]  ;;  %v2970_v4 = vcombine.low %v130_v54, %v138_v55  ;;  %v85_v54 = vld [vmem:[%s4861_s0 + $0x218] sm:$0xff] }
  0x2b   :  { %1851 = vmatmul.mubr.bf16.gmra.mrb[4].mxu0 %v2874_v51  ;;  %v3769_v51 = vld [vmem:[%s4860_s1 + $0x1f8] sm:$0xff]  }
  0x2c   :  { %1948 = vmatmul.mubr.bf16.gmra.mrb[4].mxu1 %v2876_v53  ;;  %1858 = vmatprep.mubr.bf16.mxu0 %v2891_v60  ;;  %v3770_v53 = vld [vmem:[%s4860_s1 + $0x1b8] sm:$0xff]   ;;  %v2954_v60 = vcombine.low %v114_v41, %v122_v42  ;;  %v3787_v42 = vld [vmem:[%s4860_s1 + $0x260] sm:$0xff]  }
  0x2d   :  { %1955 = vmatprep.mubr.bf16.mxu1 %v2893_v61  ;;  %3328 = vmatpush3.bf16.msra.mxu0 %v3748_v63  ;;  %v2956_v61 = vcombine.low %v115_v44, %v123_v45  ;;  %v2973_v63 = vcombine.high %v131_v57, %v139_v59  ;;  %v3786_v41 = vld [vmem:[%s4860_s1 + $0x298] sm:$0xff]   ;;  %v3789_v44 = vld [vmem:[%s4860_s1 + $0x2e0] sm:$0xff]   ;;  %v3794_v57 = vld [vmem:[%s4860_s1 + $0x2a8] sm:$0xff]  }
  0x2e   :  { %3392 = vmatpush3.bf16.msra.mxu1 %v3750_v1  ;;  %3329 = vmatprep.subr.bf16.mxu0 %v3751_v10  ;;  %v28_v1 = vld [vmem:[%s4861_s0 + $0x50] sm:$0xff]  ;;  %v93_v55 = vld [vmem:[%s4861_s0 + $0x258] sm:$0xff] }
  0x2f   :  { %3393 = vmatprep.subr.bf16.mxu1 %v3753_v12  ;;  %v2862_v10 = vcombine.low %v20_v0, %v28_v1  ;;  %v37_v12 = vld [vmem:[%s4861_s0 + $0x98] sm:$0xff] }
  0x31   :  { %3330 = vmatpush3.bf16.msra.mxu0 %v3752_v11  ;;  %v3772_v11 = vld [vmem:[%s4860_s1 + $0x200] sm:$0xff]  }
  0x32   :  { %3394 = vmatpush3.bf16.msra.mxu1 %v3754_v13  ;;  %3331 = vmatprep.subr.bf16.mxu0 %v3755_v18  ;;  %v45_v13 = vld [vmem:[%s4861_s0 + $0xd8] sm:$0xff] }
  0x33   :  { %1859 = vmatmul.mubr.bf16.gmra.mrb[8].mxu0 %v2890_v2  ;;  %3395 = vmatprep.subr.bf16.mxu1 %v3757_v23  ;;  %v21_v2 = vld [vmem:[%s4861_s0 + $0x18] sm:$0xff]  ;;  %v2881_v18 = vcombine.high %v37_v12, %v45_v13  ;;  %v60_v23 = vld [vmem:[%s4861_s0 + $0x150] sm:$0xff]  ;;  %v2880_v29 = vcombine.low %v37_v12, %v45_v13  ;;  %v3805_v12 = vld [vmem:[%s4860_s1 + $0x3c0] sm:$0xff]   ;;  %v2928_v13 = vcombine.low %v85_v54, %v93_v55 }
  0x34   :  { %1956 = vmatmul.mubr.bf16.gmra.mrb[8].mxu1 %v2892_v6  ;;  %1866 = vmatprep.mubr.bf16.mxu0 %v2907_v7  ;;  %v2863_v6 = vcombine.high %v20_v0, %v28_v1  ;;  %v2865_v7 = vcombine.high %v21_v2, %v29_v3  ;;  %v2864_v14 = vcombine.low %v21_v2, %v29_v3  ;;  %v3796_v0 = vld [vmem:[%s4860_s1 + $0x230] sm:$0xff]   ;;  %v3799_v2 = vld [vmem:[%s4860_s1 + $0x278] sm:$0xff]  }
  0x35   :  { %1963 = vmatprep.mubr.bf16.mxu1 %v2909_v9  ;;  %3332 = vmatpush3.bf16.msra.mxu0 %v3756_v20  ;;  %v44_v9 = vld [vmem:[%s4861_s0 + $0xd0] sm:$0xff]  ;;  %v3777_v20 = vld [vmem:[%s4860_s1 + $0x2c8] sm:$0xff]  }
  0x36   :  { %3396 = vmatpush3.bf16.msra.mxu1 %v3758_v25  ;;  %3333 = vmatprep.subr.bf16.mxu0 %v3759_v28  ;;  %v2879_v16 = vcombine.high %v36_v8, %v44_v9  ;;  %v61_v25 = vld [vmem:[%s4861_s0 + $0x158] sm:$0xff]  ;;  %v2878_v28 = vcombine.low %v36_v8, %v44_v9  ;;  %v3798_v1 = vld [vmem:[%s4860_s1 + $0x2b0] sm:$0xff]  }
  0x37   :  { %3397 = vmatprep.subr.bf16.mxu1 %v3761_v32  ;;  %v3780_v32 = vld [vmem:[%s4860_s1 + $0x210] sm:$0xff]   ;;  %v3800_v8 = vld [vmem:[%s4860_s1 + $0x238] sm:$0xff]  }
  0x38   :  { %v100_v3 = vld [vmem:[%s4861_s0 + $0x290] sm:$0xff]  ;;  %v3802_v9 = vld [vmem:[%s4860_s1 + $0x2b8] sm:$0xff]  }
  0x39   :  { %3334 = vmatpush3.bf16.msra.mxu0 %v3760_v31 }
  0x3a   :  { %3398 = vmatpush3.bf16.msra.mxu1 %v3762_v33  ;;  %3335 = vmatprep.subr.bf16.mxu0 %v3763_v38  ;;  %v3782_v33 = vld [vmem:[%s4860_s1 + $0x290] sm:$0xff]   ;;  %v69_v38 = vld [vmem:[%s4861_s0 + $0x198] sm:$0xff] }
  0x3b   :  { %1867 = vmatmul.mubr.bf16.gmra.mrb[12].mxu0 %v2906_v19  ;;  %3399 = vmatprep.subr.bf16.mxu1 %v3765_v40  ;;  %v3776_v19 = vld [vmem:[%s4860_s1 + $0x208] sm:$0xff]   ;;  %v3784_v40 = vld [vmem:[%s4860_s1 + $0x218] sm:$0xff]  }
  0x3c   :  { %1964 = vmatmul.mubr.bf16.gmra.mrb[12].mxu1 %v2908_v21  ;;  %1874 = vmatprep.mubr.bf16.mxu0 %v2923_v22  ;;  %v3778_v21 = vld [vmem:[%s4860_s1 + $0x288] sm:$0xff]   ;;  %v52_v22 = vld [vmem:[%s4861_s0 + $0x110] sm:$0xff] }
  0x3d   :  { %1971 = vmatprep.mubr.bf16.mxu1 %v2925_v24  ;;  %3336 = vmatpush3.bf16.msra.mxu0 %v3764_v39  ;;  %v53_v24 = vld [vmem:[%s4861_s0 + $0x118] sm:$0xff]  ;;  %v2895_v30 = vcombine.high %v52_v22, %v60_v23 }
  0x3e   :  { %3400 = vmatpush3.bf16.msra.mxu1 %v3766_v43  ;;  %3337 = vmatprep.subr.bf16.mxu0 %v3767_v46  ;;  %v2897_v31 = vcombine.high %v53_v24, %v61_v25  ;;  %v77_v39 = vld [vmem:[%s4861_s0 + $0x1d8] sm:$0xff]  ;;  %v2894_v43 = vcombine.low %v52_v22, %v60_v23  ;;  %v2896_v45 = vcombine.low %v53_v24, %v61_v25  ;;  %v132_v24 = vld [vmem:[%s4861_s0 + $0x390] sm:$0xff] }
  0x3f   :  { %3401 = vmatprep.subr.bf16.mxu1 %v3769_v51  ;;  %v84_v51 = vld [vmem:[%s4861_s0 + $0x210] sm:$0xff] }
  0x40   :  { %v140_v25 = vld [vmem:[%s4861_s0 + $0x3d0] sm:$0xff] }
  0x41   :  { %3338 = vmatpush3.bf16.msra.mxu0 %v3768_v48  ;;  %v2913_v48 = vcombine.high %v69_v38, %v77_v39 }
  0x42   :  { %3402 = vmatpush3.bf16.msra.mxu1 %v3770_v53  ;;  %3451 = vmatprep.subr.bf16.mxu0 %v3771_v56  ;;  %v92_v53 = vld [vmem:[%s4861_s0 + $0x250] sm:$0xff]  ;;  %v3792_v56 = vld [vmem:[%s4860_s1 + $0x228] sm:$0xff]  }
  0x43   :  { %1875 = vmatmul.mubr.bf16.gmra.mrb[16].mxu0 %v2922_v34  ;;  %3515 = vmatprep.subr.bf16.mxu1 %v3773_v58  ;;  %v3783_v34 = vld [vmem:[%s4860_s1 + $0x258] sm:$0xff]   ;;  %v3795_v58 = vld [vmem:[%s4860_s1 + $0x270] sm:$0xff]  }
  0x44   :  { %1972 = vmatmul.mubr.bf16.gmra.mrb[16].mxu1 %v2924_v35  ;;  %1882 = vmatprep.mubr.bf16.mxu0 %v2939_v36  ;;  %v68_v35 = vld [vmem:[%s4861_s0 + $0x190] sm:$0xff] }
  0x45   :  { %1979 = vmatprep.mubr.bf16.mxu1 %v2941_v37  ;;  %v76_v36 = vld [vmem:[%s4861_s0 + $0x1d0] sm:$0xff]  ;;  %v3785_v37 = vld [vmem:[%s4860_s1 + $0x2d8] sm:$0xff]  }
  0x46   :  { %v2911_v46 = vcombine.high %v68_v35, %v76_v36  ;;  %v2910_v59 = vcombine.low %v68_v35, %v76_v36  ;;  %v31_v35 = vld [vmem:[%s4861_s0 + $0x68] sm:$0xff]  ;;  %v2974_v36 = vcombine.low %v132_v24, %v140_v25 }
  0x4b   :  { %1883 = vmatmul.mubr.bf16.gmra.mrb[20].mxu0 %v2938_v47  ;;  %v3788_v47 = vld [vmem:[%s4860_s1 + $0x220] sm:$0xff]  }
  0x4c   :  { %1980 = vmatmul.mubr.bf16.gmra.mrb[20].mxu1 %v2940_v49  ;;  %1890 = vmatprep.mubr.bf16.mxu0 %v2955_v50  ;;  %v3790_v49 = vld [vmem:[%s4860_s1 + $0x2a0] sm:$0xff]   ;;  %v3791_v50 = vld [vmem:[%s4860_s1 + $0x268] sm:$0xff]  }
  0x4d   :  { %1987 = vmatprep.mubr.bf16.mxu1 %v2957_v52  ;;  %v3793_v52 = vld [vmem:[%s4860_s1 + $0x2e8] sm:$0xff]  }
  0x53   :  { %1891 = vmatmul.mubr.bf16.gmra.mrb[24].mxu0 %v2954_v60  ;;  %v3797_v60 = vld [vmem:[%s4860_s1 + $0x2f0] sm:$0xff]  }
  0x54   :  { %1988 = vmatmul.mubr.bf16.gmra.mrb[24].mxu1 %v2956_v61  ;;  %1898 = vmatprep.mubr.bf16.mxu0 %v2971_v62  ;;  %v2912_v61 = vcombine.low %v69_v38, %v77_v39  ;;  %v2927_v62 = vcombine.high %v84_v51, %v92_v53 }
  0x55   :  { %1995 = vmatprep.mubr.bf16.mxu1 %v2973_v63  ;;  %v2929_v63 = vcombine.high %v85_v54, %v93_v55  ;;  %v54_v54 = vld [vmem:[%s4861_s0 + $0x120] sm:$0xff] }
  0x56   :  { %v62_v55 = vld [vmem:[%s4861_s0 + $0x160] sm:$0xff] }
  0x5b   :  { %1899 = vmatmul.mubr.bf16.gmra.mrb[28].mxu0 %v2970_v4  ;;  %v108_v4 = vld [vmem:[%s4861_s0 + $0x2d0] sm:$0xff] }
  0x5c   :  { %1996 = vmatmul.mubr.bf16.gmra.mrb[28].mxu1 %v2972_v5  ;;  %2036 = vmatprep.mubr.bf16.mxu0 %v2863_v6  ;;  %v3801_v5 = vld [vmem:[%s4860_s1 + $0x2f8] sm:$0xff]  }
  0x5d   :  { %2133 = vmatprep.mubr.bf16.mxu1 %v2865_v7  ;;  %v101_v6 = vld [vmem:[%s4861_s0 + $0x298] sm:$0xff] }
  0x5e   :  { %v109_v7 = vld [vmem:[%s4861_s0 + $0x2d8] sm:$0xff] }
  0x63   :  { %2037 = vmatmul.mubr.bf16.vlgmr.msra.gmra.mrb[32].mxu0 %v2862_v10  ;;  %v3803_v10 = vld [vmem:[%s4860_s1 + $0x340] sm:$0xff]  }
  0x64   :  { %2134 = vmatmul.mubr.bf16.vlgmr.msra.gmra.mrb[32].mxu1 %v2864_v14  ;;  %3452 = vmatpush3.bf16.msra.mxu0 %v3772_v11  ;;  %v2926_v11 = vcombine.low %v84_v51, %v92_v53  ;;  %v2943_v14 = vcombine.high %v100_v3, %v108_v4  ;;  %v3809_v51 = vld [vmem:[%s4860_s1 + $0x3c8] sm:$0xff]  }
  0x65   :  { %3516 = vmatpush3.bf16.msra.mxu1 %v3774_v15  ;;  %2044 = vmatprep.mubr.bf16.mxu0 %v2879_v16  ;;  %v2945_v15 = vcombine.high %v101_v6, %v109_v7  ;;  %v116_v16 = vld [vmem:[%s4861_s0 + $0x310] sm:$0xff]  ;;  %v3810_v53 = vld [vmem:[%s4860_s1 + $0x388] sm:$0xff]  }
  0x66   :  { %2141 = vmatprep.mubr.bf16.mxu1 %v2881_v18  ;;  %3453 = vmatprep.subr.bf16.mxu0 %v3775_v17  ;;  %v124_v17 = vld [vmem:[%s4861_s0 + $0x350] sm:$0xff]  ;;  %v117_v18 = vld [vmem:[%s4861_s0 + $0x318] sm:$0xff] }
  0x67   :  { %3517 = vmatprep.subr.bf16.mxu1 %v3777_v20  ;;  %v2942_v20 = vcombine.low %v100_v3, %v108_v4  ;;  %v2959_v22 = vcombine.high %v116_v16, %v124_v17  ;;  %v3817_v3 = vld [vmem:[%s4860_s1 + $0x3d8] sm:$0xff]   ;;  %v70_v4 = vld [vmem:[%s4861_s0 + $0x1a0] sm:$0xff] }
  0x68   :  { %3454 = vmatpush3.bf16.msra.mxu0 %v3776_v19  ;;  %v125_v19 = vld [vmem:[%s4861_s0 + $0x358] sm:$0xff] }
  0x69   :  { %3518 = vmatpush3.bf16.msra.mxu1 %v3778_v21  ;;  %3455 = vmatprep.subr.bf16.mxu0 %v3779_v26  ;;  %v2944_v21 = vcombine.low %v101_v6, %v109_v7  ;;  %v2961_v23 = vcombine.high %v117_v18, %v125_v19  ;;  %v133_v26 = vld [vmem:[%s4861_s0 + $0x398] sm:$0xff]  ;;  %v71_v6 = vld [vmem:[%s4861_s0 + $0x1a8] sm:$0xff] }
  0x6a   :  { %3519 = vmatprep.subr.bf16.mxu1 %v3781_v27  ;;  %v141_v27 = vld [vmem:[%s4861_s0 + $0x3d8] sm:$0xff] }
  0x6b   :  { %2045 = vmatmul.mubr.bf16.gmra.mrb[36].mxu0 %v2878_v28  ;;  %v2958_v28 = vcombine.low %v116_v16, %v124_v17  ;;  %v3816_v7 = vld [vmem:[%s4860_s1 + $0x318] sm:$0xff]   ;;  %v3820_v16 = vld [vmem:[%s4860_s1 + $0x320] sm:$0xff]  }
  0x6c   :  { %2142 = vmatmul.mubr.bf16.gmra.mrb[36].mxu1 %v2880_v29  ;;  %2052 = vmatprep.mubr.bf16.mxu0 %v2895_v30  ;;  %v2960_v29 = vcombine.low %v117_v18, %v125_v19  ;;  %v2975_v30 = vcombine.high %v132_v24, %v140_v25  ;;  %v3822_v17 = vld [vmem:[%s4860_s1 + $0x3a0] sm:$0xff]   ;;  %v3823_v18 = vld [vmem:[%s4860_s1 + $0x368] sm:$0xff]  }
  0x6d   :  { %2149 = vmatprep.mubr.bf16.mxu1 %v2897_v31  ;;  %3456 = vmatpush3.bf16.msra.mxu0 %v3780_v32  ;;  %v2977_v31 = vcombine.high %v133_v26, %v141_v27  ;;  %v22_v32 = vld [vmem:[%s4861_s0 + $0x20] sm:$0xff]  ;;  %v3825_v19 = vld [vmem:[%s4860_s1 + $0x3e8] sm:$0xff]  }
  0x6e   :  { %3520 = vmatpush3.bf16.msra.mxu1 %v3782_v33  ;;  %3457 = vmatprep.subr.bf16.mxu0 %v3783_v34  ;;  %v30_v33 = vld [vmem:[%s4861_s0 + $0x60] sm:$0xff]  ;;  %v23_v34 = vld [vmem:[%s4861_s0 + $0x28] sm:$0xff] }
  0x6f   :  { %3521 = vmatprep.subr.bf16.mxu1 %v3785_v37  ;;  %v2976_v37 = vcombine.low %v133_v26, %v141_v27  ;;  %v2867_v38 = vcombine.high %v22_v32, %v30_v33  ;;  %v2869_v39 = vcombine.high %v23_v34, %v31_v35  ;;  %v95_v24 = vld [vmem:[%s4861_s0 + $0x268] sm:$0xff]  ;;  %v3827_v26 = vld [vmem:[%s4860_s1 + $0x370] sm:$0xff]  }
  0x70   :  { %v3826_v25 = vld [vmem:[%s4860_s1 + $0x3a8] sm:$0xff]  }
  0x71   :  { %3458 = vmatpush3.bf16.msra.mxu0 %v3784_v40  ;;  %v38_v40 = vld [vmem:[%s4861_s0 + $0xa0] sm:$0xff] }
  0x72   :  { %3522 = vmatpush3.bf16.msra.mxu1 %v3786_v41  ;;  %3459 = vmatprep.subr.bf16.mxu0 %v3787_v42  ;;  %v46_v41 = vld [vmem:[%s4861_s0 + $0xe0] sm:$0xff]  ;;  %v2866_v42 = vcombine.low %v22_v32, %v30_v33  ;;  %v3828_v32 = vld [vmem:[%s4860_s1 + $0x330] sm:$0xff]  }
  0x73   :  { %2053 = vmatmul.mubr.bf16.gmra.mrb[40].mxu0 %v2894_v43  ;;  %3523 = vmatprep.subr.bf16.mxu1 %v3789_v44  ;;  %v39_v43 = vld [vmem:[%s4861_s0 + $0xa8] sm:$0xff]  ;;  %v3830_v33 = vld [vmem:[%s4860_s1 + $0x3b0] sm:$0xff]  }
  0x74   :  { %2150 = vmatmul.mubr.bf16.gmra.mrb[40].mxu1 %v2896_v45  ;;  %2060 = vmatprep.mubr.bf16.mxu0 %v2911_v46  ;;  %v47_v44 = vld [vmem:[%s4861_s0 + $0xe8] sm:$0xff]  ;;  %v2868_v45 = vcombine.low %v23_v34, %v31_v35  ;;  %v3804_v46 = vld [vmem:[%s4860_s1 + $0x300] sm:$0xff]   ;;  %v3831_v34 = vld [vmem:[%s4860_s1 + $0x378] sm:$0xff]  }
  0x75   :  { %2157 = vmatprep.mubr.bf16.mxu1 %v2913_v48  ;;  %3460 = vmatpush3.bf16.msra.mxu0 %v3788_v47  ;;  %v3806_v47 = vld [vmem:[%s4860_s1 + $0x380] sm:$0xff]   ;;  %v2883_v48 = vcombine.high %v38_v40, %v46_v41  ;;  %v3833_v35 = vld [vmem:[%s4860_s1 + $0x3f8] sm:$0xff]  }
  0x76   :  { %3524 = vmatpush3.bf16.msra.mxu1 %v3790_v49  ;;  %3461 = vmatprep.subr.bf16.mxu0 %v3791_v50  ;;  %v2885_v49 = vcombine.high %v39_v43, %v47_v44  ;;  %v3807_v50 = vld [vmem:[%s4860_s1 + $0x348] sm:$0xff]  }
  0x77   :  { %3525 = vmatprep.subr.bf16.mxu1 %v3793_v52  ;;  %v3808_v52 = vld [vmem:[%s4860_s1 + $0x308] sm:$0xff]  }
  0x79   :  { %3462 = vmatpush3.bf16.msra.mxu0 %v3792_v56  ;;  %v3811_v56 = vld [vmem:[%s4860_s1 + $0x350] sm:$0xff]  }
  0x7a   :  { %3526 = vmatpush3.bf16.msra.mxu1 %v3794_v57  ;;  %3463 = vmatprep.subr.bf16.mxu0 %v3795_v58  ;;  %v55_v57 = vld [vmem:[%s4861_s0 + $0x128] sm:$0xff] }
  0x7b   :  { %2061 = vmatmul.mubr.bf16.gmra.mrb[44].mxu0 %v2910_v59  ;;  %3527 = vmatprep.subr.bf16.mxu1 %v3797_v60  ;;  %v63_v58 = vld [vmem:[%s4861_s0 + $0x168] sm:$0xff]  ;;  %v3813_v59 = vld [vmem:[%s4860_s1 + $0x3d0] sm:$0xff]   ;;  %v2882_v60 = vcombine.low %v38_v40, %v46_v41  ;;  %v3834_v41 = vld [vmem:[%s4860_s1 + $0x3b8] sm:$0xff]  }
  0x7c   :  { %2158 = vmatmul.mubr.bf16.gmra.mrb[44].mxu1 %v2912_v61  ;;  %2068 = vmatprep.mubr.bf16.mxu0 %v2927_v62  ;;  %v2884_v61 = vcombine.low %v39_v43, %v47_v44  ;;  %v2899_v62 = vcombine.high %v54_v54, %v62_v55  ;;  %v111_v40 = vld [vmem:[%s4861_s0 + $0x2e8] sm:$0xff] }
  0x7d   :  { %2165 = vmatprep.mubr.bf16.mxu1 %v2929_v63  ;;  %3464 = vmatpush3.bf16.msra.mxu0 %v3796_v0  ;;  %v2901_v63 = vcombine.high %v55_v57, %v63_v58  ;;  %v3812_v0 = vld [vmem:[%s4860_s1 + $0x310] sm:$0xff]  }
  0x7e   :  { %3528 = vmatpush3.bf16.msra.mxu1 %v3798_v1  ;;  %3465 = vmatprep.subr.bf16.mxu0 %v3799_v2  ;;  %v3814_v1 = vld [vmem:[%s4860_s1 + $0x390] sm:$0xff]   ;;  %v3815_v2 = vld [vmem:[%s4860_s1 + $0x358] sm:$0xff]  }
  0x7f   :  { %3529 = vmatprep.subr.bf16.mxu1 %v3801_v5  ;;  %v78_v5 = vld [vmem:[%s4861_s0 + $0x1e0] sm:$0xff] }
  0x80   :  { %v2914_v27 = vcombine.low %v70_v4, %v78_v5 }
  0x81   :  { %3466 = vmatpush3.bf16.msra.mxu0 %v3800_v8  ;;  %v79_v8 = vld [vmem:[%s4861_s0 + $0x1e8] sm:$0xff] }
  0x82   :  { %3530 = vmatpush3.bf16.msra.mxu1 %v3802_v9  ;;  %3579 = vmatprep.subr.bf16.mxu0 %v3803_v10  ;;  %v3818_v9 = vld [vmem:[%s4860_s1 + $0x398] sm:$0xff]   ;;  %v3819_v10 = vld [vmem:[%s4860_s1 + $0x360] sm:$0xff]  }
  0x83   :  { %2069 = vmatmul.mubr.bf16.gmra.mrb[48].mxu0 %v2926_v11  ;;  %3643 = vmatprep.subr.bf16.mxu1 %v3805_v12  ;;  %v2898_v11 = vcombine.low %v54_v54, %v62_v55  ;;  %v3821_v12 = vld [vmem:[%s4860_s1 + $0x3e0] sm:$0xff]  }
  0x84   :  { %2166 = vmatmul.mubr.bf16.gmra.mrb[48].mxu1 %v2928_v13  ;;  %2076 = vmatprep.mubr.bf16.mxu0 %v2943_v14  ;;  %v2900_v13 = vcombine.low %v55_v57, %v63_v58  ;;  %v2915_v14 = vcombine.high %v70_v4, %v78_v5  ;;  %v134_v54 = vld [vmem:[%s4861_s0 + $0x3a0] sm:$0xff]  ;;  %v143_v57 = vld [vmem:[%s4861_s0 + $0x3e8] sm:$0xff] }
  0x85   :  { %2173 = vmatprep.mubr.bf16.mxu1 %v2945_v15  ;;  %v2917_v15 = vcombine.high %v71_v6, %v79_v8  ;;  %v142_v55 = vld [vmem:[%s4861_s0 + $0x3e0] sm:$0xff] }
  0x8b   :  { %2077 = vmatmul.mubr.bf16.gmra.mrb[52].mxu0 %v2942_v20  ;;  %v86_v20 = vld [vmem:[%s4861_s0 + $0x220] sm:$0xff] }
  0x8c   :  { %2174 = vmatmul.mubr.bf16.gmra.mrb[52].mxu1 %v2944_v21  ;;  %2084 = vmatprep.mubr.bf16.mxu0 %v2959_v22  ;;  %v94_v21 = vld [vmem:[%s4861_s0 + $0x260] sm:$0xff]  ;;  %v87_v22 = vld [vmem:[%s4861_s0 + $0x228] sm:$0xff] }
  0x8d   :  { %2181 = vmatprep.mubr.bf16.mxu1 %v2961_v23  ;;  %v3824_v23 = vld [vmem:[%s4860_s1 + $0x328] sm:$0xff]   ;;  %v2932_v43 = vcombine.low %v87_v22, %v95_v24 }
  0x93   :  { %2085 = vmatmul.mubr.bf16.gmra.mrb[56].mxu0 %v2958_v28  ;;  %v3829_v28 = vld [vmem:[%s4860_s1 + $0x3f0] sm:$0xff]  }
  0x94   :  { %2182 = vmatmul.mubr.bf16.gmra.mrb[56].mxu1 %v2960_v29  ;;  %2092 = vmatprep.mubr.bf16.mxu0 %v2975_v30  ;;  %v2916_v29 = vcombine.low %v71_v6, %v79_v8  ;;  %v2931_v30 = vcombine.high %v86_v20, %v94_v21  ;;  %v40_v6 = vld [vmem:[%s4861_s0 + $0xb0] sm:$0xff]  ;;  %v41_v8 = vld [vmem:[%s4861_s0 + $0xb8] sm:$0xff] }
  0x95   :  { %2189 = vmatprep.mubr.bf16.mxu1 %v2977_v31  ;;  %v2933_v31 = vcombine.high %v87_v22, %v95_v24  ;;  %v72_v22 = vld [vmem:[%s4861_s0 + $0x1b0] sm:$0xff]  ;;  %v73_v24 = vld [vmem:[%s4861_s0 + $0x1b8] sm:$0xff] }
  0x9b   :  { %2093 = vmatmul.mubr.bf16.gmra.mrb[60].mxu0 %v2974_v36  ;;  %v102_v36 = vld [vmem:[%s4861_s0 + $0x2a0] sm:$0xff] }
  0x9c   :  { %2190 = vmatmul.mubr.bf16.gmra.mrb[60].mxu1 %v2976_v37  ;;  %2230 = vmatprep.mubr.bf16.mxu0 %v2867_v38  ;;  %v110_v37 = vld [vmem:[%s4861_s0 + $0x2e0] sm:$0xff]  ;;  %v3832_v38 = vld [vmem:[%s4860_s1 + $0x338] sm:$0xff]  }
  0x9d   :  { %2327 = vmatprep.mubr.bf16.mxu1 %v2869_v39  ;;  %v103_v39 = vld [vmem:[%s4861_s0 + $0x2a8] sm:$0xff]  ;;  %v2947_v44 = vcombine.high %v102_v36, %v110_v37 }
  0xa3   :  { %2231 = vmatmul.mubr.bf16.vlgmr.msra.gmra.mrb[64].mxu0 %v2866_v42  ;;  %v2930_v42 = vcombine.low %v86_v20, %v94_v21 }
  0xa4   :  { %2328 = vmatmul.mubr.bf16.vlgmr.msra.gmra.mrb[64].mxu1 %v2868_v45  ;;  %3580 = vmatpush3.bf16.msra.mxu0 %v3804_v46  ;;  %v2949_v45 = vcombine.high %v103_v39, %v111_v40  ;;  %v118_v46 = vld [vmem:[%s4861_s0 + $0x320] sm:$0xff] }
  0xa5   :  { %3644 = vmatpush3.bf16.msra.mxu1 %v3806_v47  ;;  %2238 = vmatprep.mubr.bf16.mxu0 %v2883_v48  ;;  %v126_v47 = vld [vmem:[%s4861_s0 + $0x360] sm:$0xff]  ;;  %v119_v48 = vld [vmem:[%s4861_s0 + $0x328] sm:$0xff] }
  0xa6   :  { %2335 = vmatprep.mubr.bf16.mxu1 %v2885_v49  ;;  %3581 = vmatprep.subr.bf16.mxu0 %v3807_v50  ;;  %v127_v49 = vld [vmem:[%s4861_s0 + $0x368] sm:$0xff]  ;;  %v2946_v50 = vcombine.low %v102_v36, %v110_v37  ;;  %v2962_v58 = vcombine.low %v118_v46, %v126_v47 }
  0xa7   :  { %3645 = vmatprep.subr.bf16.mxu1 %v3809_v51  ;;  %v2948_v51 = vcombine.low %v103_v39, %v111_v40 }
  0xa8   :  { %3582 = vmatpush3.bf16.msra.mxu0 %v3808_v52  ;;  %v2963_v52 = vcombine.high %v118_v46, %v126_v47 }
  0xa9   :  { %3646 = vmatpush3.bf16.msra.mxu1 %v3810_v53  ;;  %3583 = vmatprep.subr.bf16.mxu0 %v3811_v56  ;;  %v2965_v53 = vcombine.high %v119_v48, %v127_v49  ;;  %v135_v56 = vld [vmem:[%s4861_s0 + $0x3a8] sm:$0xff] }
  0xaa   :  { %3647 = vmatprep.subr.bf16.mxu1 %v3813_v59  ;;  %v2964_v59 = vcombine.low %v119_v48, %v127_v49 }
  0xab   :  { %2239 = vmatmul.mubr.bf16.gmra.mrb[68].mxu0 %v2882_v60  ;;  %v2979_v60 = vcombine.high %v134_v54, %v142_v55 }
  0xac   :  { %2336 = vmatmul.mubr.bf16.gmra.mrb[68].mxu1 %v2884_v61  ;;  %2246 = vmatprep.mubr.bf16.mxu0 %v2899_v62  ;;  %v2981_v61 = vcombine.high %v135_v56, %v143_v57  ;;  %v24_v62 = vld [vmem:[%s4861_s0 + $0x30] sm:$0xff] }
  0xad   :  { %2343 = vmatprep.mubr.bf16.mxu1 %v2901_v63  ;;  %3584 = vmatpush3.bf16.msra.mxu0 %v3812_v0  ;;  %v32_v63 = vld [vmem:[%s4861_s0 + $0x70] sm:$0xff]  ;;  %v25_v0 = vld [vmem:[%s4861_s0 + $0x38] sm:$0xff] }
  0xae   :  { %3648 = vmatpush3.bf16.msra.mxu1 %v3814_v1  ;;  %3585 = vmatprep.subr.bf16.mxu0 %v3815_v2  ;;  %v33_v1 = vld [vmem:[%s4861_s0 + $0x78] sm:$0xff]  ;;  %v2978_v2 = vcombine.low %v134_v54, %v142_v55  ;;  %v2871_v4 = vcombine.high %v24_v62, %v32_v63 }
  0xaf   :  { %3649 = vmatprep.subr.bf16.mxu1 %v3817_v3  ;;  %v2980_v3 = vcombine.low %v135_v56, %v143_v57  ;;  %v2873_v5 = vcombine.high %v25_v0, %v33_v1  ;;  %v105_v55 = vld [vmem:[%s4861_s0 + $0x2b8] sm:$0xff] }
  0xb0   :  { %v113_v56 = vld [vmem:[%s4861_s0 + $0x2f8] sm:$0xff] }
  0xb1   :  { %3586 = vmatpush3.bf16.msra.mxu0 %v3816_v7  ;;  %v48_v7 = vld [vmem:[%s4861_s0 + $0xf0] sm:$0xff] }
  0xb2   :  { %3650 = vmatpush3.bf16.msra.mxu1 %v3818_v9  ;;  %3587 = vmatprep.subr.bf16.mxu0 %v3819_v10  ;;  %v49_v9 = vld [vmem:[%s4861_s0 + $0xf8] sm:$0xff]  ;;  %v2870_v10 = vcombine.low %v24_v62, %v32_v63 }
  0xb3   :  { %2247 = vmatmul.mubr.bf16.gmra.mrb[72].mxu0 %v2898_v11  ;;  %3651 = vmatprep.subr.bf16.mxu1 %v3821_v12  ;;  %v2872_v11 = vcombine.low %v25_v0, %v33_v1  ;;  %v2887_v12 = vcombine.high %v40_v6, %v48_v7 }
  0xb4   :  { %2344 = vmatmul.mubr.bf16.gmra.mrb[72].mxu1 %v2900_v13  ;;  %2254 = vmatprep.mubr.bf16.mxu0 %v2915_v14  ;;  %v2889_v13 = vcombine.high %v41_v8, %v49_v9  ;;  %v56_v14 = vld [vmem:[%s4861_s0 + $0x130] sm:$0xff] }
  0xb5   :  { %2351 = vmatprep.mubr.bf16.mxu1 %v2917_v15  ;;  %3588 = vmatpush3.bf16.msra.mxu0 %v3820_v16  ;;  %v64_v15 = vld [vmem:[%s4861_s0 + $0x170] sm:$0xff]  ;;  %v57_v16 = vld [vmem:[%s4861_s0 + $0x138] sm:$0xff] }
  0xb6   :  { %3652 = vmatpush3.bf16.msra.mxu1 %v3822_v17  ;;  %3589 = vmatprep.subr.bf16.mxu0 %v3823_v18  ;;  %v65_v17 = vld [vmem:[%s4861_s0 + $0x178] sm:$0xff]  ;;  %v2886_v18 = vcombine.low %v40_v6, %v48_v7  ;;  %v2903_v20 = vcombine.high %v56_v14, %v64_v15 }
  0xb7   :  { %3653 = vmatprep.subr.bf16.mxu1 %v3825_v19  ;;  %v2888_v19 = vcombine.low %v41_v8, %v49_v9  ;;  %v2905_v21 = vcombine.high %v57_v16, %v65_v17 }
  0xb9   :  { %3590 = vmatpush3.bf16.msra.mxu0 %v3824_v23  ;;  %v80_v23 = vld [vmem:[%s4861_s0 + $0x1f0] sm:$0xff] }
  0xba   :  { %3654 = vmatpush3.bf16.msra.mxu1 %v3826_v25  ;;  %3591 = vmatprep.subr.bf16.mxu0 %v3827_v26  ;;  %v81_v25 = vld [vmem:[%s4861_s0 + $0x1f8] sm:$0xff]  ;;  %v2902_v26 = vcombine.low %v56_v14, %v64_v15  ;;  %v2918_v37 = vcombine.low %v72_v22, %v80_v23 }
  0xbb   :  { %2255 = vmatmul.mubr.bf16.gmra.mrb[76].mxu0 %v2914_v27  ;;  %3655 = vmatprep.subr.bf16.mxu1 %v3829_v28  ;;  %v2904_v27 = vcombine.low %v57_v16, %v65_v17  ;;  %v2919_v28 = vcombine.high %v72_v22, %v80_v23  ;;  %v129_v14 = vld [vmem:[%s4861_s0 + $0x378] sm:$0xff] }
  0xbc   :  { %2352 = vmatmul.mubr.bf16.gmra.mrb[76].mxu1 %v2916_v29  ;;  %2262 = vmatprep.mubr.bf16.mxu0 %v2931_v30  ;;  %v2921_v29 = vcombine.high %v73_v24, %v81_v25  ;;  %v88_v30 = vld [vmem:[%s4861_s0 + $0x230] sm:$0xff] }
  0xbd   :  { %2359 = vmatprep.mubr.bf16.mxu1 %v2933_v31  ;;  %3592 = vmatpush3.bf16.msra.mxu0 %v3828_v32  ;;  %v96_v31 = vld [vmem:[%s4861_s0 + $0x270] sm:$0xff] }
  0xbe   :  { %3656 = vmatpush3.bf16.msra.mxu1 %v3830_v33  ;;  %3593 = vmatprep.subr.bf16.mxu0 %v3831_v34  ;;  %v89_v33 = vld [vmem:[%s4861_s0 + $0x238] sm:$0xff] }
  0xbf   :  { %3657 = vmatprep.subr.bf16.mxu1 %v3833_v35  ;;  %v97_v34 = vld [vmem:[%s4861_s0 + $0x278] sm:$0xff] }
  0xc0   :  { %v2937_v46 = vcombine.high %v89_v33, %v97_v34  ;;  %v2936_v63 = vcombine.low %v89_v33, %v97_v34  ;;  %v144_v33 = vld [vmem:[%s4861_s0 + $0x3f0] sm:$0xff] }
  0xc1   :  { %3594 = vmatpush3.bf16.msra.mxu0 %v3832_v38 }
  0xc2   :  { %3658 = vmatpush3.bf16.msra.mxu1 %v3834_v41  ;;  %v2920_v41 = vcombine.low %v73_v24, %v81_v25 }
  0xc3   :  { %2263 = vmatmul.mubr.bf16.gmra.mrb[80].mxu0 %v2930_v42  ;;  %v2935_v42 = vcombine.high %v88_v30, %v96_v31 }
  0xc4   :  { %2360 = vmatmul.mubr.bf16.gmra.mrb[80].mxu1 %v2932_v43  ;;  %2270 = vmatprep.mubr.bf16.mxu0 %v2947_v44 }
  0xc5   :  { %2367 = vmatprep.mubr.bf16.mxu1 %v2949_v45 }
  0xcb   :  { %2271 = vmatmul.mubr.bf16.gmra.mrb[84].mxu0 %v2946_v50 }
  0xcc   :  { %2368 = vmatmul.mubr.bf16.gmra.mrb[84].mxu1 %v2948_v51  ;;  %2278 = vmatprep.mubr.bf16.mxu0 %v2963_v52  ;;  %v104_v52 = vld [vmem:[%s4861_s0 + $0x2b0] sm:$0xff] }
  0xcd   :  { %2375 = vmatprep.mubr.bf16.mxu1 %v2965_v53  ;;  %v112_v53 = vld [vmem:[%s4861_s0 + $0x2f0] sm:$0xff] }
  0xce   :  { %v2951_v0 = vcombine.high %v104_v52, %v112_v53  ;;  %v2950_v17 = vcombine.low %v104_v52, %v112_v53 }
  0xd3   :  { %2279 = vmatmul.mubr.bf16.gmra.mrb[88].mxu0 %v2962_v58 }
  0xd4   :  { %2376 = vmatmul.mubr.bf16.gmra.mrb[88].mxu1 %v2964_v59  ;;  %2286 = vmatprep.mubr.bf16.mxu0 %v2979_v60  ;;  %v2934_v59 = vcombine.low %v88_v30, %v96_v31 }
  0xd5   :  { %2383 = vmatprep.mubr.bf16.mxu1 %v2981_v61 }
  0xdb   :  { %2287 = vmatmul.mubr.bf16.gmra.mrb[92].mxu0 %v2978_v2 }
  0xdc   :  { %2384 = vmatmul.mubr.bf16.gmra.mrb[92].mxu1 %v2980_v3  ;;  %2424 = vmatprep.mubr.bf16.mxu0 %v2871_v4  ;;  %v2953_v4 = vcombine.high %v105_v55, %v113_v56 }
  0xdd   :  { %2521 = vmatprep.mubr.bf16.mxu1 %v2873_v5 }
  0xe3   :  { %2425 = vmatmul.mubr.bf16.vlgmr.msra.gmra.mrb[96].mxu0 %v2870_v10  ;;  %v120_v10 = vld [vmem:[%s4861_s0 + $0x330] sm:$0xff] }
  0xe4   :  { %2522 = vmatmul.mubr.bf16.vlgmr.msra.gmra.mrb[96].mxu1 %v2872_v11  ;;  %2432 = vmatprep.mubr.bf16.mxu0 %v2887_v12  ;;  %v128_v11 = vld [vmem:[%s4861_s0 + $0x370] sm:$0xff] }
  0xe5   :  { %2529 = vmatprep.mubr.bf16.mxu1 %v2889_v13  ;;  %v121_v13 = vld [vmem:[%s4861_s0 + $0x338] sm:$0xff]  ;;  %v2967_v22 = vcombine.high %v120_v10, %v128_v11 }
  0xeb   :  { %2433 = vmatmul.mubr.bf16.gmra.mrb[100].mxu0 %v2886_v18 }
  0xec   :  { %2530 = vmatmul.mubr.bf16.gmra.mrb[100].mxu1 %v2888_v19  ;;  %2440 = vmatprep.mubr.bf16.mxu0 %v2903_v20 }
  0xed   :  { %2537 = vmatprep.mubr.bf16.mxu1 %v2905_v21  ;;  %v2952_v21 = vcombine.low %v105_v55, %v113_v56 }
  0xf3   :  { %2441 = vmatmul.mubr.bf16.gmra.mrb[104].mxu0 %v2902_v26  ;;  %v2969_v26 = vcombine.high %v121_v13, %v129_v14 }
  0xf4   :  { %2538 = vmatmul.mubr.bf16.gmra.mrb[104].mxu1 %v2904_v27  ;;  %2448 = vmatprep.mubr.bf16.mxu0 %v2919_v28 }
  0xf5   :  { %2545 = vmatprep.mubr.bf16.mxu1 %v2921_v29 }
  0xf6   :  { %v3211_v32 = vpop.f32.mrb[0].mxu0 }
  0xf7   :  { %v3275_v35 = vpop.f32.mrb[0].mxu1  ;;  %v3212_v36 = vpop.f32.mrb[1].mxu0 }
  0xf8   :  { %v3213_v38 = vadd.f32 %v3212_v36, %v3211_v32  ;;  %v3276_v39 = vpop.f32.mrb[1].mxu1  ;;  %v3214_v40 = vpop.f32.mrb[2].mxu0  ;;  %v136_v32 = vld [vmem:[%s4861_s0 + $0x3b0] sm:$0xff]  ;;  %v145_v36 = vld [vmem:[%s4861_s0 + $0x3f8] sm:$0xff] }
  0xf9   :  { %v3277_v43 = vadd.f32 %v3276_v39, %v3275_v35  ;;  %v3278_v44 = vpop.f32.mrb[2].mxu1  ;;  %v3215_v45 = vpop.f32.mrb[3].mxu0  ;;  %v137_v35 = vld [vmem:[%s4861_s0 + $0x3b8] sm:$0xff]  ;;  %v2966_v39 = vcombine.low %v120_v10, %v128_v11 }
  0xfa   :  { %v3216_v47 = vadd.f32 %v3215_v45, %v3214_v40  ;;  %v3279_v48 = vpop.f32.mrb[3].mxu1 }
  0xfb   :  { %v4594_v49 = vadd.f32 %v3277_v43, %v3213_v38  ;;  %v3280_v50 = vadd.f32 %v3279_v48, %v3278_v44  ;;  %2449 = vmatmul.mubr.bf16.gmra.mrb[108].mxu0 %v2918_v37  ;;  %v2968_v43 = vcombine.low %v121_v13, %v129_v14  ;;  %v2983_v44 = vcombine.high %v136_v32, %v144_v33 }
  0xfc   :  { %2546 = vmatmul.mubr.bf16.gmra.mrb[108].mxu1 %v2920_v41  ;;  %2456 = vmatprep.mubr.bf16.mxu0 %v2935_v42  ;;  %v2985_v48 = vcombine.high %v137_v35, %v145_v36 }
  0xfd   :  { %v4596_v51 = vadd.f32 %v3280_v50, %v3216_v47  ;;  %2553 = vmatprep.mubr.bf16.mxu1 %v2937_v46 }
  0xfe   :  { %v3217_v54 = vpop.f32.mrb[4].mxu0 }
  0xff   :  { %v3281_v57 = vpop.f32.mrb[4].mxu1  ;;  %v3218_v58 = vpop.f32.mrb[5].mxu0 }
 0x100   :  { %v3219_v60 = vadd.f32 %v3218_v58, %v3217_v54  ;;  %v3282_v61 = vpop.f32.mrb[5].mxu1  ;;  %v3220_v62 = vpop.f32.mrb[6].mxu0 }
 0x101   :  { %v3283_v1 = vadd.f32 %v3282_v61, %v3281_v57  ;;  %v3284_v2 = vpop.f32.mrb[6].mxu1  ;;  %v3221_v3 = vpop.f32.mrb[7].mxu0 }
 0x102   :  { %v3222_v5 = vadd.f32 %v3221_v3, %v3220_v62  ;;  %v3285_v6 = vpop.f32.mrb[7].mxu1 }
 0x103   :  { %v4610_v7 = vadd.f32 %v3283_v1, %v3219_v60  ;;  %v3286_v8 = vadd.f32 %v3285_v6, %v3284_v2  ;;  %2457 = vmatmul.mubr.bf16.gmra.mrb[112].mxu0 %v2934_v59  ;;  %v2982_v59 = vcombine.low %v136_v32, %v144_v33 }
 0x104   :  { %2554 = vmatmul.mubr.bf16.gmra.mrb[112].mxu1 %v2936_v63  ;;  %2464 = vmatprep.mubr.bf16.mxu0 %v2951_v0  ;;  %v2984_v63 = vcombine.low %v137_v35, %v145_v36 }
 0x105   :  { %v4612_v9 = vadd.f32 %v3286_v8, %v3222_v5  ;;  %2561 = vmatprep.mubr.bf16.mxu1 %v2953_v4 }
 0x106   :  { %v3223_v12 = vpop.f32.mrb[8].mxu0 }
 0x107   :  { %v3287_v15 = vpop.f32.mrb[8].mxu1  ;;  %v3224_v16 = vpop.f32.mrb[9].mxu0 }
 0x108   :  { %v3225_v18 = vadd.f32 %v3224_v16, %v3223_v12  ;;  %v3288_v19 = vpop.f32.mrb[9].mxu1  ;;  %v3226_v20 = vpop.f32.mrb[10].mxu0 }
 0x109   :  { %v3289_v23 = vadd.f32 %v3288_v19, %v3287_v15  ;;  %v3290_v24 = vpop.f32.mrb[10].mxu1  ;;  %v3227_v25 = vpop.f32.mrb[11].mxu0 }
 0x10a   :  { %v3228_v27 = vadd.f32 %v3227_v25, %v3226_v20  ;;  %v3291_v28 = vpop.f32.mrb[11].mxu1 }
 0x10b   :  { %v4626_v29 = vadd.f32 %v3289_v23, %v3225_v18  ;;  %v3292_v30 = vadd.f32 %v3291_v28, %v3290_v24  ;;  %2465 = vmatmul.mubr.bf16.gmra.mrb[116].mxu0 %v2950_v17 }
 0x10c   :  { %2562 = vmatmul.mubr.bf16.gmra.mrb[116].mxu1 %v2952_v21  ;;  %2472 = vmatprep.mubr.bf16.mxu0 %v2967_v22 }
 0x10d   :  { %v4628_v31 = vadd.f32 %v3292_v30, %v3228_v27  ;;  %2569 = vmatprep.mubr.bf16.mxu1 %v2969_v26 }
 0x10e   :  { %v3229_v34 = vpop.f32.mrb[12].mxu0 }
 0x10f   :  { %v3293_v37 = vpop.f32.mrb[12].mxu1  ;;  %v3230_v38 = vpop.f32.mrb[13].mxu0 }
 0x110   :  { %v3231_v40 = vadd.f32 %v3230_v38, %v3229_v34  ;;  %v3294_v41 = vpop.f32.mrb[13].mxu1  ;;  %v3232_v42 = vpop.f32.mrb[14].mxu0 }
 0x111   :  { %v3295_v45 = vadd.f32 %v3294_v41, %v3293_v37  ;;  %v3296_v46 = vpop.f32.mrb[14].mxu1  ;;  %v3233_v47 = vpop.f32.mrb[15].mxu0 }
 0x112   :  { %v3234_v50 = vadd.f32 %v3233_v47, %v3232_v42  ;;  %v3297_v52 = vpop.f32.mrb[15].mxu1 }
 0x113   :  { %v4642_v53 = vadd.f32 %v3295_v45, %v3231_v40  ;;  %v3298_v54 = vadd.f32 %v3297_v52, %v3296_v46  ;;  %2473 = vmatmul.mubr.bf16.gmra.mrb[120].mxu0 %v2966_v39 }
 0x114   :  { %2570 = vmatmul.mubr.bf16.gmra.mrb[120].mxu1 %v2968_v43  ;;  %2480 = vmatprep.mubr.bf16.mxu0 %v2983_v44 }
 0x115   :  { %v4644_v55 = vadd.f32 %v3298_v54, %v3234_v50  ;;  %2577 = vmatprep.mubr.bf16.mxu1 %v2985_v48 }
 0x116   :  { %v3235_v56 = vpop.f32.mrb[16].mxu0 }
 0x117   :  { %v3299_v57 = vpop.f32.mrb[16].mxu1  ;;  %v3236_v58 = vpop.f32.mrb[17].mxu0 }
 0x118   :  { %v3237_v60 = vadd.f32 %v3236_v58, %v3235_v56  ;;  %v3300_v61 = vpop.f32.mrb[17].mxu1  ;;  %v3238_v62 = vpop.f32.mrb[18].mxu0 }
 0x119   :  { %v3301_v0 = vadd.f32 %v3300_v61, %v3299_v57  ;;  %v3302_v1 = vpop.f32.mrb[18].mxu1  ;;  %v3239_v2 = vpop.f32.mrb[19].mxu0 }
 0x11a   :  { %v3240_v3 = vadd.f32 %v3239_v2, %v3238_v62  ;;  %v3303_v4 = vpop.f32.mrb[19].mxu1 }
 0x11b   :  { %v4646_v5 = vadd.f32 %v3301_v0, %v3237_v60  ;;  %v3304_v6 = vadd.f32 %v3303_v4, %v3302_v1  ;;  %2481 = vmatmul.mubr.bf16.gmra.mrb[124].mxu0 %v2982_v59 }
 0x11c   :  { %2578 = vmatmul.mubr.bf16.gmra.mrb[124].mxu1 %v2984_v63 }
 0x11d   :  { %v4648_v8 = vadd.f32 %v3304_v6, %v3240_v3 }
 0x11e   :  { %v3241_v10 = vpop.f32.mrb[20].mxu0 }
 0x11f   :  { %v3305_v11 = vpop.f32.mrb[20].mxu1  ;;  %v3242_v12 = vpop.f32.mrb[21].mxu0 }
 0x120   :  { %v3243_v13 = vadd.f32 %v3242_v12, %v3241_v10  ;;  %v3306_v14 = vpop.f32.mrb[21].mxu1  ;;  %v3244_v15 = vpop.f32.mrb[22].mxu0 }
 0x121   :  { %v3307_v16 = vadd.f32 %v3306_v14, %v3305_v11  ;;  %v3308_v17 = vpop.f32.mrb[22].mxu1  ;;  %v3245_v18 = vpop.f32.mrb[23].mxu0 }
 0x122   :  { %v3246_v19 = vadd.f32 %v3245_v18, %v3244_v15  ;;  %v3309_v20 = vpop.f32.mrb[23].mxu1 }
 0x123   :  { %v4650_v21 = vadd.f32 %v3307_v16, %v3243_v13  ;;  %v3310_v22 = vadd.f32 %v3309_v20, %v3308_v17 }
 0x125   :  { %v4652_v23 = vadd.f32 %v3310_v22, %v3246_v19 }
 0x126   :  { %v3247_v24 = vpop.f32.mrb[24].mxu0 }
 0x127   :  { %v3311_v25 = vpop.f32.mrb[24].mxu1  ;;  %v3248_v26 = vpop.f32.mrb[25].mxu0 }
 0x128   :  { %v3249_v27 = vadd.f32 %v3248_v26, %v3247_v24  ;;  %v3312_v28 = vpop.f32.mrb[25].mxu1  ;;  %v3250_v30 = vpop.f32.mrb[26].mxu0 }
 0x129   :  { %v3313_v32 = vadd.f32 %v3312_v28, %v3311_v25  ;;  %v3314_v33 = vpop.f32.mrb[26].mxu1  ;;  %v3251_v34 = vpop.f32.mrb[27].mxu0 }
 0x12a   :  { %v3252_v35 = vadd.f32 %v3251_v34, %v3250_v30  ;;  %v3315_v36 = vpop.f32.mrb[27].mxu1 }
 0x12b   :  { %v4654_v37 = vadd.f32 %v3313_v32, %v3249_v27  ;;  %v3316_v38 = vadd.f32 %v3315_v36, %v3314_v33 }
 0x12d   :  { %v4656_v39 = vadd.f32 %v3316_v38, %v3252_v35 }
 0x12e   :  { %v3253_v40 = vpop.f32.mrb[28].mxu0 }
 0x12f   :  { %v3317_v41 = vpop.f32.mrb[28].mxu1  ;;  %v3254_v42 = vpop.f32.mrb[29].mxu0 }
 0x130   :  { %v3255_v43 = vadd.f32 %v3254_v42, %v3253_v40  ;;  %v3318_v44 = vpop.f32.mrb[29].mxu1  ;;  %v3256_v45 = vpop.f32.mrb[30].mxu0 }
 0x131   :  { %v3319_v46 = vadd.f32 %v3318_v44, %v3317_v41  ;;  %v3320_v47 = vpop.f32.mrb[30].mxu1  ;;  %v3257_v48 = vpop.f32.mrb[31].mxu0 }
 0x132   :  { %v3258_v50 = vadd.f32 %v3257_v48, %v3256_v45  ;;  %v3321_v52 = vpop.f32.mrb[31].mxu1 }
 0x133   :  { %v4658_v54 = vadd.f32 %v3319_v46, %v3255_v43  ;;  %v3322_v56 = vadd.f32 %v3321_v52, %v3320_v47 }
 0x135   :  { %v4660_v57 = vadd.f32 %v3322_v56, %v3258_v50 }
 0x136   :  { %v3339_v58 = vpop.f32.mrb[32].mxu0 }
 0x137   :  { %v3403_v59 = vpop.f32.mrb[32].mxu1  ;;  %v3340_v60 = vpop.f32.mrb[33].mxu0 }
 0x138   :  { %v3341_v61 = vadd.f32 %v3340_v60, %v3339_v58  ;;  %v3404_v62 = vpop.f32.mrb[33].mxu1  ;;  %v3342_v63 = vpop.f32.mrb[34].mxu0 }
 0x139   :  { %v3405_v0 = vadd.f32 %v3404_v62, %v3403_v59  ;;  %v3406_v1 = vpop.f32.mrb[34].mxu1  ;;  %v3343_v2 = vpop.f32.mrb[35].mxu0 }
 0x13a   :  { %v2039_v3 = vadd.f32 %v3341_v61, %v4594_v49  ;;  %v3344_v4 = vadd.f32 %v3343_v2, %v3342_v63  ;;  %v3407_v6 = vpop.f32.mrb[35].mxu1 }
 0x13b   :  { %v3408_v10 = vadd.f32 %v3407_v6, %v3406_v1 }
 0x13c   :  { %v4663_v11 = vadd.f32 %v3405_v0, %v2039_v3  ;;  %v2042_v12 = vadd.f32 %v3344_v4, %v4596_v51 }
 0x13e   :  { %v4666_v13 = vadd.f32 %v3408_v10, %v2042_v12  ;;  %v3345_v14 = vpop.f32.mrb[36].mxu0 }
 0x13f   :  { %v3409_v15 = vpop.f32.mrb[36].mxu1  ;;  %v3346_v16 = vpop.f32.mrb[37].mxu0 }
 0x140   :  { %v3347_v17 = vadd.f32 %v3346_v16, %v3345_v14  ;;  %v3410_v18 = vpop.f32.mrb[37].mxu1  ;;  %v3348_v19 = vpop.f32.mrb[38].mxu0 }
 0x141   :  { %v3411_v20 = vadd.f32 %v3410_v18, %v3409_v15  ;;  %v3412_v22 = vpop.f32.mrb[38].mxu1  ;;  %v3349_v24 = vpop.f32.mrb[39].mxu0 }
 0x142   :  { %v2047_v49 = vadd.f32 %v3347_v17, %v4610_v7  ;;  %v3350_v25 = vadd.f32 %v3349_v24, %v3348_v19  ;;  %v3413_v26 = vpop.f32.mrb[39].mxu1 }
 0x143   :  { %v3414_v27 = vadd.f32 %v3413_v26, %v3412_v22 }
 0x144   :  { %v4669_v28 = vadd.f32 %v3411_v20, %v2047_v49  ;;  %v2050_v51 = vadd.f32 %v3350_v25, %v4612_v9 }
 0x146   :  { %v4672_v30 = vadd.f32 %v3414_v27, %v2050_v51  ;;  %v3351_v32 = vpop.f32.mrb[40].mxu0 }
 0x147   :  { %v3415_v33 = vpop.f32.mrb[40].mxu1  ;;  %v3352_v34 = vpop.f32.mrb[41].mxu0 }
 0x148   :  { %v3353_v35 = vadd.f32 %v3352_v34, %v3351_v32  ;;  %v3416_v36 = vpop.f32.mrb[41].mxu1  ;;  %v3354_v38 = vpop.f32.mrb[42].mxu0 }
 0x149   :  { %v3417_v40 = vadd.f32 %v3416_v36, %v3415_v33  ;;  %v3418_v41 = vpop.f32.mrb[42].mxu1  ;;  %v3355_v42 = vpop.f32.mrb[43].mxu0 }
 0x14a   :  { %v2055_v7 = vadd.f32 %v3353_v35, %v4626_v29  ;;  %v3356_v43 = vadd.f32 %v3355_v42, %v3354_v38  ;;  %v3419_v44 = vpop.f32.mrb[43].mxu1 }
 0x14b   :  { %v3420_v45 = vadd.f32 %v3419_v44, %v3418_v41 }
 0x14c   :  { %v4675_v46 = vadd.f32 %v3417_v40, %v2055_v7  ;;  %v2058_v9 = vadd.f32 %v3356_v43, %v4628_v31 }
 0x14e   :  { %v4678_v47 = vadd.f32 %v3420_v45, %v2058_v9  ;;  %v3357_v48 = vpop.f32.mrb[44].mxu0 }
 0x14f   :  { %v3421_v50 = vpop.f32.mrb[44].mxu1  ;;  %v3358_v52 = vpop.f32.mrb[45].mxu0 }
 0x150   :  { %v3359_v56 = vadd.f32 %v3358_v52, %v3357_v48  ;;  %v3422_v58 = vpop.f32.mrb[45].mxu1  ;;  %v3360_v59 = vpop.f32.mrb[46].mxu0 }
 0x151   :  { %v3423_v60 = vadd.f32 %v3422_v58, %v3421_v50  ;;  %v3424_v61 = vpop.f32.mrb[46].mxu1  ;;  %v3361_v62 = vpop.f32.mrb[47].mxu0 }
 0x152   :  { %v2063_v29 = vadd.f32 %v3359_v56, %v4642_v53  ;;  %v3362_v63 = vadd.f32 %v3361_v62, %v3360_v59  ;;  %v3425_v0 = vpop.f32.mrb[47].mxu1 }
 0x153   :  { %v3426_v1 = vadd.f32 %v3425_v0, %v3424_v61 }
 0x154   :  { %v4681_v2 = vadd.f32 %v3423_v60, %v2063_v29  ;;  %v2066_v31 = vadd.f32 %v3362_v63, %v4644_v55 }
 0x156   :  { %v4684_v3 = vadd.f32 %v3426_v1, %v2066_v31  ;;  %v3363_v4 = vpop.f32.mrb[48].mxu0 }
 0x157   :  { %v3427_v6 = vpop.f32.mrb[48].mxu1  ;;  %v3364_v10 = vpop.f32.mrb[49].mxu0 }
 0x158   :  { %v3365_v12 = vadd.f32 %v3364_v10, %v3363_v4  ;;  %v3428_v14 = vpop.f32.mrb[49].mxu1  ;;  %v3366_v15 = vpop.f32.mrb[50].mxu0 }
 0x159   :  { %v3429_v16 = vadd.f32 %v3428_v14, %v3427_v6  ;;  %v3430_v17 = vpop.f32.mrb[50].mxu1  ;;  %v3367_v18 = vpop.f32.mrb[51].mxu0 }
 0x15a   :  { %v2071_v53 = vadd.f32 %v3365_v12, %v4646_v5  ;;  %v3368_v19 = vadd.f32 %v3367_v18, %v3366_v15  ;;  %v3431_v20 = vpop.f32.mrb[51].mxu1 }
 0x15b   :  { %v3432_v22 = vadd.f32 %v3431_v20, %v3430_v17 }
 0x15c   :  { %v4687_v24 = vadd.f32 %v3429_v16, %v2071_v53  ;;  %v2074_v55 = vadd.f32 %v3368_v19, %v4648_v8 }
 0x15e   :  { %v4690_v49 = vadd.f32 %v3432_v22, %v2074_v55  ;;  %v3369_v25 = vpop.f32.mrb[52].mxu0 }
 0x15f   :  { %v3433_v26 = vpop.f32.mrb[52].mxu1  ;;  %v3370_v27 = vpop.f32.mrb[53].mxu0 }
 0x160   :  { %v3371_v51 = vadd.f32 %v3370_v27, %v3369_v25  ;;  %v3434_v32 = vpop.f32.mrb[53].mxu1  ;;  %v3372_v33 = vpop.f32.mrb[54].mxu0 }
 0x161   :  { %v3435_v34 = vadd.f32 %v3434_v32, %v3433_v26  ;;  %v3436_v35 = vpop.f32.mrb[54].mxu1  ;;  %v3373_v36 = vpop.f32.mrb[55].mxu0 }
 0x162   :  { %v2079_v5 = vadd.f32 %v3371_v51, %v4650_v21  ;;  %v3374_v38 = vadd.f32 %v3373_v36, %v3372_v33  ;;  %v3437_v40 = vpop.f32.mrb[55].mxu1 }
 0x163   :  { %v3438_v41 = vadd.f32 %v3437_v40, %v3436_v35 }
 0x164   :  { %v4693_v42 = vadd.f32 %v3435_v34, %v2079_v5  ;;  %v2082_v8 = vadd.f32 %v3374_v38, %v4652_v23 }
 0x166   :  { %v4696_v7 = vadd.f32 %v3438_v41, %v2082_v8  ;;  %v3375_v43 = vpop.f32.mrb[56].mxu0 }
 0x167   :  { %v3439_v44 = vpop.f32.mrb[56].mxu1  ;;  %v3376_v45 = vpop.f32.mrb[57].mxu0 }
 0x168   :  { %v3377_v9 = vadd.f32 %v3376_v45, %v3375_v43  ;;  %v3440_v48 = vpop.f32.mrb[57].mxu1  ;;  %v3378_v50 = vpop.f32.mrb[58].mxu0 }
 0x169   :  { %v3441_v52 = vadd.f32 %v3440_v48, %v3439_v44  ;;  %v3442_v56 = vpop.f32.mrb[58].mxu1  ;;  %v3379_v58 = vpop.f32.mrb[59].mxu0 }
 0x16a   :  { %v2087_v21 = vadd.f32 %v3377_v9, %v4654_v37  ;;  %v3380_v59 = vadd.f32 %v3379_v58, %v3378_v50  ;;  %v3443_v60 = vpop.f32.mrb[59].mxu1 }
 0x16b   :  { %v3444_v61 = vadd.f32 %v3443_v60, %v3442_v56 }
 0x16c   :  { %v4699_v62 = vadd.f32 %v3441_v52, %v2087_v21  ;;  %v2090_v23 = vadd.f32 %v3380_v59, %v4656_v39 }
 0x16e   :  { %v4702_v29 = vadd.f32 %v3444_v61, %v2090_v23  ;;  %v3381_v63 = vpop.f32.mrb[60].mxu0 }
 0x16f   :  { %v3445_v0 = vpop.f32.mrb[60].mxu1  ;;  %v3382_v1 = vpop.f32.mrb[61].mxu0 }
 0x170   :  { %v3383_v31 = vadd.f32 %v3382_v1, %v3381_v63  ;;  %v3446_v4 = vpop.f32.mrb[61].mxu1  ;;  %v3384_v6 = vpop.f32.mrb[62].mxu0 }
 0x171   :  { %v3447_v10 = vadd.f32 %v3446_v4, %v3445_v0  ;;  %v3448_v12 = vpop.f32.mrb[62].mxu1  ;;  %v3385_v14 = vpop.f32.mrb[63].mxu0 }
 0x172   :  { %v2095_v37 = vadd.f32 %v3383_v31, %v4658_v54  ;;  %v3386_v15 = vadd.f32 %v3385_v14, %v3384_v6  ;;  %v3449_v16 = vpop.f32.mrb[63].mxu1 }
 0x173   :  { %v3450_v17 = vadd.f32 %v3449_v16, %v3448_v12 }
 0x174   :  { %v4705_v18 = vadd.f32 %v3447_v10, %v2095_v37  ;;  %v2098_v39 = vadd.f32 %v3386_v15, %v4660_v57 }
 0x176   :  { %v4708_v53 = vadd.f32 %v3450_v17, %v2098_v39  ;;  %v3467_v19 = vpop.f32.mrb[64].mxu0 }
 0x177   :  { %v3531_v20 = vpop.f32.mrb[64].mxu1  ;;  %v3468_v22 = vpop.f32.mrb[65].mxu0 }
 0x178   :  { %v3469_v55 = vadd.f32 %v3468_v22, %v3467_v19  ;;  %v3532_v25 = vpop.f32.mrb[65].mxu1  ;;  %v3470_v26 = vpop.f32.mrb[66].mxu0 }
 0x179   :  { %v3533_v27 = vadd.f32 %v3532_v25, %v3531_v20  ;;  %v3534_v51 = vpop.f32.mrb[66].mxu1  ;;  %v3471_v32 = vpop.f32.mrb[67].mxu0 }
 0x17a   :  { %v2233_v54 = vadd.f32 %v3469_v55, %v4663_v11  ;;  %v3472_v33 = vadd.f32 %v3471_v32, %v3470_v26  ;;  %v3535_v34 = vpop.f32.mrb[67].mxu1 }
 0x17b   :  { %v3536_v35 = vadd.f32 %v3535_v34, %v3534_v51 }
 0x17c   :  { %v4711_v36 = vadd.f32 %v3533_v27, %v2233_v54  ;;  %v2236_v57 = vadd.f32 %v3472_v33, %v4666_v13 }
 0x17e   :  { %v4714_v5 = vadd.f32 %v3536_v35, %v2236_v57  ;;  %v3473_v38 = vpop.f32.mrb[68].mxu0 }
 0x17f   :  { %v3537_v40 = vpop.f32.mrb[68].mxu1  ;;  %v3474_v41 = vpop.f32.mrb[69].mxu0 }
 0x180   :  { %v3475_v8 = vadd.f32 %v3474_v41, %v3473_v38  ;;  %v3538_v43 = vpop.f32.mrb[69].mxu1  ;;  %v3476_v44 = vpop.f32.mrb[70].mxu0 }
 0x181   :  { %v3539_v45 = vadd.f32 %v3538_v43, %v3537_v40  ;;  %v3540_v9 = vpop.f32.mrb[70].mxu1  ;;  %v3477_v48 = vpop.f32.mrb[71].mxu0 }
 0x182   :  { %v2241_v11 = vadd.f32 %v3475_v8, %v4669_v28  ;;  %v3478_v50 = vadd.f32 %v3477_v48, %v3476_v44  ;;  %v3541_v52 = vpop.f32.mrb[71].mxu1 }
 0x183   :  { %v3542_v56 = vadd.f32 %v3541_v52, %v3540_v9 }
 0x184   :  { %v4717_v58 = vadd.f32 %v3539_v45, %v2241_v11  ;;  %v2244_v13 = vadd.f32 %v3478_v50, %v4672_v30 }
 0x186   :  { %v4720_v21 = vadd.f32 %v3542_v56, %v2244_v13  ;;  %v3479_v59 = vpop.f32.mrb[72].mxu0 }
 0x187   :  { %v3543_v60 = vpop.f32.mrb[72].mxu1  ;;  %v3480_v61 = vpop.f32.mrb[73].mxu0 }
 0x188   :  { %v3481_v23 = vadd.f32 %v3480_v61, %v3479_v59  ;;  %v3544_v63 = vpop.f32.mrb[73].mxu1  ;;  %v3482_v0 = vpop.f32.mrb[74].mxu0 }
 0x189   :  { %v3545_v1 = vadd.f32 %v3544_v63, %v3543_v60  ;;  %v3546_v31 = vpop.f32.mrb[74].mxu1  ;;  %v3483_v4 = vpop.f32.mrb[75].mxu0 }
 0x18a   :  { %v2249_v28 = vadd.f32 %v3481_v23, %v4675_v46  ;;  %v3484_v6 = vadd.f32 %v3483_v4, %v3482_v0  ;;  %v3547_v10 = vpop.f32.mrb[75].mxu1 }
 0x18b   :  { %v3548_v12 = vadd.f32 %v3547_v10, %v3546_v31 }
 0x18c   :  { %v4723_v14 = vadd.f32 %v3545_v1, %v2249_v28  ;;  %v2252_v30 = vadd.f32 %v3484_v6, %v4678_v47 }
 0x18e   :  { %v4726_v37 = vadd.f32 %v3548_v12, %v2252_v30  ;;  %v3485_v15 = vpop.f32.mrb[76].mxu0 }
 0x18f   :  { %v3549_v16 = vpop.f32.mrb[76].mxu1  ;;  %v3486_v17 = vpop.f32.mrb[77].mxu0 }
 0x190   :  { %v3487_v39 = vadd.f32 %v3486_v17, %v3485_v15  ;;  %v3550_v19 = vpop.f32.mrb[77].mxu1  ;;  %v3488_v20 = vpop.f32.mrb[78].mxu0 }
 0x191   :  { %v3551_v22 = vadd.f32 %v3550_v19, %v3549_v16  ;;  %v3552_v55 = vpop.f32.mrb[78].mxu1  ;;  %v3489_v25 = vpop.f32.mrb[79].mxu0 }
 0x192   :  { %v2257_v46 = vadd.f32 %v3487_v39, %v4681_v2  ;;  %v3490_v26 = vadd.f32 %v3489_v25, %v3488_v20  ;;  %v3553_v27 = vpop.f32.mrb[79].mxu1 }
 0x193   :  { %v3554_v51 = vadd.f32 %v3553_v27, %v3552_v55 }
 0x194   :  { %v4729_v32 = vadd.f32 %v3551_v22, %v2257_v46  ;;  %v2260_v47 = vadd.f32 %v3490_v26, %v4684_v3 }
 0x196   :  { %v4732_v54 = vadd.f32 %v3554_v51, %v2260_v47  ;;  %v3491_v33 = vpop.f32.mrb[80].mxu0 }
 0x197   :  { %v3555_v34 = vpop.f32.mrb[80].mxu1  ;;  %v3492_v35 = vpop.f32.mrb[81].mxu0 }
 0x198   :  { %v3493_v57 = vadd.f32 %v3492_v35, %v3491_v33  ;;  %v3556_v38 = vpop.f32.mrb[81].mxu1  ;;  %v3494_v40 = vpop.f32.mrb[82].mxu0 }
 0x199   :  { %v3557_v41 = vadd.f32 %v3556_v38, %v3555_v34  ;;  %v3558_v8 = vpop.f32.mrb[82].mxu1  ;;  %v3495_v43 = vpop.f32.mrb[83].mxu0 }
 0x19a   :  { %v2265_v2 = vadd.f32 %v3493_v57, %v4687_v24  ;;  %v3496_v44 = vadd.f32 %v3495_v43, %v3494_v40  ;;  %v3559_v45 = vpop.f32.mrb[83].mxu1 }
 0x19b   :  { %v3560_v9 = vadd.f32 %v3559_v45, %v3558_v8 }
 0x19c   :  { %v4735_v48 = vadd.f32 %v3557_v41, %v2265_v2  ;;  %v2268_v3 = vadd.f32 %v3496_v44, %v4690_v49 }
 0x19e   :  { %v4738_v11 = vadd.f32 %v3560_v9, %v2268_v3  ;;  %v3497_v50 = vpop.f32.mrb[84].mxu0 }
 0x19f   :  { %v3561_v52 = vpop.f32.mrb[84].mxu1  ;;  %v3498_v56 = vpop.f32.mrb[85].mxu0 }
 0x1a0   :  { %v3499_v13 = vadd.f32 %v3498_v56, %v3497_v50  ;;  %v3562_v59 = vpop.f32.mrb[85].mxu1  ;;  %v3500_v60 = vpop.f32.mrb[86].mxu0 }
 0x1a1   :  { %v3563_v61 = vadd.f32 %v3562_v59, %v3561_v52  ;;  %v3564_v23 = vpop.f32.mrb[86].mxu1  ;;  %v3501_v63 = vpop.f32.mrb[87].mxu0 }
 0x1a2   :  { %v2273_v24 = vadd.f32 %v3499_v13, %v4693_v42  ;;  %v3502_v0 = vadd.f32 %v3501_v63, %v3500_v60  ;;  %v3565_v1 = vpop.f32.mrb[87].mxu1 }
 0x1a3   :  { %v3566_v31 = vadd.f32 %v3565_v1, %v3564_v23 }
 0x1a4   :  { %v4741_v4 = vadd.f32 %v3563_v61, %v2273_v24  ;;  %v2276_v49 = vadd.f32 %v3502_v0, %v4696_v7 }
 0x1a6   :  { %v4744_v28 = vadd.f32 %v3566_v31, %v2276_v49  ;;  %v3503_v6 = vpop.f32.mrb[88].mxu0 }
 0x1a7   :  { %v3567_v10 = vpop.f32.mrb[88].mxu1  ;;  %v3504_v12 = vpop.f32.mrb[89].mxu0 }
 0x1a8   :  { %v3505_v30 = vadd.f32 %v3504_v12, %v3503_v6  ;;  %v3568_v15 = vpop.f32.mrb[89].mxu1  ;;  %v3506_v16 = vpop.f32.mrb[90].mxu0 }
 0x1a9   :  { %v3569_v17 = vadd.f32 %v3568_v15, %v3567_v10  ;;  %v3570_v39 = vpop.f32.mrb[90].mxu1  ;;  %v3507_v19 = vpop.f32.mrb[91].mxu0 }
 0x1aa   :  { %v2281_v42 = vadd.f32 %v3505_v30, %v4699_v62  ;;  %v3508_v20 = vadd.f32 %v3507_v19, %v3506_v16  ;;  %v3571_v22 = vpop.f32.mrb[91].mxu1 }
 0x1ab   :  { %v3572_v55 = vadd.f32 %v3571_v22, %v3570_v39 }
 0x1ac   :  { %v4747_v25 = vadd.f32 %v3569_v17, %v2281_v42  ;;  %v2284_v7 = vadd.f32 %v3508_v20, %v4702_v29 }
 0x1ae   :  { %v4750_v46 = vadd.f32 %v3572_v55, %v2284_v7  ;;  %v3509_v26 = vpop.f32.mrb[92].mxu0 }
 0x1af   :  { %v3573_v27 = vpop.f32.mrb[92].mxu1  ;;  %v3510_v51 = vpop.f32.mrb[93].mxu0 }
 0x1b0   :  { %v3511_v47 = vadd.f32 %v3510_v51, %v3509_v26  ;;  %v3574_v33 = vpop.f32.mrb[93].mxu1  ;;  %v3512_v34 = vpop.f32.mrb[94].mxu0 }
 0x1b1   :  { %v3575_v35 = vadd.f32 %v3574_v33, %v3573_v27  ;;  %v3576_v57 = vpop.f32.mrb[94].mxu1  ;;  %v3513_v38 = vpop.f32.mrb[95].mxu0 }
 0x1b2   :  { %v2289_v62 = vadd.f32 %v3511_v47, %v4705_v18  ;;  %v3514_v40 = vadd.f32 %v3513_v38, %v3512_v34  ;;  %v3577_v41 = vpop.f32.mrb[95].mxu1 }
 0x1b3   :  { %v3578_v8 = vadd.f32 %v3577_v41, %v3576_v57 }
 0x1b4   :  { %v4753_v43 = vadd.f32 %v3575_v35, %v2289_v62  ;;  %v2292_v29 = vadd.f32 %v3514_v40, %v4708_v53 }
 0x1b6   :  { %v4756_v2 = vadd.f32 %v3578_v8, %v2292_v29  ;;  %v3595_v44 = vpop.f32.mrb[96].mxu0 }
 0x1b7   :  { %v3659_v45 = vpop.f32.mrb[96].mxu1  ;;  %v3596_v9 = vpop.f32.mrb[97].mxu0 }
 0x1b8   :  { %v3597_v3 = vadd.f32 %v3596_v9, %v3595_v44  ;;  %v3660_v50 = vpop.f32.mrb[97].mxu1  ;;  %v3598_v52 = vpop.f32.mrb[98].mxu0 }
 0x1b9   :  { %v3661_v56 = vadd.f32 %v3660_v50, %v3659_v45  ;;  %v3662_v13 = vpop.f32.mrb[98].mxu1  ;;  %v3599_v59 = vpop.f32.mrb[99].mxu0 }
 0x1ba   :  { %v2427_v18 = vadd.f32 %v3597_v3, %v4711_v36  ;;  %v3600_v60 = vadd.f32 %v3599_v59, %v3598_v52  ;;  %v3663_v61 = vpop.f32.mrb[99].mxu1 }
 0x1bb   :  { %v3664_v23 = vadd.f32 %v3663_v61, %v3662_v13 }
 0x1bc   :  { %v4759_v63 = vadd.f32 %v3661_v56, %v2427_v18  ;;  %v2430_v53 = vadd.f32 %v3600_v60, %v4714_v5 }
 0x1be   :  { %v4762_v24 = vadd.f32 %v3664_v23, %v2430_v53  ;;  %v3601_v0 = vpop.f32.mrb[100].mxu0 }
 0x1bf   :  { %v3665_v1 = vpop.f32.mrb[100].mxu1  ;;  %v3602_v31 = vpop.f32.mrb[101].mxu0 }
 0x1c0   :  { %v2586_v49 = vadd.f32 %v4762_v24, %v4759_v63  ;;  %v3603_v6 = vadd.f32 %v3602_v31, %v3601_v0  ;;  %v3666_v10 = vpop.f32.mrb[101].mxu1  ;;  %v3604_v12 = vpop.f32.mrb[102].mxu0 }
 0x1c1   :  { %v3667_v30 = vadd.f32 %v3666_v10, %v3665_v1  ;;  %v3668_v36 = vpop.f32.mrb[102].mxu1  ;;  %v3605_v15 = vpop.f32.mrb[103].mxu0 }
 0x1c2   :  { %v2435_v16 = vadd.f32 %v3603_v6, %v4717_v58  ;;  %v3606_v17 = vadd.f32 %v3605_v15, %v3604_v12  ;;  %v3669_v39 = vpop.f32.mrb[103].mxu1 }
 0x1c3   :  { %v3670_v19 = vadd.f32 %v3669_v39, %v3668_v36 }
 0x1c4   :  { %v4767_v5 = vadd.f32 %v3667_v30, %v2435_v16  ;;  %v2438_v42 = vadd.f32 %v3606_v17, %v4720_v21 }
 0x1c6   :  { %v2587_v20 = vadd.f32 %v2586_v49, %v4767_v5  ;;  %v4771_v22 = vadd.f32 %v3670_v19, %v2438_v42  ;;  %v3607_v55 = vpop.f32.mrb[104].mxu0 }
 0x1c7   :  { %v3671_v7 = vpop.f32.mrb[104].mxu1  ;;  %v3608_v26 = vpop.f32.mrb[105].mxu0 }
 0x1c8   :  { %v2588_v27 = vadd.f32 %v2587_v20, %v4771_v22  ;;  %v3609_v51 = vadd.f32 %v3608_v26, %v3607_v55  ;;  %v3672_v47 = vpop.f32.mrb[105].mxu1  ;;  %v3610_v33 = vpop.f32.mrb[106].mxu0 }
 0x1c9   :  { %v3673_v58 = vadd.f32 %v3672_v47, %v3671_v7  ;;  %v3674_v34 = vpop.f32.mrb[106].mxu1  ;;  %v3611_v35 = vpop.f32.mrb[107].mxu0 }
 0x1ca   :  { %v2443_v57 = vadd.f32 %v3609_v51, %v4723_v14  ;;  %v3612_v38 = vadd.f32 %v3611_v35, %v3610_v33  ;;  %v3675_v62 = vpop.f32.mrb[107].mxu1 }
 0x1cb   :  { %v3676_v21 = vadd.f32 %v3675_v62, %v3674_v34 }
 0x1cc   :  { %v4775_v40 = vadd.f32 %v3673_v58, %v2443_v57  ;;  %v2446_v41 = vadd.f32 %v3612_v38, %v4726_v37 }
 0x1ce   :  { %v2589_v8 = vadd.f32 %v2588_v27, %v4775_v40  ;;  %v4779_v29 = vadd.f32 %v3676_v21, %v2446_v41  ;;  %v3613_v44 = vpop.f32.mrb[108].mxu0 }
 0x1cf   :  { %v3677_v45 = vpop.f32.mrb[108].mxu1  ;;  %v3614_v9 = vpop.f32.mrb[109].mxu0 }
 0x1d0   :  { %v2590_v3 = vadd.f32 %v2589_v8, %v4779_v29  ;;  %v3615_v50 = vadd.f32 %v3614_v9, %v3613_v44  ;;  %v3678_v52 = vpop.f32.mrb[109].mxu1  ;;  %v3616_v56 = vpop.f32.mrb[110].mxu0 }
 0x1d1   :  { %v3679_v14 = vadd.f32 %v3678_v52, %v3677_v45  ;;  %v3680_v13 = vpop.f32.mrb[110].mxu1  ;;  %v3617_v59 = vpop.f32.mrb[111].mxu0 }
 0x1d2   :  { %v2451_v18 = vadd.f32 %v3615_v50, %v4729_v32  ;;  %v3618_v60 = vadd.f32 %v3617_v59, %v3616_v56  ;;  %v3681_v61 = vpop.f32.mrb[111].mxu1 }
 0x1d3   :  { %v3682_v37 = vadd.f32 %v3681_v61, %v3680_v13 }
 0x1d4   :  { %v4783_v23 = vadd.f32 %v3679_v14, %v2451_v18  ;;  %v2454_v53 = vadd.f32 %v3618_v60, %v4732_v54 }
 0x1d6   :  { %v2591_v0 = vadd.f32 %v2590_v3, %v4783_v23  ;;  %v4787_v1 = vadd.f32 %v3682_v37, %v2454_v53  ;;  %v3619_v31 = vpop.f32.mrb[112].mxu0 }
 0x1d7   :  { %v3683_v49 = vpop.f32.mrb[112].mxu1  ;;  %v3620_v6 = vpop.f32.mrb[113].mxu0 }
 0x1d8   :  { %v2592_v10 = vadd.f32 %v2591_v0, %v4787_v1  ;;  %v3621_v12 = vadd.f32 %v3620_v6, %v3619_v31  ;;  %v3684_v30 = vpop.f32.mrb[113].mxu1  ;;  %v3622_v36 = vpop.f32.mrb[114].mxu0 }
 0x1d9   :  { %v3685_v32 = vadd.f32 %v3684_v30, %v3683_v49  ;;  %v3686_v15 = vpop.f32.mrb[114].mxu1  ;;  %v3623_v16 = vpop.f32.mrb[115].mxu0 }
 0x1da   :  { %v2459_v17 = vadd.f32 %v3621_v12, %v4735_v48  ;;  %v3624_v39 = vadd.f32 %v3623_v16, %v3622_v36  ;;  %v3687_v19 = vpop.f32.mrb[115].mxu1 }
 0x1db   :  { %v3688_v54 = vadd.f32 %v3687_v19, %v3686_v15 }
 0x1dc   :  { %v4791_v42 = vadd.f32 %v3685_v32, %v2459_v17  ;;  %v2462_v20 = vadd.f32 %v3624_v39, %v4738_v11 }
 0x1de   :  { %v2593_v55 = vadd.f32 %v2592_v10, %v4791_v42  ;;  %v4795_v7 = vadd.f32 %v3688_v54, %v2462_v20  ;;  %v3625_v26 = vpop.f32.mrb[116].mxu0 }
 0x1df   :  { %v3689_v27 = vpop.f32.mrb[116].mxu1  ;;  %v3626_v51 = vpop.f32.mrb[117].mxu0 }
 0x1e0   :  { %v2594_v47 = vadd.f32 %v2593_v55, %v4795_v7  ;;  %v3627_v33 = vadd.f32 %v3626_v51, %v3625_v26  ;;  %v3690_v58 = vpop.f32.mrb[117].mxu1  ;;  %v3628_v34 = vpop.f32.mrb[118].mxu0 }
 0x1e1   :  { %v3691_v48 = vadd.f32 %v3690_v58, %v3689_v27  ;;  %v3692_v35 = vpop.f32.mrb[118].mxu1  ;;  %v3629_v57 = vpop.f32.mrb[119].mxu0 }
 0x1e2   :  { %v2467_v38 = vadd.f32 %v3627_v33, %v4741_v4  ;;  %v3630_v62 = vadd.f32 %v3629_v57, %v3628_v34  ;;  %v3693_v21 = vpop.f32.mrb[119].mxu1 }
 0x1e3   :  { %v3694_v11 = vadd.f32 %v3693_v21, %v3692_v35 }
 0x1e4   :  { %v2564_v41 = vadd.f32 %v3691_v48, %v2467_v38  ;;  %v2470_v8 = vadd.f32 %v3630_v62, %v4744_v28 }
 0x1e6   :  { %v2595_v44 = vadd.f32 %v2594_v47, %v2564_v41  ;;  %v2567_v45 = vadd.f32 %v3694_v11, %v2470_v8  ;;  %v3631_v9 = vpop.f32.mrb[120].mxu0 }
 0x1e7   :  { %v3695_v3 = vpop.f32.mrb[120].mxu1  ;;  %v3632_v50 = vpop.f32.mrb[121].mxu0 }
 0x1e8   :  { %v2596_v52 = vadd.f32 %v2595_v44, %v2567_v45  ;;  %v3633_v56 = vadd.f32 %v3632_v50, %v3631_v9  ;;  %v3696_v14 = vpop.f32.mrb[121].mxu1  ;;  %v3634_v13 = vpop.f32.mrb[122].mxu0 }
 0x1e9   :  { %v3697_v59 = vadd.f32 %v3696_v14, %v3695_v3  ;;  %v3698_v18 = vpop.f32.mrb[122].mxu1  ;;  %v3635_v60 = vpop.f32.mrb[123].mxu0 }
 0x1ea   :  { %v2475_v4 = vadd.f32 %v3633_v56, %v4747_v25  ;;  %v3636_v61 = vadd.f32 %v3635_v60, %v3634_v13  ;;  %v3699_v37 = vpop.f32.mrb[123].mxu1 }
 0x1eb   :  { %v3700_v53 = vadd.f32 %v3699_v37, %v3698_v18 }
 0x1ec   :  { %v2572_v0 = vadd.f32 %v3697_v59, %v2475_v4  ;;  %v2478_v28 = vadd.f32 %v3636_v61, %v4750_v46 }
 0x1ee   :  { %v2597_v31 = vadd.f32 %v2596_v52, %v2572_v0  ;;  %v2575_v49 = vadd.f32 %v3700_v53, %v2478_v28  ;;  %v3637_v6 = vpop.f32.mrb[124].mxu0 }
 0x1ef   :  { %v3701_v10 = vpop.f32.mrb[124].mxu1  ;;  %v3638_v12 = vpop.f32.mrb[125].mxu0 }
 0x1f0   :  { %v2598_v30 = vadd.f32 %v2597_v31, %v2575_v49  ;;  %v3639_v36 = vadd.f32 %v3638_v12, %v3637_v6  ;;  %v3702_v32 = vpop.f32.mrb[125].mxu1  ;;  %v3640_v15 = vpop.f32.mrb[126].mxu0 }
 0x1f1   :  { %v3703_v16 = vadd.f32 %v3702_v32, %v3701_v10  ;;  %v3704_v17 = vpop.f32.mrb[126].mxu1  ;;  %v3641_v39 = vpop.f32.mrb[127].mxu0 }
 0x1f2   :  { %v2483_v25 = vadd.f32 %v3639_v36, %v4753_v43  ;;  %v3642_v19 = vadd.f32 %v3641_v39, %v3640_v15  ;;  %v3705_v54 = vpop.f32.mrb[127].mxu1 }
 0x1f3   :  { %v3706_v20 = vadd.f32 %v3705_v54, %v3704_v17 }
 0x1f4   :  { %v2580_v55 = vadd.f32 %v3703_v16, %v2483_v25  ;;  %v2486_v46 = vadd.f32 %v3642_v19, %v4756_v2 }
 0x1f6   :  { %v2599_v26 = vadd.f32 %v2598_v30, %v2580_v55  ;;  %v2583_v27 = vadd.f32 %v3706_v20, %v2486_v46 }
 0x1f8   :  { %v2600_v51 = vadd.f32 %v2599_v26, %v2583_v27 }
 0x1fa   :  { %v2601_v47 = vrot.slane %v2600_v51, 4 }
 0x1fc   :  { %v2602_v33 = vadd.f32 %v2601_v47, %v2600_v51 }
 0x1fe   :  { %v2603_v58 = vrot.slane %v2602_v33, 2 }
 0x200   :  { %v2604_v34 = vadd.f32 %v2603_v58, %v2602_v33 }
 0x202   :  { %v2605_v48 = vrot.slane %v2604_v34, 1 }
 0x204   :  { %v2606_v35 = vadd.f32 %v2605_v48, %v2604_v34 }
 0x206   :  { %v2607_v57 = vmul.f32 0.0078125, %v2606_v35 }
 0x208   :  { %v2608_v38 = vsub.f32 %v4759_v63, %v2607_v57  ;;  %v2609_v43 = vsub.f32 %v4762_v24, %v2607_v57  ;;  %v2610_v62 = vsub.f32 %v4767_v5, %v2607_v57  ;;  %v2611_v21 = vsub.f32 %v4771_v22, %v2607_v57 }
 0x209   :  { %v2612_v2 = vsub.f32 %v4775_v40, %v2607_v57  ;;  %v2613_v11 = vsub.f32 %v4779_v29, %v2607_v57  ;;  %v2614_v8 = vsub.f32 %v4783_v23, %v2607_v57  ;;  %v2615_v44 = vsub.f32 %v4787_v1, %v2607_v57 }
 0x20a   :  { %v2616_v9 = vsub.f32 %v4791_v42, %v2607_v57  ;;  %v2617_v3 = vsub.f32 %v4795_v7, %v2607_v57  ;;  %v2618_v50 = vsub.f32 %v2564_v41, %v2607_v57  ;;  %v2619_v63 = vsub.f32 %v2567_v45, %v2607_v57 }
 0x20b   :  { %v2620_v52 = vsub.f32 %v2572_v0, %v2607_v57  ;;  %v2621_v24 = vsub.f32 %v2575_v49, %v2607_v57  ;;  %v2622_v56 = vsub.f32 %v2580_v55, %v2607_v57  ;;  %v2623_v5 = vsub.f32 %v2583_v27, %v2607_v57 }
 0x20c   :  { %v2624_v14 = vmul.f32 %v2608_v38, %v2608_v38  ;;  %v2625_v22 = vmul.f32 %v2609_v43, %v2609_v43  ;;  %v2626_v13 = vmul.f32 %v2610_v62, %v2610_v62  ;;  %v2627_v59 = vmul.f32 %v2611_v21, %v2611_v21 }
 0x20d   :  { %v2628_v18 = vmul.f32 %v2612_v2, %v2612_v2  ;;  %v2629_v60 = vmul.f32 %v2613_v11, %v2613_v11  ;;  %v2630_v4 = vmul.f32 %v2614_v8, %v2614_v8  ;;  %v2631_v61 = vmul.f32 %v2615_v44, %v2615_v44 }
 0x20e   :  { %v2640_v40 = vadd.f32 %v2625_v22, %v2624_v14  ;;  %v2632_v41 = vmul.f32 %v2616_v9, %v2616_v9  ;;  %v2633_v37 = vmul.f32 %v2617_v3, %v2617_v3  ;;  %v2634_v0 = vmul.f32 %v2618_v50, %v2618_v50  ;;  %v3114_v14 = vld [vmem:[%s4862_s2] ss:$0 sm:$0xff] }
 0x20f   :  { %v2635_v31 = vmul.f32 %v2619_v63, %v2619_v63  ;;  %v2636_v6 = vmul.f32 %v2620_v52, %v2620_v52  ;;  %v2637_v12 = vmul.f32 %v2621_v24, %v2621_v24  ;;  %v2638_v36 = vmul.f32 %v2622_v56, %v2622_v56 }
 0x210   :  { %v2641_v29 = vadd.f32 %v2640_v40, %v2626_v13  ;;  %v2639_v15 = vmul.f32 %v2623_v5, %v2623_v5 }
 0x212   :  { %v2642_v23 = vadd.f32 %v2641_v29, %v2627_v59 }
 0x214   :  { %v2643_v1 = vadd.f32 %v2642_v23, %v2628_v18 }
 0x216   :  { %v2644_v42 = vadd.f32 %v2643_v1, %v2629_v60  ;;  %v3115_v1 = vld [vmem:[%s4863_s3] ss:$0 sm:$0xff] }
 0x218   :  { %v2645_v7 = vadd.f32 %v2644_v42, %v2630_v4 }
 0x21a   :  { %v2646_v45 = vadd.f32 %v2645_v7, %v2631_v61 }
 0x21c   :  { %v2647_v53 = vadd.f32 %v2646_v45, %v2632_v41 }
 0x21e   :  { %v2648_v28 = vadd.f32 %v2647_v53, %v2633_v37 }
 0x220   :  { %v2649_v49 = vadd.f32 %v2648_v28, %v2634_v0 }
 0x222   :  { %v2650_v10 = vadd.f32 %v2649_v49, %v2635_v31 }
 0x224   :  { %v2651_v30 = vadd.f32 %v2650_v10, %v2636_v6 }
 0x226   :  { %v2652_v32 = vadd.f32 %v2651_v30, %v2637_v12 }
 0x228   :  { %v2653_v16 = vadd.f32 %v2652_v32, %v2638_v36 }
 0x22a   :  { %v2654_v17 = vadd.f32 %v2653_v16, %v2639_v15 }
 0x22c   :  { %v2655_v39 = vrot.slane %v2654_v17, 4 }
 0x22e   :  { %v2656_v25 = vadd.f32 %v2655_v39, %v2654_v17 }
 0x230   :  { %v2657_v19 = vrot.slane %v2656_v25, 2 }
 0x232   :  { %v2658_v54 = vadd.f32 %v2657_v19, %v2656_v25 }
 0x234   :  { %v2659_v20 = vrot.slane %v2658_v54, 1 }
 0x236   :  { %v2660_v55 = vadd.f32 %v2659_v20, %v2658_v54 }
 0x238   :  { %v2661_v46 = vmul.f32 0.0078125, %v2660_v55 }
 0x23a   :  { %v2662_v26 = vadd.f32 1e-05, %v2661_v46 }
 0x23c   :  { %3835 = vrsqrt.f32 %v2662_v26 }
 0x246   :  { %v3836_v27 = vpop.eup %3835 }
 0x247   :  { %v2664_v51 = vmul.f32 %v3836_v27, %v2608_v38  ;;  %v2665_v47 = vmul.f32 %v3836_v27, %v2609_v43  ;;  %v2666_v33 = vmul.f32 %v3836_v27, %v2610_v62  ;;  %v2667_v58 = vmul.f32 %v3836_v27, %v2611_v21 }
 0x248   :  { %v2668_v34 = vmul.f32 %v3836_v27, %v2612_v2  ;;  %v2669_v48 = vmul.f32 %v3836_v27, %v2613_v11  ;;  %v2670_v35 = vmul.f32 %v3836_v27, %v2614_v8  ;;  %v2671_v57 = vmul.f32 %v3836_v27, %v2615_v44 }
 0x249   :  { %v2672_v22 = vmul.f32 %v3836_v27, %v2616_v9  ;;  %v2673_v13 = vmul.f32 %v3836_v27, %v2617_v3  ;;  %v2674_v40 = vmul.f32 %v3836_v27, %v2618_v50  ;;  %v2675_v59 = vmul.f32 %v3836_v27, %v2619_v63 }
 0x24a   :  { %v2676_v29 = vmul.f32 %v3836_v27, %v2620_v52  ;;  %v2677_v18 = vmul.f32 %v3836_v27, %v2621_v24  ;;  %v2678_v23 = vmul.f32 %v3836_v27, %v2622_v56  ;;  %v2679_v60 = vmul.f32 %v3836_v27, %v2623_v5 }
 0x24b   :  { %v2687_v38 = vmul.f32 %v3114_v14, %v2664_v51  ;;  %v2688_v43 = vmul.f32 %v3114_v14, %v2665_v47  ;;  %v2689_v62 = vmul.f32 %v3114_v14, %v2666_v33  ;;  %v2690_v21 = vmul.f32 %v3114_v14, %v2667_v58 }
 0x24c   :  { %v2691_v2 = vmul.f32 %v3114_v14, %v2668_v34  ;;  %v2692_v11 = vmul.f32 %v3114_v14, %v2669_v48  ;;  %v2693_v8 = vmul.f32 %v3114_v14, %v2670_v35  ;;  %v2694_v44 = vmul.f32 %v3114_v14, %v2671_v57 }
 0x24d   :  { %v2695_v9 = vmul.f32 %v3114_v14, %v2672_v22  ;;  %v2696_v3 = vmul.f32 %v3114_v14, %v2673_v13  ;;  %v2697_v50 = vmul.f32 %v3114_v14, %v2674_v40  ;;  %v2698_v63 = vmul.f32 %v3114_v14, %v2675_v59 }
 0x24e   :  { %v2699_v52 = vmul.f32 %v3114_v14, %v2676_v29  ;;  %v2700_v24 = vmul.f32 %v3114_v14, %v2677_v18  ;;  %v2701_v56 = vmul.f32 %v3114_v14, %v2678_v23  ;;  %v2702_v5 = vmul.f32 %v3114_v14, %v2679_v60 }
 0x24f   :  { %v2710_v4 = vadd.f32 %v3115_v1, %v2687_v38  ;;  %v2711_v42 = vadd.f32 %v3115_v1, %v2688_v43  ;;  %v2712_v61 = vadd.f32 %v3115_v1, %v2689_v62  ;;  %v2713_v7 = vadd.f32 %v3115_v1, %v2690_v21 }
 0x250   :  { %v2714_v41 = vadd.f32 %v3115_v1, %v2691_v2  ;;  %v2715_v45 = vadd.f32 %v3115_v1, %v2692_v11  ;;  %v2716_v37 = vadd.f32 %v3115_v1, %v2693_v8  ;;  %v2717_v53 = vadd.f32 %v3115_v1, %v2694_v44 }
 0x251   :  { %v2718_v0 = vadd.f32 %v3115_v1, %v2695_v9  ;;  %v2719_v28 = vadd.f32 %v3115_v1, %v2696_v3  ;;  %v2720_v31 = vadd.f32 %v3115_v1, %v2697_v50  ;;  %v2721_v49 = vadd.f32 %v3115_v1, %v2698_v63 }
 0x252   :  { %v2722_v6 = vadd.f32 %v3115_v1, %v2699_v52  ;;  %v2723_v10 = vadd.f32 %v3115_v1, %v2700_v24  ;;  %v2724_v12 = vadd.f32 %v3115_v1, %v2701_v56  ;;  %v2725_v30 = vadd.f32 %v3115_v1, %v2702_v5 }
 0x253   :  { %vm2726_vm0 = vcmp.ge.f32.partialorder %v2710_v4, 0.0  ;;  %vm2727_vm1 = vcmp.ge.f32.partialorder %v2711_v42, 0.0  ;;  %vm2728_vm2 = vcmp.ge.f32.partialorder %v2712_v61, 0.0  ;;  %vm2729_vm3 = vcmp.ge.f32.partialorder %v2713_v7, 0.0 }
 0x254   :  { %vm2730_vm4 = vcmp.ge.f32.partialorder %v2714_v41, 0.0  ;;  %vm2731_vm5 = vcmp.ge.f32.partialorder %v2715_v45, 0.0  ;;  %vm2732_vm6 = vcmp.ge.f32.partialorder %v2716_v37, 0.0  ;;  %vm2733_vm7 = vcmp.ge.f32.partialorder %v2717_v53, 0.0 }
 0x255   :  { %vm2734_vm8 = vcmp.ge.f32.partialorder %v2718_v0, 0.0  ;;  %vm2735_vm9 = vcmp.ge.f32.partialorder %v2719_v28, 0.0  ;;  %vm2736_vm10 = vcmp.ge.f32.partialorder %v2720_v31, 0.0  ;;  %vm2737_vm11 = vcmp.ge.f32.partialorder %v2721_v49, 0.0 }
 0x256   :  { %vm2738_vm12 = vcmp.ge.f32.partialorder %v2722_v6, 0.0  ;;  %vm2739_vm13 = vcmp.ge.f32.partialorder %v2723_v10, 0.0  ;;  %vm2740_vm14 = vcmp.ge.f32.partialorder %v2724_v12, 0.0  ;;  %vm2741_vm15 = vcmp.ge.f32.partialorder %v2725_v30, 0.0 }
 0x257   :  { %v2742_v36 = vmul.f32 0.2, %v2710_v4  ;;  %v2743_v32 = vmul.f32 0.2, %v2711_v42  ;;  %v2744_v15 = vmul.f32 0.2, %v2712_v61 }
 0x258   :  { %v2745_v16 = vmul.f32 0.2, %v2713_v7  ;;  %v2746_v17 = vmul.f32 0.2, %v2714_v41  ;;  %v2747_v39 = vmul.f32 0.2, %v2715_v45 }
 0x259   :  { %v2748_v25 = vmul.f32 0.2, %v2716_v37  ;;  %v2749_v19 = vmul.f32 0.2, %v2717_v53  ;;  %v2750_v54 = vmul.f32 0.2, %v2718_v0  ;;  %v2758_v20 = vsel %vm2726_vm0, %v2710_v4, %v2742_v36 }
 0x25a   :  { %v2751_v55 = vmul.f32 0.2, %v2719_v28  ;;  %v2752_v46 = vmul.f32 0.2, %v2720_v31  ;;  %v2753_v26 = vmul.f32 0.2, %v2721_v49  ;;  %v2759_v27 = vsel %vm2727_vm1, %v2711_v42, %v2743_v32 }
 0x25b   :  { %v2754_v51 = vmul.f32 0.2, %v2722_v6  ;;  %v2755_v47 = vmul.f32 0.2, %v2723_v10  ;;  %v2756_v33 = vmul.f32 0.2, %v2724_v12  ;;  %v2760_v58 = vsel %vm2728_vm2, %v2712_v61, %v2744_v15 }
 0x25c   :  { %v2757_v34 = vmul.f32 0.2, %v2725_v30  ;;  %v2761_v48 = vsel %vm2729_vm3, %v2713_v7, %v2745_v16  ;;  %v2762_v35 = vsel %vm2730_vm4, %v2714_v41, %v2746_v17  ;;  %v2763_v57 = vsel %vm2731_vm5, %v2715_v45, %v2747_v39 }
 0x25d   :  { %v2764_v14 = vsel %vm2732_vm6, %v2716_v37, %v2748_v25  ;;  %v2765_v22 = vsel %vm2733_vm7, %v2717_v53, %v2749_v19  ;;  %v2766_v13 = vsel %vm2734_vm8, %v2718_v0, %v2750_v54  ;;  %v2767_v40 = vsel %vm2735_vm9, %v2719_v28, %v2751_v55 }
 0x25e   :  { %v2768_v59 = vsel %vm2736_vm10, %v2720_v31, %v2752_v46  ;;  %v2769_v29 = vsel %vm2737_vm11, %v2721_v49, %v2753_v26  ;;  %v2770_v18 = vsel %vm2738_vm12, %v2722_v6, %v2754_v51  ;;  %v2771_v23 = vsel %vm2739_vm13, %v2723_v10, %v2755_v47 }
 0x25f   :  { %v2772_v60 = vsel %vm2740_vm14, %v2724_v12, %v2756_v33  ;;  %v2773_v38 = vsel %vm2741_vm15, %v2725_v30, %v2757_v34  ;;  %v3151_v43 = vpack.c.bf16 %v2759_v27, %v2758_v20  ;;  %v3156_v62 = vpack.c.bf16 %v2761_v48, %v2760_v58 }
 0x260   :  { %v3161_v21 = vpack.c.bf16 %v2763_v57, %v2762_v35  ;;  %v3166_v2 = vpack.c.bf16 %v2765_v22, %v2764_v14  ;;  %v3171_v11 = vpack.c.bf16 %v2767_v40, %v2766_v13  ;;  %v3176_v8 = vpack.c.bf16 %v2769_v29, %v2768_v59 }
 0x261   :  { %3152 = vst [vmem:[%s4864_s4] sm:$0xff] %v3151_v43   ;;  %3188 = vst [vmem:[%s4864_s4 + $0x8] sm:$0xff] %v3156_v62   ;;  %v3181_v44 = vpack.c.bf16 %v2771_v23, %v2770_v18  ;;  %v3186_v1 = vpack.c.bf16 %v2773_v38, %v2772_v60 }
 0x262   :  { %3189 = vst [vmem:[%s4864_s4 + $0x10] sm:$0xff] %v3161_v21   ;;  %3190 = vst [vmem:[%s4864_s4 + $0x18] sm:$0xff] %v3166_v2  }
 0x263   :  { %3191 = vst [vmem:[%s4864_s4 + $0x20] sm:$0xff] %v3171_v11   ;;  %3192 = vst [vmem:[%s4864_s4 + $0x28] sm:$0xff] %v3176_v8  }
 0x264   :  { %3193 = vst [vmem:[%s4864_s4 + $0x30] sm:$0xff] %v3181_v44   ;;  %3194 = vst [vmem:[%s4864_s4 + $0x38] sm:$0xff] %v3186_v1  }

// kernel: discriminator_forward.8
= control target key start
LH: loop header
LB: loop body
LE: loop exit
PB: predicated region body
PF: predicated region fallthrough
CT: control target
= control target key end

     0   :  { %s2770_s1 = inlined_call_operand.vmem [shape: bf16[2048,128], index: 1, kind: input, shape index: {}]   ;;  %s2771_s0 = inlined_call_operand.vmem [shape: bf16[32,2048], index: 0, kind: input, shape index: {}]   ;;  %s2772_s2 = inlined_call_operand.vmem [shape: f32[1,128], index: 2, kind: input, shape index: {}]   ;;  %s2773_s3 = inlined_call_operand.vmem [shape: f32[1,128], index: 3, kind: input, shape index: {}]   ;;  %s2774_s4 = inlined_call_operand.vmem [shape: bf16[32,128], index: 4, kind: output, shape index: {}]  }
   0x1   :  { %v2123_v0 = vld [vmem:[%s2770_s1 + $0x40] sm:$0xff]   ;;  %v2127_v4 = vld [vmem:[%s2770_s1 + $0x48] sm:$0xff]   ;;  %v2131_v8 = vld [vmem:[%s2770_s1 + $0x50] sm:$0xff]  }
   0x2   :  { %v2124_v1 = vld [vmem:[%s2770_s1 + $0xc0] sm:$0xff]   ;;  %1899 = vmatprep.subr.bf16.mxu0 %v2123_v0  ;;  %v2128_v5 = vld [vmem:[%s2770_s1 + $0xc8] sm:$0xff]   ;;  %v2132_v9 = vld [vmem:[%s2770_s1 + $0xd0] sm:$0xff]  }
   0x3   :  { %v2125_v2 = vld [vmem:[%s2770_s1] sm:$0xff]   ;;  %1927 = vmatprep.subr.bf16.mxu1 %v2124_v1  ;;  %v2129_v6 = vld [vmem:[%s2770_s1 + $0x8] sm:$0xff]   ;;  %v2133_v10 = vld [vmem:[%s2770_s1 + $0x10] sm:$0xff]  }
   0x4   :  { %v2126_v3 = vld [vmem:[%s2770_s1 + $0x80] sm:$0xff]   ;;  %1900 = vmatpush3.bf16.msra.mxu0 %v2125_v2  ;;  %v2130_v7 = vld [vmem:[%s2770_s1 + $0x88] sm:$0xff]   ;;  %v2134_v11 = vld [vmem:[%s2770_s1 + $0x90] sm:$0xff]  }
   0x5   :  { %1928 = vmatpush3.bf16.msra.mxu1 %v2126_v3  ;;  %1901 = vmatprep.subr.bf16.mxu0 %v2127_v4  ;;  %v2135_v12 = vld [vmem:[%s2770_s1 + $0x58] sm:$0xff]   ;;  %v2139_v16 = vld [vmem:[%s2770_s1 + $0x60] sm:$0xff]   ;;  %v2143_v20 = vld [vmem:[%s2770_s1 + $0x68] sm:$0xff]  }
   0x6   :  { %1929 = vmatprep.subr.bf16.mxu1 %v2128_v5  ;;  %v2136_v13 = vld [vmem:[%s2770_s1 + $0xd8] sm:$0xff]   ;;  %v2140_v17 = vld [vmem:[%s2770_s1 + $0xe0] sm:$0xff]   ;;  %v2144_v21 = vld [vmem:[%s2770_s1 + $0xe8] sm:$0xff]  }
   0x7   :  { %v2137_v14 = vld [vmem:[%s2770_s1 + $0x18] sm:$0xff]   ;;  %v2141_v18 = vld [vmem:[%s2770_s1 + $0x20] sm:$0xff]   ;;  %v2145_v22 = vld [vmem:[%s2770_s1 + $0x28] sm:$0xff]  }
   0x8   :  { %1902 = vmatpush3.bf16.msra.mxu0 %v2129_v6  ;;  %v2138_v15 = vld [vmem:[%s2770_s1 + $0x98] sm:$0xff]   ;;  %v2142_v19 = vld [vmem:[%s2770_s1 + $0xa0] sm:$0xff]   ;;  %v2146_v23 = vld [vmem:[%s2770_s1 + $0xa8] sm:$0xff]  }
   0x9   :  { %1930 = vmatpush3.bf16.msra.mxu1 %v2130_v7  ;;  %1903 = vmatprep.subr.bf16.mxu0 %v2131_v8  ;;  %v2147_v24 = vld [vmem:[%s2770_s1 + $0x70] sm:$0xff]   ;;  %v2151_v28 = vld [vmem:[%s2770_s1 + $0x78] sm:$0xff]   ;;  %v18_v32 = vld [vmem:[%s2771_s0] sm:$0xff] }
   0xa   :  { %1931 = vmatprep.subr.bf16.mxu1 %v2132_v9  ;;  %v2148_v25 = vld [vmem:[%s2770_s1 + $0xf0] sm:$0xff]   ;;  %v2152_v29 = vld [vmem:[%s2770_s1 + $0xf8] sm:$0xff]   ;;  %v26_v33 = vld [vmem:[%s2771_s0 + $0x40] sm:$0xff] }
   0xb   :  { %v2149_v26 = vld [vmem:[%s2770_s1 + $0x30] sm:$0xff]   ;;  %v2153_v30 = vld [vmem:[%s2770_s1 + $0x38] sm:$0xff]   ;;  %v19_v34 = vld [vmem:[%s2771_s0 + $0x8] sm:$0xff]  ;;  %v1718_v35 = vcombine.low %v18_v32, %v26_v33  ;;  %v1719_v36 = vcombine.high %v18_v32, %v26_v33 }
   0xc   :  { %1904 = vmatpush3.bf16.msra.mxu0 %v2133_v10  ;;  %v2150_v27 = vld [vmem:[%s2770_s1 + $0xb0] sm:$0xff]   ;;  %v2154_v31 = vld [vmem:[%s2770_s1 + $0xb8] sm:$0xff]   ;;  %v27_v37 = vld [vmem:[%s2771_s0 + $0x48] sm:$0xff] }
   0xd   :  { %1932 = vmatpush3.bf16.msra.mxu1 %v2134_v11  ;;  %1905 = vmatprep.subr.bf16.mxu0 %v2135_v12  ;;  %v1720_v38 = vcombine.low %v19_v34, %v27_v37  ;;  %v1721_v39 = vcombine.high %v19_v34, %v27_v37  ;;  %v2155_v40 = vld [vmem:[%s2770_s1 + $0x140] sm:$0xff]   ;;  %v2159_v44 = vld [vmem:[%s2770_s1 + $0x148] sm:$0xff]   ;;  %v2163_v48 = vld [vmem:[%s2770_s1 + $0x150] sm:$0xff]  }
   0xe   :  { %1933 = vmatprep.subr.bf16.mxu1 %v2136_v13  ;;  %1266 = vmatprep.mubr.bf16.mxu0 %v1719_v36  ;;  %v2156_v41 = vld [vmem:[%s2770_s1 + $0x1c0] sm:$0xff]   ;;  %v2160_v45 = vld [vmem:[%s2770_s1 + $0x1c8] sm:$0xff]   ;;  %v2164_v49 = vld [vmem:[%s2770_s1 + $0x1d0] sm:$0xff]  }
   0xf   :  { %1315 = vmatprep.mubr.bf16.mxu1 %v1721_v39  ;;  %v2157_v42 = vld [vmem:[%s2770_s1 + $0x100] sm:$0xff]   ;;  %v2161_v46 = vld [vmem:[%s2770_s1 + $0x108] sm:$0xff]   ;;  %v2165_v50 = vld [vmem:[%s2770_s1 + $0x110] sm:$0xff]  }
  0x10   :  { %1906 = vmatpush3.bf16.msra.mxu0 %v2137_v14  ;;  %v2158_v43 = vld [vmem:[%s2770_s1 + $0x180] sm:$0xff]   ;;  %v2162_v47 = vld [vmem:[%s2770_s1 + $0x188] sm:$0xff]   ;;  %v2166_v51 = vld [vmem:[%s2770_s1 + $0x190] sm:$0xff]  }
  0x11   :  { %1934 = vmatpush3.bf16.msra.mxu1 %v2138_v15  ;;  %1907 = vmatprep.subr.bf16.mxu0 %v2139_v16  ;;  %v2167_v52 = vld [vmem:[%s2770_s1 + $0x158] sm:$0xff]   ;;  %v2171_v56 = vld [vmem:[%s2770_s1 + $0x160] sm:$0xff]   ;;  %v2175_v60 = vld [vmem:[%s2770_s1 + $0x168] sm:$0xff]  }
  0x12   :  { %1935 = vmatprep.subr.bf16.mxu1 %v2140_v17  ;;  %v2168_v53 = vld [vmem:[%s2770_s1 + $0x1d8] sm:$0xff]   ;;  %v2172_v57 = vld [vmem:[%s2770_s1 + $0x1e0] sm:$0xff]   ;;  %v2176_v61 = vld [vmem:[%s2770_s1 + $0x1e8] sm:$0xff]  }
  0x13   :  { %v2169_v54 = vld [vmem:[%s2770_s1 + $0x118] sm:$0xff]   ;;  %v2173_v58 = vld [vmem:[%s2770_s1 + $0x120] sm:$0xff]   ;;  %v35_v1 = vld [vmem:[%s2771_s0 + $0x88] sm:$0xff] }
  0x14   :  { %1908 = vmatpush3.bf16.msra.mxu0 %v2141_v18  ;;  %v2170_v55 = vld [vmem:[%s2770_s1 + $0x198] sm:$0xff]   ;;  %v2174_v59 = vld [vmem:[%s2770_s1 + $0x1a0] sm:$0xff]   ;;  %v43_v2 = vld [vmem:[%s2771_s0 + $0xc8] sm:$0xff] }
  0x15   :  { %1936 = vmatpush3.bf16.msra.mxu1 %v2142_v19  ;;  %1909 = vmatprep.subr.bf16.mxu0 %v2143_v20  ;;  %v34_v62 = vld [vmem:[%s2771_s0 + $0x80] sm:$0xff]  ;;  %v1737_v4 = vcombine.high %v35_v1, %v43_v2  ;;  %v2177_v5 = vld [vmem:[%s2770_s1 + $0x128] sm:$0xff]   ;;  %v1736_v6 = vcombine.low %v35_v1, %v43_v2  ;;  %v2179_v8 = vld [vmem:[%s2770_s1 + $0x170] sm:$0xff]  }
  0x16   :  { %1937 = vmatprep.subr.bf16.mxu1 %v2144_v21  ;;  %v42_v63 = vld [vmem:[%s2771_s0 + $0xc0] sm:$0xff]  ;;  %v2178_v7 = vld [vmem:[%s2770_s1 + $0x1a8] sm:$0xff]   ;;  %v2180_v9 = vld [vmem:[%s2770_s1 + $0x1f0] sm:$0xff]  }
  0x17   :  { %v1735_v0 = vcombine.high %v34_v62, %v42_v63  ;;  %v1734_v3 = vcombine.low %v34_v62, %v42_v63  ;;  %v2181_v10 = vld [vmem:[%s2770_s1 + $0x130] sm:$0xff]   ;;  %v2183_v12 = vld [vmem:[%s2770_s1 + $0x178] sm:$0xff]   ;;  %v30_v1 = vld [vmem:[%s2771_s0 + $0x60] sm:$0xff] }
  0x18   :  { %1910 = vmatpush3.bf16.msra.mxu0 %v2145_v22  ;;  %v2182_v11 = vld [vmem:[%s2770_s1 + $0x1b0] sm:$0xff]   ;;  %v2184_v13 = vld [vmem:[%s2770_s1 + $0x1f8] sm:$0xff]  }
  0x19   :  { %1938 = vmatpush3.bf16.msra.mxu1 %v2146_v23  ;;  %1911 = vmatprep.subr.bf16.mxu0 %v2147_v24  ;;  %v2185_v14 = vld [vmem:[%s2770_s1 + $0x138] sm:$0xff]   ;;  %v20_v16 = vld [vmem:[%s2771_s0 + $0x10] sm:$0xff]  ;;  %v2187_v24 = vld [vmem:[%s2770_s1 + $0x240] sm:$0xff]  }
  0x1a   :  { %1939 = vmatprep.subr.bf16.mxu1 %v2148_v25  ;;  %v2186_v15 = vld [vmem:[%s2770_s1 + $0x1b8] sm:$0xff]   ;;  %v28_v17 = vld [vmem:[%s2771_s0 + $0x50] sm:$0xff]  ;;  %v2188_v25 = vld [vmem:[%s2770_s1 + $0x2c0] sm:$0xff]  }
  0x1b   :  { %v21_v18 = vld [vmem:[%s2771_s0 + $0x18] sm:$0xff]  ;;  %v1722_v20 = vcombine.low %v20_v16, %v28_v17  ;;  %v1723_v21 = vcombine.high %v20_v16, %v28_v17  ;;  %v36_v32 = vld [vmem:[%s2771_s0 + $0x90] sm:$0xff]  ;;  %v38_v16 = vld [vmem:[%s2771_s0 + $0xa0] sm:$0xff] }
  0x1c   :  { %1912 = vmatpush3.bf16.msra.mxu0 %v2149_v26  ;;  %v29_v19 = vld [vmem:[%s2771_s0 + $0x58] sm:$0xff]  ;;  %v2189_v26 = vld [vmem:[%s2770_s1 + $0x200] sm:$0xff]   ;;  %v44_v33 = vld [vmem:[%s2771_s0 + $0xd0] sm:$0xff] }
  0x1d   :  { %1940 = vmatpush3.bf16.msra.mxu1 %v2150_v27  ;;  %1913 = vmatprep.subr.bf16.mxu0 %v2151_v28  ;;  %v1724_v22 = vcombine.low %v21_v18, %v29_v19  ;;  %v1725_v23 = vcombine.high %v21_v18, %v29_v19  ;;  %v2190_v27 = vld [vmem:[%s2770_s1 + $0x280] sm:$0xff]   ;;  %v2191_v28 = vld [vmem:[%s2770_s1 + $0x248] sm:$0xff]   ;;  %v1739_v34 = vcombine.high %v36_v32, %v44_v33  ;;  %v2195_v36 = vld [vmem:[%s2770_s1 + $0x250] sm:$0xff]  }
  0x1e   :  { %1941 = vmatprep.subr.bf16.mxu1 %v2152_v29  ;;  %v2192_v29 = vld [vmem:[%s2770_s1 + $0x2c8] sm:$0xff]   ;;  %v2196_v37 = vld [vmem:[%s2770_s1 + $0x2d0] sm:$0xff]   ;;  %v45_v39 = vld [vmem:[%s2771_s0 + $0xd8] sm:$0xff] }
  0x1f   :  { %v2217_v62 = vld [vmem:[%s2770_s1 + $0x238] sm:$0xff]   ;;  %v46_v17 = vld [vmem:[%s2771_s0 + $0xe0] sm:$0xff] }
  0x20   :  { %1914 = vmatpush3.bf16.msra.mxu0 %v2153_v30  ;;  %v2193_v30 = vld [vmem:[%s2770_s1 + $0x208] sm:$0xff]   ;;  %v2218_v63 = vld [vmem:[%s2770_s1 + $0x2b8] sm:$0xff]   ;;  %v1743_v18 = vcombine.high %v38_v16, %v46_v17  ;;  %v1742_v19 = vcombine.low %v38_v16, %v46_v17 }
  0x21   :  { %1942 = vmatpush3.bf16.msra.mxu1 %v2154_v31  ;;  %1955 = vmatprep.subr.bf16.mxu0 %v2155_v40  ;;  %v2194_v31 = vld [vmem:[%s2770_s1 + $0x288] sm:$0xff]  }
  0x22   :  { %1983 = vmatprep.subr.bf16.mxu1 %v2156_v41  ;;  %v2197_v41 = vld [vmem:[%s2770_s1 + $0x210] sm:$0xff]  }
  0x23   :  { %1267 = vmatmul.mubr.bf16.vlgmr.msra.gmra.mrb[0].mxu0 %v1718_v35  ;;  %v1738_v35 = vcombine.low %v36_v32, %v44_v33  ;;  %v2235_v32 = vld [vmem:[%s2770_s1 + $0x360] sm:$0xff]  }
  0x24   :  { %1316 = vmatmul.mubr.bf16.vlgmr.msra.gmra.mrb[0].mxu1 %v1720_v38  ;;  %1956 = vmatpush3.bf16.msra.mxu0 %v2157_v42  ;;  %v37_v38 = vld [vmem:[%s2771_s0 + $0x98] sm:$0xff]  ;;  %v2236_v33 = vld [vmem:[%s2770_s1 + $0x3e0] sm:$0xff]  }
  0x25   :  { %1984 = vmatpush3.bf16.msra.mxu1 %v2158_v43  ;;  %1957 = vmatprep.subr.bf16.mxu0 %v2159_v44  ;;  %v1741_v40 = vcombine.high %v37_v38, %v45_v39  ;;  %v1740_v42 = vcombine.low %v37_v38, %v45_v39  ;;  %v2198_v43 = vld [vmem:[%s2770_s1 + $0x290] sm:$0xff]   ;;  %v2199_v44 = vld [vmem:[%s2770_s1 + $0x258] sm:$0xff]   ;;  %v2241_v38 = vld [vmem:[%s2770_s1 + $0x328] sm:$0xff]  }
  0x26   :  { %1985 = vmatprep.subr.bf16.mxu1 %v2160_v45  ;;  %1274 = vmatprep.mubr.bf16.mxu0 %v1735_v0  ;;  %v2200_v45 = vld [vmem:[%s2770_s1 + $0x2d8] sm:$0xff]   ;;  %v22_v0 = vld [vmem:[%s2771_s0 + $0x20] sm:$0xff]  ;;  %v2242_v39 = vld [vmem:[%s2770_s1 + $0x3a8] sm:$0xff]  }
  0x27   :  { %1323 = vmatprep.mubr.bf16.mxu1 %v1737_v4  ;;  %v1726_v2 = vcombine.low %v22_v0, %v30_v1  ;;  %v23_v4 = vld [vmem:[%s2771_s0 + $0x28] sm:$0xff] }
  0x28   :  { %1958 = vmatpush3.bf16.msra.mxu0 %v2161_v46  ;;  %v2201_v46 = vld [vmem:[%s2770_s1 + $0x218] sm:$0xff]  }
  0x29   :  { %1986 = vmatpush3.bf16.msra.mxu1 %v2162_v47  ;;  %1959 = vmatprep.subr.bf16.mxu0 %v2163_v48  ;;  %v2202_v47 = vld [vmem:[%s2770_s1 + $0x298] sm:$0xff]   ;;  %v2203_v48 = vld [vmem:[%s2770_s1 + $0x260] sm:$0xff]  }
  0x2a   :  { %1987 = vmatprep.subr.bf16.mxu1 %v2164_v49  ;;  %v2204_v49 = vld [vmem:[%s2770_s1 + $0x2e0] sm:$0xff]  }
  0x2b   :  { %1275 = vmatmul.mubr.bf16.gmra.mrb[4].mxu0 %v1734_v3  ;;  %v1727_v3 = vcombine.high %v22_v0, %v30_v1 }
  0x2c   :  { %1960 = vmatpush3.bf16.msra.mxu0 %v2165_v50  ;;  %1324 = vmatmul.mubr.bf16.gmra.mrb[4].mxu1 %v1736_v6  ;;  %v2205_v50 = vld [vmem:[%s2770_s1 + $0x220] sm:$0xff]  }
  0x2d   :  { %1988 = vmatpush3.bf16.msra.mxu1 %v2166_v51  ;;  %1961 = vmatprep.subr.bf16.mxu0 %v2167_v52  ;;  %v2206_v51 = vld [vmem:[%s2770_s1 + $0x2a0] sm:$0xff]   ;;  %v2207_v52 = vld [vmem:[%s2770_s1 + $0x268] sm:$0xff]  }
  0x2e   :  { %1989 = vmatprep.subr.bf16.mxu1 %v2168_v53  ;;  %1364 = vmatprep.mubr.bf16.mxu0 %v1723_v21  ;;  %v2208_v53 = vld [vmem:[%s2770_s1 + $0x2e8] sm:$0xff]   ;;  %v2228_v21 = vld [vmem:[%s2770_s1 + $0x3d0] sm:$0xff]  }
  0x2f   :  { %1413 = vmatprep.mubr.bf16.mxu1 %v1725_v23  ;;  %v47_v23 = vld [vmem:[%s2771_s0 + $0xe8] sm:$0xff] }
  0x30   :  { %1962 = vmatpush3.bf16.msra.mxu0 %v2169_v54  ;;  %v2209_v54 = vld [vmem:[%s2770_s1 + $0x228] sm:$0xff]  }
  0x31   :  { %1990 = vmatpush3.bf16.msra.mxu1 %v2170_v55  ;;  %1963 = vmatprep.subr.bf16.mxu0 %v2171_v56  ;;  %v2210_v55 = vld [vmem:[%s2770_s1 + $0x2a8] sm:$0xff]   ;;  %v2211_v56 = vld [vmem:[%s2770_s1 + $0x270] sm:$0xff]  }
  0x32   :  { %1991 = vmatprep.subr.bf16.mxu1 %v2172_v57  ;;  %v2212_v57 = vld [vmem:[%s2770_s1 + $0x2f0] sm:$0xff]  }
  0x34   :  { %1964 = vmatpush3.bf16.msra.mxu0 %v2173_v58  ;;  %v2213_v58 = vld [vmem:[%s2770_s1 + $0x230] sm:$0xff]  }
  0x35   :  { %1992 = vmatpush3.bf16.msra.mxu1 %v2174_v59  ;;  %1965 = vmatprep.subr.bf16.mxu0 %v2175_v60  ;;  %v2214_v59 = vld [vmem:[%s2770_s1 + $0x2b0] sm:$0xff]   ;;  %v2215_v60 = vld [vmem:[%s2770_s1 + $0x278] sm:$0xff]  }
  0x36   :  { %1993 = vmatprep.subr.bf16.mxu1 %v2176_v61  ;;  %v2216_v61 = vld [vmem:[%s2770_s1 + $0x2f8] sm:$0xff]  }
  0x38   :  { %1966 = vmatpush3.bf16.msra.mxu0 %v2177_v5  ;;  %v31_v5 = vld [vmem:[%s2771_s0 + $0x68] sm:$0xff] }
  0x39   :  { %1994 = vmatpush3.bf16.msra.mxu1 %v2178_v7  ;;  %1967 = vmatprep.subr.bf16.mxu0 %v2179_v8  ;;  %v1728_v6 = vcombine.low %v23_v4, %v31_v5  ;;  %v1729_v7 = vcombine.high %v23_v4, %v31_v5  ;;  %v2219_v8 = vld [vmem:[%s2770_s1 + $0x340] sm:$0xff]  }
  0x3a   :  { %1995 = vmatprep.subr.bf16.mxu1 %v2180_v9  ;;  %v2220_v9 = vld [vmem:[%s2770_s1 + $0x3c0] sm:$0xff]  }
  0x3c   :  { %1968 = vmatpush3.bf16.msra.mxu0 %v2181_v10  ;;  %v2221_v10 = vld [vmem:[%s2770_s1 + $0x300] sm:$0xff]  }
  0x3d   :  { %1996 = vmatpush3.bf16.msra.mxu1 %v2182_v11  ;;  %1969 = vmatprep.subr.bf16.mxu0 %v2183_v12  ;;  %v2222_v11 = vld [vmem:[%s2770_s1 + $0x380] sm:$0xff]   ;;  %v2223_v12 = vld [vmem:[%s2770_s1 + $0x348] sm:$0xff]  }
  0x3e   :  { %1997 = vmatprep.subr.bf16.mxu1 %v2184_v13  ;;  %v2224_v13 = vld [vmem:[%s2770_s1 + $0x3c8] sm:$0xff]  }
  0x40   :  { %1970 = vmatpush3.bf16.msra.mxu0 %v2185_v14  ;;  %v2225_v14 = vld [vmem:[%s2770_s1 + $0x308] sm:$0xff]  }
  0x41   :  { %1998 = vmatpush3.bf16.msra.mxu1 %v2186_v15  ;;  %2011 = vmatprep.subr.bf16.mxu0 %v2187_v24  ;;  %v2226_v15 = vld [vmem:[%s2770_s1 + $0x388] sm:$0xff]  }
  0x42   :  { %2039 = vmatprep.subr.bf16.mxu1 %v2188_v25  ;;  %v2229_v25 = vld [vmem:[%s2770_s1 + $0x310] sm:$0xff]  }
  0x43   :  { %1365 = vmatmul.mubr.bf16.vlgmr.msra.gmra.mrb[8].mxu0 %v1722_v20  ;;  %v2227_v20 = vld [vmem:[%s2770_s1 + $0x350] sm:$0xff]  }
  0x44   :  { %1414 = vmatmul.mubr.bf16.vlgmr.msra.gmra.mrb[8].mxu1 %v1724_v22  ;;  %2012 = vmatpush3.bf16.msra.mxu0 %v2189_v26  ;;  %v39_v22 = vld [vmem:[%s2771_s0 + $0xa8] sm:$0xff] }
  0x45   :  { %2040 = vmatpush3.bf16.msra.mxu1 %v2190_v27  ;;  %2013 = vmatprep.subr.bf16.mxu0 %v2191_v28  ;;  %v1745_v24 = vcombine.high %v39_v22, %v47_v23  ;;  %v1744_v26 = vcombine.low %v39_v22, %v47_v23  ;;  %v2230_v27 = vld [vmem:[%s2770_s1 + $0x390] sm:$0xff]   ;;  %v2231_v28 = vld [vmem:[%s2770_s1 + $0x358] sm:$0xff]  }
  0x46   :  { %2041 = vmatprep.subr.bf16.mxu1 %v2192_v29  ;;  %1372 = vmatprep.mubr.bf16.mxu0 %v1739_v34  ;;  %v2232_v29 = vld [vmem:[%s2770_s1 + $0x3d8] sm:$0xff]   ;;  %v2237_v34 = vld [vmem:[%s2770_s1 + $0x320] sm:$0xff]  }
  0x47   :  { %1421 = vmatprep.mubr.bf16.mxu1 %v1741_v40  ;;  %v2243_v40 = vld [vmem:[%s2770_s1 + $0x370] sm:$0xff]  }
  0x48   :  { %2014 = vmatpush3.bf16.msra.mxu0 %v2193_v30  ;;  %v2233_v30 = vld [vmem:[%s2770_s1 + $0x318] sm:$0xff]  }
  0x49   :  { %2042 = vmatpush3.bf16.msra.mxu1 %v2194_v31  ;;  %2015 = vmatprep.subr.bf16.mxu0 %v2195_v36  ;;  %v2234_v31 = vld [vmem:[%s2770_s1 + $0x398] sm:$0xff]   ;;  %v2239_v36 = vld [vmem:[%s2770_s1 + $0x368] sm:$0xff]  }
  0x4a   :  { %2043 = vmatprep.subr.bf16.mxu1 %v2196_v37  ;;  %v2240_v37 = vld [vmem:[%s2770_s1 + $0x3e8] sm:$0xff]  }
  0x4b   :  { %1373 = vmatmul.mubr.bf16.gmra.mrb[12].mxu0 %v1738_v35  ;;  %v2238_v35 = vld [vmem:[%s2770_s1 + $0x3a0] sm:$0xff]  }
  0x4c   :  { %2016 = vmatpush3.bf16.msra.mxu0 %v2197_v41  ;;  %1422 = vmatmul.mubr.bf16.gmra.mrb[12].mxu1 %v1740_v42  ;;  %v2244_v41 = vld [vmem:[%s2770_s1 + $0x3f0] sm:$0xff]  }
  0x4d   :  { %2044 = vmatpush3.bf16.msra.mxu1 %v2198_v43  ;;  %2017 = vmatprep.subr.bf16.mxu0 %v2199_v44  ;;  %v2245_v42 = vld [vmem:[%s2770_s1 + $0x330] sm:$0xff]   ;;  %v2247_v44 = vld [vmem:[%s2770_s1 + $0x378] sm:$0xff]  }
  0x4e   :  { %2045 = vmatprep.subr.bf16.mxu1 %v2200_v45  ;;  %1462 = vmatprep.mubr.bf16.mxu0 %v1727_v3  ;;  %v2246_v43 = vld [vmem:[%s2770_s1 + $0x3b0] sm:$0xff]   ;;  %v2248_v45 = vld [vmem:[%s2770_s1 + $0x3f8] sm:$0xff]  }
  0x4f   :  { %1511 = vmatprep.mubr.bf16.mxu1 %v1729_v7 }
  0x50   :  { %2018 = vmatpush3.bf16.msra.mxu0 %v2201_v46  ;;  %v2249_v46 = vld [vmem:[%s2770_s1 + $0x338] sm:$0xff]  }
  0x51   :  { %2046 = vmatpush3.bf16.msra.mxu1 %v2202_v47  ;;  %2019 = vmatprep.subr.bf16.mxu0 %v2203_v48  ;;  %v2250_v47 = vld [vmem:[%s2770_s1 + $0x3b8] sm:$0xff]   ;;  %v24_v48 = vld [vmem:[%s2771_s0 + $0x30] sm:$0xff] }
  0x52   :  { %2047 = vmatprep.subr.bf16.mxu1 %v2204_v49  ;;  %v32_v49 = vld [vmem:[%s2771_s0 + $0x70] sm:$0xff] }
  0x54   :  { %2020 = vmatpush3.bf16.msra.mxu0 %v2205_v50  ;;  %v25_v50 = vld [vmem:[%s2771_s0 + $0x38] sm:$0xff] }
  0x55   :  { %2048 = vmatpush3.bf16.msra.mxu1 %v2206_v51  ;;  %2021 = vmatprep.subr.bf16.mxu0 %v2207_v52  ;;  %v1730_v51 = vcombine.low %v24_v48, %v32_v49  ;;  %v1731_v52 = vcombine.high %v24_v48, %v32_v49 }
  0x56   :  { %2049 = vmatprep.subr.bf16.mxu1 %v2208_v53  ;;  %v33_v53 = vld [vmem:[%s2771_s0 + $0x78] sm:$0xff] }
  0x58   :  { %2022 = vmatpush3.bf16.msra.mxu0 %v2209_v54  ;;  %v40_v54 = vld [vmem:[%s2771_s0 + $0xb0] sm:$0xff] }
  0x59   :  { %2050 = vmatpush3.bf16.msra.mxu1 %v2210_v55  ;;  %2023 = vmatprep.subr.bf16.mxu0 %v2211_v56  ;;  %v48_v55 = vld [vmem:[%s2771_s0 + $0xf0] sm:$0xff]  ;;  %v1732_v56 = vcombine.low %v25_v50, %v33_v53 }
  0x5a   :  { %2051 = vmatprep.subr.bf16.mxu1 %v2212_v57  ;;  %v1733_v57 = vcombine.high %v25_v50, %v33_v53 }
  0x5c   :  { %2024 = vmatpush3.bf16.msra.mxu0 %v2213_v58  ;;  %v1747_v58 = vcombine.high %v40_v54, %v48_v55 }
  0x5d   :  { %2052 = vmatpush3.bf16.msra.mxu1 %v2214_v59  ;;  %2025 = vmatprep.subr.bf16.mxu0 %v2215_v60  ;;  %v41_v59 = vld [vmem:[%s2771_s0 + $0xb8] sm:$0xff] }
  0x5e   :  { %2053 = vmatprep.subr.bf16.mxu1 %v2216_v61  ;;  %v49_v60 = vld [vmem:[%s2771_s0 + $0xf8] sm:$0xff] }
  0x5f   :  { %v1749_v61 = vcombine.high %v41_v59, %v49_v60 }
  0x60   :  { %2026 = vmatpush3.bf16.msra.mxu0 %v2217_v62  ;;  %v1746_v62 = vcombine.low %v40_v54, %v48_v55 }
  0x61   :  { %2054 = vmatpush3.bf16.msra.mxu1 %v2218_v63  ;;  %2067 = vmatprep.subr.bf16.mxu0 %v2219_v8  ;;  %v1748_v63 = vcombine.low %v41_v59, %v49_v60 }
  0x62   :  { %2095 = vmatprep.subr.bf16.mxu1 %v2220_v9 }
  0x63   :  { %1463 = vmatmul.mubr.bf16.vlgmr.msra.gmra.mrb[16].mxu0 %v1726_v2 }
  0x64   :  { %1512 = vmatmul.mubr.bf16.vlgmr.msra.gmra.mrb[16].mxu1 %v1728_v6  ;;  %2068 = vmatpush3.bf16.msra.mxu0 %v2221_v10 }
  0x65   :  { %2096 = vmatpush3.bf16.msra.mxu1 %v2222_v11  ;;  %2069 = vmatprep.subr.bf16.mxu0 %v2223_v12 }
  0x66   :  { %2097 = vmatprep.subr.bf16.mxu1 %v2224_v13  ;;  %1470 = vmatprep.mubr.bf16.mxu0 %v1743_v18 }
  0x67   :  { %1519 = vmatprep.mubr.bf16.mxu1 %v1745_v24 }
  0x68   :  { %2070 = vmatpush3.bf16.msra.mxu0 %v2225_v14 }
  0x69   :  { %2098 = vmatpush3.bf16.msra.mxu1 %v2226_v15  ;;  %2071 = vmatprep.subr.bf16.mxu0 %v2227_v20 }
  0x6a   :  { %2099 = vmatprep.subr.bf16.mxu1 %v2228_v21 }
  0x6b   :  { %1471 = vmatmul.mubr.bf16.gmra.mrb[20].mxu0 %v1742_v19 }
  0x6c   :  { %2072 = vmatpush3.bf16.msra.mxu0 %v2229_v25  ;;  %1520 = vmatmul.mubr.bf16.gmra.mrb[20].mxu1 %v1744_v26 }
  0x6d   :  { %2100 = vmatpush3.bf16.msra.mxu1 %v2230_v27  ;;  %2073 = vmatprep.subr.bf16.mxu0 %v2231_v28 }
  0x6e   :  { %2101 = vmatprep.subr.bf16.mxu1 %v2232_v29  ;;  %1560 = vmatprep.mubr.bf16.mxu0 %v1731_v52 }
  0x6f   :  { %1609 = vmatprep.mubr.bf16.mxu1 %v1733_v57 }
  0x70   :  { %2074 = vmatpush3.bf16.msra.mxu0 %v2233_v30 }
  0x71   :  { %2102 = vmatpush3.bf16.msra.mxu1 %v2234_v31  ;;  %2075 = vmatprep.subr.bf16.mxu0 %v2235_v32 }
  0x72   :  { %2103 = vmatprep.subr.bf16.mxu1 %v2236_v33 }
  0x74   :  { %2076 = vmatpush3.bf16.msra.mxu0 %v2237_v34 }
  0x75   :  { %2104 = vmatpush3.bf16.msra.mxu1 %v2238_v35  ;;  %2077 = vmatprep.subr.bf16.mxu0 %v2239_v36 }
  0x76   :  { %2105 = vmatprep.subr.bf16.mxu1 %v2240_v37 }
  0x78   :  { %2078 = vmatpush3.bf16.msra.mxu0 %v2241_v38 }
  0x79   :  { %2106 = vmatpush3.bf16.msra.mxu1 %v2242_v39  ;;  %2079 = vmatprep.subr.bf16.mxu0 %v2243_v40 }
  0x7a   :  { %2107 = vmatprep.subr.bf16.mxu1 %v2244_v41 }
  0x7c   :  { %2080 = vmatpush3.bf16.msra.mxu0 %v2245_v42 }
  0x7d   :  { %2108 = vmatpush3.bf16.msra.mxu1 %v2246_v43  ;;  %2081 = vmatprep.subr.bf16.mxu0 %v2247_v44 }
  0x7e   :  { %2109 = vmatprep.subr.bf16.mxu1 %v2248_v45 }
  0x80   :  { %2082 = vmatpush3.bf16.msra.mxu0 %v2249_v46 }
  0x81   :  { %2110 = vmatpush3.bf16.msra.mxu1 %v2250_v47 }
  0x83   :  { %1561 = vmatmul.mubr.bf16.vlgmr.msra.gmra.mrb[24].mxu0 %v1730_v51 }
  0x84   :  { %1610 = vmatmul.mubr.bf16.vlgmr.msra.gmra.mrb[24].mxu1 %v1732_v56  ;;  %1568 = vmatprep.mubr.bf16.mxu0 %v1747_v58 }
  0x85   :  { %1617 = vmatprep.mubr.bf16.mxu1 %v1749_v61 }
  0x8b   :  { %1569 = vmatmul.mubr.bf16.gmra.mrb[28].mxu0 %v1746_v62 }
  0x8c   :  { %1618 = vmatmul.mubr.bf16.gmra.mrb[28].mxu1 %v1748_v63 }
  0xf6   :  { %v1915_v0 = vpop.f32.mrb[0].mxu0 }
  0xf7   :  { %v1943_v1 = vpop.f32.mrb[0].mxu1  ;;  %v1916_v2 = vpop.f32.mrb[1].mxu0 }
  0xf8   :  { %v1917_v3 = vadd.f32 %v1916_v2, %v1915_v0  ;;  %v1944_v4 = vpop.f32.mrb[1].mxu1  ;;  %v1918_v5 = vpop.f32.mrb[2].mxu0 }
  0xf9   :  { %v1945_v6 = vadd.f32 %v1944_v4, %v1943_v1  ;;  %v1946_v7 = vpop.f32.mrb[2].mxu1  ;;  %v1919_v8 = vpop.f32.mrb[3].mxu0 }
  0xfa   :  { %v1920_v9 = vadd.f32 %v1919_v8, %v1918_v5  ;;  %v1947_v10 = vpop.f32.mrb[3].mxu1 }
  0xfb   :  { %v1318_v11 = vadd.f32 %v1945_v6, %v1917_v3  ;;  %v1948_v12 = vadd.f32 %v1947_v10, %v1946_v7 }
  0xfd   :  { %v1321_v13 = vadd.f32 %v1948_v12, %v1920_v9 }
  0xfe   :  { %v1921_v14 = vpop.f32.mrb[4].mxu0 }
  0xff   :  { %v1949_v15 = vpop.f32.mrb[4].mxu1  ;;  %v1922_v16 = vpop.f32.mrb[5].mxu0 }
 0x100   :  { %v1923_v17 = vadd.f32 %v1922_v16, %v1921_v14  ;;  %v1950_v18 = vpop.f32.mrb[5].mxu1  ;;  %v1924_v19 = vpop.f32.mrb[6].mxu0 }
 0x101   :  { %v1951_v20 = vadd.f32 %v1950_v18, %v1949_v15  ;;  %v1952_v21 = vpop.f32.mrb[6].mxu1  ;;  %v1925_v22 = vpop.f32.mrb[7].mxu0 }
 0x102   :  { %v1926_v23 = vadd.f32 %v1925_v22, %v1924_v19  ;;  %v1953_v24 = vpop.f32.mrb[7].mxu1 }
 0x103   :  { %v1326_v25 = vadd.f32 %v1951_v20, %v1923_v17  ;;  %v1954_v26 = vadd.f32 %v1953_v24, %v1952_v21 }
 0x105   :  { %v1329_v27 = vadd.f32 %v1954_v26, %v1926_v23 }
 0x116   :  { %v1971_v28 = vpop.f32.mrb[8].mxu0 }
 0x117   :  { %v1999_v29 = vpop.f32.mrb[8].mxu1  ;;  %v1972_v30 = vpop.f32.mrb[9].mxu0 }
 0x118   :  { %v2000_v31 = vpop.f32.mrb[9].mxu1  ;;  %v1973_v32 = vadd.f32 %v1972_v30, %v1971_v28  ;;  %v1974_v34 = vpop.f32.mrb[10].mxu0 }
 0x119   :  { %v2001_v33 = vadd.f32 %v2000_v31, %v1999_v29  ;;  %v2002_v35 = vpop.f32.mrb[10].mxu1  ;;  %v1975_v36 = vpop.f32.mrb[11].mxu0 }
 0x11a   :  { %v2003_v37 = vpop.f32.mrb[11].mxu1  ;;  %v1367_v38 = vadd.f32 %v1973_v32, %v1318_v11  ;;  %v1976_v39 = vadd.f32 %v1975_v36, %v1974_v34 }
 0x11b   :  { %v2004_v40 = vadd.f32 %v2003_v37, %v2002_v35 }
 0x11c   :  { %v1416_v41 = vadd.f32 %v2001_v33, %v1367_v38  ;;  %v1370_v42 = vadd.f32 %v1976_v39, %v1321_v13 }
 0x11e   :  { %v1419_v43 = vadd.f32 %v2004_v40, %v1370_v42  ;;  %v1977_v44 = vpop.f32.mrb[12].mxu0 }
 0x11f   :  { %v1978_v45 = vpop.f32.mrb[13].mxu0  ;;  %v2005_v50 = vpop.f32.mrb[12].mxu1 }
 0x120   :  { %v1979_v46 = vadd.f32 %v1978_v45, %v1977_v44  ;;  %v1980_v47 = vpop.f32.mrb[14].mxu0  ;;  %v2006_v52 = vpop.f32.mrb[13].mxu1 }
 0x121   :  { %v1981_v48 = vpop.f32.mrb[15].mxu0  ;;  %v2007_v54 = vadd.f32 %v2006_v52, %v2005_v50  ;;  %v2008_v55 = vpop.f32.mrb[14].mxu1 }
 0x122   :  { %v1375_v49 = vadd.f32 %v1979_v46, %v1326_v25  ;;  %v1982_v51 = vadd.f32 %v1981_v48, %v1980_v47  ;;  %v2009_v56 = vpop.f32.mrb[15].mxu1 }
 0x123   :  { %v2010_v58 = vadd.f32 %v2009_v56, %v2008_v55 }
 0x124   :  { %v1378_v53 = vadd.f32 %v1982_v51, %v1329_v27  ;;  %v1424_v57 = vadd.f32 %v2007_v54, %v1375_v49 }
 0x126   :  { %v1427_v59 = vadd.f32 %v2010_v58, %v1378_v53 }
 0x136   :  { %v2027_v60 = vpop.f32.mrb[16].mxu0 }
 0x137   :  { %v2055_v61 = vpop.f32.mrb[16].mxu1  ;;  %v2028_v62 = vpop.f32.mrb[17].mxu0 }
 0x138   :  { %v2029_v63 = vadd.f32 %v2028_v62, %v2027_v60  ;;  %v2056_v0 = vpop.f32.mrb[17].mxu1  ;;  %v2030_v1 = vpop.f32.mrb[18].mxu0 }
 0x139   :  { %v2057_v2 = vadd.f32 %v2056_v0, %v2055_v61  ;;  %v2058_v3 = vpop.f32.mrb[18].mxu1  ;;  %v2031_v4 = vpop.f32.mrb[19].mxu0 }
 0x13a   :  { %v1465_v5 = vadd.f32 %v2029_v63, %v1416_v41  ;;  %v2032_v6 = vadd.f32 %v2031_v4, %v2030_v1  ;;  %v2059_v7 = vpop.f32.mrb[19].mxu1 }
 0x13b   :  { %v2060_v8 = vadd.f32 %v2059_v7, %v2058_v3 }
 0x13c   :  { %v1514_v9 = vadd.f32 %v2057_v2, %v1465_v5  ;;  %v1468_v10 = vadd.f32 %v2032_v6, %v1419_v43 }
 0x13e   :  { %v1517_v11 = vadd.f32 %v2060_v8, %v1468_v10  ;;  %v2033_v12 = vpop.f32.mrb[20].mxu0 }
 0x13f   :  { %v2034_v13 = vpop.f32.mrb[21].mxu0  ;;  %v2061_v16 = vpop.f32.mrb[20].mxu1 }
 0x140   :  { %v2035_v14 = vadd.f32 %v2034_v13, %v2033_v12  ;;  %v2036_v15 = vpop.f32.mrb[22].mxu0  ;;  %v2062_v20 = vpop.f32.mrb[21].mxu1 }
 0x141   :  { %v2037_v17 = vpop.f32.mrb[23].mxu0  ;;  %v2063_v21 = vadd.f32 %v2062_v20, %v2061_v16  ;;  %v2064_v22 = vpop.f32.mrb[22].mxu1 }
 0x142   :  { %v1473_v18 = vadd.f32 %v2035_v14, %v1424_v57  ;;  %v2038_v19 = vadd.f32 %v2037_v17, %v2036_v15  ;;  %v2065_v24 = vpop.f32.mrb[23].mxu1 }
 0x143   :  { %v2066_v26 = vadd.f32 %v2065_v24, %v2064_v22 }
 0x144   :  { %v1476_v23 = vadd.f32 %v2038_v19, %v1427_v59  ;;  %v1522_v25 = vadd.f32 %v2063_v21, %v1473_v18 }
 0x146   :  { %v1525_v27 = vadd.f32 %v2066_v26, %v1476_v23  ;;  %v1878_v26 = vld [vmem:[%s2772_s2] ss:$0 sm:$0xff] }
 0x156   :  { %v2083_v28 = vpop.f32.mrb[24].mxu0 }
 0x157   :  { %v2111_v29 = vpop.f32.mrb[24].mxu1  ;;  %v2084_v30 = vpop.f32.mrb[25].mxu0 }
 0x158   :  { %v2085_v31 = vadd.f32 %v2084_v30, %v2083_v28  ;;  %v2112_v32 = vpop.f32.mrb[25].mxu1  ;;  %v2086_v33 = vpop.f32.mrb[26].mxu0 }
 0x159   :  { %v2113_v34 = vadd.f32 %v2112_v32, %v2111_v29  ;;  %v2114_v35 = vpop.f32.mrb[26].mxu1  ;;  %v2087_v36 = vpop.f32.mrb[27].mxu0 }
 0x15a   :  { %v1563_v37 = vadd.f32 %v2085_v31, %v1514_v9  ;;  %v2088_v38 = vadd.f32 %v2087_v36, %v2086_v33  ;;  %v2115_v39 = vpop.f32.mrb[27].mxu1  ;;  %v1879_v31 = vld [vmem:[%s2773_s3] ss:$0 sm:$0xff] }
 0x15b   :  { %v2116_v40 = vadd.f32 %v2115_v39, %v2114_v35 }
 0x15c   :  { %v1612_v41 = vadd.f32 %v2113_v34, %v1563_v37  ;;  %v1566_v42 = vadd.f32 %v2088_v38, %v1517_v11 }
 0x15e   :  { %v1615_v43 = vadd.f32 %v2116_v40, %v1566_v42  ;;  %v2089_v44 = vpop.f32.mrb[28].mxu0 }
 0x15f   :  { %v2117_v45 = vpop.f32.mrb[28].mxu1  ;;  %v2090_v46 = vpop.f32.mrb[29].mxu0 }
 0x160   :  { %v1626_v47 = vadd.f32 %v1615_v43, %v1612_v41  ;;  %v2091_v48 = vadd.f32 %v2090_v46, %v2089_v44  ;;  %v2118_v49 = vpop.f32.mrb[29].mxu1  ;;  %v2092_v50 = vpop.f32.mrb[30].mxu0 }
 0x161   :  { %v2119_v51 = vadd.f32 %v2118_v49, %v2117_v45  ;;  %v2120_v52 = vpop.f32.mrb[30].mxu1  ;;  %v2093_v53 = vpop.f32.mrb[31].mxu0 }
 0x162   :  { %v1571_v54 = vadd.f32 %v2091_v48, %v1522_v25  ;;  %v2094_v55 = vadd.f32 %v2093_v53, %v2092_v50  ;;  %v2121_v56 = vpop.f32.mrb[31].mxu1 }
 0x163   :  { %v2122_v57 = vadd.f32 %v2121_v56, %v2120_v52 }
 0x164   :  { %v1620_v58 = vadd.f32 %v2119_v51, %v1571_v54  ;;  %v1574_v59 = vadd.f32 %v2094_v55, %v1525_v27 }
 0x166   :  { %v1627_v60 = vadd.f32 %v1626_v47, %v1620_v58  ;;  %v1623_v61 = vadd.f32 %v2122_v57, %v1574_v59 }
 0x168   :  { %v1628_v62 = vadd.f32 %v1627_v60, %v1623_v61 }
 0x16a   :  { %v1629_v63 = vrot.slane %v1628_v62, 4 }
 0x16c   :  { %v1630_v0 = vadd.f32 %v1629_v63, %v1628_v62 }
 0x16e   :  { %v1631_v1 = vrot.slane %v1630_v0, 2 }
 0x170   :  { %v1632_v2 = vadd.f32 %v1631_v1, %v1630_v0 }
 0x172   :  { %v1633_v3 = vrot.slane %v1632_v2, 1 }
 0x174   :  { %v1634_v4 = vadd.f32 %v1633_v3, %v1632_v2 }
 0x176   :  { %v1635_v5 = vmul.f32 0.03125, %v1634_v4 }
 0x178   :  { %v1636_v6 = vsub.f32 %v1612_v41, %v1635_v5  ;;  %v1637_v7 = vsub.f32 %v1615_v43, %v1635_v5  ;;  %v1638_v8 = vsub.f32 %v1620_v58, %v1635_v5  ;;  %v1639_v9 = vsub.f32 %v1623_v61, %v1635_v5 }
 0x17a   :  { %v1640_v10 = vmul.f32 %v1636_v6, %v1636_v6  ;;  %v1641_v11 = vmul.f32 %v1637_v7, %v1637_v7  ;;  %v1642_v12 = vmul.f32 %v1638_v8, %v1638_v8  ;;  %v1643_v14 = vmul.f32 %v1639_v9, %v1639_v9 }
 0x17c   :  { %v1644_v13 = vadd.f32 %v1641_v11, %v1640_v10 }
 0x17e   :  { %v1645_v15 = vadd.f32 %v1644_v13, %v1642_v12 }
 0x180   :  { %v1646_v16 = vadd.f32 %v1645_v15, %v1643_v14 }
 0x182   :  { %v1647_v17 = vrot.slane %v1646_v16, 4 }
 0x184   :  { %v1648_v18 = vadd.f32 %v1647_v17, %v1646_v16 }
 0x186   :  { %v1649_v19 = vrot.slane %v1648_v18, 2 }
 0x188   :  { %v1650_v20 = vadd.f32 %v1649_v19, %v1648_v18 }
 0x18a   :  { %v1651_v21 = vrot.slane %v1650_v20, 1 }
 0x18c   :  { %v1652_v22 = vadd.f32 %v1651_v21, %v1650_v20 }
 0x18e   :  { %v1653_v23 = vmul.f32 0.03125, %v1652_v22 }
 0x190   :  { %v1654_v24 = vadd.f32 1e-05, %v1653_v23 }
 0x192   :  { %2251 = vrsqrt.f32 %v1654_v24 }
 0x19c   :  { %v2252_v25 = vpop.eup %2251 }
 0x19d   :  { %v1656_v27 = vmul.f32 %v2252_v25, %v1636_v6  ;;  %v1657_v28 = vmul.f32 %v2252_v25, %v1637_v7  ;;  %v1658_v29 = vmul.f32 %v2252_v25, %v1638_v8  ;;  %v1659_v30 = vmul.f32 %v2252_v25, %v1639_v9 }
 0x19f   :  { %v1667_v32 = vmul.f32 %v1878_v26, %v1656_v27  ;;  %v1668_v33 = vmul.f32 %v1878_v26, %v1657_v28  ;;  %v1669_v34 = vmul.f32 %v1878_v26, %v1658_v29  ;;  %v1670_v35 = vmul.f32 %v1878_v26, %v1659_v30 }
 0x1a1   :  { %v1678_v36 = vadd.f32 %v1879_v31, %v1667_v32  ;;  %v1679_v37 = vadd.f32 %v1879_v31, %v1668_v33  ;;  %v1680_v38 = vadd.f32 %v1879_v31, %v1669_v34  ;;  %v1681_v39 = vadd.f32 %v1879_v31, %v1670_v35 }
 0x1a3   :  { %vm1682_vm0 = vcmp.ge.f32.partialorder %v1678_v36, 0.0  ;;  %vm1683_vm1 = vcmp.ge.f32.partialorder %v1679_v37, 0.0  ;;  %vm1684_vm2 = vcmp.ge.f32.partialorder %v1680_v38, 0.0  ;;  %vm1685_vm3 = vcmp.ge.f32.partialorder %v1681_v39, 0.0 }
 0x1a4   :  { %v1686_v40 = vmul.f32 0.2, %v1678_v36  ;;  %v1687_v41 = vmul.f32 0.2, %v1679_v37  ;;  %v1688_v42 = vmul.f32 0.2, %v1680_v38 }
 0x1a5   :  { %v1689_v43 = vmul.f32 0.2, %v1681_v39 }
 0x1a6   :  { %v1690_v44 = vsel %vm1682_vm0, %v1678_v36, %v1686_v40  ;;  %v1691_v45 = vsel %vm1683_vm1, %v1679_v37, %v1687_v41  ;;  %v1692_v46 = vsel %vm1684_vm2, %v1680_v38, %v1688_v42 }
 0x1a7   :  { %v1693_v47 = vsel %vm1685_vm3, %v1681_v39, %v1689_v43  ;;  %v1891_v48 = vpack.c.bf16 %v1691_v45, %v1690_v44 }
 0x1a8   :  { %v1896_v49 = vpack.c.bf16 %v1693_v47, %v1692_v46 }
 0x1a9   :  { %1892 = vst [vmem:[%s2774_s4] sm:$0xff] %v1891_v48  }
 0x1aa   :  { %1898 = vst [vmem:[%s2774_s4 + $0x8] sm:$0xff] %v1896_v49  }

// kernel: discriminator_forward.9
= control target key start
LH: loop header
LB: loop body
LE: loop exit
PB: predicated region body
PF: predicated region fallthrough
CT: control target
= control target key end

     0   :  { %v1935_v22 = vmov 1966171168   ;;  %v286_v24 = vlaneseq  ;;  %s2386_s1 = inlined_call_operand.vmem [shape: bf16[2048,128], index: 1, kind: input, shape index: {}]   ;;  %s2387_s0 = inlined_call_operand.vmem [shape: bf16[2,2048], index: 0, kind: input, shape index: {}]   ;;  %s2388_s2 = inlined_call_operand.vmem [shape: f32[1,128], index: 2, kind: input, shape index: {}]   ;;  %s2389_s3 = inlined_call_operand.vmem [shape: f32[2,128], index: 3, kind: output, shape index: {}]  }
   0x1   :  { %v1801_v0 = vld [vmem:[%s2386_s1 + $0x40] sm:$0xff]   ;;  %v1805_v4 = vld [vmem:[%s2386_s1 + $0x48] sm:$0xff]   ;;  %v1809_v8 = vld [vmem:[%s2386_s1 + $0x50] sm:$0xff]   ;;  %v284_v23 = vunpack.c.l.s4 %v1935_v22 }
   0x2   :  { %v1802_v1 = vld [vmem:[%s2386_s1 + $0xc0] sm:$0xff]   ;;  %1624 = vmatprep.subr.bf16.mxu0 %v1801_v0  ;;  %v1806_v5 = vld [vmem:[%s2386_s1 + $0xc8] sm:$0xff]   ;;  %v1810_v9 = vld [vmem:[%s2386_s1 + $0xd0] sm:$0xff]   ;;  %v287_v30 = vshrl.u32 %v286_v24, 7 }
   0x3   :  { %v1803_v2 = vld [vmem:[%s2386_s1] sm:$0xff]   ;;  %1646 = vmatprep.subr.bf16.mxu1 %v1802_v1  ;;  %v1807_v6 = vld [vmem:[%s2386_s1 + $0x8] sm:$0xff]   ;;  %v1811_v10 = vld [vmem:[%s2386_s1 + $0x10] sm:$0xff]   ;;  %v285_v29 = vunpack.c.0.s8 %v284_v23 }
   0x4   :  { %v1804_v3 = vld [vmem:[%s2386_s1 + $0x80] sm:$0xff]   ;;  %1625 = vmatpush3.bf16.msra.mxu0 %v1803_v2  ;;  %v1808_v7 = vld [vmem:[%s2386_s1 + $0x88] sm:$0xff]   ;;  %v1812_v11 = vld [vmem:[%s2386_s1 + $0x90] sm:$0xff]  }
   0x5   :  { %1647 = vmatpush3.bf16.msra.mxu1 %v1804_v3  ;;  %1626 = vmatprep.subr.bf16.mxu0 %v1805_v4  ;;  %v1813_v12 = vld [vmem:[%s2386_s1 + $0x58] sm:$0xff]   ;;  %v1817_v16 = vld [vmem:[%s2386_s1 + $0x60] sm:$0xff]   ;;  %v1821_v20 = vld [vmem:[%s2386_s1 + $0x68] sm:$0xff]   ;;  %v2046_v35 = vsub.s32 %v285_v29, %v287_v30 }
   0x6   :  { %1648 = vmatprep.subr.bf16.mxu1 %v1806_v5  ;;  %v1814_v13 = vld [vmem:[%s2386_s1 + $0xd8] sm:$0xff]   ;;  %v1818_v17 = vld [vmem:[%s2386_s1 + $0xe0] sm:$0xff]   ;;  %v1822_v21 = vld [vmem:[%s2386_s1 + $0xe8] sm:$0xff]  }
   0x7   :  { %v1815_v14 = vld [vmem:[%s2386_s1 + $0x18] sm:$0xff]   ;;  %v1819_v18 = vld [vmem:[%s2386_s1 + $0x20] sm:$0xff]   ;;  %v1823_v25 = vld [vmem:[%s2386_s1 + $0x28] sm:$0xff]  }
   0x8   :  { %1627 = vmatpush3.bf16.msra.mxu0 %v1807_v6  ;;  %v1816_v15 = vld [vmem:[%s2386_s1 + $0x98] sm:$0xff]   ;;  %v1820_v19 = vld [vmem:[%s2386_s1 + $0xa0] sm:$0xff]   ;;  %v1824_v26 = vld [vmem:[%s2386_s1 + $0xa8] sm:$0xff]  }
   0x9   :  { %1649 = vmatpush3.bf16.msra.mxu1 %v1808_v7  ;;  %1628 = vmatprep.subr.bf16.mxu0 %v1809_v8  ;;  %v1825_v27 = vld [vmem:[%s2386_s1 + $0x70] sm:$0xff]   ;;  %v1829_v33 = vld [vmem:[%s2386_s1 + $0x78] sm:$0xff]   ;;  %v15_v38 = vld [vmem:[%s2387_s0] sm:$0xff] }
   0xa   :  { %1650 = vmatprep.subr.bf16.mxu1 %v1810_v9  ;;  %v1826_v28 = vld [vmem:[%s2386_s1 + $0xf0] sm:$0xff]   ;;  %v1830_v34 = vld [vmem:[%s2386_s1 + $0xf8] sm:$0xff]   ;;  %v282_v39 = vcombine.high %v15_v38, %v15_v38  ;;  %v289_v40 = vrot.slane %v15_v38, %v2046_v35  ;;  %v1835_v41 = vld [vmem:[%s2386_s1 + $0x140] sm:$0xff]  }
   0xb   :  { %v1827_v31 = vld [vmem:[%s2386_s1 + $0x30] sm:$0xff]   ;;  %v1831_v36 = vld [vmem:[%s2386_s1 + $0x38] sm:$0xff]   ;;  %v1836_v42 = vld [vmem:[%s2386_s1 + $0x1c0] sm:$0xff]  }
   0xc   :  { %1629 = vmatpush3.bf16.msra.mxu0 %v1811_v10  ;;  %v1828_v32 = vld [vmem:[%s2386_s1 + $0xb0] sm:$0xff]   ;;  %v1832_v37 = vld [vmem:[%s2386_s1 + $0xb8] sm:$0xff]   ;;  %v297_v43 = vcombine.high %v289_v40, %v289_v40  ;;  %v305_v44 = vrot.slane %v289_v40, %v2046_v35  ;;  %v2066_v45 = vrot.slane %v282_v39, %v2046_v35  ;;  %v1837_v47 = vld [vmem:[%s2386_s1 + $0x100] sm:$0xff]  }
   0xd   :  { %1651 = vmatpush3.bf16.msra.mxu1 %v1812_v11  ;;  %1630 = vmatprep.subr.bf16.mxu0 %v1813_v12  ;;  %v1839_v50 = vld [vmem:[%s2386_s1 + $0x148] sm:$0xff]   ;;  %v1838_v52 = vld [vmem:[%s2386_s1 + $0x180] sm:$0xff]   ;;  %v1843_v57 = vld [vmem:[%s2386_s1 + $0x150] sm:$0xff]  }
   0xe   :  { %1652 = vmatprep.subr.bf16.mxu1 %v1814_v13  ;;  %v319_v46 = vrot.slane %v297_v43, %v2046_v35  ;;  %v298_v48 = vcombine.high %v2066_v45, %v2066_v45  ;;  %v327_v49 = vcombine.high %v305_v44, %v305_v44  ;;  %v1840_v54 = vld [vmem:[%s2386_s1 + $0x1c8] sm:$0xff]   ;;  %v1844_v59 = vld [vmem:[%s2386_s1 + $0x1d0] sm:$0xff]   ;;  %v1847_v61 = vld [vmem:[%s2386_s1 + $0x158] sm:$0xff]  }
   0xf   :  { %v1841_v55 = vld [vmem:[%s2386_s1 + $0x108] sm:$0xff]   ;;  %v1845_v60 = vld [vmem:[%s2386_s1 + $0x110] sm:$0xff]   ;;  %v1848_v63 = vld [vmem:[%s2386_s1 + $0x1d8] sm:$0xff]  }
  0x10   :  { %1631 = vmatpush3.bf16.msra.mxu0 %v1815_v14  ;;  %1196 = vmatprep.mubr.bf16.mxu0 %v319_v46  ;;  %v329_v51 = vcombine.high %v319_v46, %v319_v46  ;;  %v326_v53 = vrot.slane %v298_v48, %v2046_v35  ;;  %v1842_v58 = vld [vmem:[%s2386_s1 + $0x188] sm:$0xff]   ;;  %v1846_v62 = vld [vmem:[%s2386_s1 + $0x190] sm:$0xff]   ;;  %v1849_v0 = vld [vmem:[%s2386_s1 + $0x118] sm:$0xff]  }
  0x11   :  { %1653 = vmatpush3.bf16.msra.mxu1 %v1816_v15  ;;  %1632 = vmatprep.subr.bf16.mxu0 %v1817_v16  ;;  %v1851_v1 = vld [vmem:[%s2386_s1 + $0x160] sm:$0xff]   ;;  %v1850_v2 = vld [vmem:[%s2386_s1 + $0x198] sm:$0xff]   ;;  %v2126_v5 = vld [vmem:[%s2387_s0 + $0x8] sm:$0xff] }
  0x12   :  { %1654 = vmatprep.subr.bf16.mxu1 %v1818_v17  ;;  %1236 = vmatprep.mubr.bf16.mxu1 %v329_v51  ;;  %v330_v56 = vcombine.high %v326_v53, %v326_v53  ;;  %v1852_v3 = vld [vmem:[%s2386_s1 + $0x1e0] sm:$0xff]   ;;  %v1855_v6 = vld [vmem:[%s2386_s1 + $0x168] sm:$0xff]   ;;  %v1859_v10 = vld [vmem:[%s2386_s1 + $0x170] sm:$0xff]   ;;  %v2148_v12 = vrot.slane %v2126_v5, %v2046_v35  ;;  %v331_v46 = vcombine.high %v2126_v5, %v2126_v5 }
  0x13   :  { %v1853_v4 = vld [vmem:[%s2386_s1 + $0x120] sm:$0xff]   ;;  %v1856_v8 = vld [vmem:[%s2386_s1 + $0x1e8] sm:$0xff]   ;;  %v1860_v13 = vld [vmem:[%s2386_s1 + $0x1f0] sm:$0xff]  }
  0x14   :  { %1633 = vmatpush3.bf16.msra.mxu0 %v1819_v18  ;;  %v1854_v7 = vld [vmem:[%s2386_s1 + $0x1a0] sm:$0xff]   ;;  %v1857_v9 = vld [vmem:[%s2386_s1 + $0x128] sm:$0xff]   ;;  %v1861_v14 = vld [vmem:[%s2386_s1 + $0x130] sm:$0xff]   ;;  %v346_v17 = vcombine.high %v2148_v12, %v2148_v12 }
  0x15   :  { %1655 = vmatpush3.bf16.msra.mxu1 %v1820_v19  ;;  %1634 = vmatprep.subr.bf16.mxu0 %v1821_v20  ;;  %v1858_v11 = vld [vmem:[%s2386_s1 + $0x1a8] sm:$0xff]   ;;  %v1863_v15 = vld [vmem:[%s2386_s1 + $0x178] sm:$0xff]   ;;  %v1862_v16 = vld [vmem:[%s2386_s1 + $0x1b0] sm:$0xff]   ;;  %v312_v20 = vrot.slane %v2066_v45, %v2046_v35 }
  0x16   :  { %1656 = vmatprep.subr.bf16.mxu1 %v1822_v21  ;;  %v1864_v18 = vld [vmem:[%s2386_s1 + $0x1f8] sm:$0xff]   ;;  %v1867_v21 = vld [vmem:[%s2386_s1 + $0x240] sm:$0xff]   ;;  %v368_v23 = vrot.slane %v346_v17, %v2046_v35  ;;  %v1872_v30 = vld [vmem:[%s2386_s1 + $0x2c8] sm:$0xff]  }
  0x17   :  { %v1865_v19 = vld [vmem:[%s2386_s1 + $0x138] sm:$0xff]   ;;  %v1868_v24 = vld [vmem:[%s2386_s1 + $0x2c0] sm:$0xff]   ;;  %v1878_v38 = vld [vmem:[%s2386_s1 + $0x290] sm:$0xff]  }
  0x18   :  { %1635 = vmatpush3.bf16.msra.mxu0 %v1823_v25  ;;  %v1866_v22 = vld [vmem:[%s2386_s1 + $0x1b8] sm:$0xff]   ;;  %v1869_v25 = vld [vmem:[%s2386_s1 + $0x200] sm:$0xff]   ;;  %v378_v29 = vcombine.high %v368_v23, %v368_v23  ;;  %v1887_v45 = vld [vmem:[%s2386_s1 + $0x268] sm:$0xff]  }
  0x19   :  { %1657 = vmatpush3.bf16.msra.mxu1 %v1824_v26  ;;  %1636 = vmatprep.subr.bf16.mxu0 %v1825_v27  ;;  %v328_v26 = vcombine.high %v312_v20, %v312_v20  ;;  %v1871_v27 = vld [vmem:[%s2386_s1 + $0x248] sm:$0xff]   ;;  %v1880_v39 = vld [vmem:[%s2386_s1 + $0x2d8] sm:$0xff]   ;;  %v1884_v43 = vld [vmem:[%s2386_s1 + $0x2e0] sm:$0xff]  }
  0x1a   :  { %1658 = vmatprep.subr.bf16.mxu1 %v1826_v28  ;;  %v1870_v28 = vld [vmem:[%s2386_s1 + $0x280] sm:$0xff]   ;;  %v1881_v40 = vld [vmem:[%s2386_s1 + $0x218] sm:$0xff]   ;;  %v1888_v48 = vld [vmem:[%s2386_s1 + $0x2e8] sm:$0xff]  }
  0x1b   :  { %v1890_v51 = vld [vmem:[%s2386_s1 + $0x2a8] sm:$0xff]   ;;  %v1914_v17 = vld [vmem:[%s2386_s1 + $0x398] sm:$0xff]  }
  0x1c   :  { %1637 = vmatpush3.bf16.msra.mxu0 %v1827_v31  ;;  %v1873_v31 = vld [vmem:[%s2386_s1 + $0x208] sm:$0xff]  }
  0x1d   :  { %1659 = vmatpush3.bf16.msra.mxu1 %v1828_v32  ;;  %1638 = vmatprep.subr.bf16.mxu0 %v1829_v33  ;;  %v1875_v32 = vld [vmem:[%s2386_s1 + $0x250] sm:$0xff]   ;;  %v1874_v33 = vld [vmem:[%s2386_s1 + $0x288] sm:$0xff]  }
  0x1e   :  { %1660 = vmatprep.subr.bf16.mxu1 %v1830_v34  ;;  %v1876_v34 = vld [vmem:[%s2386_s1 + $0x2d0] sm:$0xff]  }
  0x20   :  { %1639 = vmatpush3.bf16.msra.mxu0 %v1831_v36  ;;  %v1877_v36 = vld [vmem:[%s2386_s1 + $0x210] sm:$0xff]  }
  0x21   :  { %1661 = vmatpush3.bf16.msra.mxu1 %v1832_v37  ;;  %1668 = vmatprep.subr.bf16.mxu0 %v1835_v41  ;;  %v1879_v37 = vld [vmem:[%s2386_s1 + $0x258] sm:$0xff]   ;;  %v1883_v41 = vld [vmem:[%s2386_s1 + $0x260] sm:$0xff]  }
  0x22   :  { %1690 = vmatprep.subr.bf16.mxu1 %v1836_v42  ;;  %v1882_v42 = vld [vmem:[%s2386_s1 + $0x298] sm:$0xff]  }
  0x23   :  { %1197 = vmatmul.mubr.bf16.vlgmr.msra.gmra.mrb[0].mxu0 %v305_v44  ;;  %v1885_v44 = vld [vmem:[%s2386_s1 + $0x220] sm:$0xff]  }
  0x24   :  { %1669 = vmatpush3.bf16.msra.mxu0 %v1837_v47  ;;  %1237 = vmatmul.mubr.bf16.vlgmr.msra.gmra.mrb[0].mxu1 %v327_v49  ;;  %v1886_v47 = vld [vmem:[%s2386_s1 + $0x2a0] sm:$0xff]   ;;  %v1889_v49 = vld [vmem:[%s2386_s1 + $0x228] sm:$0xff]  }
  0x25   :  { %1670 = vmatprep.subr.bf16.mxu0 %v1839_v50  ;;  %1691 = vmatpush3.bf16.msra.mxu1 %v1838_v52  ;;  %v1891_v50 = vld [vmem:[%s2386_s1 + $0x270] sm:$0xff]   ;;  %v2254_v52 = vrot.slane %v331_v46, %v2046_v35 }
  0x26   :  { %1276 = vmatprep.mubr.bf16.mxu0 %v326_v53  ;;  %1692 = vmatprep.subr.bf16.mxu1 %v1840_v54  ;;  %v1892_v53 = vld [vmem:[%s2386_s1 + $0x2f0] sm:$0xff]  }
  0x27   :  { %1316 = vmatprep.mubr.bf16.mxu1 %v330_v56  ;;  %v1893_v54 = vld [vmem:[%s2386_s1 + $0x230] sm:$0xff]  }
  0x28   :  { %1671 = vmatpush3.bf16.msra.mxu0 %v1841_v55  ;;  %v1895_v55 = vld [vmem:[%s2386_s1 + $0x278] sm:$0xff]   ;;  %v1894_v56 = vld [vmem:[%s2386_s1 + $0x2b0] sm:$0xff]  }
  0x29   :  { %1672 = vmatprep.subr.bf16.mxu0 %v1843_v57  ;;  %1693 = vmatpush3.bf16.msra.mxu1 %v1842_v58  ;;  %v347_v57 = vcombine.high %v2254_v52, %v2254_v52  ;;  %v1896_v58 = vld [vmem:[%s2386_s1 + $0x2f8] sm:$0xff]  }
  0x2a   :  { %1694 = vmatprep.subr.bf16.mxu1 %v1844_v59  ;;  %v1897_v59 = vld [vmem:[%s2386_s1 + $0x238] sm:$0xff]  }
  0x2c   :  { %1673 = vmatpush3.bf16.msra.mxu0 %v1845_v60  ;;  %v354_v60 = vrot.slane %v2148_v12, %v2046_v35  ;;  %v1911_v12 = vld [vmem:[%s2386_s1 + $0x358] sm:$0xff]  }
  0x2d   :  { %1674 = vmatprep.subr.bf16.mxu0 %v1847_v61  ;;  %1695 = vmatpush3.bf16.msra.mxu1 %v1846_v62  ;;  %v1899_v61 = vld [vmem:[%s2386_s1 + $0x340] sm:$0xff]   ;;  %v1898_v62 = vld [vmem:[%s2386_s1 + $0x2b8] sm:$0xff]  }
  0x2e   :  { %1696 = vmatprep.subr.bf16.mxu1 %v1848_v63  ;;  %v375_v63 = vrot.slane %v347_v57, %v2046_v35 }
  0x30   :  { %1675 = vmatpush3.bf16.msra.mxu0 %v1849_v0  ;;  %v1900_v0 = vld [vmem:[%s2386_s1 + $0x3c0] sm:$0xff]   ;;  %v379_v5 = vcombine.high %v375_v63, %v375_v63 }
  0x31   :  { %1676 = vmatprep.subr.bf16.mxu0 %v1851_v1  ;;  %1697 = vmatpush3.bf16.msra.mxu1 %v1850_v2  ;;  %v1901_v1 = vld [vmem:[%s2386_s1 + $0x300] sm:$0xff]   ;;  %v376_v2 = vcombine.high %v354_v60, %v354_v60 }
  0x32   :  { %1698 = vmatprep.subr.bf16.mxu1 %v1852_v3  ;;  %v1903_v3 = vld [vmem:[%s2386_s1 + $0x348] sm:$0xff]  }
  0x34   :  { %1677 = vmatpush3.bf16.msra.mxu0 %v1853_v4  ;;  %v1902_v4 = vld [vmem:[%s2386_s1 + $0x380] sm:$0xff]  }
  0x35   :  { %1678 = vmatprep.subr.bf16.mxu0 %v1855_v6  ;;  %1699 = vmatpush3.bf16.msra.mxu1 %v1854_v7  ;;  %v1904_v6 = vld [vmem:[%s2386_s1 + $0x3c8] sm:$0xff]  }
  0x36   :  { %1700 = vmatprep.subr.bf16.mxu1 %v1856_v8  ;;  %v1905_v7 = vld [vmem:[%s2386_s1 + $0x308] sm:$0xff]   ;;  %v1907_v8 = vld [vmem:[%s2386_s1 + $0x350] sm:$0xff]  }
  0x38   :  { %1679 = vmatpush3.bf16.msra.mxu0 %v1857_v9  ;;  %v1906_v9 = vld [vmem:[%s2386_s1 + $0x388] sm:$0xff]  }
  0x39   :  { %1680 = vmatprep.subr.bf16.mxu0 %v1859_v10  ;;  %1701 = vmatpush3.bf16.msra.mxu1 %v1858_v11  ;;  %v1908_v10 = vld [vmem:[%s2386_s1 + $0x3d0] sm:$0xff]  }
  0x3a   :  { %1702 = vmatprep.subr.bf16.mxu1 %v1860_v13  ;;  %v1909_v11 = vld [vmem:[%s2386_s1 + $0x310] sm:$0xff]  }
  0x3b   :  { %v1910_v13 = vld [vmem:[%s2386_s1 + $0x390] sm:$0xff]  }
  0x3c   :  { %1681 = vmatpush3.bf16.msra.mxu0 %v1861_v14  ;;  %v1912_v14 = vld [vmem:[%s2386_s1 + $0x3d8] sm:$0xff]  }
  0x3d   :  { %1682 = vmatprep.subr.bf16.mxu0 %v1863_v15  ;;  %1703 = vmatpush3.bf16.msra.mxu1 %v1862_v16  ;;  %v1913_v15 = vld [vmem:[%s2386_s1 + $0x318] sm:$0xff]   ;;  %v1915_v16 = vld [vmem:[%s2386_s1 + $0x360] sm:$0xff]  }
  0x3e   :  { %1704 = vmatprep.subr.bf16.mxu1 %v1864_v18  ;;  %v1916_v18 = vld [vmem:[%s2386_s1 + $0x3e0] sm:$0xff]  }
  0x40   :  { %1683 = vmatpush3.bf16.msra.mxu0 %v1865_v19  ;;  %v1917_v19 = vld [vmem:[%s2386_s1 + $0x320] sm:$0xff]  }
  0x41   :  { %1712 = vmatprep.subr.bf16.mxu0 %v1867_v21  ;;  %1705 = vmatpush3.bf16.msra.mxu1 %v1866_v22  ;;  %v1918_v21 = vld [vmem:[%s2386_s1 + $0x3a0] sm:$0xff]   ;;  %v1920_v22 = vld [vmem:[%s2386_s1 + $0x3e8] sm:$0xff]  }
  0x42   :  { %1734 = vmatprep.subr.bf16.mxu1 %v1868_v24  ;;  %v1923_v24 = vld [vmem:[%s2386_s1 + $0x370] sm:$0xff]  }
  0x43   :  { %1277 = vmatmul.mubr.bf16.vlgmr.msra.gmra.mrb[4].mxu0 %v312_v20  ;;  %v1919_v20 = vld [vmem:[%s2386_s1 + $0x368] sm:$0xff]  }
  0x44   :  { %1713 = vmatpush3.bf16.msra.mxu0 %v1869_v25  ;;  %1356 = vmatprep.mubr.bf16.mxu0 %v368_v23  ;;  %v1921_v23 = vld [vmem:[%s2386_s1 + $0x328] sm:$0xff]  }
  0x45   :  { %1317 = vmatmul.mubr.bf16.vlgmr.msra.gmra.mrb[4].mxu1 %v328_v26  ;;  %1714 = vmatprep.subr.bf16.mxu0 %v1871_v27  ;;  %v1922_v25 = vld [vmem:[%s2386_s1 + $0x3a8] sm:$0xff]   ;;  %v1924_v26 = vld [vmem:[%s2386_s1 + $0x3f0] sm:$0xff]  }
  0x46   :  { %1735 = vmatpush3.bf16.msra.mxu1 %v1870_v28  ;;  %1396 = vmatprep.mubr.bf16.mxu1 %v378_v29  ;;  %v1925_v27 = vld [vmem:[%s2386_s1 + $0x330] sm:$0xff]   ;;  %v1927_v28 = vld [vmem:[%s2386_s1 + $0x378] sm:$0xff]  }
  0x47   :  { %1736 = vmatprep.subr.bf16.mxu1 %v1872_v30  ;;  %v1926_v29 = vld [vmem:[%s2386_s1 + $0x3b0] sm:$0xff]   ;;  %v1928_v30 = vld [vmem:[%s2386_s1 + $0x3f8] sm:$0xff]  }
  0x48   :  { %1715 = vmatpush3.bf16.msra.mxu0 %v1873_v31  ;;  %v1929_v31 = vld [vmem:[%s2386_s1 + $0x338] sm:$0xff]  }
  0x49   :  { %1716 = vmatprep.subr.bf16.mxu0 %v1875_v32  ;;  %v361_v32 = vrot.slane %v2254_v52, %v2046_v35 }
  0x4a   :  { %1737 = vmatpush3.bf16.msra.mxu1 %v1874_v33  ;;  %v1930_v33 = vld [vmem:[%s2386_s1 + $0x3b8] sm:$0xff]  }
  0x4b   :  { %1738 = vmatprep.subr.bf16.mxu1 %v1876_v34  ;;  %v377_v34 = vcombine.high %v361_v32, %v361_v32 }
  0x4c   :  { %1717 = vmatpush3.bf16.msra.mxu0 %v1877_v36 }
  0x4d   :  { %1718 = vmatprep.subr.bf16.mxu0 %v1879_v37  ;;  %v1495_v37 = vld [vmem:[%s2388_s2] ss:$0 sm:$0xff] }
  0x4e   :  { %1739 = vmatpush3.bf16.msra.mxu1 %v1878_v38 }
  0x4f   :  { %1740 = vmatprep.subr.bf16.mxu1 %v1880_v39 }
  0x50   :  { %1719 = vmatpush3.bf16.msra.mxu0 %v1881_v40 }
  0x51   :  { %1720 = vmatprep.subr.bf16.mxu0 %v1883_v41 }
  0x52   :  { %1741 = vmatpush3.bf16.msra.mxu1 %v1882_v42 }
  0x53   :  { %1742 = vmatprep.subr.bf16.mxu1 %v1884_v43 }
  0x54   :  { %1721 = vmatpush3.bf16.msra.mxu0 %v1885_v44 }
  0x55   :  { %1722 = vmatprep.subr.bf16.mxu0 %v1887_v45 }
  0x56   :  { %1743 = vmatpush3.bf16.msra.mxu1 %v1886_v47 }
  0x57   :  { %1744 = vmatprep.subr.bf16.mxu1 %v1888_v48 }
  0x58   :  { %1723 = vmatpush3.bf16.msra.mxu0 %v1889_v49 }
  0x59   :  { %1724 = vmatprep.subr.bf16.mxu0 %v1891_v50 }
  0x5a   :  { %1745 = vmatpush3.bf16.msra.mxu1 %v1890_v51 }
  0x5b   :  { %1746 = vmatprep.subr.bf16.mxu1 %v1892_v53 }
  0x5c   :  { %1725 = vmatpush3.bf16.msra.mxu0 %v1893_v54 }
  0x5d   :  { %1726 = vmatprep.subr.bf16.mxu0 %v1895_v55 }
  0x5e   :  { %1747 = vmatpush3.bf16.msra.mxu1 %v1894_v56 }
  0x5f   :  { %1748 = vmatprep.subr.bf16.mxu1 %v1896_v58 }
  0x60   :  { %1727 = vmatpush3.bf16.msra.mxu0 %v1897_v59 }
  0x61   :  { %1756 = vmatprep.subr.bf16.mxu0 %v1899_v61 }
  0x62   :  { %1749 = vmatpush3.bf16.msra.mxu1 %v1898_v62 }
  0x63   :  { %1357 = vmatmul.mubr.bf16.vlgmr.msra.gmra.mrb[8].mxu0 %v354_v60  ;;  %1778 = vmatprep.subr.bf16.mxu1 %v1900_v0 }
  0x64   :  { %1757 = vmatpush3.bf16.msra.mxu0 %v1901_v1  ;;  %1436 = vmatprep.mubr.bf16.mxu0 %v375_v63 }
  0x65   :  { %1397 = vmatmul.mubr.bf16.vlgmr.msra.gmra.mrb[8].mxu1 %v376_v2  ;;  %1758 = vmatprep.subr.bf16.mxu0 %v1903_v3 }
  0x66   :  { %1779 = vmatpush3.bf16.msra.mxu1 %v1902_v4  ;;  %1476 = vmatprep.mubr.bf16.mxu1 %v379_v5 }
  0x67   :  { %1780 = vmatprep.subr.bf16.mxu1 %v1904_v6 }
  0x68   :  { %1759 = vmatpush3.bf16.msra.mxu0 %v1905_v7 }
  0x69   :  { %1760 = vmatprep.subr.bf16.mxu0 %v1907_v8 }
  0x6a   :  { %1781 = vmatpush3.bf16.msra.mxu1 %v1906_v9 }
  0x6b   :  { %1782 = vmatprep.subr.bf16.mxu1 %v1908_v10 }
  0x6c   :  { %1761 = vmatpush3.bf16.msra.mxu0 %v1909_v11 }
  0x6d   :  { %1762 = vmatprep.subr.bf16.mxu0 %v1911_v12 }
  0x6e   :  { %1783 = vmatpush3.bf16.msra.mxu1 %v1910_v13 }
  0x6f   :  { %1784 = vmatprep.subr.bf16.mxu1 %v1912_v14 }
  0x70   :  { %1763 = vmatpush3.bf16.msra.mxu0 %v1913_v15 }
  0x71   :  { %1764 = vmatprep.subr.bf16.mxu0 %v1915_v16 }
  0x72   :  { %1785 = vmatpush3.bf16.msra.mxu1 %v1914_v17 }
  0x73   :  { %1786 = vmatprep.subr.bf16.mxu1 %v1916_v18 }
  0x74   :  { %1765 = vmatpush3.bf16.msra.mxu0 %v1917_v19 }
  0x75   :  { %1766 = vmatprep.subr.bf16.mxu0 %v1919_v20 }
  0x76   :  { %1787 = vmatpush3.bf16.msra.mxu1 %v1918_v21 }
  0x77   :  { %1788 = vmatprep.subr.bf16.mxu1 %v1920_v22 }
  0x78   :  { %1767 = vmatpush3.bf16.msra.mxu0 %v1921_v23 }
  0x79   :  { %1768 = vmatprep.subr.bf16.mxu0 %v1923_v24 }
  0x7a   :  { %1789 = vmatpush3.bf16.msra.mxu1 %v1922_v25 }
  0x7b   :  { %1790 = vmatprep.subr.bf16.mxu1 %v1924_v26 }
  0x7c   :  { %1769 = vmatpush3.bf16.msra.mxu0 %v1925_v27 }
  0x7d   :  { %1770 = vmatprep.subr.bf16.mxu0 %v1927_v28 }
  0x7e   :  { %1791 = vmatpush3.bf16.msra.mxu1 %v1926_v29 }
  0x7f   :  { %1792 = vmatprep.subr.bf16.mxu1 %v1928_v30 }
  0x80   :  { %1771 = vmatpush3.bf16.msra.mxu0 %v1929_v31 }
  0x82   :  { %1793 = vmatpush3.bf16.msra.mxu1 %v1930_v33 }
  0x83   :  { %1437 = vmatmul.mubr.bf16.vlgmr.msra.gmra.mrb[12].mxu0 %v361_v32 }
  0x85   :  { %1477 = vmatmul.mubr.bf16.vlgmr.msra.gmra.mrb[12].mxu1 %v377_v34 }
  0xf6   :  { %v1640_v36 = vpop.f32.mrb[0].mxu0 }
  0xf7   :  { %v1641_v38 = vpop.f32.mrb[1].mxu0  ;;  %v1662_v39 = vpop.f32.mrb[0].mxu1 }
  0xf8   :  { %v1642_v40 = vadd.f32 %v1641_v38, %v1640_v36  ;;  %v1643_v35 = vpop.f32.mrb[2].mxu0  ;;  %v1663_v41 = vpop.f32.mrb[1].mxu1 }
  0xf9   :  { %v1644_v42 = vpop.f32.mrb[3].mxu0  ;;  %v1664_v44 = vadd.f32 %v1663_v41, %v1662_v39  ;;  %v1665_v45 = vpop.f32.mrb[2].mxu1 }
  0xfa   :  { %v1199_v43 = vadd.f32 %v1642_v40, %v1495_v37  ;;  %v1666_v46 = vpop.f32.mrb[3].mxu1 }
  0xfc   :  { %v1239_v47 = vadd.f32 %v1664_v44, %v1199_v43 }
 0x116   :  { %v1684_v48 = vpop.f32.mrb[4].mxu0 }
 0x117   :  { %v1685_v49 = vpop.f32.mrb[5].mxu0 }
 0x118   :  { %v1706_v50 = vpop.f32.mrb[4].mxu1  ;;  %v1686_v51 = vadd.f32 %v1685_v49, %v1684_v48  ;;  %v1687_v52 = vpop.f32.mrb[6].mxu0 }
 0x119   :  { %v1707_v53 = vpop.f32.mrb[5].mxu1  ;;  %v1688_v54 = vpop.f32.mrb[7].mxu0 }
 0x11a   :  { %v1279_v55 = vadd.f32 %v1686_v51, %v1239_v47  ;;  %v1708_v56 = vadd.f32 %v1707_v53, %v1706_v50  ;;  %v1709_v57 = vpop.f32.mrb[6].mxu1 }
 0x11b   :  { %v1710_v58 = vpop.f32.mrb[7].mxu1 }
 0x11c   :  { %v1319_v59 = vadd.f32 %v1708_v56, %v1279_v55 }
 0x136   :  { %v1728_v60 = vpop.f32.mrb[8].mxu0 }
 0x137   :  { %v1729_v61 = vpop.f32.mrb[9].mxu0 }
 0x138   :  { %v1750_v62 = vpop.f32.mrb[8].mxu1  ;;  %v1730_v63 = vadd.f32 %v1729_v61, %v1728_v60  ;;  %v1731_v0 = vpop.f32.mrb[10].mxu0 }
 0x139   :  { %v1751_v1 = vpop.f32.mrb[9].mxu1  ;;  %v1732_v2 = vpop.f32.mrb[11].mxu0 }
 0x13a   :  { %v1359_v3 = vadd.f32 %v1730_v63, %v1319_v59  ;;  %v1752_v4 = vadd.f32 %v1751_v1, %v1750_v62  ;;  %v1753_v5 = vpop.f32.mrb[10].mxu1 }
 0x13b   :  { %v1754_v6 = vpop.f32.mrb[11].mxu1 }
 0x13c   :  { %v1399_v7 = vadd.f32 %v1752_v4, %v1359_v3 }
 0x156   :  { %v1772_v8 = vpop.f32.mrb[12].mxu0 }
 0x157   :  { %v1773_v9 = vpop.f32.mrb[13].mxu0 }
 0x158   :  { %v1794_v10 = vpop.f32.mrb[12].mxu1  ;;  %v1774_v11 = vadd.f32 %v1773_v9, %v1772_v8  ;;  %v1775_v12 = vpop.f32.mrb[14].mxu0 }
 0x159   :  { %v1795_v13 = vpop.f32.mrb[13].mxu1  ;;  %v1776_v14 = vpop.f32.mrb[15].mxu0 }
 0x15a   :  { %v1439_v15 = vadd.f32 %v1774_v11, %v1399_v7  ;;  %v1796_v16 = vadd.f32 %v1795_v13, %v1794_v10  ;;  %v1797_v17 = vpop.f32.mrb[14].mxu1 }
 0x15b   :  { %v1798_v18 = vpop.f32.mrb[15].mxu1 }
 0x15c   :  { %v1479_v19 = vadd.f32 %v1796_v16, %v1439_v15 }
 0x15e   :  { %v1484_v20 = vsub.f32 0.0, %v1479_v19 }
 0x160   :  { %v1485_v21 = vmul.f32 1.442695, %v1484_v20 }
 0x162   :  { %1931 = vpow2.f32 %v1485_v21 }
 0x16c   :  { %v1932_v22 = vpop.eup %1931 }
 0x16d   :  { %v1487_v23 = vadd.f32 1.0, %v1932_v22 }
 0x16f   :  { %1933 = vrcp.f32 %v1487_v23 }
 0x179   :  { %v1934_v24 = vpop.eup %1933 }
 0x17a   :  { %1490 = vst [vmem:[%s2389_s3] sm:$0x3] %v1934_v24 }

</bundles_post_ra>
